<compile_context>
chip_gen: v6e
topology: v6e:2x2x1
jax: 0.10.0
libtpu: 0.0.40
codegen_flags: <defaults>
</compile_context>

<pallas_src>
import math
import functools

import numpy as np
import jax
import jax.numpy as jnp
from jax.experimental import pallas as pl
from jax.experimental.pallas import tpu as pltpu

EPS = 1e-5  # nn.LayerNorm default eps


# --------------------------- static permutation helpers ----------------------

def _window_permutation(H, W, window_size):
    """perm such that windows_flat[m] = x_patches[perm[m]] (m = w*S + p)."""
    nw = H // window_size
    S = window_size * window_size
    perm = np.zeros(H * W, dtype=np.int64)
    for w in range(nw * nw):
        wi, wj = w // nw, w % nw
        for p in range(S):
            ki, kj = p // window_size, p % window_size
            i = wi * window_size + ki
            j = wj * window_size + kj
            perm[w * S + p] = i * W + j
    return perm


def _shift_permutation(H, W, window_size, shift):
    """perm such that shifted_flat[m] = win_flat[perm[m]] for the reference
    shift_window(window2image -> roll(+shift,+shift) -> re-window)."""
    nw = H // window_size
    S = window_size * window_size

    def win_index(i, j):
        return ((i // window_size) * nw + (j // window_size)) * S \
            + (i % window_size) * window_size + (j % window_size)

    perm = np.zeros(H * W, dtype=np.int64)
    for m in range(H * W):
        w, p = m // S, m % S
        wi, wj = w // nw, w % nw
        ki, kj = p // window_size, p % window_size
        i = wi * window_size + ki
        j = wj * window_size + kj
        perm[m] = win_index((i - shift) % H, (j - shift) % W)
    return perm


def _build_static_operands(H, W, window_size, num_head, batch):
    """Precompute (host-side, all static):
      perms: (2, BN, BN)  [P_win, P_shift @ P_shift] block-diag over batch
      masks: (2, HBN, HBN) additive masks (0 / -1e9) restricting attention to
             same head, same batch element and same (possibly shifted) window.
    """
    num_patch = H * W
    S = window_size * window_size
    nW = (H // window_size) * (W // window_size)
    BN = batch * num_patch

    perm_win = _window_permutation(H, W, window_size)
    perm_shift = _shift_permutation(H, W, window_size, window_size // 2)
    perm2 = perm_shift[perm_shift]          # shift applied twice (reference "un-shift" quirk)

    inv_win = np.argsort(perm_win)          # patch -> window-flat position
    inv_shift = np.argsort(perm_shift)      # patch -> shifted-window-flat position

    def batched_perm(perm):
        permb = (np.arange(batch)[:, None] * num_patch + perm[None, :]).reshape(-1)
        P = np.zeros((BN, BN), np.float32)
        P[np.arange(BN), permb] = 1.0       # (P @ Y)[r] = Y[permb[r]]
        return P

    def blocked_mask(group):                # group[p] = window id of patch p
        g = (np.arange(batch)[:, None] * nW + group[None, :]).reshape(-1)        # (BN,)
        g = (np.arange(num_head)[:, None] * (batch * nW) + g[None, :]).reshape(-1)  # (H*BN,)
        return np.where(g[:, None] == g[None, :], 0.0, -1e9).astype(np.float32)

    perms = np.stack([batched_perm(perm_win), batched_perm(perm2)])
    masks = np.stack([blocked_mask(inv_win // S), blocked_mask(inv_shift // S)])
    return jnp.asarray(perms), jnp.asarray(masks)


def _pack_vectors(p, D):
    """Pack the 14 tiny (1,len) bias / LayerNorm vectors into one (14, 4D) array."""
    order = [
        p["mhsa1"]["bqkv"], p["mhsa1"]["bo"],
        p["ln2"][0], p["ln2"][1], p["wsma"][1], p["wsma"][3],
        p["ln3"][0], p["ln3"][1],
        p["mhsa2"]["bqkv"], p["mhsa2"]["bo"],
        p["ln4"][0], p["ln4"][1], p["swsma"][1], p["swsma"][3],
    ]
    Lmax = 4 * D
    rows = [jnp.pad(jnp.asarray(v, jnp.float32).reshape(1, -1),
                    ((0, 0), (0, Lmax - v.size))) for v in order]
    return jnp.concatenate(rows, axis=0)    # (14, 4D)


# --------------------------- fused Pallas kernel ------------------------------

def _swin_block_kernel(x_ref, perm_ref, mask_ref, wqkv_ref, wo_ref,
                       w1_ref, w2_ref, vec_ref, o_ref, *, num_head, model_dim):
    D = model_dim
    hd = D // num_head
    scale = 1.0 / math.sqrt(hd)

    # x arrives feature-major (D, BN): lane-dense, one unmasked (8,128) tile.
    # Compute runs row-major (BN, D) after a single cheap in-kernel transpose.
    x = x_ref[...].astype(jnp.float32).T                 # (BN, D)
    BN = x.shape[0]

    vecs = vec_ref[...]                                  # (14, 4D)

    def row(j, length):
        return vecs[j:j + 1, 0:length]                   # (1, length)

    bqkv1, bo1 = row(0, 3 * D), row(1, D)
    g2, b2 = row(2, D), row(3, D)
    bb1, bb2 = row(4, 4 * D), row(5, D)
    g3, b3 = row(6, D), row(7, D)
    bqkv2, bo2 = row(8, 3 * D), row(9, D)
    g4, b4 = row(10, D), row(11, D)
    b1s, b2s = row(12, 4 * D), row(13, D)

    # 0/1 column masks selecting each head's feature columns (trace-time consts).
    cidx = jax.lax.broadcasted_iota(jnp.int32, (1, D), 1)
    head_col_masks = [((cidx >= h * hd) & (cidx < (h + 1) * hd)).astype(jnp.float32)
                      for h in range(num_head)]

    def layernorm(v, g, b):
        m = jnp.mean(v, axis=-1, keepdims=True)
        var = jnp.mean((v - m) ** 2, axis=-1, keepdims=True)
        return (v - m) * jax.lax.rsqrt(var + EPS) * g + b

    def mhsa(xin, wqkv, bqkv, wo, bo, mask_blk):
        # xin: (BN, D). All batches, windows AND heads in one score matmul:
        # heads are merged block-diagonally (row block h carries head h, other
        # heads' feature columns zeroed); mask_blk restricts attention to the
        # same head / same window / same batch element.
        qkv = jnp.dot(xin, wqkv, preferred_element_type=jnp.float32) + bqkv   # (BN, 3D)
        q, k, v = qkv[:, 0:D], qkv[:, D:2 * D], qkv[:, 2 * D:3 * D]
        qb = jnp.concatenate([q * m for m in head_col_masks], axis=0)          # (H*BN, D)
        kb = jnp.concatenate([k * m for m in head_col_masks], axis=0)
        vb = jnp.concatenate([v * m for m in head_col_masks], axis=0)
        s = jnp.dot(qb, kb.T, preferred_element_type=jnp.float32) * scale + mask_blk
        s = s - jnp.max(s, axis=-1, keepdims=True)
        e = jnp.exp(s)
        p = e * pl.reciprocal(jnp.sum(e, axis=-1, keepdims=True), approx=True)
        ctx = jnp.dot(p, vb, preferred_element_type=jnp.float32)               # (H*BN, D)
        out = jnp.dot(ctx, wo, preferred_element_type=jnp.float32)             # (H*BN, D)
        acc = out[0:BN]
        for h in range(1, num_head):
            acc = acc + out[h * BN:(h + 1) * BN]
        return acc + bo                                                        # (BN, D)

    def ln_mlp_residual(v, g, b, w1, b1, w2, b2_):
        h0 = layernorm(v, g, b)
        h1 = jnp.dot(h0, w1, preferred_element_type=jnp.float32) + b1
        h2 = jnp.dot(h1, w2, preferred_element_type=jnp.float32) + b2_
        return v + h2          # reference has no activation between mlp1/mlp2

    # layer_noem1(input) is computed but never consumed by the reference — skipped.

    # ---- W-MSA: window partition folded into mask_ref[0]; only the attention
    # OUTPUT is permuted to window order (the reference residual quirk adds
    # window-ordered attention output to the patch-ordered input).
    attn1 = mhsa(x, wqkv_ref[0], bqkv1, wo_ref[0], bo1, mask_ref[0])
    w_msa = x + jnp.dot(perm_ref[0], attn1, preferred_element_type=jnp.float32)
    output1 = ln_mlp_residual(w_msa, g2, b2, w1_ref[0], bb1, w2_ref[0], bb2)

    # ---- SW-MSA: cyclic shift folded into mask_ref[1]; the shift and the
    # reference's "+shift again" un-shift collapse into the single output
    # permutation perm_ref[1] = P_shift @ P_shift.  The reference builds but
    # never applies its shifted-window additive mask, so it is omitted too.
    input2 = layernorm(output1, g3, b3)
    attn2 = mhsa(input2, wqkv_ref[1], bqkv2, wo_ref[1], bo2, mask_ref[1])
    sw_msa = output1 + jnp.dot(perm_ref[1], attn2, preferred_element_type=jnp.float32)
    output2 = ln_mlp_residual(sw_msa, g4, b4, w1_ref[1], b1s, w2_ref[1], b2s)

    # store feature-major: one lane-dense unmasked (8, BN) tile
    o_ref[...] = output2.T.astype(o_ref.dtype)


# --------------------------- Pallas wrapper -----------------------------------

def swin_block_forward_pallas(x, params, window_size=4, num_head=2):
    bs, num_patch, D = x.shape
    S = window_size * window_size
    num_window = num_patch // S
    H = int(math.isqrt(num_patch))
    BN = bs * num_patch    # batch fully folded into one kernel invocation

    perms, masks = _build_static_operands(H, H, window_size, num_head, bs)

    p = params
    wqkv = jnp.stack([p["mhsa1"]["wqkv"], p["mhsa2"]["wqkv"]])   # (2, D, 3D)
    wo = jnp.stack([p["mhsa1"]["wo"], p["mhsa2"]["wo"]])         # (2, D, D)
    w1 = jnp.stack([p["wsma"][0], p["swsma"][0]])                # (2, D, 4D)
    w2 = jnp.stack([p["wsma"][2], p["swsma"][2]])                # (2, 4D, D)
    vecs = _pack_vectors(p, D)                                   # (14, 4D)

    # feature-major, lane-dense I/O slab (layout plumbing only)
    x_fm = x.reshape(BN, D).T                                    # (D, BN)

    kernel = functools.partial(_swin_block_kernel, num_head=num_head, model_dim=D)

    operands = (x_fm, perms, masks, wqkv, wo, w1, w2, vecs)
    in_specs = [pl.BlockSpec((D, BN), lambda b: (0, 0))]
    for a in operands[1:]:        # weights / perms / masks stay whole (constant index)
        nz = (0,) * a.ndim
        in_specs.append(pl.BlockSpec(a.shape, lambda b, nz=nz: nz))

    out_fm = pl.pallas_call(
        kernel,
        out_shape=jax.ShapeDtypeStruct((D, BN), x.dtype),
        grid=(1,),
        in_specs=in_specs,
        out_specs=pl.BlockSpec((D, BN), lambda b: (0, 0)),
        compiler_params=pltpu.CompilerParams(dimension_semantics=("arbitrary",)),
    )(*operands)

    return out_fm.T.reshape(bs, num_window, S, D)


# --------------------------- window / shift glue (reference only) -------------

def image_to_windows(x, window_size):
    bs, num_patch, D = x.shape
    H = int(math.isqrt(num_patch))
    nw = H // window_size
    img = x.transpose(0, 2, 1).reshape(bs, D, H, H)
    win = img.reshape(bs, D, nw, window_size, nw, window_size)
    win = win.transpose(0, 2, 4, 3, 5, 1)
    return win.reshape(bs * nw * nw, window_size * window_size, D)


def windows_to_image(w, window_size):
    bs, num_window, S, D = w.shape
    nw = int(math.isqrt(num_window))
    H = nw * window_size
    img = w.reshape(bs, nw, nw, window_size, window_size, D)
    img = img.transpose(0, 1, 3, 2, 4, 5).reshape(bs, H * H, D)
    return img.transpose(0, 2, 1).reshape(bs, D, H, H)


def shift_window(w, window_size, shift_size):
    bs, num_window, S, D = w.shape
    nw = int(math.isqrt(num_window))
    img = windows_to_image(w, window_size)
    rolled = jnp.roll(img, shift=(shift_size, shift_size), axis=(2, 3))
    out = rolled.reshape(bs, D, nw, window_size, nw, window_size)
    out = out.transpose(0, 2, 4, 3, 5, 1)
    return out.reshape(bs, num_window, S, D)


# --------------------------- pure-jnp reference (for checking) ----------------

def _ln_ref(x, g, b):
    m = jnp.mean(x, -1, keepdims=True)
    v = jnp.mean((x - m) ** 2, -1, keepdims=True)
    return (x - m) / jnp.sqrt(v + EPS) * g + b


def _mhsa_ref(x, p, num_head):
    bs, S, D = x.shape
    hd = D // num_head
    qkv = x @ p["wqkv"] + p["bqkv"]
    q, k, v = jnp.split(qkv, 3, axis=-1)

    def to_heads(t):
        return t.reshape(bs, S, num_head, hd).transpose(0, 2, 1, 3).reshape(bs * num_head, S, hd)

    q, k, v = to_heads(q), to_heads(k), to_heads(v)
    attn = jax.nn.softmax(jnp.einsum("bsd,btd->bst", q, k) / math.sqrt(hd), axis=-1)
    out = jnp.einsum("bst,btd->bsd", attn, v)
    out = out.reshape(bs, num_head, S, hd).transpose(0, 2, 1, 3).reshape(bs, S, D)
    return out @ p["wo"] + p["bo"]


def swin_block_forward_reference(x, params, window_size=4, num_head=2):
    bs, num_patch, D = x.shape
    S = window_size * window_size
    num_window = num_patch // S

    windows = image_to_windows(x, window_size)
    attn1 = _mhsa_ref(windows, params["mhsa1"], num_head)
    w_msa = x + attn1.reshape(bs, num_patch, D)

    g2, b2 = params["ln2"]
    w1, bb1, w2, bb2 = params["wsma"]
    output1 = (_ln_ref(w_msa, g2, b2) @ w1 + bb1) @ w2 + bb2 + w_msa

    g3, b3 = params["ln3"]
    input2 = _ln_ref(output1, g3, b3).reshape(bs, num_window, S, D)

    shifted = shift_window(input2, window_size, window_size // 2)
    attn2 = _mhsa_ref(shifted.reshape(bs * num_window, S, D), params["mhsa2"], num_head)
    sw_out = shift_window(attn2.reshape(bs, num_window, S, D), window_size, window_size // 2)
    sw_msa = output1 + sw_out.reshape(bs, num_patch, D)

    g4, b4 = params["ln4"]
    w1s, b1s, w2s, b2s = params["swsma"]
    output2 = (_ln_ref(sw_msa, g4, b4) @ w1s + b1s) @ w2s + b2s + sw_msa
    return output2.reshape(bs, num_window, S, D)


# --------------------------- parameter init -----------------------------------

def init_params(key, model_dim):
    D = model_dim
    keys = jax.random.split(key, 12)

    def lin(k, din, dout, scale=0.05):
        kw, kb = jax.random.split(k)
        return (jax.random.normal(kw, (din, dout), jnp.float32) * scale,
                jax.random.normal(kb, (1, dout), jnp.float32) * scale)

    def ln():
        return jnp.ones((1, D), jnp.float32), jnp.zeros((1, D), jnp.float32)

    def mhsa(k):
        k1, k2 = jax.random.split(k)
        wqkv, bqkv = lin(k1, D, 3 * D)
        wo, bo = lin(k2, D, D)
        return {"wqkv": wqkv, "bqkv": bqkv, "wo": wo, "bo": bo}

    w1, b1 = lin(keys[0], D, 4 * D)
    w2, b2 = lin(keys[1], 4 * D, D)
    w1s, b1s = lin(keys[2], D, 4 * D)
    w2s, b2s = lin(keys[3], 4 * D, D)

    return {
        "ln1": ln(),  # present in the module but never consumed by forward()
        "ln2": ln(), "ln3": ln(), "ln4": ln(),
        "wsma": (w1, b1, w2, b2),
        "swsma": (w1s, b1s, w2s, b2s),
        "mhsa1": mhsa(keys[4]),
        "mhsa2": mhsa(keys[5]),
    }


# --------------------------- main ----------------------------------------------

if __name__ == "__main__":
    model_dim = 8
    window_size = 4
    num_head = 2
    bs = 2
    H = W = 8                       # image 8x8 -> num_patch = 64, num_window = 4
    num_patch = H * W

    key = jax.random.PRNGKey(0)
    kx, kp = jax.random.split(key)
    x = jax.random.normal(kx, (bs, num_patch, model_dim), jnp.float32)
    params = init_params(kp, model_dim)

    out = swin_block_forward_pallas(x, params, window_size=window_size, num_head=num_head)
    out = jax.block_until_ready(out)

    with jax.default_matmul_precision("float32"):
        ref = swin_block_forward_reference(x, params, window_size=window_size, num_head=num_head)
    ref = jax.block_until_ready(ref)

    assert out.shape == (bs, num_patch // (window_size * window_size),
                         window_size * window_size, model_dim)
    assert jnp.allclose(out, ref, atol=2e-3, rtol=2e-3), "Pallas output mismatch vs reference"

    print("KERNEL_OK")
</pallas_src>

<mosaic_0001>
module attributes {stable_mosaic.version = 11 : i64} {
  func.func @_swin_block_kernel(%arg0: i32, %arg1: memref<8x128xf32, #tpu.memory_space<vmem>>, %arg2: memref<2x128x128xf32, #tpu.memory_space<vmem>>, %arg3: memref<2x256x256xf32, #tpu.memory_space<vmem>>, %arg4: memref<2x8x24xf32, #tpu.memory_space<vmem>>, %arg5: memref<2x8x8xf32, #tpu.memory_space<vmem>>, %arg6: memref<2x8x32xf32, #tpu.memory_space<vmem>>, %arg7: memref<2x32x8xf32, #tpu.memory_space<vmem>>, %arg8: memref<14x32xf32, #tpu.memory_space<vmem>>, %arg9: memref<8x128xf32, #tpu.memory_space<vmem>>) attributes {dimension_semantics = [#tpu.dimension_semantics<arbitrary>], iteration_bounds = array<i64: 1>, scalar_prefetch = 0 : i64, scratch_operands = 0 : i64, tpu.core_type = #tpu.core_type<tc>, window_params = [{pipeline_mode = #tpu.pipeline_mode<synchronous>, transform_indices = @transform_0, window_bounds = array<i64: 8, 128>}, {pipeline_mode = #tpu.pipeline_mode<synchronous>, transform_indices = @transform_1, window_bounds = array<i64: 2, 128, 128>}, {pipeline_mode = #tpu.pipeline_mode<synchronous>, transform_indices = @transform_2, window_bounds = array<i64: 2, 256, 256>}, {pipeline_mode = #tpu.pipeline_mode<synchronous>, transform_indices = @transform_3, window_bounds = array<i64: 2, 8, 24>}, {pipeline_mode = #tpu.pipeline_mode<synchronous>, transform_indices = @transform_4, window_bounds = array<i64: 2, 8, 8>}, {pipeline_mode = #tpu.pipeline_mode<synchronous>, transform_indices = @transform_5, window_bounds = array<i64: 2, 8, 32>}, {pipeline_mode = #tpu.pipeline_mode<synchronous>, transform_indices = @transform_6, window_bounds = array<i64: 2, 32, 8>}, {pipeline_mode = #tpu.pipeline_mode<synchronous>, transform_indices = @transform_7, window_bounds = array<i64: 14, 32>}, {pipeline_mode = #tpu.pipeline_mode<synchronous>, transform_indices = @transform_8, window_bounds = array<i64: 8, 128>}]} {
    %c0 = arith.constant 0 : index
    %c0_0 = arith.constant 0 : index
    %0 = vector.load %arg1[%c0, %c0_0] : memref<8x128xf32, #tpu.memory_space<vmem>>, vector<8x128xf32>
    %1 = tpu.transpose %0, [1, 0] : vector<8x128xf32> -> vector<128x8xf32>
    %c0_1 = arith.constant 0 : index
    %c0_2 = arith.constant 0 : index
    %2 = vector.load %arg8[%c0_1, %c0_2] : memref<14x32xf32, #tpu.memory_space<vmem>>, vector<14x32xf32>
    %3 = vector.extract_strided_slice %2 {offsets = [0, 0], sizes = [1, 24], strides = [1, 1]} : vector<14x32xf32> to vector<1x24xf32>
    %4 = vector.extract_strided_slice %2 {offsets = [1, 0], sizes = [1, 8], strides = [1, 1]} : vector<14x32xf32> to vector<1x8xf32>
    %5 = vector.extract_strided_slice %2 {offsets = [2, 0], sizes = [1, 8], strides = [1, 1]} : vector<14x32xf32> to vector<1x8xf32>
    %6 = vector.extract_strided_slice %2 {offsets = [3, 0], sizes = [1, 8], strides = [1, 1]} : vector<14x32xf32> to vector<1x8xf32>
    %7 = vector.extract_strided_slice %2 {offsets = [4, 0], sizes = [1, 32], strides = [1, 1]} : vector<14x32xf32> to vector<1x32xf32>
    %8 = vector.extract_strided_slice %2 {offsets = [5, 0], sizes = [1, 8], strides = [1, 1]} : vector<14x32xf32> to vector<1x8xf32>
    %9 = vector.extract_strided_slice %2 {offsets = [6, 0], sizes = [1, 8], strides = [1, 1]} : vector<14x32xf32> to vector<1x8xf32>
    %10 = vector.extract_strided_slice %2 {offsets = [7, 0], sizes = [1, 8], strides = [1, 1]} : vector<14x32xf32> to vector<1x8xf32>
    %11 = vector.extract_strided_slice %2 {offsets = [8, 0], sizes = [1, 24], strides = [1, 1]} : vector<14x32xf32> to vector<1x24xf32>
    %12 = vector.extract_strided_slice %2 {offsets = [9, 0], sizes = [1, 8], strides = [1, 1]} : vector<14x32xf32> to vector<1x8xf32>
    %13 = vector.extract_strided_slice %2 {offsets = [10, 0], sizes = [1, 8], strides = [1, 1]} : vector<14x32xf32> to vector<1x8xf32>
    %14 = vector.extract_strided_slice %2 {offsets = [11, 0], sizes = [1, 8], strides = [1, 1]} : vector<14x32xf32> to vector<1x8xf32>
    %15 = vector.extract_strided_slice %2 {offsets = [12, 0], sizes = [1, 32], strides = [1, 1]} : vector<14x32xf32> to vector<1x32xf32>
    %16 = vector.extract_strided_slice %2 {offsets = [13, 0], sizes = [1, 8], strides = [1, 1]} : vector<14x32xf32> to vector<1x8xf32>
    %17 = tpu.iota {dimensions = array<i32: 1>} : vector<1x8xi32>
    %c0_i32 = arith.constant 0 : i32
    %18 = vector.broadcast %c0_i32 : i32 to vector<1x8xi32>
    %19 = arith.cmpi sge, %17, %18 : vector<1x8xi32>
    %c4_i32 = arith.constant 4 : i32
    %20 = vector.broadcast %c4_i32 : i32 to vector<1x8xi32>
    %21 = arith.cmpi slt, %17, %20 : vector<1x8xi32>
    %22 = arith.andi %19, %21 : vector<1x8xi1>
    %23 = arith.extui %22 : vector<1x8xi1> to vector<1x8xi32>
    %24 = arith.sitofp %23 : vector<1x8xi32> to vector<1x8xf32>
    %c4_i32_3 = arith.constant 4 : i32
    %25 = vector.broadcast %c4_i32_3 : i32 to vector<1x8xi32>
    %26 = arith.cmpi sge, %17, %25 : vector<1x8xi32>
    %c8_i32 = arith.constant 8 : i32
    %27 = vector.broadcast %c8_i32 : i32 to vector<1x8xi32>
    %28 = arith.cmpi slt, %17, %27 : vector<1x8xi32>
    %29 = arith.andi %26, %28 : vector<1x8xi1>
    %30 = arith.extui %29 : vector<1x8xi1> to vector<1x8xi32>
    %31 = arith.sitofp %30 : vector<1x8xi32> to vector<1x8xf32>
    %c0_4 = arith.constant 0 : index
    %c0_5 = arith.constant 0 : index
    %c0_6 = arith.constant 0 : index
    %32 = vector.load %arg4[%c0_4, %c0_5, %c0_6] : memref<2x8x24xf32, #tpu.memory_space<vmem>>, vector<1x8x24xf32>
    %33 = vector.shape_cast %32 : vector<1x8x24xf32> to vector<8x24xf32>
    %c0_7 = arith.constant 0 : index
    %c0_8 = arith.constant 0 : index
    %c0_9 = arith.constant 0 : index
    %34 = vector.load %arg5[%c0_7, %c0_8, %c0_9] : memref<2x8x8xf32, #tpu.memory_space<vmem>>, vector<1x8x8xf32>
    %35 = vector.shape_cast %34 : vector<1x8x8xf32> to vector<8x8xf32>
    %c0_10 = arith.constant 0 : index
    %c0_11 = arith.constant 0 : index
    %c0_12 = arith.constant 0 : index
    %36 = vector.load %arg3[%c0_10, %c0_11, %c0_12] : memref<2x256x256xf32, #tpu.memory_space<vmem>>, vector<1x256x256xf32>
    %37 = vector.shape_cast %36 : vector<1x256x256xf32> to vector<256x256xf32>
    %cst = arith.constant dense<0.000000e+00> : vector<128x24xf32>
    %38 = tpu.matmul %1, %33, %cst {dimension_numbers = #tpu.dot_dimension_numbers<[1], [0], [0], [1], [0, 0, 1, 1], [], []>} : vector<128x8xf32>, vector<8x24xf32>, vector<128x24xf32> -> vector<128x24xf32>
    %39 = vector.broadcast %3 : vector<1x24xf32> to vector<128x24xf32>
    %40 = arith.addf %38, %39 : vector<128x24xf32>
    %41 = vector.extract_strided_slice %40 {offsets = [0, 0], sizes = [128, 8], strides = [1, 1]} : vector<128x24xf32> to vector<128x8xf32>
    %42 = vector.extract_strided_slice %40 {offsets = [0, 8], sizes = [128, 8], strides = [1, 1]} : vector<128x24xf32> to vector<128x8xf32>
    %43 = vector.extract_strided_slice %40 {offsets = [0, 16], sizes = [128, 8], strides = [1, 1]} : vector<128x24xf32> to vector<128x8xf32>
    %44 = vector.broadcast %24 : vector<1x8xf32> to vector<128x8xf32>
    %45 = arith.mulf %41, %44 : vector<128x8xf32>
    %46 = vector.broadcast %31 : vector<1x8xf32> to vector<128x8xf32>
    %47 = arith.mulf %41, %46 : vector<128x8xf32>
    %48 = tpu.concatenate %45, %47 in 0 : vector<128x8xf32>, vector<128x8xf32> -> vector<256x8xf32>
    %49 = vector.broadcast %24 : vector<1x8xf32> to vector<128x8xf32>
    %50 = arith.mulf %42, %49 : vector<128x8xf32>
    %51 = vector.broadcast %31 : vector<1x8xf32> to vector<128x8xf32>
    %52 = arith.mulf %42, %51 : vector<128x8xf32>
    %53 = tpu.concatenate %50, %52 in 0 : vector<128x8xf32>, vector<128x8xf32> -> vector<256x8xf32>
    %54 = vector.broadcast %24 : vector<1x8xf32> to vector<128x8xf32>
    %55 = arith.mulf %43, %54 : vector<128x8xf32>
    %56 = vector.broadcast %31 : vector<1x8xf32> to vector<128x8xf32>
    %57 = arith.mulf %43, %56 : vector<128x8xf32>
    %58 = tpu.concatenate %55, %57 in 0 : vector<128x8xf32>, vector<128x8xf32> -> vector<256x8xf32>
    %59 = tpu.transpose %53, [1, 0] : vector<256x8xf32> -> vector<8x256xf32>
    %cst_13 = arith.constant dense<0.000000e+00> : vector<256x256xf32>
    %60 = tpu.matmul %48, %59, %cst_13 {dimension_numbers = #tpu.dot_dimension_numbers<[1], [0], [0], [1], [0, 0, 1, 1], [], []>} : vector<256x8xf32>, vector<8x256xf32>, vector<256x256xf32> -> vector<256x256xf32>
    %cst_14 = arith.constant 5.000000e-01 : f32
    %61 = vector.broadcast %cst_14 : f32 to vector<256x256xf32>
    %62 = arith.mulf %60, %61 : vector<256x256xf32>
    %63 = arith.addf %62, %37 : vector<256x256xf32>
    %cst_15 = arith.constant dense<0xFF800000> : vector<256xf32>
    %64 = vector.multi_reduction <maximumf>, %63, %cst_15 [1] : vector<256x256xf32> to vector<256xf32>
    %65 = vector.shape_cast %64 : vector<256xf32> to vector<256x1xf32>
    %66 = vector.broadcast %65 : vector<256x1xf32> to vector<256x256xf32>
    %67 = arith.subf %63, %66 : vector<256x256xf32>
    %68 = math.exp %67 : vector<256x256xf32>
    %cst_16 = arith.constant dense<0.000000e+00> : vector<256xf32>
    %69 = vector.multi_reduction <add>, %68, %cst_16 [1] : vector<256x256xf32> to vector<256xf32>
    %70 = vector.shape_cast %69 : vector<256xf32> to vector<256x1xf32>
    %71 = tpu.reciprocal %70 {approx = true} : vector<256x1xf32> -> vector<256x1xf32>
    %72 = vector.broadcast %71 : vector<256x1xf32> to vector<256x256xf32>
    %73 = arith.mulf %68, %72 : vector<256x256xf32>
    %cst_17 = arith.constant dense<0.000000e+00> : vector<256x8xf32>
    %74 = tpu.matmul %73, %58, %cst_17 {dimension_numbers = #tpu.dot_dimension_numbers<[1], [0], [0], [1], [0, 0, 1, 1], [], []>} : vector<256x256xf32>, vector<256x8xf32>, vector<256x8xf32> -> vector<256x8xf32>
    %cst_18 = arith.constant dense<0.000000e+00> : vector<256x8xf32>
    %75 = tpu.matmul %74, %35, %cst_18 {dimension_numbers = #tpu.dot_dimension_numbers<[1], [0], [0], [1], [0, 0, 1, 1], [], []>} : vector<256x8xf32>, vector<8x8xf32>, vector<256x8xf32> -> vector<256x8xf32>
    %76 = vector.extract_strided_slice %75 {offsets = [0, 0], sizes = [128, 8], strides = [1, 1]} : vector<256x8xf32> to vector<128x8xf32>
    %77 = vector.extract_strided_slice %75 {offsets = [128, 0], sizes = [128, 8], strides = [1, 1]} : vector<256x8xf32> to vector<128x8xf32>
    %78 = arith.addf %76, %77 : vector<128x8xf32>
    %79 = vector.broadcast %4 : vector<1x8xf32> to vector<128x8xf32>
    %80 = arith.addf %78, %79 : vector<128x8xf32>
    %c0_19 = arith.constant 0 : index
    %c0_20 = arith.constant 0 : index
    %c0_21 = arith.constant 0 : index
    %81 = vector.load %arg2[%c0_19, %c0_20, %c0_21] : memref<2x128x128xf32, #tpu.memory_space<vmem>>, vector<1x128x128xf32>
    %82 = vector.shape_cast %81 : vector<1x128x128xf32> to vector<128x128xf32>
    %cst_22 = arith.constant dense<0.000000e+00> : vector<128x8xf32>
    %83 = tpu.matmul %82, %80, %cst_22 {dimension_numbers = #tpu.dot_dimension_numbers<[1], [0], [0], [1], [0, 0, 1, 1], [], []>} : vector<128x128xf32>, vector<128x8xf32>, vector<128x8xf32> -> vector<128x8xf32>
    %84 = arith.addf %1, %83 : vector<128x8xf32>
    %c0_23 = arith.constant 0 : index
    %c0_24 = arith.constant 0 : index
    %c0_25 = arith.constant 0 : index
    %85 = vector.load %arg6[%c0_23, %c0_24, %c0_25] : memref<2x8x32xf32, #tpu.memory_space<vmem>>, vector<1x8x32xf32>
    %86 = vector.shape_cast %85 : vector<1x8x32xf32> to vector<8x32xf32>
    %c0_26 = arith.constant 0 : index
    %c0_27 = arith.constant 0 : index
    %c0_28 = arith.constant 0 : index
    %87 = vector.load %arg7[%c0_26, %c0_27, %c0_28] : memref<2x32x8xf32, #tpu.memory_space<vmem>>, vector<1x32x8xf32>
    %88 = vector.shape_cast %87 : vector<1x32x8xf32> to vector<32x8xf32>
    %cst_29 = arith.constant dense<0.000000e+00> : vector<128xf32>
    %89 = vector.multi_reduction <add>, %84, %cst_29 [1] : vector<128x8xf32> to vector<128xf32>
    %90 = vector.shape_cast %89 : vector<128xf32> to vector<128x1xf32>
    %cst_30 = arith.constant 8.000000e+00 : f32
    %91 = vector.broadcast %cst_30 : f32 to vector<128x1xf32>
    %92 = arith.divf %90, %91 : vector<128x1xf32>
    %93 = vector.broadcast %92 : vector<128x1xf32> to vector<128x8xf32>
    %94 = arith.subf %84, %93 : vector<128x8xf32>
    %95 = arith.mulf %94, %94 : vector<128x8xf32>
    %cst_31 = arith.constant dense<0.000000e+00> : vector<128xf32>
    %96 = vector.multi_reduction <add>, %95, %cst_31 [1] : vector<128x8xf32> to vector<128xf32>
    %97 = vector.shape_cast %96 : vector<128xf32> to vector<128x1xf32>
    %cst_32 = arith.constant 8.000000e+00 : f32
    %98 = vector.broadcast %cst_32 : f32 to vector<128x1xf32>
    %99 = arith.divf %97, %98 : vector<128x1xf32>
    %100 = vector.broadcast %92 : vector<128x1xf32> to vector<128x8xf32>
    %101 = arith.subf %84, %100 : vector<128x8xf32>
    %cst_33 = arith.constant 9.99999974E-6 : f32
    %102 = vector.broadcast %cst_33 : f32 to vector<128x1xf32>
    %103 = arith.addf %99, %102 : vector<128x1xf32>
    %104 = math.rsqrt %103 : vector<128x1xf32>
    %105 = vector.broadcast %104 : vector<128x1xf32> to vector<128x8xf32>
    %106 = arith.mulf %101, %105 : vector<128x8xf32>
    %107 = vector.broadcast %5 : vector<1x8xf32> to vector<128x8xf32>
    %108 = arith.mulf %106, %107 : vector<128x8xf32>
    %109 = vector.broadcast %6 : vector<1x8xf32> to vector<128x8xf32>
    %110 = arith.addf %108, %109 : vector<128x8xf32>
    %cst_34 = arith.constant dense<0.000000e+00> : vector<128x32xf32>
    %111 = tpu.matmul %110, %86, %cst_34 {dimension_numbers = #tpu.dot_dimension_numbers<[1], [0], [0], [1], [0, 0, 1, 1], [], []>} : vector<128x8xf32>, vector<8x32xf32>, vector<128x32xf32> -> vector<128x32xf32>
    %112 = vector.broadcast %7 : vector<1x32xf32> to vector<128x32xf32>
    %113 = arith.addf %111, %112 : vector<128x32xf32>
    %cst_35 = arith.constant dense<0.000000e+00> : vector<128x8xf32>
    %114 = tpu.matmul %113, %88, %cst_35 {dimension_numbers = #tpu.dot_dimension_numbers<[1], [0], [0], [1], [0, 0, 1, 1], [], []>} : vector<128x32xf32>, vector<32x8xf32>, vector<128x8xf32> -> vector<128x8xf32>
    %115 = vector.broadcast %8 : vector<1x8xf32> to vector<128x8xf32>
    %116 = arith.addf %114, %115 : vector<128x8xf32>
    %117 = arith.addf %84, %116 : vector<128x8xf32>
    %cst_36 = arith.constant dense<0.000000e+00> : vector<128xf32>
    %118 = vector.multi_reduction <add>, %117, %cst_36 [1] : vector<128x8xf32> to vector<128xf32>
    %119 = vector.shape_cast %118 : vector<128xf32> to vector<128x1xf32>
    %cst_37 = arith.constant 8.000000e+00 : f32
    %120 = vector.broadcast %cst_37 : f32 to vector<128x1xf32>
    %121 = arith.divf %119, %120 : vector<128x1xf32>
    %122 = vector.broadcast %121 : vector<128x1xf32> to vector<128x8xf32>
    %123 = arith.subf %117, %122 : vector<128x8xf32>
    %124 = arith.mulf %123, %123 : vector<128x8xf32>
    %cst_38 = arith.constant dense<0.000000e+00> : vector<128xf32>
    %125 = vector.multi_reduction <add>, %124, %cst_38 [1] : vector<128x8xf32> to vector<128xf32>
    %126 = vector.shape_cast %125 : vector<128xf32> to vector<128x1xf32>
    %cst_39 = arith.constant 8.000000e+00 : f32
    %127 = vector.broadcast %cst_39 : f32 to vector<128x1xf32>
    %128 = arith.divf %126, %127 : vector<128x1xf32>
    %129 = vector.broadcast %121 : vector<128x1xf32> to vector<128x8xf32>
    %130 = arith.subf %117, %129 : vector<128x8xf32>
    %cst_40 = arith.constant 9.99999974E-6 : f32
    %131 = vector.broadcast %cst_40 : f32 to vector<128x1xf32>
    %132 = arith.addf %128, %131 : vector<128x1xf32>
    %133 = math.rsqrt %132 : vector<128x1xf32>
    %134 = vector.broadcast %133 : vector<128x1xf32> to vector<128x8xf32>
    %135 = arith.mulf %130, %134 : vector<128x8xf32>
    %136 = vector.broadcast %9 : vector<1x8xf32> to vector<128x8xf32>
    %137 = arith.mulf %135, %136 : vector<128x8xf32>
    %138 = vector.broadcast %10 : vector<1x8xf32> to vector<128x8xf32>
    %139 = arith.addf %137, %138 : vector<128x8xf32>
    %c1 = arith.constant 1 : index
    %c0_41 = arith.constant 0 : index
    %c0_42 = arith.constant 0 : index
    %140 = vector.load %arg4[%c1, %c0_41, %c0_42] : memref<2x8x24xf32, #tpu.memory_space<vmem>>, vector<1x8x24xf32>
    %141 = vector.shape_cast %140 : vector<1x8x24xf32> to vector<8x24xf32>
    %c1_43 = arith.constant 1 : index
    %c0_44 = arith.constant 0 : index
    %c0_45 = arith.constant 0 : index
    %142 = vector.load %arg5[%c1_43, %c0_44, %c0_45] : memref<2x8x8xf32, #tpu.memory_space<vmem>>, vector<1x8x8xf32>
    %143 = vector.shape_cast %142 : vector<1x8x8xf32> to vector<8x8xf32>
    %c1_46 = arith.constant 1 : index
    %c0_47 = arith.constant 0 : index
    %c0_48 = arith.constant 0 : index
    %144 = vector.load %arg3[%c1_46, %c0_47, %c0_48] : memref<2x256x256xf32, #tpu.memory_space<vmem>>, vector<1x256x256xf32>
    %145 = vector.shape_cast %144 : vector<1x256x256xf32> to vector<256x256xf32>
    %cst_49 = arith.constant dense<0.000000e+00> : vector<128x24xf32>
    %146 = tpu.matmul %139, %141, %cst_49 {dimension_numbers = #tpu.dot_dimension_numbers<[1], [0], [0], [1], [0, 0, 1, 1], [], []>} : vector<128x8xf32>, vector<8x24xf32>, vector<128x24xf32> -> vector<128x24xf32>
    %147 = vector.broadcast %11 : vector<1x24xf32> to vector<128x24xf32>
    %148 = arith.addf %146, %147 : vector<128x24xf32>
    %149 = vector.extract_strided_slice %148 {offsets = [0, 0], sizes = [128, 8], strides = [1, 1]} : vector<128x24xf32> to vector<128x8xf32>
    %150 = vector.extract_strided_slice %148 {offsets = [0, 8], sizes = [128, 8], strides = [1, 1]} : vector<128x24xf32> to vector<128x8xf32>
    %151 = vector.extract_strided_slice %148 {offsets = [0, 16], sizes = [128, 8], strides = [1, 1]} : vector<128x24xf32> to vector<128x8xf32>
    %152 = vector.broadcast %24 : vector<1x8xf32> to vector<128x8xf32>
    %153 = arith.mulf %149, %152 : vector<128x8xf32>
    %154 = vector.broadcast %31 : vector<1x8xf32> to vector<128x8xf32>
    %155 = arith.mulf %149, %154 : vector<128x8xf32>
    %156 = tpu.concatenate %153, %155 in 0 : vector<128x8xf32>, vector<128x8xf32> -> vector<256x8xf32>
    %157 = vector.broadcast %24 : vector<1x8xf32> to vector<128x8xf32>
    %158 = arith.mulf %150, %157 : vector<128x8xf32>
    %159 = vector.broadcast %31 : vector<1x8xf32> to vector<128x8xf32>
    %160 = arith.mulf %150, %159 : vector<128x8xf32>
    %161 = tpu.concatenate %158, %160 in 0 : vector<128x8xf32>, vector<128x8xf32> -> vector<256x8xf32>
    %162 = vector.broadcast %24 : vector<1x8xf32> to vector<128x8xf32>
    %163 = arith.mulf %151, %162 : vector<128x8xf32>
    %164 = vector.broadcast %31 : vector<1x8xf32> to vector<128x8xf32>
    %165 = arith.mulf %151, %164 : vector<128x8xf32>
    %166 = tpu.concatenate %163, %165 in 0 : vector<128x8xf32>, vector<128x8xf32> -> vector<256x8xf32>
    %167 = tpu.transpose %161, [1, 0] : vector<256x8xf32> -> vector<8x256xf32>
    %cst_50 = arith.constant dense<0.000000e+00> : vector<256x256xf32>
    %168 = tpu.matmul %156, %167, %cst_50 {dimension_numbers = #tpu.dot_dimension_numbers<[1], [0], [0], [1], [0, 0, 1, 1], [], []>} : vector<256x8xf32>, vector<8x256xf32>, vector<256x256xf32> -> vector<256x256xf32>
    %cst_51 = arith.constant 5.000000e-01 : f32
    %169 = vector.broadcast %cst_51 : f32 to vector<256x256xf32>
    %170 = arith.mulf %168, %169 : vector<256x256xf32>
    %171 = arith.addf %170, %145 : vector<256x256xf32>
    %cst_52 = arith.constant dense<0xFF800000> : vector<256xf32>
    %172 = vector.multi_reduction <maximumf>, %171, %cst_52 [1] : vector<256x256xf32> to vector<256xf32>
    %173 = vector.shape_cast %172 : vector<256xf32> to vector<256x1xf32>
    %174 = vector.broadcast %173 : vector<256x1xf32> to vector<256x256xf32>
    %175 = arith.subf %171, %174 : vector<256x256xf32>
    %176 = math.exp %175 : vector<256x256xf32>
    %cst_53 = arith.constant dense<0.000000e+00> : vector<256xf32>
    %177 = vector.multi_reduction <add>, %176, %cst_53 [1] : vector<256x256xf32> to vector<256xf32>
    %178 = vector.shape_cast %177 : vector<256xf32> to vector<256x1xf32>
    %179 = tpu.reciprocal %178 {approx = true} : vector<256x1xf32> -> vector<256x1xf32>
    %180 = vector.broadcast %179 : vector<256x1xf32> to vector<256x256xf32>
    %181 = arith.mulf %176, %180 : vector<256x256xf32>
    %cst_54 = arith.constant dense<0.000000e+00> : vector<256x8xf32>
    %182 = tpu.matmul %181, %166, %cst_54 {dimension_numbers = #tpu.dot_dimension_numbers<[1], [0], [0], [1], [0, 0, 1, 1], [], []>} : vector<256x256xf32>, vector<256x8xf32>, vector<256x8xf32> -> vector<256x8xf32>
    %cst_55 = arith.constant dense<0.000000e+00> : vector<256x8xf32>
    %183 = tpu.matmul %182, %143, %cst_55 {dimension_numbers = #tpu.dot_dimension_numbers<[1], [0], [0], [1], [0, 0, 1, 1], [], []>} : vector<256x8xf32>, vector<8x8xf32>, vector<256x8xf32> -> vector<256x8xf32>
    %184 = vector.extract_strided_slice %183 {offsets = [0, 0], sizes = [128, 8], strides = [1, 1]} : vector<256x8xf32> to vector<128x8xf32>
    %185 = vector.extract_strided_slice %183 {offsets = [128, 0], sizes = [128, 8], strides = [1, 1]} : vector<256x8xf32> to vector<128x8xf32>
    %186 = arith.addf %184, %185 : vector<128x8xf32>
    %187 = vector.broadcast %12 : vector<1x8xf32> to vector<128x8xf32>
    %188 = arith.addf %186, %187 : vector<128x8xf32>
    %c1_56 = arith.constant 1 : index
    %c0_57 = arith.constant 0 : index
    %c0_58 = arith.constant 0 : index
    %189 = vector.load %arg2[%c1_56, %c0_57, %c0_58] : memref<2x128x128xf32, #tpu.memory_space<vmem>>, vector<1x128x128xf32>
    %190 = vector.shape_cast %189 : vector<1x128x128xf32> to vector<128x128xf32>
    %cst_59 = arith.constant dense<0.000000e+00> : vector<128x8xf32>
    %191 = tpu.matmul %190, %188, %cst_59 {dimension_numbers = #tpu.dot_dimension_numbers<[1], [0], [0], [1], [0, 0, 1, 1], [], []>} : vector<128x128xf32>, vector<128x8xf32>, vector<128x8xf32> -> vector<128x8xf32>
    %192 = arith.addf %117, %191 : vector<128x8xf32>
    %c1_60 = arith.constant 1 : index
    %c0_61 = arith.constant 0 : index
    %c0_62 = arith.constant 0 : index
    %193 = vector.load %arg6[%c1_60, %c0_61, %c0_62] : memref<2x8x32xf32, #tpu.memory_space<vmem>>, vector<1x8x32xf32>
    %194 = vector.shape_cast %193 : vector<1x8x32xf32> to vector<8x32xf32>
    %c1_63 = arith.constant 1 : index
    %c0_64 = arith.constant 0 : index
    %c0_65 = arith.constant 0 : index
    %195 = vector.load %arg7[%c1_63, %c0_64, %c0_65] : memref<2x32x8xf32, #tpu.memory_space<vmem>>, vector<1x32x8xf32>
    %196 = vector.shape_cast %195 : vector<1x32x8xf32> to vector<32x8xf32>
    %cst_66 = arith.constant dense<0.000000e+00> : vector<128xf32>
    %197 = vector.multi_reduction <add>, %192, %cst_66 [1] : vector<128x8xf32> to vector<128xf32>
    %198 = vector.shape_cast %197 : vector<128xf32> to vector<128x1xf32>
    %cst_67 = arith.constant 8.000000e+00 : f32
    %199 = vector.broadcast %cst_67 : f32 to vector<128x1xf32>
    %200 = arith.divf %198, %199 : vector<128x1xf32>
    %201 = vector.broadcast %200 : vector<128x1xf32> to vector<128x8xf32>
    %202 = arith.subf %192, %201 : vector<128x8xf32>
    %203 = arith.mulf %202, %202 : vector<128x8xf32>
    %cst_68 = arith.constant dense<0.000000e+00> : vector<128xf32>
    %204 = vector.multi_reduction <add>, %203, %cst_68 [1] : vector<128x8xf32> to vector<128xf32>
    %205 = vector.shape_cast %204 : vector<128xf32> to vector<128x1xf32>
    %cst_69 = arith.constant 8.000000e+00 : f32
    %206 = vector.broadcast %cst_69 : f32 to vector<128x1xf32>
    %207 = arith.divf %205, %206 : vector<128x1xf32>
    %208 = vector.broadcast %200 : vector<128x1xf32> to vector<128x8xf32>
    %209 = arith.subf %192, %208 : vector<128x8xf32>
    %cst_70 = arith.constant 9.99999974E-6 : f32
    %210 = vector.broadcast %cst_70 : f32 to vector<128x1xf32>
    %211 = arith.addf %207, %210 : vector<128x1xf32>
    %212 = math.rsqrt %211 : vector<128x1xf32>
    %213 = vector.broadcast %212 : vector<128x1xf32> to vector<128x8xf32>
    %214 = arith.mulf %209, %213 : vector<128x8xf32>
    %215 = vector.broadcast %13 : vector<1x8xf32> to vector<128x8xf32>
    %216 = arith.mulf %214, %215 : vector<128x8xf32>
    %217 = vector.broadcast %14 : vector<1x8xf32> to vector<128x8xf32>
    %218 = arith.addf %216, %217 : vector<128x8xf32>
    %cst_71 = arith.constant dense<0.000000e+00> : vector<128x32xf32>
    %219 = tpu.matmul %218, %194, %cst_71 {dimension_numbers = #tpu.dot_dimension_numbers<[1], [0], [0], [1], [0, 0, 1, 1], [], []>} : vector<128x8xf32>, vector<8x32xf32>, vector<128x32xf32> -> vector<128x32xf32>
    %220 = vector.broadcast %15 : vector<1x32xf32> to vector<128x32xf32>
    %221 = arith.addf %219, %220 : vector<128x32xf32>
    %cst_72 = arith.constant dense<0.000000e+00> : vector<128x8xf32>
    %222 = tpu.matmul %221, %196, %cst_72 {dimension_numbers = #tpu.dot_dimension_numbers<[1], [0], [0], [1], [0, 0, 1, 1], [], []>} : vector<128x32xf32>, vector<32x8xf32>, vector<128x8xf32> -> vector<128x8xf32>
    %223 = vector.broadcast %16 : vector<1x8xf32> to vector<128x8xf32>
    %224 = arith.addf %222, %223 : vector<128x8xf32>
    %225 = arith.addf %192, %224 : vector<128x8xf32>
    %226 = tpu.transpose %225, [1, 0] : vector<128x8xf32> -> vector<8x128xf32>
    %c0_73 = arith.constant 0 : index
    %c0_74 = arith.constant 0 : index
    %227 = vector.load %arg9[%c0_73, %c0_74] : memref<8x128xf32, #tpu.memory_space<vmem>>, vector<8x128xf32>
    tpu.vector_store %arg9[%c0_73, %c0_74], %226 {strides = array<i32>} : memref<8x128xf32, #tpu.memory_space<vmem>>, vector<8x128xf32>,
    return
  }
  func.func @transform_0(%arg0: i32) -> (i32, i32) {
    %c0_i32 = arith.constant 0 : i32
    %c0_i32_0 = arith.constant 0 : i32
    %c0_i32_1 = arith.constant 0 : i32
    return %c0_i32, %c0_i32_0 : i32, i32
  }
  func.func @transform_1(%arg0: i32) -> (i32, i32, i32) {
    %c0_i32 = arith.constant 0 : i32
    %c0_i32_0 = arith.constant 0 : i32
    %c0_i32_1 = arith.constant 0 : i32
    %c0_i32_2 = arith.constant 0 : i32
    return %c0_i32, %c0_i32_0, %c0_i32_1 : i32, i32, i32
  }
  func.func @transform_2(%arg0: i32) -> (i32, i32, i32) {
    %c0_i32 = arith.constant 0 : i32
    %c0_i32_0 = arith.constant 0 : i32
    %c0_i32_1 = arith.constant 0 : i32
    %c0_i32_2 = arith.constant 0 : i32
    return %c0_i32, %c0_i32_0, %c0_i32_1 : i32, i32, i32
  }
  func.func @transform_3(%arg0: i32) -> (i32, i32, i32) {
    %c0_i32 = arith.constant 0 : i32
    %c0_i32_0 = arith.constant 0 : i32
    %c0_i32_1 = arith.constant 0 : i32
    %c0_i32_2 = arith.constant 0 : i32
    return %c0_i32, %c0_i32_0, %c0_i32_1 : i32, i32, i32
  }
  func.func @transform_4(%arg0: i32) -> (i32, i32, i32) {
    %c0_i32 = arith.constant 0 : i32
    %c0_i32_0 = arith.constant 0 : i32
    %c0_i32_1 = arith.constant 0 : i32
    %c0_i32_2 = arith.constant 0 : i32
    return %c0_i32, %c0_i32_0, %c0_i32_1 : i32, i32, i32
  }
  func.func @transform_5(%arg0: i32) -> (i32, i32, i32) {
    %c0_i32 = arith.constant 0 : i32
    %c0_i32_0 = arith.constant 0 : i32
    %c0_i32_1 = arith.constant 0 : i32
    %c0_i32_2 = arith.constant 0 : i32
    return %c0_i32, %c0_i32_0, %c0_i32_1 : i32, i32, i32
  }
  func.func @transform_6(%arg0: i32) -> (i32, i32, i32) {
    %c0_i32 = arith.constant 0 : i32
    %c0_i32_0 = arith.constant 0 : i32
    %c0_i32_1 = arith.constant 0 : i32
    %c0_i32_2 = arith.constant 0 : i32
    return %c0_i32, %c0_i32_0, %c0_i32_1 : i32, i32, i32
  }
  func.func @transform_7(%arg0: i32) -> (i32, i32) {
    %c0_i32 = arith.constant 0 : i32
    %c0_i32_0 = arith.constant 0 : i32
    %c0_i32_1 = arith.constant 0 : i32
    return %c0_i32, %c0_i32_0 : i32, i32
  }
  func.func @transform_8(%arg0: i32) -> (i32, i32) {
    %c0_i32 = arith.constant 0 : i32
    %c0_i32_0 = arith.constant 0 : i32
    %c0_i32_1 = arith.constant 0 : i32
    return %c0_i32, %c0_i32_0 : i32, i32
  }
}

</mosaic_0001>

<bundles_post_ra>
// kernel: tpu_custom_call.1
= control target key start
LH: loop header
LB: loop body
LE: loop exit
PB: predicated region body
PF: predicated region fallthrough
CT: control target
= control target key end

     0   :  { %13 = vsyncpa [#allocation3], 0  ;;  %s11408_s0 = inlined_call_operand.vmem [shape: f32[8,128], index: 0, kind: input, shape index: {}]   ;;  %s11409_s1 = inlined_call_operand.hbm [shape: f32[2,128,128], index: 1, kind: input, shape index: {}]   ;;  %s11410_s2 = inlined_call_operand.hbm [shape: f32[2,256,256], index: 2, kind: input, shape index: {}]   ;;  %s11411_s3 = inlined_call_operand.vmem [shape: f32[2,8,24], index: 3, kind: input, shape index: {}]   ;;  %s11412_s4 = inlined_call_operand.vmem [shape: f32[2,8,8], index: 4, kind: input, shape index: {}]   ;;  %s11413_s5 = inlined_call_operand.vmem [shape: f32[2,8,32], index: 5, kind: input, shape index: {}]   ;;  %s11414_s6 = inlined_call_operand.vmem [shape: f32[2,32,8], index: 6, kind: input, shape index: {}]   ;;  %s11415_s7 = inlined_call_operand.vmem [shape: f32[14,32], index: 7, kind: input, shape index: {}]   ;;  %s11416_s8 = inlined_call_operand.hbm [shape: f32[8,128], index: 8, kind: output, shape index: {}]  }
   0x1   :  { %14 = vsyncpa [#allocation6], 0 }
   0x2   :  { %15 = vsyncpa [#allocation4], 0  ;;  %s8169_s27 = smov [#allocation2]  }
   0x3   :  { %s23_s28 = sshll.u32 %s8169_s27, 4  ;;  %s24_s28 = int_to_ptr.vmem [resolvable:$true] %s23_s28 }
   0x4   :  { %s8111_s29 = scalar_lea.vmem %s24_s28, 4096  ;;  %p8116_p1 = scmp.lt.s32.totalorder %s24_s28, %s24_s28 }
   0x5   :  { %p8112_p0 = scmp.ne.s32.totalorder %s24_s28, %s8111_s29  ;;  %p8117_p2 = scmp.lt.s32.totalorder %s8111_s29, %s8111_s29 }
   0x7   :  { %p8118_p3 = por %p8117_p2, %p8116_p1 }
   0x9   :  { %p8119_p4 = pnand %p8118_p3, %p8112_p0 }
   0xb   :  { %8122 = shalt.err (!%p8119_p4)
}
   0xc   :  { %s8170_s30 = smov 128   ;;  %s8171_s9 = smov 8  }
   0xd   :  { %29 = dma.hbm_to_vmem [thread:$0]  %s11409_s1, 4096, %s24_s28, [#allocation3], %s8170_s30, %s8170_s30, %s8171_s9  }
   0xe   :  { %s8172_s12 = smov [#allocation5]  }
   0xf   :  { %s35_s13 = sshll.u32 %s8172_s12, 4  ;;  %s36_s13 = int_to_ptr.vmem [resolvable:$true] %s35_s13 }
  0x10   :  { %s8131_s14 = scalar_lea.vmem %s36_s13, 16384  ;;  %p8136_p6 = scmp.lt.s32.totalorder %s36_s13, %s36_s13 }
  0x11   :  { %p8132_p5 = scmp.ne.s32.totalorder %s36_s13, %s8131_s14  ;;  %p8137_p7 = scmp.lt.s32.totalorder %s8131_s14, %s8131_s14 }
  0x13   :  { %p8138_p8 = por %p8137_p7, %p8136_p6 }
  0x15   :  { %p8139_p9 = pnand %p8138_p8, %p8132_p5 }
  0x17   :  { %8142 = shalt.err (!%p8139_p9)
}
  0x18   :  { %s8173_s15 = smov 256   ;;  %s8174_s16 = smov 16  }
  0x19   :  { %41 = dma.hbm_to_vmem [thread:$0]  %s11410_s2, 16384, %s36_s13, [#allocation6], %s8173_s15, %s8173_s15, %s8174_s16  }
  0x1a   :  { %8163 = dma.done.wait [#allocation3], 4096  }
  0x1b   :  { %8164 = vsyncadd [#allocation3], 4294963200 }
  0x1c   :  { %8165 = dma.done.wait [#allocation6], 16384  }
  0x1d   :  { %8166 = vsyncadd [#allocation6], 4294950912  ;;  %v58_v0 = vld [vmem:[%s11408_s0] sm:$0xff]  ;;  %v11418_v2 = vmov 0.0   ;;  %v93_v3 = vlaneseq  ;;  %vm175_vm4 = vcmask 64512   ;;  %s8176_s22 = smov 120  }
  0x1e   :  { %v105_v1 = vld [vmem:[%s11411_s3] sm:$0xff]  ;;  %59 = vxpose.xlu0.b32.start.end [1/1] (short) %v58_v0, 128  ;;  %s8177_s23 = smov 112   ;;  %vm2942_vm5 = vcmask 261120  }
  0x1f   :  { %7212 = vmatprep.subr.mxu0 %v105_v1  ;;  %v94_v4 = vand.u32 127, %v93_v3  ;;  %v8312_v24 = vshrl.u32 %v93_v3, 7  ;;  %v91_v26 = vld [vmem:[%s11415_s7] sm:$0xff] }
  0x20   :  { %7213 = vmatpush3.msra.mxu0 %v105_v1 }
  0x21   :  { %1728 = vmatprep.subr.mxu0 %v11418_v2  ;;  %vm100_vm0 = vcmp.ge.s32.totalorder %v94_v4, 4  ;;  %vm101_vm1 = vcmp.lt.s32.totalorder %v94_v4, 8  ;;  %vm96_vm2 = vcmp.lt.s32.totalorder %v94_v4, 4  ;;  %11550 = vst [vmem:[#allocation29_spill] sm:$0xff] %v8312_v24  ;;  %v11417_v25 = vsub.s32 0, %v8312_v24 }
  0x22   :  { %vm102_vm3 = vmand %vm100_vm0, %vm101_vm1  ;;  %v8240_v5 = vsel %vm96_vm2, 1.0, %v11418_v2 }
  0x23   :  { %11532 = vst [vmem:[#allocation11_spill] sm:$0xff] %v8240_v5  ;;  %v8243_v6 = vsel %vm102_vm3, 1.0, %v11418_v2  ;;  %v8320_v28 = vrot.slane %v91_v26, %v11417_v25 }
  0x24   :  { %11533 = vst [vmem:[#allocation12_spill] sm:$0xff] %v8243_v6  ;;  %v7610_v7 = vpack.i.bf16 %v8240_v5, %v8243_v6 }
  0x83   :  { %7611 = vrot.lane.b32.xlu0 %v7610_v7, %s8171_s9 }
  0x9a   :  { %v8248_v8 = vpop.trf.xlu0 }
  0x9b   :  { %11534 = vst [vmem:[#allocation13_spill] sm:$0xff] %v8248_v8  ;;  %7214 = vmatprep.mubr.msk.f32.mxu0 %vm175_vm4, %v8248_v8 }
  0x9e   :  { %v8252_v9 = vpop.trf.xlu0 }
  0x9f   :  { %11535 = vst [vmem:[#allocation14_spill] sm:$0xff] %v8252_v9  ;;  %7215 = vmatmul.mubr.msk.f32.vlgmr.msra.gmra.mxu0 %vm175_vm4, %v8252_v9 }
  0xa2   :  { %v8256_v10 = vpop.trf.xlu0 }
  0xa3   :  { %11536 = vst [vmem:[#allocation15_spill] sm:$0xff] %v8256_v10  ;;  %7217 = vmatprep.mubr.msk.f32.mxu0 %vm175_vm4, %v8256_v10 }
  0xa6   :  { %v8260_v11 = vpop.trf.xlu0 }
  0xa7   :  { %11537 = vst [vmem:[#allocation16_spill] sm:$0xff] %v8260_v11  ;;  %7218 = vmatmul.mubr.msk.f32.gmra.mxu0 %vm175_vm4, %v8260_v11 }
  0xaa   :  { %v8264_v12 = vpop.trf.xlu0 }
  0xab   :  { %11538 = vst [vmem:[#allocation17_spill] sm:$0xff] %v8264_v12  ;;  %7220 = vmatprep.mubr.msk.f32.mxu0 %vm175_vm4, %v8264_v12 }
  0xae   :  { %v8268_v13 = vpop.trf.xlu0 }
  0xaf   :  { %11539 = vst [vmem:[#allocation18_spill] sm:$0xff] %v8268_v13  ;;  %7221 = vmatmul.mubr.msk.f32.gmra.mxu0 %vm175_vm4, %v8268_v13 }
  0xb2   :  { %v8272_v14 = vpop.trf.xlu0 }
  0xb3   :  { %11540 = vst [vmem:[#allocation19_spill] sm:$0xff] %v8272_v14  ;;  %7223 = vmatprep.mubr.msk.f32.mxu0 %vm175_vm4, %v8272_v14 }
  0xb6   :  { %v8276_v15 = vpop.trf.xlu0 }
  0xb7   :  { %11541 = vst [vmem:[#allocation20_spill] sm:$0xff] %v8276_v15  ;;  %7224 = vmatmul.mubr.msk.f32.gmra.mxu0 %vm175_vm4, %v8276_v15 }
  0xba   :  { %v8280_v16 = vpop.trf.xlu0 }
  0xbb   :  { %11542 = vst [vmem:[#allocation21_spill] sm:$0xff] %v8280_v16  ;;  %7226 = vmatprep.mubr.msk.f32.mxu0 %vm175_vm4, %v8280_v16 }
  0xbe   :  { %v8284_v17 = vpop.trf.xlu0 }
  0xbf   :  { %11543 = vst [vmem:[#allocation22_spill] sm:$0xff] %v8284_v17  ;;  %7227 = vmatmul.mubr.msk.f32.gmra.mxu0 %vm175_vm4, %v8284_v17 }
  0xc2   :  { %v8288_v18 = vpop.trf.xlu0 }
  0xc3   :  { %11544 = vst [vmem:[#allocation23_spill] sm:$0xff] %v8288_v18  ;;  %7229 = vmatprep.mubr.msk.f32.mxu0 %vm175_vm4, %v8288_v18 }
  0xc6   :  { %v8292_v19 = vpop.trf.xlu0 }
  0xc7   :  { %11545 = vst [vmem:[#allocation24_spill] sm:$0xff] %v8292_v19  ;;  %7230 = vmatmul.mubr.msk.f32.gmra.mxu0 %vm175_vm4, %v8292_v19 }
  0xca   :  { %v8296_v20 = vpop.trf.xlu0 }
  0xcb   :  { %11546 = vst [vmem:[#allocation25_spill] sm:$0xff] %v8296_v20  ;;  %7232 = vmatprep.mubr.msk.f32.mxu0 %vm175_vm4, %v8296_v20 }
  0xce   :  { %v8300_v21 = vpop.trf.xlu0 }
  0xcf   :  { %11547 = vst [vmem:[#allocation26_spill] sm:$0xff] %v8300_v21  ;;  %7233 = vmatmul.mubr.msk.f32.gmra.mxu0 %vm175_vm4, %v8300_v21 }
  0xd2   :  { %v8304_v22 = vpop.trf.xlu0 }
  0xd3   :  { %11548 = vst [vmem:[#allocation27_spill] sm:$0xff] %v8304_v22  ;;  %7235 = vmatprep.mubr.msk.f32.mxu0 %vm175_vm4, %v8304_v22 }
  0xd6   :  { %v8308_v23 = vpop.trf.xlu0 }
  0xd7   :  { %11549 = vst [vmem:[#allocation28_spill] sm:$0xff] %v8308_v23  ;;  %7236 = vmatmul.mubr.msk.f32.gmra.mxu0 %vm175_vm4, %v8308_v23 }
  0xf5   :  { %v7612_v32 = vpop.permute.xlu0 %7611 }
  0xf6   :  { %v8334_v36 = vunpack.i.h.bf16 %v7612_v32  ;;  %v8359_v49 = vunpack.i.l.bf16 %v7612_v32 }
  0xf8   :  { %11551 = vst [vmem:[#allocation30_spill] sm:$0xff] %v8334_v36  ;;  %11552 = vst [vmem:[#allocation31_spill] sm:$0xff] %v8359_v49 }
 0x15f   :  { %v7216_v27 = vpop.f32.mrf.mxu0 }
 0x160   :  { %v8340_v38 = vadd.f32 %v7216_v27, %v8320_v28 }
 0x161   :  { %v290_v29 = vpop.f32.mrf.mxu0 }
 0x162   :  { %v8323_v30 = vadd.f32 %v290_v29, %v8320_v28  ;;  %v406_v42 = vmul.f32 %v8334_v36, %v8340_v38 }
 0x164   :  { %v8327_v31 = vmul.f32 %v8240_v5, %v8323_v30  ;;  %v405_v43 = vmul.f32 %v8334_v36, %v8323_v30 }
 0x166   :  { %6831 = vmatprep.mubr.msk.f32.mxu1 %vm175_vm4, %v8327_v31 }
 0x167   :  { %v7219_v33 = vpop.f32.mrf.mxu0 }
 0x168   :  { %v8332_v34 = vadd.f32 %v7219_v33, %v8320_v28 }
 0x169   :  { %v300_v35 = vpop.f32.mrf.mxu0 }
 0x16a   :  { %v8337_v37 = vadd.f32 %v300_v35, %v8320_v28 }
 0x16c   :  { %v407_v39 = vmul.f32 %v8334_v36, %v8337_v37 }
 0x16e   :  { %515 = vrot.lane.b32.xlu0 %v407_v39, %s8176_s22 }
 0x16f   :  { %v7222_v40 = vpop.f32.mrf.mxu0 }
 0x170   :  { %v8346_v41 = vadd.f32 %v7222_v40, %v8320_v28 }
 0x171   :  { %v8353_v44 = vpop.f32.mrf.mxu0 }
 0x172   :  { %513 = vrot.lane.b32.xlu0 %v406_v42, %s8176_s22 }
 0x176   :  { %511 = vrot.lane.b32.xlu0 %v405_v43, %s8176_s22 }
 0x177   :  { %v7225_v45 = vpop.f32.mrf.mxu0 }
 0x178   :  { %v8357_v46 = vadd.f32 %v7225_v45, %v8320_v28 }
 0x179   :  { %v320_v47 = vpop.f32.mrf.mxu0 }
 0x17f   :  { %v7228_v48 = vpop.f32.mrf.mxu0 }
 0x180   :  { %v8362_v50 = vadd.f32 %v7228_v48, %v8320_v28 }
 0x181   :  { %v330_v52 = vpop.f32.mrf.mxu0 }
 0x182   :  { %v434_v51 = vmul.f32 %v8359_v49, %v8362_v50  ;;  %v8368_v53 = vadd.f32 %v330_v52, %v8320_v28  ;;  %v414_v54 = vmul.f32 %v8334_v36, %v8362_v50  ;;  %v8437_v52 = vadd.f32 %v320_v47, %v8320_v28 }
 0x183   :  { %v8453_v47 = vadd.f32 %v8353_v44, %v8320_v28  ;;  %v427_v44 = vmul.f32 %v8359_v49, %v8337_v37 }
 0x184   :  { %561 = vrot.lane.b32.xlu1 %v434_v51, %s8176_s22  ;;  %v433_v57 = vmul.f32 %v8359_v49, %v8368_v53  ;;  %v413_v48 = vmul.f32 %v8334_v36, %v8368_v53  ;;  %v432_v51 = vmul.f32 %v8359_v49, %v8357_v46 }
 0x187   :  { %v7231_v55 = vpop.f32.mrf.mxu0 }
 0x188   :  { %529 = vrot.lane.b32.xlu1 %v414_v54, %s8176_s22  ;;  %v8374_v56 = vadd.f32 %v7231_v55, %v8320_v28  ;;  %v412_v54 = vmul.f32 %v8334_v36, %v8357_v46  ;;  %v431_v55 = vmul.f32 %v8359_v49, %v8437_v52 }
 0x189   :  { %v340_v59 = vpop.f32.mrf.mxu0 }
 0x18a   :  { %v436_v58 = vmul.f32 %v8359_v49, %v8374_v56  ;;  %v8383_v60 = vadd.f32 %v340_v59, %v8320_v28  ;;  %v416_v61 = vmul.f32 %v8334_v36, %v8374_v56  ;;  %v410_v59 = vmul.f32 %v8334_v36, %v8346_v41 }
 0x18c   :  { %559 = vrot.lane.b32.xlu1 %v433_v57, %s8176_s22  ;;  %v435_v62 = vmul.f32 %v8359_v49, %v8383_v60  ;;  %v415_v1 = vmul.f32 %v8334_v36, %v8383_v60  ;;  %v411_v57 = vmul.f32 %v8334_v36, %v8437_v52 }
 0x18f   :  { %v7234_v63 = vpop.f32.mrf.mxu0 }
 0x190   :  { %565 = vrot.lane.b32.xlu1 %v436_v58, %s8176_s22  ;;  %v8392_v0 = vadd.f32 %v7234_v63, %v8320_v28  ;;  %v430_v58 = vmul.f32 %v8359_v49, %v8346_v41  ;;  %v428_v63 = vmul.f32 %v8359_v49, %v8332_v34 }
 0x191   :  { %v350_v4 = vpop.f32.mrf.mxu0 }
 0x192   :  { %v438_v3 = vmul.f32 %v8359_v49, %v8392_v0  ;;  %v8401_v7 = vadd.f32 %v350_v4, %v8320_v28  ;;  %v418_v26 = vmul.f32 %v8334_v36, %v8392_v0  ;;  %v7615_v4 = vpack.i.bf16 %v8243_v6, %v8240_v5 }
 0x194   :  { %533 = vrot.lane.b32.xlu1 %v416_v61, %s8176_s22  ;;  %v437_v27 = vmul.f32 %v8359_v49, %v8401_v7  ;;  %v417_v33 = vmul.f32 %v8334_v36, %v8401_v7  ;;  %v429_v61 = vmul.f32 %v8359_v49, %v8453_v47 }
 0x197   :  { %v7237_v29 = vpop.f32.mrf.mxu0 }
 0x198   :  { %563 = vrot.lane.b32.xlu1 %v435_v62, %s8176_s22  ;;  %v8410_v32 = vadd.f32 %v7237_v29, %v8320_v28  ;;  %v409_v62 = vmul.f32 %v8334_v36, %v8453_v47 }
 0x199   :  { %v360_v39 = vpop.f32.mrf.mxu0 }
 0x19a   :  { %v440_v35 = vmul.f32 %v8359_v49, %v8410_v32  ;;  %v8419_v40 = vadd.f32 %v360_v39, %v8320_v28  ;;  %v420_v42 = vmul.f32 %v8334_v36, %v8410_v32  ;;  %v408_v28 = vmul.f32 %v8334_v36, %v8332_v34 }
 0x19c   :  { %531 = vrot.lane.b32.xlu1 %v415_v1, %s8176_s22  ;;  %v439_v43 = vmul.f32 %v8359_v49, %v8419_v40  ;;  %v419_v45 = vmul.f32 %v8334_v36, %v8419_v40  ;;  %v426_v1 = vmul.f32 %v8359_v49, %v8340_v38 }
 0x1a0   :  { %569 = vrot.lane.b32.xlu1 %v438_v3, %s8176_s22  ;;  %v425_v3 = vmul.f32 %v8359_v49, %v8323_v30 }
 0x1a4   :  { %537 = vrot.lane.b32.xlu1 %v418_v26, %s8176_s22 }
 0x1a8   :  { %567 = vrot.lane.b32.xlu1 %v437_v27, %s8176_s22 }
 0x1ac   :  { %535 = vrot.lane.b32.xlu1 %v417_v33, %s8176_s22 }
 0x1b0   :  { %573 = vrot.lane.b32.xlu1 %v440_v35, %s8176_s22 }
 0x1b4   :  { %541 = vrot.lane.b32.xlu1 %v420_v42, %s8176_s22 }
 0x1b8   :  { %571 = vrot.lane.b32.xlu1 %v439_v43, %s8176_s22 }
 0x1bc   :  { %539 = vrot.lane.b32.xlu1 %v419_v45, %s8176_s22 }
 0x1c0   :  { %527 = vrot.lane.b32.xlu1 %v413_v48, %s8176_s22 }
 0x1c4   :  { %557 = vrot.lane.b32.xlu1 %v432_v51, %s8176_s22 }
 0x1c8   :  { %525 = vrot.lane.b32.xlu1 %v412_v54, %s8176_s22 }
 0x1cc   :  { %555 = vrot.lane.b32.xlu1 %v431_v55, %s8176_s22 }
 0x1d0   :  { %523 = vrot.lane.b32.xlu1 %v411_v57, %s8176_s22 }
 0x1d4   :  { %553 = vrot.lane.b32.xlu1 %v430_v58, %s8176_s22 }
 0x1d8   :  { %521 = vrot.lane.b32.xlu1 %v410_v59, %s8176_s22 }
 0x1dc   :  { %551 = vrot.lane.b32.xlu1 %v429_v61, %s8176_s22 }
 0x1e0   :  { %519 = vrot.lane.b32.xlu1 %v409_v62, %s8176_s22 }
 0x1e4   :  { %549 = vrot.lane.b32.xlu1 %v428_v63, %s8176_s22 }
 0x1e8   :  { %517 = vrot.lane.b32.xlu1 %v408_v28, %s8176_s22 }
 0x1ec   :  { %547 = vrot.lane.b32.xlu1 %v427_v44, %s8176_s22 }
 0x1f0   :  { %545 = vrot.lane.b32.xlu1 %v426_v1, %s8176_s22 }
 0x1f4   :  { %543 = vrot.lane.b32.xlu1 %v425_v3, %s8176_s22 }
 0x1f6   :  { %v562_v26 = vpop.permute.xlu1 %561 }
 0x1f8   :  { %7616 = vrot.lane.b32.xlu1 %v7615_v4, %s8174_s16 }
 0x1fa   :  { %v530_v27 = vpop.permute.xlu1 %529 }
 0x1fe   :  { %v560_v29 = vpop.permute.xlu1 %559 }
 0x202   :  { %v566_v33 = vpop.permute.xlu1 %565 }
 0x206   :  { %v534_v35 = vpop.permute.xlu1 %533 }
 0x20a   :  { %v564_v39 = vpop.permute.xlu1 %563 }
 0x20e   :  { %v532_v42 = vpop.permute.xlu1 %531 }
 0x212   :  { %v570_v43 = vpop.permute.xlu1 %569 }
 0x216   :  { %v538_v45 = vpop.permute.xlu1 %537 }
 0x21a   :  { %v568_v48 = vpop.permute.xlu1 %567 }
 0x21e   :  { %v536_v51 = vpop.permute.xlu1 %535 }
 0x222   :  { %v574_v54 = vpop.permute.xlu1 %573 }
 0x223   :  { %6799 = vmatprep.subr.msk.mxu1 %vm175_vm4, %v574_v54 }
 0x226   :  { %v542_v55 = vpop.permute.xlu1 %541 }
 0x227   :  { %6800 = vmatpush3.xpose.msk.msra.mxu1 %vm175_vm4, %v542_v55 }
 0x22a   :  { %v572_v57 = vpop.permute.xlu1 %571 }
 0x22b   :  { %6801 = vmatprep.subr.msk.mxu1 %vm175_vm4, %v572_v57  ;;  %v371_v57 = vmul.f32 %v8240_v5, %v8337_v37 }
 0x22e   :  { %v540_v58 = vpop.permute.xlu1 %539 }
 0x22f   :  { %6802 = vmatpush3.xpose.msk.msra.mxu1 %vm175_vm4, %v540_v58 }
 0x230   :  { %6803 = vmatprep.subr.msk.mxu1 %vm175_vm4, %v570_v43 }
 0x232   :  { %v528_v59 = vpop.permute.xlu1 %527 }
 0x233   :  { %6804 = vmatpush3.xpose.msk.msra.mxu1 %vm175_vm4, %v538_v45 }
 0x234   :  { %6805 = vmatprep.subr.msk.mxu1 %vm175_vm4, %v568_v48  ;;  %v370_v48 = vmul.f32 %v8240_v5, %v8340_v38 }
 0x236   :  { %v558_v61 = vpop.permute.xlu1 %557 }
 0x237   :  { %6806 = vmatpush3.xpose.msk.msra.mxu1 %vm175_vm4, %v536_v51 }
 0x238   :  { %6807 = vmatprep.subr.msk.mxu1 %vm175_vm4, %v566_v33 }
 0x23a   :  { %v526_v62 = vpop.permute.xlu1 %525 }
 0x23b   :  { %6808 = vmatpush3.xpose.msk.msra.mxu1 %vm175_vm4, %v534_v35 }
 0x23c   :  { %6809 = vmatprep.subr.msk.mxu1 %vm175_vm4, %v564_v39 }
 0x23e   :  { %v556_v63 = vpop.permute.xlu1 %555 }
 0x23f   :  { %6810 = vmatpush3.xpose.msk.msra.mxu1 %vm175_vm4, %v532_v42 }
 0x240   :  { %6811 = vmatprep.subr.msk.mxu1 %vm175_vm4, %v562_v26 }
 0x242   :  { %v524_v28 = vpop.permute.xlu1 %523 }
 0x243   :  { %6812 = vmatpush3.xpose.msk.msra.mxu1 %vm175_vm4, %v530_v27 }
 0x244   :  { %6813 = vmatprep.subr.msk.mxu1 %vm175_vm4, %v560_v29  ;;  %v516_v29 = vpop.permute.xlu0 %515 }
 0x246   :  { %v554_v44 = vpop.permute.xlu1 %553 }
 0x247   :  { %6814 = vmatpush3.xpose.msk.msra.mxu1 %vm175_vm4, %v528_v59  ;;  %v372_v59 = vmul.f32 %v8240_v5, %v8332_v34 }
 0x248   :  { %6815 = vmatprep.subr.msk.mxu1 %vm175_vm4, %v558_v61  ;;  %v514_v35 = vpop.permute.xlu0 %513 }
 0x24a   :  { %v522_v1 = vpop.permute.xlu1 %521 }
 0x24b   :  { %6816 = vmatpush3.xpose.msk.msra.mxu1 %vm175_vm4, %v526_v62 }
 0x24c   :  { %6817 = vmatprep.subr.msk.mxu1 %vm175_vm4, %v556_v63  ;;  %v512_v43 = vpop.permute.xlu0 %511  ;;  %v373_v63 = vmul.f32 %v8240_v5, %v8453_v47 }
 0x24e   :  { %v552_v3 = vpop.permute.xlu1 %551 }
 0x24f   :  { %6818 = vmatpush3.xpose.msk.msra.mxu1 %vm175_vm4, %v524_v28 }
 0x250   :  { %6819 = vmatprep.subr.msk.mxu1 %vm175_vm4, %v554_v44 }
 0x252   :  { %v520_v4 = vpop.permute.xlu1 %519 }
 0x253   :  { %6820 = vmatpush3.xpose.msk.msra.mxu1 %vm175_vm4, %v522_v1  ;;  %v374_v1 = vmul.f32 %v8240_v5, %v8346_v41 }
 0x254   :  { %6821 = vmatprep.subr.msk.mxu1 %vm175_vm4, %v552_v3 }
 0x256   :  { %v550_v26 = vpop.permute.xlu1 %549 }
 0x257   :  { %6822 = vmatpush3.xpose.msk.msra.mxu1 %vm175_vm4, %v520_v4 }
 0x258   :  { %6823 = vmatprep.subr.msk.mxu1 %vm175_vm4, %v550_v26  ;;  %v375_v26 = vmul.f32 %v8240_v5, %v8437_v52 }
 0x25a   :  { %v518_v27 = vpop.permute.xlu1 %517 }
 0x25b   :  { %6824 = vmatpush3.xpose.msk.msra.mxu1 %vm175_vm4, %v518_v27 }
 0x25e   :  { %v548_v33 = vpop.permute.xlu1 %547 }
 0x25f   :  { %6825 = vmatprep.subr.msk.mxu1 %vm175_vm4, %v548_v33  ;;  %v376_v33 = vmul.f32 %v8240_v5, %v8357_v46 }
 0x260   :  { %6826 = vmatpush3.xpose.msk.msra.mxu1 %vm175_vm4, %v516_v29 }
 0x262   :  { %v546_v39 = vpop.permute.xlu1 %545 }
 0x263   :  { %6827 = vmatprep.subr.msk.mxu1 %vm175_vm4, %v546_v39 }
 0x264   :  { %6828 = vmatpush3.xpose.msk.msra.mxu1 %vm175_vm4, %v514_v35 }
 0x266   :  { %v544_v42 = vpop.permute.xlu1 %543 }
 0x267   :  { %6829 = vmatprep.subr.msk.mxu1 %vm175_vm4, %v544_v42 }
 0x268   :  { %6830 = vmatpush3.xpose.msk.msra.mxu1 %vm175_vm4, %v512_v43  ;;  %v377_v43 = vmul.f32 %v8240_v5, %v8368_v53 }
 0x26a   :  { %v7617_v45 = vpop.permute.xlu1 %7616 }
 0x26b   :  { %v8516_v51 = vunpack.i.l.bf16 %v7617_v45  ;;  %6832 = vmatmul.mubr.msk.f32.vlgmr.msra.gmra.mxu1 %vm175_vm4, %v8327_v31  ;;  %v8581_v35 = vunpack.i.h.bf16 %v7617_v45 }
 0x26c   :  { %6833 = vmatprep.mubr.msk.f32.mxu1 %vm175_vm4, %v370_v48 }
 0x26d   :  { %11553 = vst [vmem:[#allocation32_spill] sm:$0xff] %v8516_v51  ;;  %v459_v54 = vmul.f32 %v8516_v51, %v8410_v32  ;;  %v457_v55 = vmul.f32 %v8516_v51, %v8392_v0  ;;  %v455_v31 = vmul.f32 %v8516_v51, %v8374_v56  ;;  %v456_v58 = vmul.f32 %v8516_v51, %v8401_v7 }
 0x26e   :  { %v451_v61 = vmul.f32 %v8516_v51, %v8357_v46  ;;  %v454_v62 = vmul.f32 %v8516_v51, %v8383_v60  ;;  %v450_v28 = vmul.f32 %v8516_v51, %v8437_v52  ;;  %v453_v44 = vmul.f32 %v8516_v51, %v8362_v50  ;;  %11554 = vst [vmem:[#allocation33_spill] sm:$0xff] %v8581_v35 }
 0x26f   :  { %6834 = vmatmul.mubr.msk.f32.gmra.mxu1 %vm175_vm4, %v370_v48  ;;  %1662 = vrot.lane.b32.xlu1 %v459_v54, %s8177_s23  ;;  %v449_v3 = vmul.f32 %v8516_v51, %v8346_v41  ;;  %v452_v4 = vmul.f32 %v8516_v51, %v8368_v53  ;;  %v445_v27 = vmul.f32 %v8516_v51, %v8340_v38 }
 0x270   :  { %1658 = vrot.lane.b32.xlu0 %v457_v55, %s8177_s23  ;;  %6835 = vmatprep.mubr.msk.f32.mxu1 %vm175_vm4, %v371_v57  ;;  %v448_v29 = vmul.f32 %v8516_v51, %v8453_v47  ;;  %v444_v39 = vmul.f32 %v8516_v51, %v8323_v30  ;;  %v447_v42 = vmul.f32 %v8516_v51, %v8332_v34 }
 0x271   :  { %v475_v45 = vmul.f32 %v8581_v35, %v8401_v7  ;;  %v446_v48 = vmul.f32 %v8516_v51, %v8337_v37  ;;  %v378_v54 = vmul.f32 %v8240_v5, %v8362_v50  ;;  %v473_v55 = vmul.f32 %v8581_v35, %v8383_v60 }
 0x273   :  { %6836 = vmatmul.mubr.msk.f32.gmra.mxu1 %vm175_vm4, %v371_v57  ;;  %1654 = vrot.lane.b32.xlu1 %v455_v31, %s8177_s23  ;;  %v478_v57 = vmul.f32 %v8581_v35, %v8410_v32  ;;  %v379_v31 = vmul.f32 %v8240_v5, %v8383_v60 }
 0x274   :  { %1656 = vrot.lane.b32.xlu0 %v456_v58, %s8177_s23  ;;  %6837 = vmatprep.mubr.msk.f32.mxu1 %vm175_vm4, %v372_v59  ;;  %v471_v58 = vmul.f32 %v8581_v35, %v8368_v53 }
 0x277   :  { %6838 = vmatmul.mubr.msk.f32.gmra.mxu1 %vm175_vm4, %v372_v59  ;;  %1646 = vrot.lane.b32.xlu1 %v451_v61, %s8177_s23  ;;  %v476_v59 = vmul.f32 %v8581_v35, %v8392_v0  ;;  %v380_v61 = vmul.f32 %v8240_v5, %v8374_v56 }
 0x278   :  { %1652 = vrot.lane.b32.xlu0 %v454_v62, %s8177_s23  ;;  %6839 = vmatprep.mubr.msk.f32.mxu1 %vm175_vm4, %v373_v63  ;;  %v469_v62 = vmul.f32 %v8581_v35, %v8437_v52 }
 0x27b   :  { %6840 = vmatmul.mubr.msk.f32.gmra.mxu1 %vm175_vm4, %v373_v63  ;;  %1644 = vrot.lane.b32.xlu1 %v450_v28, %s8177_s23  ;;  %v474_v63 = vmul.f32 %v8581_v35, %v8374_v56  ;;  %v381_v28 = vmul.f32 %v8240_v5, %v8401_v7 }
 0x27c   :  { %1650 = vrot.lane.b32.xlu0 %v453_v44, %s8177_s23  ;;  %6841 = vmatprep.mubr.msk.f32.mxu1 %vm175_vm4, %v374_v1  ;;  %v467_v44 = vmul.f32 %v8581_v35, %v8453_v47 }
 0x27f   :  { %6842 = vmatmul.mubr.msk.f32.gmra.mxu1 %vm175_vm4, %v374_v1  ;;  %1642 = vrot.lane.b32.xlu1 %v449_v3, %s8177_s23  ;;  %v472_v1 = vmul.f32 %v8581_v35, %v8362_v50  ;;  %v382_v3 = vmul.f32 %v8240_v5, %v8392_v0 }
 0x280   :  { %1648 = vrot.lane.b32.xlu0 %v452_v4, %s8177_s23  ;;  %6843 = vmatprep.mubr.msk.f32.mxu1 %vm175_vm4, %v375_v26  ;;  %v465_v4 = vmul.f32 %v8581_v35, %v8337_v37 }
 0x283   :  { %6844 = vmatmul.mubr.msk.f32.gmra.mxu1 %vm175_vm4, %v375_v26  ;;  %1634 = vrot.lane.b32.xlu1 %v445_v27, %s8177_s23  ;;  %v470_v26 = vmul.f32 %v8581_v35, %v8357_v46  ;;  %v383_v27 = vmul.f32 %v8240_v5, %v8419_v40 }
 0x284   :  { %1640 = vrot.lane.b32.xlu0 %v448_v29, %s8177_s23  ;;  %6845 = vmatprep.mubr.msk.f32.mxu1 %vm175_vm4, %v376_v33  ;;  %v477_v29 = vmul.f32 %v8581_v35, %v8419_v40 }
 0x287   :  { %6846 = vmatmul.mubr.msk.f32.gmra.mxu1 %vm175_vm4, %v376_v33  ;;  %1632 = vrot.lane.b32.xlu1 %v444_v39, %s8177_s23  ;;  %v458_v33 = vmul.f32 %v8516_v51, %v8419_v40  ;;  %v384_v39 = vmul.f32 %v8240_v5, %v8410_v32 }
 0x288   :  { %1638 = vrot.lane.b32.xlu0 %v447_v42, %s8177_s23  ;;  %6847 = vmatprep.mubr.msk.f32.mxu1 %vm175_vm4, %v377_v43  ;;  %v468_v42 = vmul.f32 %v8581_v35, %v8346_v41 }
 0x28b   :  { %6848 = vmatmul.mubr.msk.f32.gmra.mxu1 %vm175_vm4, %v377_v43  ;;  %1688 = vrot.lane.b32.xlu1 %v475_v45, %s8177_s23  ;;  %v385_v43 = vmul.f32 %v8243_v6, %v8323_v30  ;;  %v466_v45 = vmul.f32 %v8581_v35, %v8332_v34 }
 0x28c   :  { %1636 = vrot.lane.b32.xlu0 %v446_v48, %s8177_s23  ;;  %6849 = vmatprep.mubr.msk.f32.mxu1 %vm175_vm4, %v378_v54  ;;  %v386_v48 = vmul.f32 %v8243_v6, %v8340_v38 }
 0x28f   :  { %6850 = vmatmul.mubr.msk.f32.gmra.mxu1 %vm175_vm4, %v378_v54  ;;  %1684 = vrot.lane.b32.xlu1 %v473_v55, %s8177_s23  ;;  %v387_v54 = vmul.f32 %v8243_v6, %v8337_v37  ;;  %v388_v55 = vmul.f32 %v8243_v6, %v8332_v34  ;;  %v390_v37 = vmul.f32 %v8243_v6, %v8346_v41 }
 0x290   :  { %1694 = vrot.lane.b32.xlu0 %v478_v57, %s8177_s23  ;;  %6851 = vmatprep.mubr.msk.f32.mxu1 %vm175_vm4, %v379_v31  ;;  %v389_v57 = vmul.f32 %v8243_v6, %v8453_v47  ;;  %v391_v34 = vmul.f32 %v8243_v6, %v8437_v52  ;;  %v392_v47 = vmul.f32 %v8243_v6, %v8357_v46 }
 0x291   :  { %v393_v41 = vmul.f32 %v8243_v6, %v8368_v53  ;;  %v394_v52 = vmul.f32 %v8243_v6, %v8362_v50  ;;  %v395_v46 = vmul.f32 %v8243_v6, %v8383_v60  ;;  %v396_v53 = vmul.f32 %v8243_v6, %v8374_v56 }
 0x292   :  { %v397_v50 = vmul.f32 %v8243_v6, %v8401_v7  ;;  %v398_v60 = vmul.f32 %v8243_v6, %v8392_v0  ;;  %v399_v56 = vmul.f32 %v8243_v6, %v8419_v40 }
 0x293   :  { %6852 = vmatmul.mubr.msk.f32.gmra.mxu1 %vm175_vm4, %v379_v31  ;;  %1680 = vrot.lane.b32.xlu1 %v471_v58, %s8177_s23  ;;  %v400_v58 = vmul.f32 %v8243_v6, %v8410_v32 }
 0x294   :  { %1690 = vrot.lane.b32.xlu0 %v476_v59, %s8177_s23  ;;  %6853 = vmatprep.mubr.msk.f32.mxu1 %vm175_vm4, %v380_v61 }
 0x297   :  { %6854 = vmatmul.mubr.msk.f32.gmra.mxu1 %vm175_vm4, %v380_v61  ;;  %1676 = vrot.lane.b32.xlu1 %v469_v62, %s8177_s23 }
 0x298   :  { %1686 = vrot.lane.b32.xlu0 %v474_v63, %s8177_s23  ;;  %6855 = vmatprep.mubr.msk.f32.mxu1 %vm175_vm4, %v381_v28 }
 0x29b   :  { %6856 = vmatmul.mubr.msk.f32.gmra.mxu1 %vm175_vm4, %v381_v28  ;;  %1672 = vrot.lane.b32.xlu1 %v467_v44, %s8177_s23 }
 0x29c   :  { %1682 = vrot.lane.b32.xlu0 %v472_v1, %s8177_s23  ;;  %6857 = vmatprep.mubr.msk.f32.mxu1 %vm175_vm4, %v382_v3 }
 0x29f   :  { %6858 = vmatmul.mubr.msk.f32.gmra.mxu1 %vm175_vm4, %v382_v3  ;;  %1668 = vrot.lane.b32.xlu1 %v465_v4, %s8177_s23 }
 0x2a0   :  { %1678 = vrot.lane.b32.xlu0 %v470_v26, %s8177_s23  ;;  %6859 = vmatprep.mubr.msk.f32.mxu1 %vm175_vm4, %v383_v27 }
 0x2a3   :  { %6860 = vmatmul.mubr.msk.f32.gmra.mxu1 %vm175_vm4, %v383_v27  ;;  %1692 = vrot.lane.b32.xlu1 %v477_v29, %s8177_s23 }
 0x2a4   :  { %1660 = vrot.lane.b32.xlu0 %v458_v33, %s8177_s23  ;;  %6861 = vmatprep.mubr.msk.f32.mxu1 %vm175_vm4, %v384_v39 }
 0x2a7   :  { %6862 = vmatmul.mubr.msk.f32.gmra.mxu1 %vm175_vm4, %v384_v39 }
 0x2a8   :  { %1674 = vrot.lane.b32.xlu0 %v468_v42, %s8177_s23  ;;  %6863 = vmatprep.mubr.msk.f32.mxu1 %vm175_vm4, %v385_v43 }
 0x2ab   :  { %6864 = vmatmul.mubr.msk.f32.gmra.mxu1 %vm175_vm4, %v385_v43 }
 0x2ac   :  { %1670 = vrot.lane.b32.xlu0 %v466_v45, %s8177_s23  ;;  %6865 = vmatprep.mubr.msk.f32.mxu1 %vm175_vm4, %v386_v48 }
 0x2af   :  { %6866 = vmatmul.mubr.msk.f32.gmra.mxu1 %vm175_vm4, %v386_v48 }
 0x2b0   :  { %6867 = vmatprep.mubr.msk.f32.mxu1 %vm175_vm4, %v387_v54 }
 0x2b3   :  { %6868 = vmatmul.mubr.msk.f32.gmra.mxu1 %vm175_vm4, %v387_v54 }
 0x2b4   :  { %6869 = vmatprep.mubr.msk.f32.mxu1 %vm175_vm4, %v388_v55 }
 0x2b7   :  { %6870 = vmatmul.mubr.msk.f32.gmra.mxu1 %vm175_vm4, %v388_v55 }
 0x2b8   :  { %6871 = vmatprep.mubr.msk.f32.mxu1 %vm175_vm4, %v389_v57 }
 0x2bb   :  { %6872 = vmatmul.mubr.msk.f32.gmra.mxu1 %vm175_vm4, %v389_v57 }
 0x2bc   :  { %6873 = vmatprep.mubr.msk.f32.mxu1 %vm175_vm4, %v390_v37 }
 0x2bf   :  { %6874 = vmatmul.mubr.msk.f32.gmra.mxu1 %vm175_vm4, %v390_v37 }
 0x2c0   :  { %6875 = vmatprep.mubr.msk.f32.mxu1 %vm175_vm4, %v391_v34 }
 0x2c3   :  { %6876 = vmatmul.mubr.msk.f32.gmra.mxu1 %vm175_vm4, %v391_v34 }
 0x2c4   :  { %6877 = vmatprep.mubr.msk.f32.mxu1 %vm175_vm4, %v392_v47 }
 0x2c7   :  { %6878 = vmatmul.mubr.msk.f32.gmra.mxu1 %vm175_vm4, %v392_v47  ;;  %v107_v47 = vld [vmem:[#allocation5] sm:$0xff] }
 0x2c8   :  { %6879 = vmatprep.mubr.msk.f32.mxu1 %vm175_vm4, %v393_v41 }
 0x2cb   :  { %6880 = vmatmul.mubr.msk.f32.gmra.mxu1 %vm175_vm4, %v393_v41 }
 0x2cc   :  { %6881 = vmatprep.mubr.msk.f32.mxu1 %vm175_vm4, %v394_v52 }
 0x2cf   :  { %6882 = vmatmul.mubr.msk.f32.gmra.mxu1 %vm175_vm4, %v394_v52  ;;  %v108_v52 = vld [vmem:[#allocation5 + $0x8] sm:$0xff] }
 0x2d0   :  { %6883 = vmatprep.mubr.msk.f32.mxu1 %vm175_vm4, %v395_v46 }
 0x2d3   :  { %6884 = vmatmul.mubr.msk.f32.gmra.mxu1 %vm175_vm4, %v395_v46 }
 0x2d4   :  { %6885 = vmatprep.mubr.msk.f32.mxu1 %vm175_vm4, %v396_v53 }
 0x2d7   :  { %6886 = vmatmul.mubr.msk.f32.gmra.mxu1 %vm175_vm4, %v396_v53 }
 0x2d8   :  { %6887 = vmatprep.mubr.msk.f32.mxu1 %vm175_vm4, %v397_v50 }
 0x2db   :  { %6888 = vmatmul.mubr.msk.f32.gmra.mxu1 %vm175_vm4, %v397_v50 }
 0x2dc   :  { %6889 = vmatprep.mubr.msk.f32.mxu1 %vm175_vm4, %v398_v60 }
 0x2df   :  { %6890 = vmatmul.mubr.msk.f32.gmra.mxu1 %vm175_vm4, %v398_v60 }
 0x2e0   :  { %6891 = vmatprep.mubr.msk.f32.mxu1 %vm175_vm4, %v399_v56 }
 0x2e1   :  { %v1663_v31 = vpop.permute.xlu1 %1662 }
 0x2e2   :  { %v1659_v7 = vpop.permute.xlu0 %1658  ;;  %1729 = vmatpush1.msra.mxu0 %v1663_v31 }
 0x2e3   :  { %6892 = vmatmul.mubr.msk.f32.gmra.mxu1 %vm175_vm4, %v399_v56  ;;  %1730 = vmatprep.subr.mxu0 %v11418_v2 }
 0x2e4   :  { %6893 = vmatprep.mubr.msk.f32.mxu1 %vm175_vm4, %v400_v58 }
 0x2e5   :  { %v1655_v59 = vpop.permute.xlu1 %1654 }
 0x2e6   :  { %v1657_v0 = vpop.permute.xlu0 %1656 }
 0x2e7   :  { %6894 = vmatmul.mubr.msk.f32.gmra.mxu1 %vm175_vm4, %v400_v58 }
 0x2e9   :  { %v1647_v63 = vpop.permute.xlu1 %1646 }
 0x2ea   :  { %v1653_v40 = vpop.permute.xlu0 %1652 }
 0x2ed   :  { %v1645_v44 = vpop.permute.xlu1 %1644 }
 0x2ee   :  { %v1651_v61 = vpop.permute.xlu0 %1650 }
 0x2f1   :  { %v1643_v4 = vpop.permute.xlu1 %1642 }
 0x2f2   :  { %v1649_v62 = vpop.permute.xlu0 %1648 }
 0x2f5   :  { %v1635_v26 = vpop.permute.xlu1 %1634 }
 0x2f6   :  { %v1641_v28 = vpop.permute.xlu0 %1640 }
 0x2f9   :  { %v1633_v33 = vpop.permute.xlu1 %1632 }
 0x2fa   :  { %v1639_v1 = vpop.permute.xlu0 %1638 }
 0x2fd   :  { %v8743_v42 = vpop.permute.xlu1 %1688 }
 0x2fe   :  { %v1637_v3 = vpop.permute.xlu0 %1636 }
 0x301   :  { %v8747_v48 = vpop.permute.xlu1 %1684 }
 0x302   :  { %v8735_v32 = vpop.permute.xlu0 %1694 }
 0x305   :  { %v8752_v54 = vpop.permute.xlu1 %1680 }
 0x306   :  { %v8737_v27 = vpop.permute.xlu0 %1690 }
 0x309   :  { %v8757_v55 = vpop.permute.xlu1 %1676 }
 0x30a   :  { %v8739_v29 = vpop.permute.xlu0 %1686 }
 0x30d   :  { %v8762_v57 = vpop.permute.xlu1 %1672 }
 0x30e   :  { %v8741_v39 = vpop.permute.xlu0 %1682 }
 0x311   :  { %v8767_v50 = vpop.permute.xlu1 %1668 }
 0x312   :  { %v8745_v43 = vpop.permute.xlu0 %1678 }
 0x316   :  { %v1661_v45 = vpop.permute.xlu0 %1660 }
 0x317   :  { %1731 = vmatpush1.msra.mxu0 %v1661_v45 }
 0x318   :  { %1732 = vmatprep.subr.mxu0 %v11418_v2 }
 0x319   :  { %1733 = vmatpush1.msra.mxu0 %v1659_v7  ;;  %v109_v7 = vld [vmem:[#allocation5 + $0x10] sm:$0xff] }
 0x31a   :  { %1734 = vmatprep.subr.mxu0 %v11418_v2 }
 0x31b   :  { %1735 = vmatpush1.msra.mxu0 %v1657_v0  ;;  %v110_v0 = vld [vmem:[#allocation5 + $0x18] sm:$0xff] }
 0x31c   :  { %1736 = vmatprep.subr.mxu0 %v11418_v2 }
 0x31d   :  { %1737 = vmatpush1.msra.mxu0 %v1655_v59 }
 0x31e   :  { %1738 = vmatprep.subr.mxu0 %v11418_v2 }
 0x31f   :  { %1739 = vmatpush1.msra.mxu0 %v1653_v40 }
 0x320   :  { %1740 = vmatprep.subr.mxu0 %v11418_v2 }
 0x321   :  { %1741 = vmatpush1.msra.mxu0 %v1651_v61 }
 0x322   :  { %1742 = vmatprep.subr.mxu0 %v11418_v2 }
 0x323   :  { %1743 = vmatpush1.msra.mxu0 %v1649_v62 }
 0x324   :  { %1744 = vmatprep.subr.mxu0 %v11418_v2 }
 0x325   :  { %1745 = vmatpush1.msra.mxu0 %v1647_v63 }
 0x326   :  { %1746 = vmatprep.subr.mxu0 %v11418_v2 }
 0x327   :  { %1747 = vmatpush1.msra.mxu0 %v1645_v44  ;;  %v111_v44 = vld [vmem:[#allocation5 + $0x20] sm:$0xff] }
 0x328   :  { %1748 = vmatprep.subr.mxu0 %v11418_v2 }
 0x329   :  { %1749 = vmatpush1.msra.mxu0 %v1643_v4  ;;  %v1693_v4 = vpop.permute.xlu1 %1692 }
 0x32a   :  { %1750 = vmatprep.subr.mxu0 %v11418_v2 }
 0x32b   :  { %1751 = vmatpush1.msra.mxu0 %v1641_v28  ;;  %v801_v37 = vpop.f32.mrf.mxu1 }
 0x32c   :  { %v992_v34 = vmul.f32 0.5, %v801_v37  ;;  %1752 = vmatprep.subr.mxu0 %v11418_v2 }
 0x32d   :  { %1753 = vmatpush1.msra.mxu0 %v1639_v1  ;;  %v803_v41 = vpop.f32.mrf.mxu1 }
 0x32e   :  { %v993_v46 = vmul.f32 0.5, %v803_v41  ;;  %1754 = vmatprep.subr.mxu0 %v11418_v2  ;;  %v8769_v60 = vadd.f32 %v992_v34, %v107_v47 }
 0x32f   :  { %1755 = vmatpush1.msra.mxu0 %v1637_v3  ;;  %v807_v53 = vpop.f32.mrf.mxu1  ;;  %v112_v3 = vld [vmem:[#allocation5 + $0x28] sm:$0xff] }
 0x330   :  { %v994_v56 = vmul.f32 0.5, %v807_v53  ;;  %1756 = vmatprep.subr.mxu0 %v11418_v2  ;;  %v8772_v31 = vadd.f32 %v993_v46, %v108_v52  ;;  %v114_v52 = vld [vmem:[#allocation5 + $0x38] sm:$0xff] }
 0x331   :  { %1757 = vmatpush1.msra.mxu0 %v1635_v26  ;;  %v809_v58 = vpop.f32.mrf.mxu1 }
 0x332   :  { %v995_v40 = vmul.f32 0.5, %v809_v58  ;;  %1758 = vmatprep.subr.mxu0 %v11418_v2  ;;  %v1120_v59 = vmax.f32 %v8769_v60, %v8772_v31  ;;  %v8777_v62 = vadd.f32 %v994_v56, %v109_v7 }
 0x333   :  { %1759 = vmatpush1.msra.mxu0 %v1633_v33  ;;  %v813_v61 = vpop.f32.mrf.mxu1 }
 0x334   :  { %v996_v63 = vmul.f32 0.5, %v813_v61  ;;  %1760 = vmatprep.subr.mxu0 %v11418_v2  ;;  %1121 = vmax.xlane.f32.xlu0 %v1120_v59  ;;  %v8780_v28 = vadd.f32 %v995_v40, %v110_v0  ;;  %v116_v59 = vld [vmem:[#allocation5 + $0x48] sm:$0xff] }
 0x335   :  { %1761 = vmatpush2.msra.mxu0 %v8735_v32  ;;  %v815_v1 = vpop.f32.mrf.mxu1  ;;  %v113_v32 = vld [vmem:[#allocation5 + $0x30] sm:$0xff] }
 0x336   :  { %v997_v26 = vmul.f32 0.5, %v815_v1  ;;  %1762 = vmatprep.subr.mxu0 %v11418_v2  ;;  %v1123_v33 = vmax.f32 %v8777_v62, %v8780_v28  ;;  %v8786_v37 = vadd.f32 %v996_v63, %v111_v44 }
 0x337   :  { %1763 = vmatpush2.msra.mxu0 %v1693_v4  ;;  %v819_v45 = vpop.f32.mrf.mxu1 }
 0x338   :  { %v998_v34 = vmul.f32 0.5, %v819_v45  ;;  %1764 = vmatprep.subr.mxu0 %v11418_v2  ;;  %1124 = vmax.xlane.f32.xlu1 %v1123_v33  ;;  %v8789_v47 = vadd.f32 %v997_v26, %v112_v3  ;;  %v118_v26 = vld [vmem:[#allocation5 + $0x58] sm:$0xff] }
 0x339   :  { %1765 = vmatpush2.msra.mxu0 %v8737_v27  ;;  %v821_v41 = vpop.f32.mrf.mxu1  ;;  %v115_v27 = vld [vmem:[#allocation5 + $0x40] sm:$0xff] }
 0x33a   :  { %v999_v46 = vmul.f32 0.5, %v821_v41  ;;  %1766 = vmatprep.subr.mxu0 %v11418_v2  ;;  %v1126_v53 = vmax.f32 %v8786_v37, %v8789_v47  ;;  %v8796_v7 = vadd.f32 %v998_v34, %v113_v32 }
 0x33b   :  { %1767 = vmatpush2.msra.mxu0 %v8743_v42  ;;  %v825_v56 = vpop.f32.mrf.mxu1 }
 0x33c   :  { %v1000_v58 = vmul.f32 0.5, %v825_v56  ;;  %1768 = vmatprep.subr.mxu0 %v11418_v2  ;;  %1127 = vmax.xlane.f32.xlu0 %v1126_v53  ;;  %v8799_v0 = vadd.f32 %v999_v46, %v114_v52  ;;  %v120_v46 = vld [vmem:[#allocation5 + $0x68] sm:$0xff]  ;;  %v1675_v53 = vpop.permute.xlu0 %1674 }
 0x33d   :  { %1769 = vmatpush2.msra.mxu0 %v8739_v29  ;;  %v827_v40 = vpop.f32.mrf.mxu1  ;;  %v117_v29 = vld [vmem:[#allocation5 + $0x50] sm:$0xff] }
 0x33e   :  { %v1001_v61 = vmul.f32 0.5, %v827_v40  ;;  %1770 = vmatprep.subr.mxu0 %v11418_v2  ;;  %v1129_v42 = vmax.f32 %v8796_v7, %v8799_v0  ;;  %v8806_v44 = vadd.f32 %v1000_v58, %v115_v27 }
 0x33f   :  { %1771 = vmatpush2.msra.mxu0 %v8747_v48  ;;  %v831_v63 = vpop.f32.mrf.mxu1 }
 0x340   :  { %v1002_v1 = vmul.f32 0.5, %v831_v63  ;;  %1772 = vmatprep.subr.mxu0 %v11418_v2  ;;  %1130 = vmax.xlane.f32.xlu0 %v1129_v42  ;;  %v8809_v3 = vadd.f32 %v1001_v61, %v116_v59  ;;  %v122_v42 = vld [vmem:[#allocation5 + $0x78] sm:$0xff] }
 0x341   :  { %1773 = vmatpush2.msra.mxu0 %v8741_v39  ;;  %v833_v4 = vpop.f32.mrf.mxu1  ;;  %v119_v39 = vld [vmem:[#allocation5 + $0x60] sm:$0xff] }
 0x342   :  { %v1003_v33 = vmul.f32 0.5, %v833_v4  ;;  %1774 = vmatprep.subr.mxu0 %v11418_v2  ;;  %v1132_v48 = vmax.f32 %v8806_v44, %v8809_v3  ;;  %v8816_v34 = vadd.f32 %v1002_v1, %v117_v29  ;;  %v1671_v29 = vpop.permute.xlu0 %1670 }
 0x343   :  { %1775 = vmatpush2.msra.mxu0 %v8752_v54  ;;  %v837_v45 = vpop.f32.mrf.mxu1 }
 0x344   :  { %v1004_v32 = vmul.f32 0.5, %v837_v45  ;;  %1776 = vmatprep.subr.mxu0 %v11418_v2  ;;  %1133 = vmax.xlane.f32.xlu0 %v1132_v48  ;;  %v8819_v41 = vadd.f32 %v1003_v33, %v118_v26  ;;  %v123_v48 = vld [vmem:[#allocation5 + $0x80] sm:$0xff] }
 0x345   :  { %1777 = vmatpush2.msra.mxu0 %v8745_v43  ;;  %v839_v52 = vpop.f32.mrf.mxu1  ;;  %v121_v43 = vld [vmem:[#allocation5 + $0x70] sm:$0xff] }
 0x346   :  { %v1005_v56 = vmul.f32 0.5, %v839_v52  ;;  %1778 = vmatprep.subr.mxu0 %v11418_v2  ;;  %v1135_v54 = vmax.f32 %v8816_v34, %v8819_v41  ;;  %v8826_v27 = vadd.f32 %v1004_v32, %v119_v39  ;;  %v124_v32 = vld [vmem:[#allocation5 + $0x88] sm:$0xff] }
 0x347   :  { %1779 = vmatpush2.msra.mxu0 %v8757_v55  ;;  %v843_v58 = vpop.f32.mrf.mxu1 }
 0x348   :  { %v1006_v40 = vmul.f32 0.5, %v843_v58  ;;  %1780 = vmatprep.subr.mxu0 %v11418_v2  ;;  %1136 = vmax.xlane.f32.xlu1 %v1135_v54  ;;  %v8829_v59 = vadd.f32 %v1005_v56, %v120_v46  ;;  %v125_v54 = vld [vmem:[#allocation5 + $0x90] sm:$0xff] }
 0x349   :  { %1781 = vmatpush2.msra.mxu0 %v1675_v53  ;;  %v845_v61 = vpop.f32.mrf.mxu1 }
 0x34a   :  { %v1007_v63 = vmul.f32 0.5, %v845_v61  ;;  %1782 = vmatprep.subr.mxu0 %v11418_v2  ;;  %v1138_v1 = vmax.f32 %v8826_v27, %v8829_v59  ;;  %v8835_v4 = vadd.f32 %v1006_v40, %v121_v43  ;;  %v126_v40 = vld [vmem:[#allocation5 + $0x98] sm:$0xff] }
 0x34b   :  { %1783 = vmatpush2.msra.mxu0 %v8762_v57  ;;  %v849_v55 = vpop.f32.mrf.mxu1 }
 0x34c   :  { %v1008_v26 = vmul.f32 0.5, %v849_v55  ;;  %1784 = vmatprep.subr.mxu0 %v11418_v2  ;;  %1139 = vmax.xlane.f32.xlu0 %v1138_v1  ;;  %v8838_v33 = vadd.f32 %v1007_v63, %v122_v42  ;;  %v127_v55 = vld [vmem:[#allocation5 + $0xa0] sm:$0xff] }
 0x34d   :  { %1785 = vmatpush2.msra.mxu0 %v1671_v29  ;;  %v851_v45 = vpop.f32.mrf.mxu1 }
 0x34e   :  { %v1009_v39 = vmul.f32 0.5, %v851_v45  ;;  %1786 = vmatprep.subr.mxu0 %v11418_v2  ;;  %v1141_v57 = vmax.f32 %v8835_v4, %v8838_v33  ;;  %v8844_v46 = vadd.f32 %v1008_v26, %v123_v48  ;;  %v128_v26 = vld [vmem:[#allocation5 + $0xa8] sm:$0xff] }
 0x34f   :  { %1787 = vmatpush2.msra.mxu0 %v8767_v50  ;;  %v855_v52 = vpop.f32.mrf.mxu1 }
 0x350   :  { %v1010_v53 = vmul.f32 0.5, %v855_v52  ;;  %1142 = vmax.xlane.f32.xlu1 %v1141_v57  ;;  %v8846_v56 = vadd.f32 %v1009_v39, %v124_v32  ;;  %1788 = vmatprep.subr.mxu0 %v11418_v2 }
 0x351   :  { %v857_v58 = vpop.f32.mrf.mxu1 }
 0x352   :  { %v1011_v43 = vmul.f32 0.5, %v857_v58  ;;  %v1144_v61 = vmax.f32 %v8844_v46, %v8846_v56  ;;  %v8851_v63 = vadd.f32 %v1010_v53, %v125_v54  ;;  %v129_v53 = vld [vmem:[#allocation5 + $0xb0] sm:$0xff]  ;;  %v130_v58 = vld [vmem:[#allocation5 + $0xb8] sm:$0xff] }
 0x353   :  { %v861_v42 = vpop.f32.mrf.mxu1 }
 0x354   :  { %v1012_v50 = vmul.f32 0.5, %v861_v42  ;;  %1145 = vmax.xlane.f32.xlu0 %v1144_v61  ;;  %v8853_v1 = vadd.f32 %v1011_v43, %v126_v40 }
 0x355   :  { %v863_v29 = vpop.f32.mrf.mxu1 }
 0x356   :  { %v1013_v48 = vmul.f32 0.5, %v863_v29  ;;  %v1147_v45 = vmax.f32 %v8851_v63, %v8853_v1  ;;  %v8857_v39 = vadd.f32 %v1012_v50, %v127_v55  ;;  %v131_v50 = vld [vmem:[#allocation5 + $0xc0] sm:$0xff] }
 0x357   :  { %v867_v32 = vpop.f32.mrf.mxu1 }
 0x358   :  { %v1014_v57 = vmul.f32 0.5, %v867_v32  ;;  %1148 = vmax.xlane.f32.xlu1 %v1147_v45  ;;  %v8859_v52 = vadd.f32 %v1013_v48, %v128_v26  ;;  %v132_v32 = vld [vmem:[#allocation5 + $0xc8] sm:$0xff] }
 0x359   :  { %v869_v54 = vpop.f32.mrf.mxu1 }
 0x35a   :  { %v1015_v61 = vmul.f32 0.5, %v869_v54  ;;  %v1150_v40 = vmax.f32 %v8857_v39, %v8859_v52  ;;  %v8863_v42 = vadd.f32 %v1014_v57, %v129_v53  ;;  %v133_v57 = vld [vmem:[#allocation5 + $0xd0] sm:$0xff]  ;;  %v134_v53 = vld [vmem:[#allocation5 + $0xd8] sm:$0xff] }
 0x35b   :  { %v873_v43 = vpop.f32.mrf.mxu1 }
 0x35c   :  { %v1016_v29 = vmul.f32 0.5, %v873_v43  ;;  %1151 = vmax.xlane.f32.xlu0 %v1150_v40  ;;  %v8865_v25 = vadd.f32 %v1015_v61, %v130_v58 }
 0x35d   :  { %v875_v55 = vpop.f32.mrf.mxu1 }
 0x35e   :  { %v1017_v45 = vmul.f32 0.5, %v875_v55  ;;  %v1153_v26 = vmax.f32 %v8863_v42, %v8865_v25  ;;  %v8869_v2 = vadd.f32 %v1016_v29, %v131_v50  ;;  %v135_v29 = vld [vmem:[#allocation5 + $0xe0] sm:$0xff] }
 0x35f   :  { %v879_v48 = vpop.f32.mrf.mxu1 }
 0x360   :  { %v1018_v54 = vmul.f32 0.5, %v879_v48  ;;  %1154 = vmax.xlane.f32.xlu1 %v1153_v26  ;;  %v8871_v6 = vadd.f32 %v1017_v45, %v132_v32  ;;  %v136_v48 = vld [vmem:[#allocation5 + $0xe8] sm:$0xff] }
 0x361   :  { %v881_v43 = vpop.f32.mrf.mxu1 }
 0x362   :  { %v1019_v40 = vmul.f32 0.5, %v881_v43  ;;  %v1156_v58 = vmax.f32 %v8869_v2, %v8871_v6  ;;  %v8875_v51 = vadd.f32 %v1018_v54, %v133_v57  ;;  %v137_v54 = vld [vmem:[#allocation5 + $0xf0] sm:$0xff]  ;;  %v138_v57 = vld [vmem:[#allocation5 + $0xf8] sm:$0xff] }
 0x363   :  { %v885_v61 = vpop.f32.mrf.mxu1 }
 0x364   :  { %11555 = vst [vmem:[#allocation34_spill] sm:$0xff] %v8875_v51  ;;  %v8877_v55 = vadd.f32 %v1019_v40, %v134_v53  ;;  %v1020_v36 = vmul.f32 0.5, %v885_v61  ;;  %1157 = vmax.xlane.f32.xlu0 %v1156_v58 }
 0x365   :  { %v887_v50 = vpop.f32.mrf.mxu1 }
 0x366   :  { %11556 = vst [vmem:[#allocation35_spill] sm:$0xff] %v8877_v55  ;;  %v1021_v26 = vmul.f32 0.5, %v887_v50  ;;  %v1159_v32 = vmax.f32 %v8875_v51, %v8877_v55  ;;  %v8881_v49 = vadd.f32 %v1020_v36, %v135_v29  ;;  %v139_v36 = vld [vmem:[#allocation5 + $0x100] sm:$0xff] }
 0x367   :  { %v891_v45 = vpop.f32.mrf.mxu1 }
 0x368   :  { %11557 = vst [vmem:[#allocation36_spill] sm:$0xff] %v8881_v49  ;;  %v1022_v43 = vmul.f32 0.5, %v891_v45  ;;  %1160 = vmax.xlane.f32.xlu1 %v1159_v32  ;;  %v8883_v5 = vadd.f32 %v1021_v26, %v136_v48  ;;  %v140_v45 = vld [vmem:[#allocation5 + $0x108] sm:$0xff] }
 0x369   :  { %v893_v53 = vpop.f32.mrf.mxu1 }
 0x36a   :  { %11558 = vst [vmem:[#allocation37_spill] sm:$0xff] %v8883_v5  ;;  %v1023_v40 = vmul.f32 0.5, %v893_v53  ;;  %v1162_v58 = vmax.f32 %v8881_v49, %v8883_v5  ;;  %v8887_v22 = vadd.f32 %v1022_v43, %v137_v54  ;;  %v141_v43 = vld [vmem:[#allocation5 + $0x110] sm:$0xff]  ;;  %v142_v54 = vld [vmem:[#allocation5 + $0x118] sm:$0xff]  ;;  %v151_v5 = vld [vmem:[#allocation5 + $0x160] sm:$0xff] }
 0x36b   :  { %v897_v61 = vpop.f32.mrf.mxu1  ;;  %v169_v49 = vld [vmem:[#allocation5 + $0x1f0] sm:$0xff] }
 0x36c   :  { %11559 = vst [vmem:[#allocation38_spill] sm:$0xff] %v8887_v22  ;;  %v8889_v50 = vadd.f32 %v1023_v40, %v138_v57  ;;  %v1024_v23 = vmul.f32 0.5, %v897_v61  ;;  %1163 = vmax.xlane.f32.xlu0 %v1162_v58 }
 0x36d   :  { %v899_v29 = vpop.f32.mrf.mxu1 }
 0x36e   :  { %11560 = vst [vmem:[#allocation39_spill] sm:$0xff] %v8889_v50  ;;  %v1025_v32 = vmul.f32 0.5, %v899_v29  ;;  %v1165_v48 = vmax.f32 %v8887_v22, %v8889_v50  ;;  %v8893_v20 = vadd.f32 %v1024_v23, %v139_v36  ;;  %v143_v23 = vld [vmem:[#allocation5 + $0x120] sm:$0xff] }
 0x36f   :  { %v903_v26 = vpop.f32.mrf.mxu1 }
 0x370   :  { %11561 = vst [vmem:[#allocation40_spill] sm:$0xff] %v8893_v20  ;;  %v1026_v53 = vmul.f32 0.5, %v903_v26  ;;  %1166 = vmax.xlane.f32.xlu1 %v1165_v48  ;;  %v8895_v21 = vadd.f32 %v1025_v32, %v140_v45  ;;  %v144_v26 = vld [vmem:[#allocation5 + $0x128] sm:$0xff] }
 0x371   :  { %v905_v57 = vpop.f32.mrf.mxu1 }
 0x372   :  { %11562 = vst [vmem:[#allocation41_spill] sm:$0xff] %v8895_v21  ;;  %v1027_v40 = vmul.f32 0.5, %v905_v57  ;;  %v1168_v58 = vmax.f32 %v8893_v20, %v8895_v21  ;;  %v8899_v18 = vadd.f32 %v1026_v53, %v141_v43  ;;  %v145_v53 = vld [vmem:[#allocation5 + $0x130] sm:$0xff]  ;;  %v170_v21 = vld [vmem:[#allocation5 + $0x1f8] sm:$0xff] }
 0x373   :  { %v909_v61 = vpop.f32.mrf.mxu1 }
 0x374   :  { %11563 = vst [vmem:[#allocation42_spill] sm:$0xff] %v8899_v18  ;;  %v8901_v29 = vadd.f32 %v1027_v40, %v142_v54  ;;  %v1028_v19 = vmul.f32 0.5, %v909_v61  ;;  %1169 = vmax.xlane.f32.xlu0 %v1168_v58  ;;  %v146_v54 = vld [vmem:[#allocation5 + $0x138] sm:$0xff] }
 0x375   :  { %v911_v36 = vpop.f32.mrf.mxu1 }
 0x376   :  { %11564 = vst [vmem:[#allocation43_spill] sm:$0xff] %v8901_v29  ;;  %v1029_v48 = vmul.f32 0.5, %v911_v36  ;;  %v1171_v45 = vmax.f32 %v8899_v18, %v8901_v29  ;;  %v8905_v16 = vadd.f32 %v1028_v19, %v143_v23  ;;  %v147_v19 = vld [vmem:[#allocation5 + $0x140] sm:$0xff]  ;;  %v148_v23 = vld [vmem:[#allocation5 + $0x148] sm:$0xff] }
 0x377   :  { %v915_v32 = vpop.f32.mrf.mxu1  ;;  %v152_v18 = vld [vmem:[#allocation5 + $0x168] sm:$0xff] }
 0x378   :  { %11565 = vst [vmem:[#allocation44_spill] sm:$0xff] %v8905_v16  ;;  %v1030_v57 = vmul.f32 0.5, %v915_v32  ;;  %1172 = vmax.xlane.f32.xlu1 %v1171_v45  ;;  %v8907_v17 = vadd.f32 %v1029_v48, %v144_v26 }
 0x379   :  { %v917_v43 = vpop.f32.mrf.mxu1 }
 0x37a   :  { %11566 = vst [vmem:[#allocation45_spill] sm:$0xff] %v8907_v17  ;;  %v1031_v40 = vmul.f32 0.5, %v917_v43  ;;  %v1174_v58 = vmax.f32 %v8905_v16, %v8907_v17  ;;  %v8911_v14 = vadd.f32 %v1030_v57, %v145_v53 }
 0x37b   :  { %v921_v61 = vpop.f32.mrf.mxu1 }
 0x37c   :  { %11567 = vst [vmem:[#allocation46_spill] sm:$0xff] %v8911_v14  ;;  %v1032_v36 = vmul.f32 0.5, %v921_v61  ;;  %1175 = vmax.xlane.f32.xlu0 %v1174_v58  ;;  %v8913_v15 = vadd.f32 %v1031_v40, %v146_v54 }
 0x37d   :  { %v923_v32 = vpop.f32.mrf.mxu1 }
 0x37e   :  { %11568 = vst [vmem:[#allocation47_spill] sm:$0xff] %v8913_v15  ;;  %v1033_v45 = vmul.f32 0.5, %v923_v32  ;;  %v1177_v26 = vmax.f32 %v8911_v14, %v8913_v15  ;;  %v8917_v12 = vadd.f32 %v1032_v36, %v147_v19  ;;  %v463_v36 = vmul.f32 %v8581_v35, %v8323_v30  ;;  %v149_v14 = vld [vmem:[#allocation5 + $0x150] sm:$0xff] }
 0x37f   :  { %v927_v48 = vpop.f32.mrf.mxu1  ;;  %v464_v19 = vmul.f32 %v8581_v35, %v8340_v38 }
 0x380   :  { %11569 = vst [vmem:[#allocation48_spill] sm:$0xff] %v8917_v12  ;;  %v8919_v43 = vadd.f32 %v1033_v45, %v148_v23  ;;  %1178 = vmax.xlane.f32.xlu0 %v1177_v26  ;;  %v1034_v15 = vmul.f32 0.5, %v927_v48 }
 0x381   :  { %v929_v13 = vpop.f32.mrf.mxu1 }
 0x382   :  { %11570 = vst [vmem:[#allocation49_spill] sm:$0xff] %v8919_v43  ;;  %v1180_v57 = vmax.f32 %v8917_v12, %v8919_v43  ;;  %v150_v12 = vld [vmem:[#allocation5 + $0x158] sm:$0xff]  ;;  %v8949_v20 = vadd.f32 %v1034_v15, %v149_v14  ;;  %v153_v14 = vld [vmem:[#allocation5 + $0x170] sm:$0xff] }
 0x383   :  { %v933_v53 = vpop.f32.mrf.mxu1 }
 0x384   :  { %1181 = vmax.xlane.f32.xlu1 %v1180_v57  ;;  %v1036_v50 = vmul.f32 0.5, %v933_v53 }
 0x385   :  { %v935_v54 = vpop.f32.mrf.mxu1 }
 0x386   :  { %v1037_v16 = vmul.f32 0.5, %v935_v54 }
 0x387   :  { %v939_v40 = vpop.f32.mrf.mxu1 }
 0x388   :  { %v8951_v55 = vadd.f32 %v1037_v16, %v152_v18  ;;  %v1038_v54 = vmul.f32 0.5, %v939_v40 }
 0x389   :  { %v941_v58 = vpop.f32.mrf.mxu1 }
 0x38a   :  { %v1039_v51 = vmul.f32 0.5, %v941_v58 }
 0x38b   :  { %v945_v61 = vpop.f32.mrf.mxu1 }
 0x38c   :  { %v1040_v53 = vmul.f32 0.5, %v945_v61 }
 0x38d   :  { %v947_v32 = vpop.f32.mrf.mxu1 }
 0x38f   :  { %v951_v10 = vpop.f32.mrf.mxu1 }
 0x390   :  { %v1042_v58 = vmul.f32 0.5, %v951_v10 }
 0x391   :  { %v953_v11 = vpop.f32.mrf.mxu1 }
 0x393   :  { %v8923_v8 = vpop.f32.mrf.mxu1 }
 0x394   :  { %v1044_v10 = vmul.f32 0.5, %v8923_v8 }
 0x395   :  { %v959_v23 = vpop.f32.mrf.mxu1  ;;  %1664 = vrot.lane.b32.xlu1 %v463_v36, %s8177_s23  ;;  %v1035_v36 = vmul.f32 0.5, %v929_v13 }
 0x396   :  { %1666 = vrot.lane.b32.xlu0 %v464_v19, %s8177_s23 }
 0x397   :  { %v8931_v45 = vpop.f32.mrf.mxu1  ;;  %v8947_v17 = vadd.f32 %v1035_v36, %v150_v12  ;;  %v154_v12 = vld [vmem:[#allocation5 + $0x178] sm:$0xff]  ;;  %v8957_v36 = vadd.f32 %v1036_v50, %v151_v5  ;;  %v155_v5 = vld [vmem:[#allocation5 + $0x180] sm:$0xff] }
 0x398   :  { %v8961_v15 = vadd.f32 %v1039_v51, %v154_v12  ;;  %v158_v50 = vld [vmem:[#allocation5 + $0x198] sm:$0xff]  ;;  %v8973_v40 = vadd.f32 %v1040_v53, %v155_v5  ;;  %v159_v5 = vld [vmem:[#allocation5 + $0x1a0] sm:$0xff] }
 0x399   :  { %v8933_v26 = vpop.f32.mrf.mxu1  ;;  %v1183_v48 = vmax.f32 %v8949_v20, %v8947_v17  ;;  %v1186_v18 = vmax.f32 %v8957_v36, %v8951_v55  ;;  %v8991_v8 = vadd.f32 %v1044_v10, %v159_v5 }
 0x39b   :  { %v8935_v57 = vpop.f32.mrf.mxu1 }
 0x39c   :  { %v1048_v10 = vmul.f32 0.5, %v8935_v57 }
 0x39d   :  { %v8937_v9 = vpop.f32.mrf.mxu1 }
 0x39f   :  { %v8939_v24 = vpop.f32.mrf.mxu1 }
 0x3a1   :  { %v8941_v43 = vpop.f32.mrf.mxu1 }
 0x3a3   :  { %v8943_v30 = vpop.f32.mrf.mxu1 }
 0x3a5   :  { %v8945_v38 = vpop.f32.mrf.mxu1 }
 0x3a7   :  { %v987_v35 = vpop.f32.mrf.mxu1 }
 0x3a8   :  { %v1054_v22 = vmul.f32 0.5, %v987_v35  ;;  %v1041_v35 = vmul.f32 0.5, %v947_v32 }
 0x3a9   :  { %v989_v19 = vpop.f32.mrf.mxu1 }
 0x3aa   :  { %v1055_v29 = vmul.f32 0.5, %v989_v19  ;;  %v8959_v19 = vadd.f32 %v1054_v22, %v169_v49  ;;  %v1043_v49 = vmul.f32 0.5, %v953_v11 }
 0x3ac   :  { %v8953_v13 = vadd.f32 %v1055_v29, %v170_v21  ;;  %v156_v21 = vld [vmem:[#allocation5 + $0x188] sm:$0xff]  ;;  %v8967_v29 = vadd.f32 %v1038_v54, %v153_v14  ;;  %v8977_v54 = vadd.f32 %v1043_v49, %v158_v50  ;;  %v1045_v14 = vmul.f32 0.5, %v959_v23  ;;  %v162_v50 = vld [vmem:[#allocation5 + $0x1b8] sm:$0xff] }
 0x3ad   :  { %v8969_v22 = vadd.f32 %v1041_v35, %v156_v21  ;;  %v160_v35 = vld [vmem:[#allocation5 + $0x1a8] sm:$0xff]  ;;  %v1047_v23 = vmul.f32 0.5, %v8933_v26 }
 0x3ae   :  { %v1213_v16 = vmax.f32 %v8959_v19, %v8953_v13  ;;  %v1189_v51 = vmax.f32 %v8967_v29, %v8961_v15  ;;  %v8986_v49 = vadd.f32 %v1045_v14, %v160_v35  ;;  %v1049_v14 = vmul.f32 0.5, %v8937_v9  ;;  %v164_v35 = vld [vmem:[#allocation5 + $0x1c8] sm:$0xff] }
 0x3af   :  { %v1192_v11 = vmax.f32 %v8973_v40, %v8969_v22  ;;  %v8996_v26 = vadd.f32 %v1047_v23, %v162_v50  ;;  %v166_v23 = vld [vmem:[#allocation5 + $0x1d8] sm:$0xff] }
 0x3b0   :  { %v9006_v9 = vadd.f32 %v1049_v14, %v164_v35 }
 0x3b5   :  { %1184 = vmax.xlane.f32.xlu0 %v1183_v48  ;;  %v157_v48 = vld [vmem:[#allocation5 + $0x190] sm:$0xff] }
 0x3b6   :  { %v8981_v21 = vadd.f32 %v1042_v58, %v157_v48  ;;  %v1046_v48 = vmul.f32 0.5, %v8931_v45 }
 0x3b9   :  { %1214 = vmax.xlane.f32.xlu0 %v1213_v16  ;;  %1187 = vmax.xlane.f32.xlu1 %v1186_v18 }
 0x3bd   :  { %v1122_v32 = vpop.xlane.xlu0 %1121  ;;  %1190 = vmax.xlane.f32.xlu1 %v1189_v51  ;;  %v1195_v51 = vmax.f32 %v8981_v21, %v8977_v54 }
 0x3be   :  { %v1216_v12 = vsub.f32 %v8769_v60, %v1122_v32  ;;  %v1217_v61 = vsub.f32 %v8772_v31, %v1122_v32 }
 0x3c0   :  { %v1280_v16 = vmul.f32 1.442695, %v1216_v12  ;;  %v1282_v18 = vmul.f32 1.442695, %v1217_v61 }
 0x3c1   :  { %1193 = vmax.xlane.f32.xlu1 %v1192_v11  ;;  %v1125_v53 = vpop.xlane.xlu1 %1124  ;;  %v1198_v11 = vmax.f32 %v8991_v8, %v8986_v49 }
 0x3c2   :  { %7620 = vpow2.f32 %v1280_v16  ;;  %v1218_v60 = vsub.f32 %v8777_v62, %v1125_v53  ;;  %v1219_v31 = vsub.f32 %v8780_v28, %v1125_v53  ;;  %v161_v62 = vld [vmem:[#allocation5 + $0x1b0] sm:$0xff] }
 0x3c3   :  { %7622 = vpow2.f32 %v1282_v18  ;;  %v9001_v45 = vadd.f32 %v1046_v48, %v161_v62  ;;  %v1053_v62 = vmul.f32 0.5, %v8945_v38 }
 0x3c4   :  { %v1284_v58 = vmul.f32 1.442695, %v1218_v60  ;;  %v1286_v32 = vmul.f32 1.442695, %v1219_v31  ;;  %v1051_v60 = vmul.f32 0.5, %v8941_v43 }
 0x3c5   :  { %v1128_v12 = vpop.xlane.xlu0 %1127  ;;  %1196 = vmax.xlane.f32.xlu1 %v1195_v51  ;;  %v1201_v31 = vmax.f32 %v9001_v45, %v8996_v26 }
 0x3c6   :  { %7624 = vpow2.f32 %v1284_v58  ;;  %v1220_v28 = vsub.f32 %v8786_v37, %v1128_v12  ;;  %v1221_v61 = vsub.f32 %v8789_v47, %v1128_v12  ;;  %v163_v37 = vld [vmem:[#allocation5 + $0x1c0] sm:$0xff]  ;;  %v1050_v58 = vmul.f32 0.5, %v8939_v24  ;;  %v168_v24 = vld [vmem:[#allocation5 + $0x1e8] sm:$0xff] }
 0x3c7   :  { %7626 = vpow2.f32 %v1286_v32  ;;  %v9011_v57 = vadd.f32 %v1048_v10, %v163_v37  ;;  %v9018_v12 = vadd.f32 %v1051_v60, %v166_v23  ;;  %v9034_v37 = vadd.f32 %v1053_v62, %v168_v24 }
 0x3c8   :  { %v1288_v16 = vmul.f32 1.442695, %v1220_v28  ;;  %v1290_v18 = vmul.f32 1.442695, %v1221_v61 }
 0x3c9   :  { %v1131_v53 = vpop.xlane.xlu0 %1130  ;;  %1199 = vmax.xlane.f32.xlu1 %v1198_v11  ;;  %v1204_v28 = vmax.f32 %v9011_v57, %v9006_v9 }
 0x3ca   :  { %7628 = vpow2.f32 %v1288_v16  ;;  %v1222_v47 = vsub.f32 %v8796_v7, %v1131_v53  ;;  %v1223_v5 = vsub.f32 %v8799_v0, %v1131_v53  ;;  %v165_v7 = vld [vmem:[#allocation5 + $0x1d0] sm:$0xff] }
 0x3cb   :  { %7630 = vpow2.f32 %v1290_v18  ;;  %v9025_v35 = vadd.f32 %v1050_v58, %v165_v7  ;;  %v167_v18 = vld [vmem:[#allocation5 + $0x1e0] sm:$0xff] }
 0x3cc   :  { %v1292_v51 = vmul.f32 1.442695, %v1222_v47  ;;  %v1294_v50 = vmul.f32 1.442695, %v1223_v5 }
 0x3cd   :  { %v1134_v32 = vpop.xlane.xlu0 %1133  ;;  %1202 = vmax.xlane.f32.xlu1 %v1201_v31 }
 0x3ce   :  { %7632 = vpow2.f32 %v1292_v51  ;;  %v1224_v0 = vsub.f32 %v8806_v44, %v1134_v32  ;;  %v1225_v48 = vsub.f32 %v8809_v3, %v1134_v32  ;;  %v1052_v44 = vmul.f32 0.5, %v8943_v30 }
 0x3cf   :  { %v9016_v43 = vpop.eup %7620  ;;  %7634 = vpow2.f32 %v1294_v50  ;;  %v1207_v30 = vmax.f32 %v9025_v35, %v9018_v12 }
 0x3d0   :  { %v9023_v61 = vpop.eup %7622  ;;  %v1296_v14 = vmul.f32 1.442695, %v1224_v0  ;;  %v1298_v11 = vmul.f32 1.442695, %v1225_v48  ;;  %v9040_v31 = vadd.f32 %v1052_v44, %v167_v18 }
 0x3d1   :  { %1205 = vmax.xlane.f32.xlu1 %v1204_v28  ;;  %v1137_v3 = vpop.xlane.xlu1 %1136  ;;  %v1408_v16 = vadd.f32 %v9023_v61, %v9016_v43 }
 0x3d2   :  { %7636 = vpow2.f32 %v1296_v14  ;;  %v1226_v38 = vsub.f32 %v8816_v34, %v1137_v3  ;;  %v1227_v10 = vsub.f32 %v8819_v41, %v1137_v3  ;;  %v1210_v58 = vmax.f32 %v9040_v31, %v9034_v37 }
 0x3d3   :  { %v9032_v53 = vpop.eup %7624  ;;  %7638 = vpow2.f32 %v1298_v11  ;;  %1409 = vadd.xlane.f32.xlu0 %v1408_v16 }
 0x3d4   :  { %v9038_v47 = vpop.eup %7626  ;;  %v1300_v5 = vmul.f32 1.442695, %v1226_v38  ;;  %v1302_v60 = vmul.f32 1.442695, %v1227_v10 }
 0x3d5   :  { %v1140_v23 = vpop.xlane.xlu0 %1139  ;;  %1208 = vmax.xlane.f32.xlu1 %v1207_v30  ;;  %v1411_v34 = vadd.f32 %v9038_v47, %v9032_v53 }
 0x3d6   :  { %7640 = vpow2.f32 %v1300_v5  ;;  %v1228_v41 = vsub.f32 %v8826_v27, %v1140_v23  ;;  %v1229_v51 = vsub.f32 %v8829_v59, %v1140_v23 }
 0x3d7   :  { %v9046_v50 = vpop.eup %7628  ;;  %7642 = vpow2.f32 %v1302_v60  ;;  %1412 = vadd.xlane.f32.xlu0 %v1411_v34 }
 0x3d8   :  { %v9050_v32 = vpop.eup %7630  ;;  %v1304_v7 = vmul.f32 1.442695, %v1228_v41  ;;  %v1306_v0 = vmul.f32 1.442695, %v1229_v51 }
 0x3d9   :  { %1211 = vmax.xlane.f32.xlu1 %v1210_v58  ;;  %v1143_v48 = vpop.xlane.xlu1 %1142  ;;  %v1414_v62 = vadd.f32 %v9050_v32, %v9046_v50 }
 0x3da   :  { %7644 = vpow2.f32 %v1304_v7  ;;  %v1230_v27 = vsub.f32 %v8835_v4, %v1143_v48  ;;  %v1231_v59 = vsub.f32 %v8838_v33, %v1143_v48 }
 0x3db   :  { %v9056_v28 = vpop.eup %7632  ;;  %7646 = vpow2.f32 %v1306_v0  ;;  %1415 = vadd.xlane.f32.xlu0 %v1414_v62 }
 0x3dc   :  { %v9058_v24 = vpop.eup %7634  ;;  %v1308_v14 = vmul.f32 1.442695, %v1230_v27  ;;  %v1310_v11 = vmul.f32 1.442695, %v1231_v59 }
 0x3dd   :  { %v1146_v44 = vpop.xlane.xlu0 %1145  ;;  %v1417_v3 = vadd.f32 %v9058_v24, %v9056_v28 }
 0x3de   :  { %7648 = vpow2.f32 %v1308_v14  ;;  %v1232_v16 = vsub.f32 %v8844_v46, %v1146_v44  ;;  %v1233_v18 = vsub.f32 %v8846_v56, %v1146_v44 }
 0x3df   :  { %v9064_v4 = vpop.eup %7636  ;;  %7650 = vpow2.f32 %v1310_v11  ;;  %1418 = vadd.xlane.f32.xlu0 %v1417_v3 }
 0x3e0   :  { %v9066_v33 = vpop.eup %7638  ;;  %v1312_v38 = vmul.f32 1.442695, %v1232_v16  ;;  %v1314_v10 = vmul.f32 1.442695, %v1233_v18 }
 0x3e1   :  { %v1149_v30 = vpop.xlane.xlu1 %1148  ;;  %v1420_v5 = vadd.f32 %v9066_v33, %v9064_v4 }
 0x3e2   :  { %7652 = vpow2.f32 %v1312_v38  ;;  %v1234_v60 = vsub.f32 %v8851_v63, %v1149_v30  ;;  %v1235_v23 = vsub.f32 %v8853_v1, %v1149_v30 }
 0x3e3   :  { %v9072_v46 = vpop.eup %7640  ;;  %7654 = vpow2.f32 %v1314_v10  ;;  %1421 = vadd.xlane.f32.xlu0 %v1420_v5 }
 0x3e4   :  { %v9074_v56 = vpop.eup %7642  ;;  %v1316_v34 = vmul.f32 1.442695, %v1234_v60  ;;  %v1318_v41 = vmul.f32 1.442695, %v1235_v23 }
 0x3e5   :  { %v1152_v51 = vpop.xlane.xlu0 %1151  ;;  %v1423_v58 = vadd.f32 %v9074_v56, %v9072_v46 }
 0x3e6   :  { %7656 = vpow2.f32 %v1316_v34  ;;  %v1236_v7 = vsub.f32 %v8857_v39, %v1152_v51  ;;  %v1237_v0 = vsub.f32 %v8859_v52, %v1152_v51  ;;  %v11571_v34 = vld [vmem:[#allocation34_spill] sm:$0xff]  ;;  %v11572_v51 = vld [vmem:[#allocation35_spill] sm:$0xff] }
 0x3e7   :  { %v9080_v63 = vpop.eup %7644  ;;  %7658 = vpow2.f32 %v1318_v41  ;;  %1424 = vadd.xlane.f32.xlu0 %v1423_v58 }
 0x3e8   :  { %v9082_v1 = vpop.eup %7646  ;;  %v1320_v48 = vmul.f32 1.442695, %v1236_v7  ;;  %v1322_v62 = vmul.f32 1.442695, %v1237_v0 }
 0x3e9   :  { %v1155_v27 = vpop.xlane.xlu1 %1154  ;;  %v1426_v59 = vadd.f32 %v9082_v1, %v9080_v63 }
 0x3ea   :  { %7660 = vpow2.f32 %v1320_v48  ;;  %v1238_v14 = vsub.f32 %v8863_v42, %v1155_v27  ;;  %v1239_v11 = vsub.f32 %v8865_v25, %v1155_v27  ;;  %v11573_v27 = vld [vmem:[#allocation36_spill] sm:$0xff] }
 0x3eb   :  { %v9088_v39 = vpop.eup %7648  ;;  %7662 = vpow2.f32 %v1322_v62  ;;  %1427 = vadd.xlane.f32.xlu0 %v1426_v59 }
 0x3ec   :  { %v9090_v52 = vpop.eup %7650  ;;  %v1324_v44 = vmul.f32 1.442695, %v1238_v14  ;;  %v1326_v3 = vmul.f32 1.442695, %v1239_v11  ;;  %v11574_v14 = vld [vmem:[#allocation37_spill] sm:$0xff] }
 0x3ed   :  { %v1158_v16 = vpop.xlane.xlu0 %1157  ;;  %v1429_v18 = vadd.f32 %v9090_v52, %v9088_v39 }
 0x3ee   :  { %7664 = vpow2.f32 %v1324_v44  ;;  %v1240_v38 = vsub.f32 %v8869_v2, %v1158_v16  ;;  %v1241_v10 = vsub.f32 %v8871_v6, %v1158_v16 }
 0x3ef   :  { %v9096_v42 = vpop.eup %7652  ;;  %7666 = vpow2.f32 %v1326_v3  ;;  %1430 = vadd.xlane.f32.xlu0 %v1429_v18 }
 0x3f0   :  { %v9098_v25 = vpop.eup %7654  ;;  %v1328_v30 = vmul.f32 1.442695, %v1240_v38  ;;  %v1330_v5 = vmul.f32 1.442695, %v1241_v10 }
 0x3f1   :  { %v1161_v60 = vpop.xlane.xlu1 %1160  ;;  %v1432_v23 = vadd.f32 %v9098_v25, %v9096_v42 }
 0x3f2   :  { %7668 = vpow2.f32 %v1328_v30  ;;  %v1242_v41 = vsub.f32 %v11571_v34, %v1161_v60  ;;  %v1243_v58 = vsub.f32 %v11572_v51, %v1161_v60  ;;  %v11575_v30 = vld [vmem:[#allocation38_spill] sm:$0xff]  ;;  %v11576_v60 = vld [vmem:[#allocation39_spill] sm:$0xff] }
 0x3f3   :  { %v9104_v2 = vpop.eup %7656  ;;  %7670 = vpow2.f32 %v1330_v5  ;;  %1433 = vadd.xlane.f32.xlu0 %v1432_v23 }
 0x3f4   :  { %v9106_v6 = vpop.eup %7658  ;;  %v1332_v7 = vmul.f32 1.442695, %v1242_v41  ;;  %v1334_v0 = vmul.f32 1.442695, %v1243_v58 }
 0x3f5   :  { %v1164_v48 = vpop.xlane.xlu0 %1163  ;;  %v1435_v62 = vadd.f32 %v9106_v6, %v9104_v2 }
 0x3f6   :  { %7672 = vpow2.f32 %v1332_v7  ;;  %v1244_v59 = vsub.f32 %v11573_v27, %v1164_v48  ;;  %v1245_v11 = vsub.f32 %v11574_v14, %v1164_v48  ;;  %v11577_v48 = vld [vmem:[#allocation40_spill] sm:$0xff]  ;;  %v11578_v27 = vld [vmem:[#allocation41_spill] sm:$0xff] }
 0x3f7   :  { %v9112_v44 = vpop.eup %7660  ;;  %7674 = vpow2.f32 %v1334_v0  ;;  %1436 = vadd.xlane.f32.xlu0 %v1435_v62 }
 0x3f8   :  { %v9114_v3 = vpop.eup %7662  ;;  %v1336_v16 = vmul.f32 1.442695, %v1244_v59  ;;  %v1338_v18 = vmul.f32 1.442695, %v1245_v11 }
 0x3f9   :  { %v1167_v38 = vpop.xlane.xlu1 %1166  ;;  %v1438_v10 = vadd.f32 %v9114_v3, %v9112_v44 }
 0x3fa   :  { %7676 = vpow2.f32 %v1336_v16  ;;  %v1246_v5 = vsub.f32 %v11575_v30, %v1167_v38  ;;  %v1247_v23 = vsub.f32 %v11576_v60, %v1167_v38  ;;  %v11580_v30 = vld [vmem:[#allocation42_spill] sm:$0xff]  ;;  %v11581_v60 = vld [vmem:[#allocation43_spill] sm:$0xff] }
 0x3fb   :  { %v9120_v34 = vpop.eup %7664  ;;  %7678 = vpow2.f32 %v1338_v18  ;;  %1439 = vadd.xlane.f32.xlu0 %v1438_v10 }
 0x3fc   :  { %v9122_v41 = vpop.eup %7666  ;;  %v1340_v51 = vmul.f32 1.442695, %v1246_v5  ;;  %v1342_v58 = vmul.f32 1.442695, %v1247_v23 }
 0x3fd   :  { %v1170_v7 = vpop.xlane.xlu0 %1169  ;;  %v1441_v0 = vadd.f32 %v9122_v41, %v9120_v34 }
 0x3fe   :  { %7680 = vpow2.f32 %v1340_v51  ;;  %v1248_v62 = vsub.f32 %v11577_v48, %v1170_v7  ;;  %v1249_v59 = vsub.f32 %v11578_v27, %v1170_v7  ;;  %v11584_v27 = vld [vmem:[#allocation44_spill] sm:$0xff] }
 0x3ff   :  { %v9128_v14 = vpop.eup %7668  ;;  %7682 = vpow2.f32 %v1342_v58  ;;  %1442 = vadd.xlane.f32.xlu0 %v1441_v0 }
 0x400   :  { %11579 = vst [vmem:[#allocation34_spill] sm:$0xff] %v9128_v14  ;;  %v9130_v11 = vpop.eup %7670  ;;  %v1344_v16 = vmul.f32 1.442695, %v1248_v62  ;;  %v1346_v18 = vmul.f32 1.442695, %v1249_v59 }
 0x401   :  { %v1173_v38 = vpop.xlane.xlu1 %1172  ;;  %v1444_v10 = vadd.f32 %v9130_v11, %v9128_v14 }
 0x402   :  { %7684 = vpow2.f32 %v1344_v16  ;;  %v1250_v5 = vsub.f32 %v11580_v30, %v1173_v38  ;;  %v1251_v23 = vsub.f32 %v11581_v60, %v1173_v38  ;;  %v11585_v16 = vld [vmem:[#allocation45_spill] sm:$0xff] }
 0x403   :  { %v9136_v51 = vpop.eup %7672  ;;  %7686 = vpow2.f32 %v1346_v18  ;;  %1445 = vadd.xlane.f32.xlu0 %v1444_v10 }
 0x404   :  { %11582 = vst [vmem:[#allocation35_spill] sm:$0xff] %v9136_v51  ;;  %v9138_v7 = vpop.eup %7674  ;;  %v1348_v58 = vmul.f32 1.442695, %v1250_v5  ;;  %v1350_v0 = vmul.f32 1.442695, %v1251_v23  ;;  %v11588_v23 = vld [vmem:[#allocation46_spill] sm:$0xff] }
 0x405   :  { %11583 = vst [vmem:[#allocation36_spill] sm:$0xff] %v9138_v7  ;;  %v1176_v48 = vpop.xlane.xlu0 %1175  ;;  %v1447_v62 = vadd.f32 %v9138_v7, %v9136_v51 }
 0x406   :  { %7688 = vpow2.f32 %v1348_v58  ;;  %v1252_v59 = vsub.f32 %v11584_v27, %v1176_v48  ;;  %v1253_v14 = vsub.f32 %v11585_v16, %v1176_v48  ;;  %v11589_v58 = vld [vmem:[#allocation47_spill] sm:$0xff] }
 0x407   :  { %v9144_v30 = vpop.eup %7676  ;;  %7690 = vpow2.f32 %v1350_v0  ;;  %1448 = vadd.xlane.f32.xlu0 %v1447_v62 }
 0x408   :  { %11586 = vst [vmem:[#allocation37_spill] sm:$0xff] %v9144_v30  ;;  %v9146_v38 = vpop.eup %7678  ;;  %v1352_v18 = vmul.f32 1.442695, %v1252_v59  ;;  %v1354_v10 = vmul.f32 1.442695, %v1253_v14 }
 0x409   :  { %11587 = vst [vmem:[#allocation38_spill] sm:$0xff] %v9146_v38  ;;  %v1179_v60 = vpop.xlane.xlu0 %1178  ;;  %v1450_v5 = vadd.f32 %v9146_v38, %v9144_v30  ;;  %v11591_v30 = vld [vmem:[#allocation48_spill] sm:$0xff]  ;;  %v11592_v38 = vld [vmem:[#allocation49_spill] sm:$0xff] }
 0x40a   :  { %7692 = vpow2.f32 %v1352_v18  ;;  %v1254_v51 = vsub.f32 %v11588_v23, %v1179_v60  ;;  %v1255_v7 = vsub.f32 %v11589_v58, %v1179_v60 }
 0x40b   :  { %v9152_v27 = vpop.eup %7680  ;;  %7694 = vpow2.f32 %v1354_v10  ;;  %1451 = vadd.xlane.f32.xlu0 %v1450_v5  ;;  %v11593_v10 = vmov 0.0  }
 0x40c   :  { %11590 = vst [vmem:[#allocation39_spill] sm:$0xff] %v9152_v27  ;;  %v9154_v48 = vpop.eup %7682  ;;  %v1356_v0 = vmul.f32 1.442695, %v1254_v51  ;;  %v1358_v62 = vmul.f32 1.442695, %v1255_v7 }
 0x40d   :  { %v1667_v16 = vpop.permute.xlu0 %1666  ;;  %v1182_v59 = vpop.xlane.xlu1 %1181  ;;  %v1453_v14 = vadd.f32 %v9154_v48, %v9152_v27 }
 0x40e   :  { %7696 = vpow2.f32 %v1356_v0  ;;  %v1256_v18 = vsub.f32 %v11591_v30, %v1182_v59  ;;  %v1257_v23 = vsub.f32 %v11592_v38, %v1182_v59  ;;  %1789 = vmatpush2.msra.mxu0 %v1667_v16 }
 0x40f   :  { %v9160_v60 = vpop.eup %7684  ;;  %7698 = vpow2.f32 %v1358_v62  ;;  %1454 = vadd.xlane.f32.xlu0 %v1453_v14  ;;  %1790 = vmatprep.subr.mxu0 %v11593_v10 }
 0x410   :  { %v9163_v5 = vpop.eup %7686  ;;  %v1360_v51 = vmul.f32 1.442695, %v1256_v18  ;;  %v1362_v7 = vmul.f32 1.442695, %v1257_v23 }
 0x411   :  { %v1665_v58 = vpop.permute.xlu1 %1664  ;;  %v1456_v27 = vadd.f32 %v9163_v5, %v9160_v60 }
 0x412   :  { %7700 = vpow2.f32 %v1360_v51  ;;  %1791 = vmatpush2.msra.mxu0 %v1665_v58 }
 0x413   :  { %v9167_v30 = vpop.eup %7688  ;;  %7702 = vpow2.f32 %v1362_v7  ;;  %1457 = vadd.xlane.f32.xlu1 %v1456_v27 }
 0x414   :  { %11594 = vst [vmem:[#allocation40_spill] sm:$0xff] %v9167_v30  ;;  %v9169_v38 = vpop.eup %7690 }
 0x415   :  { %11595 = vst [vmem:[#allocation41_spill] sm:$0xff] %v9169_v38  ;;  %v1459_v0 = vadd.f32 %v9169_v38, %v9167_v30 }
 0x417   :  { %v9173_v62 = vpop.eup %7692  ;;  %1460 = vadd.xlane.f32.xlu0 %v1459_v0 }
 0x418   :  { %11596 = vst [vmem:[#allocation42_spill] sm:$0xff] %v9173_v62  ;;  %v9175_v16 = vpop.eup %7694 }
 0x419   :  { %11597 = vst [vmem:[#allocation43_spill] sm:$0xff] %v9175_v16  ;;  %v1462_v59 = vadd.f32 %v9175_v16, %v9173_v62 }
 0x41b   :  { %v9179_v14 = vpop.eup %7696  ;;  %1463 = vadd.xlane.f32.xlu1 %v1462_v59 }
 0x41c   :  { %11598 = vst [vmem:[#allocation44_spill] sm:$0xff] %v9179_v14  ;;  %v9181_v18 = vpop.eup %7698 }
 0x41d   :  { %11599 = vst [vmem:[#allocation45_spill] sm:$0xff] %v9181_v18  ;;  %v1465_v27 = vadd.f32 %v9181_v18, %v9179_v14 }
 0x41f   :  { %v9185_v23 = vpop.eup %7700  ;;  %1466 = vadd.xlane.f32.xlu0 %v1465_v27 }
 0x420   :  { %11600 = vst [vmem:[#allocation46_spill] sm:$0xff] %v9185_v23  ;;  %v9187_v51 = vpop.eup %7702 }
 0x421   :  { %11601 = vst [vmem:[#allocation47_spill] sm:$0xff] %v9187_v51  ;;  %v1468_v7 = vadd.f32 %v9187_v51, %v9185_v23 }
 0x423   :  { %1469 = vadd.xlane.f32.xlu1 %v1468_v7 }
 0x43e   :  { %v1185_v58 = vpop.xlane.xlu0 %1184 }
 0x43f   :  { %v1258_v0 = vsub.f32 %v8949_v20, %v1185_v58  ;;  %v1259_v10 = vsub.f32 %v8947_v17, %v1185_v58 }
 0x441   :  { %v1364_v59 = vmul.f32 1.442695, %v1258_v0  ;;  %v1366_v62 = vmul.f32 1.442695, %v1259_v10 }
 0x442   :  { %v1188_v16 = vpop.xlane.xlu1 %1187 }
 0x443   :  { %7704 = vpow2.f32 %v1364_v59  ;;  %v1260_v14 = vsub.f32 %v8957_v36, %v1188_v16  ;;  %v1261_v27 = vsub.f32 %v8951_v55, %v1188_v16 }
 0x444   :  { %7706 = vpow2.f32 %v1366_v62 }
 0x445   :  { %v1368_v18 = vmul.f32 1.442695, %v1260_v14  ;;  %v1370_v30 = vmul.f32 1.442695, %v1261_v27  ;;  %v1215_v27 = vpop.xlane.xlu0 %1214 }
 0x446   :  { %v1191_v38 = vpop.xlane.xlu1 %1190 }
 0x447   :  { %v1262_v23 = vsub.f32 %v8967_v29, %v1191_v38  ;;  %v1263_v7 = vsub.f32 %v8961_v15, %v1191_v38  ;;  %7708 = vpow2.f32 %v1368_v18 }
 0x448   :  { %7710 = vpow2.f32 %v1370_v30 }
 0x449   :  { %v1372_v20 = vmul.f32 1.442695, %v1262_v23  ;;  %v1374_v51 = vmul.f32 1.442695, %v1263_v7 }
 0x44a   :  { %v1194_v17 = vpop.xlane.xlu1 %1193 }
 0x44b   :  { %7712 = vpow2.f32 %v1372_v20  ;;  %v1264_v10 = vsub.f32 %v8973_v40, %v1194_v17  ;;  %v1265_v36 = vsub.f32 %v8969_v22, %v1194_v17 }
 0x44c   :  { %7714 = vpow2.f32 %v1374_v51 }
 0x44d   :  { %v1376_v62 = vmul.f32 1.442695, %v1264_v10  ;;  %v1378_v55 = vmul.f32 1.442695, %v1265_v36 }
 0x44e   :  { %v1197_v16 = vpop.xlane.xlu1 %1196 }
 0x44f   :  { %7716 = vpow2.f32 %v1376_v62  ;;  %v1266_v14 = vsub.f32 %v8981_v21, %v1197_v16  ;;  %v1267_v29 = vsub.f32 %v8977_v54, %v1197_v16  ;;  %v1278_v62 = vsub.f32 %v8959_v19, %v1215_v27 }
 0x450   :  { %v9201_v15 = vpop.eup %7704  ;;  %7718 = vpow2.f32 %v1378_v55  ;;  %v1279_v19 = vsub.f32 %v8953_v13, %v1215_v27 }
 0x451   :  { %v9203_v38 = vpop.eup %7706  ;;  %v1380_v30 = vmul.f32 1.442695, %v1266_v14  ;;  %v1382_v18 = vmul.f32 1.442695, %v1267_v29 }
 0x452   :  { %v1200_v23 = vpop.xlane.xlu1 %1199  ;;  %v1471_v22 = vadd.f32 %v9203_v38, %v9201_v15  ;;  %v1406_v13 = vmul.f32 1.442695, %v1279_v19 }
 0x453   :  { %7720 = vpow2.f32 %v1380_v30  ;;  %v1268_v40 = vsub.f32 %v8991_v8, %v1200_v23  ;;  %v1269_v51 = vsub.f32 %v8986_v49, %v1200_v23 }
 0x454   :  { %7722 = vpow2.f32 %v1382_v18  ;;  %1472 = vadd.xlane.f32.xlu0 %v1471_v22  ;;  %v9209_v58 = vpop.eup %7708  ;;  %v1404_v22 = vmul.f32 1.442695, %v1278_v62 }
 0x455   :  { %v1384_v21 = vmul.f32 1.442695, %v1268_v40  ;;  %v1386_v54 = vmul.f32 1.442695, %v1269_v51  ;;  %v9211_v59 = vpop.eup %7710 }
 0x456   :  { %v1203_v0 = vpop.xlane.xlu1 %1202  ;;  %v1474_v49 = vadd.f32 %v9211_v59, %v9209_v58 }
 0x457   :  { %7724 = vpow2.f32 %v1384_v21  ;;  %v1270_v7 = vsub.f32 %v9001_v45, %v1203_v0  ;;  %v1271_v20 = vsub.f32 %v8996_v26, %v1203_v0 }
 0x458   :  { %v9215_v17 = vpop.eup %7712  ;;  %7726 = vpow2.f32 %v1386_v54  ;;  %1475 = vadd.xlane.f32.xlu1 %v1474_v49 }
 0x459   :  { %v9219_v8 = vpop.eup %7714  ;;  %v1388_v10 = vmul.f32 1.442695, %v1270_v7  ;;  %v1390_v36 = vmul.f32 1.442695, %v1271_v20 }
 0x45a   :  { %v1206_v55 = vpop.xlane.xlu1 %1205  ;;  %v1477_v16 = vadd.f32 %v9219_v8, %v9215_v17 }
 0x45b   :  { %7728 = vpow2.f32 %v1388_v10  ;;  %v1272_v26 = vsub.f32 %v9011_v57, %v1206_v55  ;;  %v1273_v45 = vsub.f32 %v9006_v9, %v1206_v55 }
 0x45c   :  { %v9226_v14 = vpop.eup %7716  ;;  %7730 = vpow2.f32 %v1390_v36  ;;  %v1410_v29 = vpop.xlane.xlu0 %1409  ;;  %1478 = vadd.xlane.f32.xlu0 %v1477_v16 }
 0x45d   :  { %v9228_v30 = vpop.eup %7718  ;;  %v1392_v18 = vmul.f32 1.442695, %v1272_v26  ;;  %v1394_v23 = vmul.f32 1.442695, %v1273_v45  ;;  %7732 = vrcp.f32 %v1410_v29 }
 0x45e   :  { %v1209_v40 = vpop.xlane.xlu1 %1208  ;;  %v1480_v51 = vadd.f32 %v9228_v30, %v9226_v14 }
 0x45f   :  { %7734 = vpow2.f32 %v1392_v18  ;;  %v1274_v9 = vsub.f32 %v9025_v35, %v1209_v40  ;;  %v1275_v57 = vsub.f32 %v9018_v12, %v1209_v40 }
 0x460   :  { %v9235_v21 = vpop.eup %7720  ;;  %7736 = vpow2.f32 %v1394_v23  ;;  %v1413_v54 = vpop.xlane.xlu0 %1412  ;;  %1481 = vadd.xlane.f32.xlu1 %v1480_v51 }
 0x461   :  { %v9237_v0 = vpop.eup %7722  ;;  %v1396_v7 = vmul.f32 1.442695, %v1274_v9  ;;  %v1398_v20 = vmul.f32 1.442695, %v1275_v57  ;;  %7738 = vrcp.f32 %v1413_v54 }
 0x462   :  { %7740 = vpow2.f32 %v1404_v22  ;;  %v1212_v27 = vpop.xlane.xlu1 %1211  ;;  %v1483_v49 = vadd.f32 %v9237_v0, %v9235_v21 }
 0x463   :  { %7742 = vpow2.f32 %v1396_v7  ;;  %v1276_v35 = vsub.f32 %v9040_v31, %v1212_v27  ;;  %v1277_v12 = vsub.f32 %v9034_v37, %v1212_v27 }
 0x464   :  { %v9243_v10 = vpop.eup %7724  ;;  %7744 = vpow2.f32 %v1398_v20  ;;  %v1416_v36 = vpop.xlane.xlu0 %1415  ;;  %1484 = vadd.xlane.f32.xlu0 %v1483_v49 }
 0x465   :  { %v9245_v62 = vpop.eup %7726  ;;  %v1400_v55 = vmul.f32 1.442695, %v1276_v35  ;;  %v1402_v16 = vmul.f32 1.442695, %v1277_v12  ;;  %7746 = vrcp.f32 %v1416_v36 }
 0x466   :  { %7748 = vpow2.f32 %v1406_v13  ;;  %v1486_v26 = vadd.f32 %v9245_v62, %v9243_v10 }
 0x467   :  { %7750 = vpow2.f32 %v1400_v55 }
 0x468   :  { %v9249_v45 = vpop.eup %7728  ;;  %7752 = vpow2.f32 %v1402_v16  ;;  %v1419_v31 = vpop.xlane.xlu0 %1418  ;;  %1487 = vadd.xlane.f32.xlu1 %v1486_v26 }
 0x469   :  { %v9251_v37 = vpop.eup %7730  ;;  %7754 = vrcp.f32 %v1419_v31 }
 0x46a   :  { %v7733_v29 = vpop.eup %7732  ;;  %v1489_v18 = vadd.f32 %v9251_v37, %v9249_v45 }
 0x46b   :  { %v1537_v23 = vmul.f32 %v7733_v29, %v9023_v61  ;;  %v1536_v19 = vmul.f32 %v7733_v29, %v9016_v43 }
 0x46c   :  { %v9257_v22 = vpop.eup %7734  ;;  %v1422_v40 = vpop.xlane.xlu0 %1421  ;;  %1490 = vadd.xlane.f32.xlu0 %v1489_v18 }
 0x46d   :  { %v9259_v51 = vpop.eup %7736  ;;  %7756 = vrcp.f32 %v1422_v40  ;;  %1792 = vmatprep.mubr.f32.mxu0 %v1537_v23 }
 0x46e   :  { %v7739_v9 = vpop.eup %7738  ;;  %1793 = vmatmul.mubr.f32.vlgmr.msra.gmra.mxu0 %v1536_v19  ;;  %v1492_v57 = vadd.f32 %v9259_v51, %v9257_v22 }
 0x46f   :  { %v9263_v54 = vpop.eup %7740  ;;  %v1539_v7 = vmul.f32 %v7739_v9, %v9038_v47  ;;  %v1538_v61 = vmul.f32 %v7739_v9, %v9032_v53 }
 0x470   :  { %v9267_v43 = vpop.eup %7742  ;;  %v1425_v20 = vpop.xlane.xlu0 %1424  ;;  %1493 = vadd.xlane.f32.xlu1 %v1492_v57 }
 0x471   :  { %v9269_v13 = vpop.eup %7744  ;;  %7758 = vrcp.f32 %v1425_v20  ;;  %1797 = vmatprep.mubr.f32.mxu0 %v1539_v7 }
 0x472   :  { %v7747_v27 = vpop.eup %7746  ;;  %1798 = vmatmul.mubr.f32.gmra.mxu0 %v1538_v61  ;;  %v1495_v49 = vadd.f32 %v9269_v13, %v9267_v43 }
 0x473   :  { %v9273_v35 = vpop.eup %7748  ;;  %v1541_v12 = vmul.f32 %v7747_v27, %v9050_v32  ;;  %v1540_v47 = vmul.f32 %v7747_v27, %v9046_v50 }
 0x474   :  { %v9277_v53 = vpop.eup %7750  ;;  %v1428_v36 = vpop.xlane.xlu0 %1427  ;;  %1496 = vadd.xlane.f32.xlu0 %v1495_v49  ;;  %v1501_v26 = vadd.f32 %v9273_v35, %v9263_v54 }
 0x475   :  { %v9279_v55 = vpop.eup %7752  ;;  %7760 = vrcp.f32 %v1428_v36  ;;  %1802 = vmatprep.mubr.f32.mxu0 %v1541_v12 }
 0x476   :  { %v7755_v16 = vpop.eup %7754  ;;  %1803 = vmatmul.mubr.f32.gmra.mxu0 %v1540_v47  ;;  %v1498_v31 = vadd.f32 %v9279_v55, %v9277_v53 }
 0x477   :  { %v1543_v32 = vmul.f32 %v7755_v16, %v9058_v24  ;;  %v1542_v50 = vmul.f32 %v7755_v16, %v9056_v28 }
 0x478   :  { %v1431_v29 = vpop.xlane.xlu0 %1430  ;;  %1502 = vadd.xlane.f32.xlu0 %v1501_v26  ;;  %1499 = vadd.xlane.f32.xlu1 %v1498_v31 }
 0x479   :  { %7762 = vrcp.f32 %v1431_v29  ;;  %1807 = vmatprep.mubr.f32.mxu0 %v1543_v32 }
 0x47a   :  { %v7757_v18 = vpop.eup %7756  ;;  %1808 = vmatmul.mubr.f32.gmra.mxu0 %v1542_v50 }
 0x47b   :  { %v1545_v23 = vmul.f32 %v7757_v18, %v9066_v33  ;;  %v1544_v19 = vmul.f32 %v7757_v18, %v9064_v4  ;;  %v11602_v18 = vld [vmem:[#allocation34_spill] sm:$0xff] }
 0x47c   :  { %v1434_v40 = vpop.xlane.xlu0 %1433 }
 0x47d   :  { %7764 = vrcp.f32 %v1434_v40  ;;  %1812 = vmatprep.mubr.f32.mxu0 %v1545_v23 }
 0x47e   :  { %v7759_v9 = vpop.eup %7758  ;;  %1813 = vmatmul.mubr.f32.gmra.mxu0 %v1544_v19  ;;  %v11603_v19 = vld [vmem:[#allocation36_spill] sm:$0xff] }
 0x47f   :  { %v1547_v24 = vmul.f32 %v7759_v9, %v9074_v56  ;;  %v1546_v28 = vmul.f32 %v7759_v9, %v9072_v46  ;;  %v11604_v9 = vld [vmem:[#allocation35_spill] sm:$0xff] }
 0x480   :  { %v1437_v57 = vpop.xlane.xlu0 %1436 }
 0x481   :  { %7766 = vrcp.f32 %v1437_v57  ;;  %1817 = vmatprep.mubr.f32.mxu0 %v1547_v24 }
 0x482   :  { %v7761_v7 = vpop.eup %7760  ;;  %1818 = vmatmul.mubr.f32.gmra.mxu0 %v1546_v28  ;;  %v11605_v28 = vld [vmem:[#allocation38_spill] sm:$0xff] }
 0x483   :  { %v1549_v61 = vmul.f32 %v7761_v7, %v9082_v1  ;;  %v1548_v33 = vmul.f32 %v7761_v7, %v9080_v63  ;;  %v11606_v7 = vld [vmem:[#allocation37_spill] sm:$0xff] }
 0x484   :  { %v1440_v20 = vpop.xlane.xlu0 %1439 }
 0x485   :  { %7768 = vrcp.f32 %v1440_v20  ;;  %1822 = vmatprep.mubr.f32.mxu0 %v1549_v61 }
 0x486   :  { %v7763_v4 = vpop.eup %7762  ;;  %1823 = vmatmul.mubr.f32.gmra.mxu0 %v1548_v33 }
 0x487   :  { %v1551_v27 = vmul.f32 %v7763_v4, %v9090_v52  ;;  %v1550_v56 = vmul.f32 %v7763_v4, %v9088_v39  ;;  %v11607_v4 = vld [vmem:[#allocation39_spill] sm:$0xff] }
 0x488   :  { %v1443_v49 = vpop.xlane.xlu0 %1442 }
 0x489   :  { %7770 = vrcp.f32 %v1443_v49  ;;  %1827 = vmatprep.mubr.f32.mxu0 %v1551_v27 }
 0x48a   :  { %v7765_v46 = vpop.eup %7764  ;;  %1828 = vmatmul.mubr.f32.gmra.mxu0 %v1550_v56 }
 0x48b   :  { %v1553_v12 = vmul.f32 %v7765_v46, %v9098_v25  ;;  %v1552_v1 = vmul.f32 %v7765_v46, %v9096_v42 }
 0x48c   :  { %v1446_v47 = vpop.xlane.xlu0 %1445 }
 0x48d   :  { %7772 = vrcp.f32 %v1446_v47  ;;  %1832 = vmatprep.mubr.f32.mxu0 %v1553_v12 }
 0x48e   :  { %v7767_v63 = vpop.eup %7766  ;;  %1833 = vmatmul.mubr.f32.gmra.mxu0 %v1552_v1 }
 0x48f   :  { %v1555_v36 = vmul.f32 %v7767_v63, %v9106_v6  ;;  %v1554_v52 = vmul.f32 %v7767_v63, %v9104_v2  ;;  %v11608_v63 = vld [vmem:[#allocation41_spill] sm:$0xff] }
 0x490   :  { %v1449_v16 = vpop.xlane.xlu0 %1448 }
 0x491   :  { %7774 = vrcp.f32 %v1449_v16  ;;  %1837 = vmatprep.mubr.f32.mxu0 %v1555_v36  ;;  %v106_v16 = vld [vmem:[%s11412_s4] sm:$0xff] }
 0x492   :  { %v7769_v39 = vpop.eup %7768  ;;  %1838 = vmatmul.mubr.f32.gmra.mxu0 %v1554_v52  ;;  %v11609_v52 = vld [vmem:[#allocation40_spill] sm:$0xff]  ;;  %7238 = vmatprep.subr.mxu1 %v106_v16 }
 0x493   :  { %v1557_v26 = vmul.f32 %v7769_v39, %v9114_v3  ;;  %v1556_v25 = vmul.f32 %v7769_v39, %v9112_v44  ;;  %7239 = vmatpush3.msra.mxu1 %v106_v16 }
 0x494   :  { %v1452_v31 = vpop.xlane.xlu0 %1451 }
 0x495   :  { %7776 = vrcp.f32 %v1452_v31  ;;  %1842 = vmatprep.mubr.f32.mxu0 %v1557_v26  ;;  %v11611_v26 = vld [vmem:[#allocation42_spill] sm:$0xff] }
 0x496   :  { %v7771_v42 = vpop.eup %7770  ;;  %1843 = vmatmul.mubr.f32.gmra.mxu0 %v1556_v25 }
 0x497   :  { %v1559_v32 = vmul.f32 %v7771_v42, %v9122_v41  ;;  %v1558_v6 = vmul.f32 %v7771_v42, %v9120_v34  ;;  %v11612_v42 = vld [vmem:[#allocation45_spill] sm:$0xff] }
 0x498   :  { %v1455_v50 = vpop.xlane.xlu0 %1454 }
 0x499   :  { %7778 = vrcp.f32 %v1455_v50  ;;  %1847 = vmatprep.mubr.f32.mxu0 %v1559_v32 }
 0x49a   :  { %v7773_v2 = vpop.eup %7772  ;;  %1848 = vmatmul.mubr.f32.gmra.mxu0 %v1558_v6  ;;  %v11613_v6 = vld [vmem:[#allocation44_spill] sm:$0xff] }
 0x49b   :  { %v1561_v29 = vmul.f32 %v7773_v2, %v9130_v11  ;;  %v1560_v3 = vmul.f32 %v7773_v2, %v11602_v18 }
 0x49c   :  { %v1458_v23 = vpop.xlane.xlu1 %1457 }
 0x49d   :  { %7780 = vrcp.f32 %v1458_v23  ;;  %1852 = vmatprep.mubr.f32.mxu0 %v1561_v29  ;;  %v11614_v29 = vld [vmem:[#allocation47_spill] sm:$0xff] }
 0x49e   :  { %v7775_v44 = vpop.eup %7774  ;;  %1853 = vmatmul.mubr.f32.gmra.mxu0 %v1560_v3  ;;  %v11615_v3 = vld [vmem:[#allocation46_spill] sm:$0xff] }
 0x49f   :  { %v1563_v40 = vmul.f32 %v7775_v44, %v11603_v19  ;;  %v1562_v41 = vmul.f32 %v7775_v44, %v11604_v9 }
 0x4a0   :  { %v1461_v24 = vpop.xlane.xlu0 %1460 }
 0x4a1   :  { %7782 = vrcp.f32 %v1461_v24  ;;  %1857 = vmatprep.mubr.f32.mxu0 %v1563_v40 }
 0x4a2   :  { %v7777_v34 = vpop.eup %7776  ;;  %1858 = vmatmul.mubr.f32.gmra.mxu0 %v1562_v41 }
 0x4a3   :  { %v1565_v57 = vmul.f32 %v7777_v34, %v11605_v28  ;;  %v1564_v11 = vmul.f32 %v7777_v34, %v11606_v7 }
 0x4a4   :  { %v1464_v61 = vpop.xlane.xlu1 %1463 }
 0x4a5   :  { %7784 = vrcp.f32 %v1464_v61  ;;  %1862 = vmatprep.mubr.f32.mxu0 %v1565_v57 }
 0x4a6   :  { %v7779_v33 = vpop.eup %7778  ;;  %1863 = vmatmul.mubr.f32.gmra.mxu0 %v1564_v11 }
 0x4a7   :  { %v1567_v20 = vmul.f32 %v7779_v33, %v9154_v48  ;;  %v1566_v27 = vmul.f32 %v7779_v33, %v11607_v4 }
 0x4a8   :  { %v1467_v56 = vpop.xlane.xlu0 %1466 }
 0x4a9   :  { %7786 = vrcp.f32 %v1467_v56  ;;  %1867 = vmatprep.mubr.f32.mxu0 %v1567_v20 }
 0x4aa   :  { %v7781_v49 = vpop.eup %7780  ;;  %1868 = vmatmul.mubr.f32.gmra.mxu0 %v1566_v27 }
 0x4ab   :  { %v1569_v46 = vmul.f32 %v7781_v49, %v9163_v5  ;;  %v1568_v12 = vmul.f32 %v7781_v49, %v9160_v60  ;;  %v11610_v5 = vld [vmem:[#allocation43_spill] sm:$0xff] }
 0x4ac   :  { %v1470_v1 = vpop.xlane.xlu1 %1469 }
 0x4ad   :  { %7788 = vrcp.f32 %v1470_v1  ;;  %1872 = vmatprep.mubr.f32.mxu0 %v1569_v46 }
 0x4ae   :  { %v7783_v47 = vpop.eup %7782  ;;  %1873 = vmatmul.mubr.f32.gmra.mxu0 %v1568_v12 }
 0x4af   :  { %v1571_v36 = vmul.f32 %v7783_v47, %v11608_v63  ;;  %v1570_v48 = vmul.f32 %v7783_v47, %v11609_v52 }
 0x4b1   :  { %1877 = vmatprep.mubr.f32.mxu0 %v1571_v36 }
 0x4b2   :  { %v7785_v39 = vpop.eup %7784  ;;  %1878 = vmatmul.mubr.f32.gmra.mxu0 %v1570_v48 }
 0x4b3   :  { %v1573_v60 = vmul.f32 %v7785_v39, %v11610_v5  ;;  %v1572_v25 = vmul.f32 %v7785_v39, %v11611_v26 }
 0x4b5   :  { %1882 = vmatprep.mubr.f32.mxu0 %v1573_v60 }
 0x4b6   :  { %v7787_v31 = vpop.eup %7786  ;;  %1883 = vmatmul.mubr.f32.gmra.mxu0 %v1572_v25 }
 0x4b7   :  { %v1575_v32 = vmul.f32 %v7787_v31, %v11612_v42  ;;  %v1574_v50 = vmul.f32 %v7787_v31, %v11613_v6 }
 0x4b9   :  { %1887 = vmatprep.mubr.f32.mxu0 %v1575_v32 }
 0x4ba   :  { %v7789_v2 = vpop.eup %7788  ;;  %1888 = vmatmul.mubr.f32.gmra.mxu0 %v1574_v50 }
 0x4bb   :  { %v1577_v18 = vmul.f32 %v7789_v2, %v11614_v29  ;;  %v1576_v23 = vmul.f32 %v7789_v2, %v11615_v3 }
 0x4bd   :  { %1892 = vmatprep.mubr.f32.mxu0 %v1577_v18 }
 0x4be   :  { %1893 = vmatmul.mubr.f32.gmra.mxu0 %v1576_v23 }
 0x4dd   :  { %v1473_v44 = vpop.xlane.xlu0 %1472 }
 0x4de   :  { %7790 = vrcp.f32 %v1473_v44 }
 0x4e1   :  { %v1476_v19 = vpop.xlane.xlu1 %1475 }
 0x4e2   :  { %7792 = vrcp.f32 %v1476_v19 }
 0x4e5   :  { %v1479_v40 = vpop.xlane.xlu0 %1478 }
 0x4e6   :  { %7794 = vrcp.f32 %v1479_v40 }
 0x4e9   :  { %v1482_v9 = vpop.xlane.xlu1 %1481 }
 0x4ea   :  { %7796 = vrcp.f32 %v1482_v9 }
 0x4eb   :  { %v7791_v41 = vpop.eup %7790 }
 0x4ec   :  { %v1579_v24 = vmul.f32 %v7791_v41, %v9203_v38  ;;  %v1578_v34 = vmul.f32 %v7791_v41, %v9201_v15 }
 0x4ed   :  { %v1485_v28 = vpop.xlane.xlu0 %1484 }
 0x4ee   :  { %7798 = vrcp.f32 %v1485_v28  ;;  %1897 = vmatprep.mubr.f32.mxu0 %v1579_v24 }
 0x4ef   :  { %1898 = vmatmul.mubr.f32.gmra.mxu0 %v1578_v34  ;;  %v7793_v57 = vpop.eup %7792 }
 0x4f0   :  { %v1581_v11 = vmul.f32 %v7793_v57, %v9211_v59  ;;  %v1580_v61 = vmul.f32 %v7793_v57, %v9209_v58 }
 0x4f1   :  { %v1488_v7 = vpop.xlane.xlu1 %1487 }
 0x4f2   :  { %7800 = vrcp.f32 %v1488_v7  ;;  %1902 = vmatprep.mubr.f32.mxu0 %v1581_v11 }
 0x4f3   :  { %v7795_v33 = vpop.eup %7794  ;;  %1903 = vmatmul.mubr.f32.gmra.mxu0 %v1580_v61 }
 0x4f4   :  { %v1583_v20 = vmul.f32 %v7795_v33, %v9219_v8  ;;  %v1582_v38 = vmul.f32 %v7795_v33, %v9215_v17 }
 0x4f5   :  { %v1491_v4 = vpop.xlane.xlu0 %1490 }
 0x4f6   :  { %7802 = vrcp.f32 %v1491_v4  ;;  %1907 = vmatprep.mubr.f32.mxu0 %v1583_v20 }
 0x4f7   :  { %v7797_v15 = vpop.eup %7796  ;;  %1908 = vmatmul.mubr.f32.gmra.mxu0 %v1582_v38 }
 0x4f8   :  { %v1585_v27 = vmul.f32 %v7797_v15, %v9228_v30  ;;  %v1584_v49 = vmul.f32 %v7797_v15, %v9226_v14 }
 0x4f9   :  { %v1494_v56 = vpop.xlane.xlu1 %1493 }
 0x4fa   :  { %7804 = vrcp.f32 %v1494_v56  ;;  %1912 = vmatprep.mubr.f32.mxu0 %v1585_v27 }
 0x4fb   :  { %v7799_v58 = vpop.eup %7798  ;;  %1913 = vmatmul.mubr.f32.gmra.mxu0 %v1584_v49 }
 0x4fc   :  { %v1587_v59 = vmul.f32 %v7799_v58, %v9237_v0  ;;  %v1586_v46 = vmul.f32 %v7799_v58, %v9235_v21 }
 0x4fd   :  { %v1497_v8 = vpop.xlane.xlu0 %1496 }
 0x4fe   :  { %7806 = vrcp.f32 %v1497_v8  ;;  %1917 = vmatprep.mubr.f32.mxu0 %v1587_v59 }
 0x4ff   :  { %v7801_v17 = vpop.eup %7800  ;;  %1918 = vmatmul.mubr.f32.gmra.mxu0 %v1586_v46 }
 0x500   :  { %v1589_v12 = vmul.f32 %v7801_v17, %v9245_v62  ;;  %v1588_v47 = vmul.f32 %v7801_v17, %v9243_v10 }
 0x501   :  { %v1503_v30 = vpop.xlane.xlu0 %1502  ;;  %v1500_v1 = vpop.xlane.xlu1 %1499 }
 0x502   :  { %1922 = vmatprep.mubr.f32.mxu0 %v1589_v12  ;;  %7808 = vrcp.f32 %v1500_v1 }
 0x503   :  { %v7803_v14 = vpop.eup %7802  ;;  %7810 = vrcp.f32 %v1503_v30  ;;  %1923 = vmatmul.mubr.f32.gmra.mxu0 %v1588_v47 }
 0x504   :  { %v1591_v0 = vmul.f32 %v7803_v14, %v9251_v37  ;;  %v1590_v63 = vmul.f32 %v7803_v14, %v9249_v45 }
 0x506   :  { %1927 = vmatprep.mubr.f32.mxu0 %v1591_v0 }
 0x507   :  { %v7805_v21 = vpop.eup %7804  ;;  %1928 = vmatmul.mubr.f32.gmra.mxu0 %v1590_v63 }
 0x508   :  { %v1593_v36 = vmul.f32 %v7805_v21, %v9259_v51  ;;  %v1592_v62 = vmul.f32 %v7805_v21, %v9257_v22 }
 0x50a   :  { %1932 = vmatprep.mubr.f32.mxu0 %v1593_v36 }
 0x50b   :  { %v7807_v52 = vpop.eup %7806  ;;  %1933 = vmatmul.mubr.f32.gmra.mxu0 %v1592_v62 }
 0x50c   :  { %v1595_v10 = vmul.f32 %v7807_v52, %v9269_v13  ;;  %v1594_v48 = vmul.f32 %v7807_v52, %v9267_v43 }
 0x50e   :  { %1937 = vmatprep.mubr.f32.mxu0 %v1595_v10 }
 0x50f   :  { %v7809_v16 = vpop.eup %7808  ;;  %1938 = vmatmul.mubr.f32.gmra.mxu0 %v1594_v48 }
 0x510   :  { %v7811_v37 = vpop.eup %7810  ;;  %v1597_v45 = vmul.f32 %v7809_v16, %v9279_v55  ;;  %v1596_v39 = vmul.f32 %v7809_v16, %v9277_v53 }
 0x511   :  { %v1599_v51 = vmul.f32 %v7811_v37, %v9273_v35  ;;  %v1598_v22 = vmul.f32 %v7811_v37, %v9263_v54 }
 0x512   :  { %1942 = vmatprep.mubr.f32.mxu0 %v1597_v45 }
 0x513   :  { %1943 = vmatmul.mubr.f32.gmra.mxu0 %v1596_v39 }
 0x514   :  { %1947 = vmatprep.mubr.f32.mxu0 %v1599_v51 }
 0x517   :  { %1948 = vmatmul.mubr.f32.gmra.mxu0 %v1598_v22 }
 0x52e   :  { %v1794_v13 = vpop.f32.mrf.mxu0 }
 0x52f   :  { %7240 = vmatprep.mubr.msk.f32.mxu1 %vm175_vm4, %v1794_v13  ;;  %v2310_v13 = vld [vmem:[#allocation2] sm:$0xff] }
 0x530   :  { %v1796_v43 = vpop.f32.mrf.mxu0  ;;  %7320 = vmatprep.mubr.f32.mxu0 %v2310_v13 }
 0x532   :  { %v1799_v5 = vpop.f32.mrf.mxu0 }
 0x533   :  { %7241 = vmatmul.mubr.msk.f32.vlgmr.msra.gmra.mxu1 %vm175_vm4, %v1799_v5 }
 0x534   :  { %v1801_v60 = vpop.f32.mrf.mxu0 }
 0x536   :  { %v1804_v26 = vpop.f32.mrf.mxu0 }
 0x537   :  { %7243 = vmatprep.mubr.msk.f32.mxu1 %vm175_vm4, %v1804_v26 }
 0x538   :  { %v1806_v53 = vpop.f32.mrf.mxu0 }
 0x53a   :  { %v1809_v55 = vpop.f32.mrf.mxu0 }
 0x53b   :  { %7244 = vmatmul.mubr.msk.f32.gmra.mxu1 %vm175_vm4, %v1809_v55 }
 0x53c   :  { %v1811_v35 = vpop.f32.mrf.mxu0 }
 0x53e   :  { %v1814_v25 = vpop.f32.mrf.mxu0 }
 0x53f   :  { %7246 = vmatprep.mubr.msk.f32.mxu1 %vm175_vm4, %v1814_v25 }
 0x540   :  { %v1816_v54 = vpop.f32.mrf.mxu0 }
 0x542   :  { %v1819_v31 = vpop.f32.mrf.mxu0 }
 0x543   :  { %7247 = vmatmul.mubr.msk.f32.gmra.mxu1 %vm175_vm4, %v1819_v31 }
 0x544   :  { %v1821_v42 = vpop.f32.mrf.mxu0 }
 0x546   :  { %v1824_v32 = vpop.f32.mrf.mxu0 }
 0x547   :  { %7249 = vmatprep.mubr.msk.f32.mxu1 %vm175_vm4, %v1824_v32 }
 0x548   :  { %v1826_v6 = vpop.f32.mrf.mxu0 }
 0x54a   :  { %v1829_v50 = vpop.f32.mrf.mxu0 }
 0x54b   :  { %7250 = vmatmul.mubr.msk.f32.gmra.mxu1 %vm175_vm4, %v1829_v50 }
 0x54c   :  { %v1831_v2 = vpop.f32.mrf.mxu0 }
 0x54e   :  { %v1834_v29 = vpop.f32.mrf.mxu0 }
 0x54f   :  { %7252 = vmatprep.mubr.msk.f32.mxu1 %vm175_vm4, %v1834_v29 }
 0x550   :  { %v1836_v18 = vpop.f32.mrf.mxu0 }
 0x552   :  { %v1839_v3 = vpop.f32.mrf.mxu0 }
 0x553   :  { %7253 = vmatmul.mubr.msk.f32.gmra.mxu1 %vm175_vm4, %v1839_v3 }
 0x554   :  { %v1841_v23 = vpop.f32.mrf.mxu0 }
 0x556   :  { %v1844_v44 = vpop.f32.mrf.mxu0 }
 0x557   :  { %7255 = vmatprep.mubr.msk.f32.mxu1 %vm175_vm4, %v1844_v44 }
 0x558   :  { %v1846_v19 = vpop.f32.mrf.mxu0 }
 0x55a   :  { %v1849_v40 = vpop.f32.mrf.mxu0 }
 0x55b   :  { %7256 = vmatmul.mubr.msk.f32.gmra.mxu1 %vm175_vm4, %v1849_v40 }
 0x55c   :  { %v1851_v9 = vpop.f32.mrf.mxu0 }
 0x55e   :  { %v1854_v41 = vpop.f32.mrf.mxu0 }
 0x55f   :  { %7258 = vmatprep.mubr.msk.f32.mxu1 %vm175_vm4, %v1854_v41 }
 0x560   :  { %v1856_v24 = vpop.f32.mrf.mxu0 }
 0x562   :  { %v1859_v34 = vpop.f32.mrf.mxu0 }
 0x563   :  { %7259 = vmatmul.mubr.msk.f32.gmra.mxu1 %vm175_vm4, %v1859_v34 }
 0x564   :  { %v1861_v28 = vpop.f32.mrf.mxu0 }
 0x566   :  { %v1864_v57 = vpop.f32.mrf.mxu0 }
 0x567   :  { %7261 = vmatprep.mubr.msk.f32.mxu1 %vm175_vm4, %v1864_v57 }
 0x568   :  { %v1866_v7 = vpop.f32.mrf.mxu0 }
 0x56a   :  { %v1869_v11 = vpop.f32.mrf.mxu0 }
 0x56b   :  { %7262 = vmatmul.mubr.msk.f32.gmra.mxu1 %vm175_vm4, %v1869_v11  ;;  %v11616_v11 = vld [vmem:[#allocation29_spill] sm:$0xff] }
 0x56c   :  { %v1871_v61 = vpop.f32.mrf.mxu0 }
 0x56d   :  { %v11484_v61 = vsub.s32 1, %v11616_v11 }
 0x56e   :  { %v1874_v33 = vpop.f32.mrf.mxu0 }
 0x56f   :  { %7264 = vmatprep.mubr.msk.f32.mxu1 %vm175_vm4, %v1874_v33 }
 0x570   :  { %v1876_v20 = vpop.f32.mrf.mxu0 }
 0x572   :  { %v1879_v4 = vpop.f32.mrf.mxu0 }
 0x573   :  { %7265 = vmatmul.mubr.msk.f32.gmra.mxu1 %vm175_vm4, %v1879_v4  ;;  %v9398_v4 = vld [vmem:[%s11415_s7] sm:$0xff] }
 0x574   :  { %v1881_v38 = vpop.f32.mrf.mxu0 }
 0x575   :  { %v2293_v38 = vrot.slane %v9398_v4, %v11484_v61 }
 0x576   :  { %v1884_v15 = vpop.f32.mrf.mxu0 }
 0x577   :  { %7267 = vmatprep.mubr.msk.f32.mxu1 %vm175_vm4, %v1884_v15 }
 0x578   :  { %v1886_v27 = vpop.f32.mrf.mxu0 }
 0x57a   :  { %v1889_v56 = vpop.f32.mrf.mxu0 }
 0x57b   :  { %7268 = vmatmul.mubr.msk.f32.gmra.mxu1 %vm175_vm4, %v1889_v56 }
 0x57c   :  { %v1891_v49 = vpop.f32.mrf.mxu0 }
 0x57e   :  { %v1894_v58 = vpop.f32.mrf.mxu0 }
 0x57f   :  { %7270 = vmatprep.mubr.msk.f32.mxu1 %vm175_vm4, %v1894_v58 }
 0x580   :  { %v1896_v59 = vpop.f32.mrf.mxu0 }
 0x5af   :  { %v1899_v8 = vpop.f32.mrf.mxu0 }
 0x5b0   :  { %7271 = vmatmul.mubr.msk.f32.gmra.mxu1 %vm175_vm4, %v1899_v8 }
 0x5b1   :  { %v1901_v46 = vpop.f32.mrf.mxu0 }
 0x5b3   :  { %v1904_v17 = vpop.f32.mrf.mxu0 }
 0x5b4   :  { %7273 = vmatprep.mubr.msk.f32.mxu1 %vm175_vm4, %v1904_v17 }
 0x5b5   :  { %v1906_v12 = vpop.f32.mrf.mxu0 }
 0x5b7   :  { %v1909_v30 = vpop.f32.mrf.mxu0 }
 0x5b8   :  { %7274 = vmatmul.mubr.msk.f32.gmra.mxu1 %vm175_vm4, %v1909_v30 }
 0x5b9   :  { %v1911_v1 = vpop.f32.mrf.mxu0 }
 0x5bb   :  { %v1914_v47 = vpop.f32.mrf.mxu0 }
 0x5bc   :  { %7276 = vmatprep.mubr.msk.f32.mxu1 %vm175_vm4, %v1914_v47 }
 0x5bd   :  { %v1916_v14 = vpop.f32.mrf.mxu0 }
 0x5bf   :  { %v1919_v0 = vpop.f32.mrf.mxu0 }
 0x5c0   :  { %7277 = vmatmul.mubr.msk.f32.gmra.mxu1 %vm175_vm4, %v1919_v0 }
 0x5c1   :  { %v1921_v63 = vpop.f32.mrf.mxu0 }
 0x5c3   :  { %v1924_v21 = vpop.f32.mrf.mxu0 }
 0x5c4   :  { %7279 = vmatprep.mubr.msk.f32.mxu1 %vm175_vm4, %v1924_v21 }
 0x5c5   :  { %v1926_v36 = vpop.f32.mrf.mxu0 }
 0x5c7   :  { %v1929_v62 = vpop.f32.mrf.mxu0 }
 0x5c8   :  { %7280 = vmatmul.mubr.msk.f32.gmra.mxu1 %vm175_vm4, %v1929_v62 }
 0x5c9   :  { %v1931_v52 = vpop.f32.mrf.mxu0 }
 0x5cb   :  { %v1934_v10 = vpop.f32.mrf.mxu0 }
 0x5cc   :  { %7282 = vmatprep.mubr.msk.f32.mxu1 %vm175_vm4, %v1934_v10 }
 0x5cd   :  { %v1936_v48 = vpop.f32.mrf.mxu0 }
 0x5cf   :  { %v1939_v16 = vpop.f32.mrf.mxu0 }
 0x5d0   :  { %7283 = vmatmul.mubr.msk.f32.gmra.mxu1 %vm175_vm4, %v1939_v16 }
 0x5d1   :  { %v1941_v37 = vpop.f32.mrf.mxu0 }
 0x5d3   :  { %v1944_v45 = vpop.f32.mrf.mxu0 }
 0x5d4   :  { %7285 = vmatprep.mubr.msk.f32.mxu1 %vm175_vm4, %v1944_v45 }
 0x5d5   :  { %v1946_v39 = vpop.f32.mrf.mxu0 }
 0x5d7   :  { %v1949_v51 = vpop.f32.mrf.mxu0 }
 0x5d8   :  { %7286 = vmatmul.mubr.msk.f32.gmra.mxu1 %vm175_vm4, %v1949_v51 }
 0x5d9   :  { %v1951_v22 = vpop.f32.mrf.mxu0 }
 0x5f3   :  { %v9378_v43 = vpop.f32.mrf.mxu1 }
 0x5f5   :  { %v9380_v5 = vpop.f32.mrf.mxu1 }
 0x5fb   :  { %v9382_v60 = vpop.f32.mrf.mxu1 }
 0x5fd   :  { %v9384_v26 = vpop.f32.mrf.mxu1 }
 0x603   :  { %v9386_v53 = vpop.f32.mrf.mxu1 }
 0x605   :  { %v9388_v55 = vpop.f32.mrf.mxu1 }
 0x60b   :  { %v7251_v35 = vpop.f32.mrf.mxu1 }
 0x60d   :  { %v2145_v25 = vpop.f32.mrf.mxu1 }
 0x613   :  { %v7254_v54 = vpop.f32.mrf.mxu1 }
 0x615   :  { %v2155_v31 = vpop.f32.mrf.mxu1 }
 0x61b   :  { %v7257_v42 = vpop.f32.mrf.mxu1 }
 0x61d   :  { %v2165_v32 = vpop.f32.mrf.mxu1 }
 0x623   :  { %v7260_v6 = vpop.f32.mrf.mxu1 }
 0x625   :  { %v2175_v50 = vpop.f32.mrf.mxu1 }
 0x62b   :  { %v7263_v2 = vpop.f32.mrf.mxu1 }
 0x62d   :  { %v2185_v29 = vpop.f32.mrf.mxu1 }
 0x633   :  { %v9390_v18 = vpop.f32.mrf.mxu1 }
 0x634   :  { %v2275_v22 = vadd.f32 %v9390_v18, %v9378_v43  ;;  %v2313_v43 = vld [vmem:[#allocation2 + $0x18] sm:$0xff]  ;;  %v2323_v18 = vld [vmem:[#allocation2 + $0x68] sm:$0xff] }
 0x635   :  { %v9392_v3 = vpop.f32.mrf.mxu1 }
 0x63b   :  { %v7269_v23 = vpop.f32.mrf.mxu1 }
 0x63c   :  { %v2277_v37 = vadd.f32 %v7269_v23, %v9382_v60  ;;  %v2295_v60 = vadd.f32 %v2293_v38, %v2275_v22  ;;  %v2325_v23 = vld [vmem:[#allocation2 + $0x78] sm:$0xff]  ;;  %v11627_v22 = vld [vmem:[#allocation24_spill] sm:$0xff] }
 0x63d   :  { %v2205_v44 = vpop.f32.mrf.mxu1 }
 0x63e   :  { %v2276_v39 = vadd.f32 %v2205_v44, %v9384_v26  ;;  %v2297_v13 = vadd.f32 %v2293_v38, %v2277_v37  ;;  %v2311_v26 = vld [vmem:[#allocation2 + $0x8] sm:$0xff]  ;;  %v11626_v37 = vld [vmem:[#allocation21_spill] sm:$0xff] }
 0x670   :  { %v7272_v19 = vpop.f32.mrf.mxu1 }
 0x671   :  { %v2279_v52 = vadd.f32 %v7272_v19, %v9386_v53  ;;  %v2274_v53 = vadd.f32 %v9392_v3, %v9380_v5  ;;  %v2315_v5 = vld [vmem:[#allocation2 + $0x28] sm:$0xff]  ;;  %v2324_v3 = vld [vmem:[#allocation2 + $0x70] sm:$0xff]  ;;  %v11617_v19 = vld [vmem:[#allocation14_spill] sm:$0xff] }
 0x672   :  { %v2215_v40 = vpop.f32.mrf.mxu1 }
 0x673   :  { %v2278_v48 = vadd.f32 %v2215_v40, %v9388_v55  ;;  %v2299_v45 = vadd.f32 %v2293_v38, %v2279_v52  ;;  %v2296_v55 = vadd.f32 %v2293_v38, %v2276_v39  ;;  %v11625_v52 = vld [vmem:[#allocation22_spill] sm:$0xff] }
 0x675   :  { %v2298_v51 = vadd.f32 %v2293_v38, %v2278_v48 }
 0x678   :  { %v7275_v9 = vpop.f32.mrf.mxu1 }
 0x679   :  { %v2281_v63 = vadd.f32 %v7275_v9, %v7251_v35  ;;  %v2294_v35 = vadd.f32 %v2293_v38, %v2274_v53 }
 0x67a   :  { %v2225_v41 = vpop.f32.mrf.mxu1 }
 0x67b   :  { %v2280_v36 = vadd.f32 %v2225_v41, %v2145_v25  ;;  %v2301_v10 = vadd.f32 %v2293_v38, %v2281_v63  ;;  %v2312_v25 = vld [vmem:[#allocation2 + $0x10] sm:$0xff]  ;;  %v11618_v41 = vld [vmem:[#allocation13_spill] sm:$0xff]  ;;  %v11624_v63 = vld [vmem:[#allocation19_spill] sm:$0xff] }
 0x67d   :  { %v2300_v16 = vadd.f32 %v2293_v38, %v2280_v36 }
 0x680   :  { %v7278_v24 = vpop.f32.mrf.mxu1 }
 0x681   :  { %v2283_v1 = vadd.f32 %v7278_v24, %v7254_v54  ;;  %v2314_v54 = vld [vmem:[#allocation2 + $0x20] sm:$0xff] }
 0x682   :  { %v2235_v34 = vpop.f32.mrf.mxu1 }
 0x683   :  { %v2282_v14 = vadd.f32 %v2235_v34, %v2155_v31  ;;  %v2303_v21 = vadd.f32 %v2293_v38, %v2283_v1  ;;  %v2316_v31 = vld [vmem:[#allocation2 + $0x30] sm:$0xff] }
 0x684   :  { %v11623_v1 = vld [vmem:[#allocation20_spill] sm:$0xff] }
 0x685   :  { %v2302_v62 = vadd.f32 %v2293_v38, %v2282_v14 }
 0x688   :  { %v7281_v28 = vpop.f32.mrf.mxu1 }
 0x689   :  { %v2285_v46 = vadd.f32 %v7281_v28, %v7257_v42  ;;  %v2317_v42 = vld [vmem:[#allocation2 + $0x38] sm:$0xff] }
 0x68a   :  { %v2245_v57 = vpop.f32.mrf.mxu1 }
 0x68b   :  { %v2284_v12 = vadd.f32 %v2245_v57, %v2165_v32  ;;  %v2305_v47 = vadd.f32 %v2293_v38, %v2285_v46  ;;  %v2318_v32 = vld [vmem:[#allocation2 + $0x40] sm:$0xff]  ;;  %v11619_v57 = vld [vmem:[#allocation16_spill] sm:$0xff]  ;;  %v11622_v46 = vld [vmem:[#allocation17_spill] sm:$0xff] }
 0x68d   :  { %v2304_v0 = vadd.f32 %v2293_v38, %v2284_v12 }
 0x690   :  { %v7284_v7 = vpop.f32.mrf.mxu1 }
 0x691   :  { %v2287_v56 = vadd.f32 %v7284_v7, %v7260_v6  ;;  %v2319_v6 = vld [vmem:[#allocation2 + $0x48] sm:$0xff] }
 0x692   :  { %v2255_v33 = vpop.f32.mrf.mxu1 }
 0x693   :  { %v2286_v59 = vadd.f32 %v2255_v33, %v2175_v50  ;;  %v2307_v17 = vadd.f32 %v2293_v38, %v2287_v56  ;;  %v2320_v50 = vld [vmem:[#allocation2 + $0x50] sm:$0xff] }
 0x695   :  { %v2306_v30 = vadd.f32 %v2293_v38, %v2286_v59 }
 0x698   :  { %v7287_v20 = vpop.f32.mrf.mxu1 }
 0x699   :  { %v2289_v15 = vadd.f32 %v7287_v20, %v7263_v2  ;;  %v2321_v2 = vld [vmem:[#allocation2 + $0x58] sm:$0xff] }
 0x69a   :  { %v2265_v27 = vpop.f32.mrf.mxu1 }
 0x69b   :  { %v2309_v49 = vadd.f32 %v2293_v38, %v2289_v15  ;;  %v2288_v58 = vadd.f32 %v2265_v27, %v2185_v29  ;;  %v2322_v29 = vld [vmem:[#allocation2 + $0x60] sm:$0xff] }
 0x69d   :  { %v2308_v8 = vadd.f32 %v2293_v38, %v2288_v58  ;;  %7288 = vmatprep.subr.mxu0 %v2309_v49  ;;  %v11620_v38 = vld [vmem:[#allocation15_spill] sm:$0xff] }
 0x69e   :  { %7289 = vmatpush3.msra.mxu0 %v2309_v49  ;;  %v11621_v49 = vld [vmem:[#allocation18_spill] sm:$0xff] }
 0x69f   :  { %7290 = vmatprep.subr.mxu0 %v2308_v8 }
 0x6a0   :  { %7291 = vmatpush3.msra.mxu0 %v2308_v8 }
 0x6a1   :  { %7292 = vmatprep.subr.mxu0 %v2307_v17 }
 0x6a2   :  { %7293 = vmatpush3.msra.mxu0 %v2307_v17 }
 0x6a3   :  { %7294 = vmatprep.subr.mxu0 %v2306_v30 }
 0x6a4   :  { %7295 = vmatpush3.msra.mxu0 %v2306_v30 }
 0x6a5   :  { %7296 = vmatprep.subr.mxu0 %v2305_v47 }
 0x6a6   :  { %7297 = vmatpush3.msra.mxu0 %v2305_v47 }
 0x6a7   :  { %7298 = vmatprep.subr.mxu0 %v2304_v0 }
 0x6a8   :  { %7299 = vmatpush3.msra.mxu0 %v2304_v0 }
 0x6a9   :  { %7300 = vmatprep.subr.mxu0 %v2303_v21 }
 0x6aa   :  { %7301 = vmatpush3.msra.mxu0 %v2303_v21 }
 0x6ab   :  { %7302 = vmatprep.subr.mxu0 %v2302_v62 }
 0x6ac   :  { %7303 = vmatpush3.msra.mxu0 %v2302_v62 }
 0x6ad   :  { %7304 = vmatprep.subr.mxu0 %v2301_v10 }
 0x6ae   :  { %7305 = vmatpush3.msra.mxu0 %v2301_v10 }
 0x6af   :  { %7306 = vmatprep.subr.mxu0 %v2300_v16 }
 0x6b0   :  { %7307 = vmatpush3.msra.mxu0 %v2300_v16 }
 0x6b1   :  { %7308 = vmatprep.subr.mxu0 %v2299_v45 }
 0x6b2   :  { %7309 = vmatpush3.msra.mxu0 %v2299_v45 }
 0x6b3   :  { %7310 = vmatprep.subr.mxu0 %v2298_v51 }
 0x6b4   :  { %7311 = vmatpush3.msra.mxu0 %v2298_v51 }
 0x6b5   :  { %7312 = vmatprep.subr.mxu0 %v2297_v13 }
 0x6b6   :  { %7313 = vmatpush3.msra.mxu0 %v2297_v13 }
 0x6b7   :  { %7314 = vmatprep.subr.mxu0 %v2296_v55 }
 0x6b8   :  { %7315 = vmatpush3.msra.mxu0 %v2296_v55 }
 0x6b9   :  { %7316 = vmatprep.subr.mxu0 %v2295_v60 }
 0x6ba   :  { %7317 = vmatpush3.msra.mxu0 %v2295_v60  ;;  %v11628_v60 = vld [vmem:[#allocation23_spill] sm:$0xff] }
 0x6bb   :  { %7318 = vmatprep.subr.mxu0 %v2294_v35 }
 0x6bc   :  { %7319 = vmatpush3.msra.mxu0 %v2294_v35 }
 0x6bd   :  { %7321 = vmatmul.mubr.f32.vlgmr.msra.gmra.mxu0 %v2311_v26 }
 0x6be   :  { %7323 = vmatprep.mubr.f32.mxu0 %v2312_v25 }
 0x6c1   :  { %7324 = vmatmul.mubr.f32.gmra.mxu0 %v2313_v43  ;;  %v11629_v43 = vld [vmem:[#allocation26_spill] sm:$0xff] }
 0x6c2   :  { %7326 = vmatprep.mubr.f32.mxu0 %v2314_v54 }
 0x6c5   :  { %7327 = vmatmul.mubr.f32.gmra.mxu0 %v2315_v5 }
 0x6c6   :  { %7329 = vmatprep.mubr.f32.mxu0 %v2316_v31 }
 0x6c9   :  { %7330 = vmatmul.mubr.f32.gmra.mxu0 %v2317_v42  ;;  %v11630_v42 = vld [vmem:[#allocation25_spill] sm:$0xff] }
 0x6ca   :  { %7332 = vmatprep.mubr.f32.mxu0 %v2318_v32 }
 0x6cd   :  { %7333 = vmatmul.mubr.f32.gmra.mxu0 %v2319_v6 }
 0x6ce   :  { %7335 = vmatprep.mubr.f32.mxu0 %v2320_v50 }
 0x6d1   :  { %7336 = vmatmul.mubr.f32.gmra.mxu0 %v2321_v2  ;;  %v11631_v2 = vld [vmem:[#allocation28_spill] sm:$0xff] }
 0x6d2   :  { %7338 = vmatprep.mubr.f32.mxu0 %v2322_v29 }
 0x6d5   :  { %7339 = vmatmul.mubr.f32.gmra.mxu0 %v2323_v18 }
 0x6d6   :  { %7341 = vmatprep.mubr.f32.mxu0 %v2324_v3 }
 0x6d9   :  { %7342 = vmatmul.mubr.f32.gmra.mxu0 %v2325_v23  ;;  %v11632_v23 = vld [vmem:[#allocation27_spill] sm:$0xff] }
 0x77d   :  { %v7322_v44 = vpop.f32.mrf.mxu0 }
 0x77e   :  { %v9412_v40 = vadd.f32 %v7322_v44, %v11617_v19 }
 0x77f   :  { %v2392_v9 = vpop.f32.mrf.mxu0 }
 0x780   :  { %v9415_v24 = vadd.f32 %v2392_v9, %v11618_v41  ;;  %v2495_v34 = vsel %vm175_vm4, %v9412_v40, 0.0 }
 0x781   :  { %2496 = vadd.xlane.f32.xlu0 %v2495_v34  ;;  %v7325_v28 = vpop.f32.mrf.mxu0 }
 0x782   :  { %v9420_v7 = vadd.f32 %v7325_v28, %v11619_v57  ;;  %v2492_v33 = vsel %vm175_vm4, %v9415_v24, 0.0 }
 0x783   :  { %2493 = vadd.xlane.f32.xlu1 %v2492_v33  ;;  %v2402_v20 = vpop.f32.mrf.mxu0 }
 0x784   :  { %v9425_v15 = vadd.f32 %v2402_v20, %v11620_v38  ;;  %v2501_v27 = vsel %vm175_vm4, %v9420_v7, 0.0 }
 0x785   :  { %2502 = vadd.xlane.f32.xlu0 %v2501_v27  ;;  %v7328_v56 = vpop.f32.mrf.mxu0 }
 0x786   :  { %v9430_v58 = vadd.f32 %v7328_v56, %v11621_v49  ;;  %v2498_v59 = vsel %vm175_vm4, %v9425_v15, 0.0 }
 0x787   :  { %2499 = vadd.xlane.f32.xlu1 %v2498_v59  ;;  %v2412_v8 = vpop.f32.mrf.mxu0 }
 0x788   :  { %v9435_v17 = vadd.f32 %v2412_v8, %v11622_v46  ;;  %v2507_v12 = vsel %vm175_vm4, %v9430_v58, 0.0 }
 0x789   :  { %2508 = vadd.xlane.f32.xlu0 %v2507_v12  ;;  %v7331_v30 = vpop.f32.mrf.mxu0 }
 0x78a   :  { %v9440_v47 = vadd.f32 %v7331_v30, %v11623_v1  ;;  %v2504_v14 = vsel %vm175_vm4, %v9435_v17, 0.0 }
 0x78b   :  { %2505 = vadd.xlane.f32.xlu1 %v2504_v14  ;;  %v2422_v0 = vpop.f32.mrf.mxu0 }
 0x78c   :  { %v9445_v21 = vadd.f32 %v2422_v0, %v11624_v63  ;;  %v2513_v36 = vsel %vm175_vm4, %v9440_v47, 0.0 }
 0x78d   :  { %2514 = vadd.xlane.f32.xlu0 %v2513_v36  ;;  %v7334_v62 = vpop.f32.mrf.mxu0 }
 0x78e   :  { %v9450_v10 = vadd.f32 %v7334_v62, %v11625_v52  ;;  %v2510_v48 = vsel %vm175_vm4, %v9445_v21, 0.0 }
 0x78f   :  { %2511 = vadd.xlane.f32.xlu1 %v2510_v48  ;;  %v2432_v16 = vpop.f32.mrf.mxu0 }
 0x790   :  { %v9455_v45 = vadd.f32 %v2432_v16, %v11626_v37  ;;  %v2519_v39 = vsel %vm175_vm4, %v9450_v10, 0.0 }
 0x791   :  { %2520 = vadd.xlane.f32.xlu0 %v2519_v39  ;;  %v7337_v51 = vpop.f32.mrf.mxu0 }
 0x792   :  { %v9460_v13 = vadd.f32 %v7337_v51, %v11627_v22  ;;  %v2516_v53 = vsel %vm175_vm4, %v9455_v45, 0.0 }
 0x793   :  { %2517 = vadd.xlane.f32.xlu1 %v2516_v53  ;;  %v2442_v55 = vpop.f32.mrf.mxu0 }
 0x794   :  { %v9465_v35 = vadd.f32 %v2442_v55, %v11628_v60  ;;  %v2525_v26 = vsel %vm175_vm4, %v9460_v13, 0.0 }
 0x795   :  { %2526 = vadd.xlane.f32.xlu0 %v2525_v26  ;;  %v7340_v25 = vpop.f32.mrf.mxu0 }
 0x796   :  { %v9470_v54 = vadd.f32 %v7340_v25, %v11629_v43  ;;  %v2522_v5 = vsel %vm175_vm4, %v9465_v35, 0.0 }
 0x797   :  { %2523 = vadd.xlane.f32.xlu1 %v2522_v5  ;;  %v2452_v31 = vpop.f32.mrf.mxu0 }
 0x798   :  { %v9475_v32 = vadd.f32 %v2452_v31, %v11630_v42  ;;  %v2531_v6 = vsel %vm175_vm4, %v9470_v54, 0.0 }
 0x799   :  { %2532 = vadd.xlane.f32.xlu0 %v2531_v6  ;;  %v7343_v50 = vpop.f32.mrf.mxu0 }
 0x79a   :  { %v9480_v29 = vadd.f32 %v7343_v50, %v11631_v2  ;;  %v2528_v18 = vsel %vm175_vm4, %v9475_v32, 0.0 }
 0x79b   :  { %2529 = vadd.xlane.f32.xlu1 %v2528_v18  ;;  %v2462_v3 = vpop.f32.mrf.mxu0 }
 0x79c   :  { %v9485_v44 = vadd.f32 %v2462_v3, %v11632_v23  ;;  %v2537_v19 = vsel %vm175_vm4, %v9480_v29, 0.0 }
 0x79d   :  { %2538 = vadd.xlane.f32.xlu0 %v2537_v19 }
 0x79e   :  { %v2534_v9 = vsel %vm175_vm4, %v9485_v44, 0.0 }
 0x79f   :  { %2535 = vadd.xlane.f32.xlu1 %v2534_v9 }
 0x80a   :  { %v2497_v41 = vpop.xlane.xlu0 %2496 }
 0x80b   :  { %v2542_v34 = vmul.f32 0.125, %v2497_v41 }
 0x80c   :  { %v2494_v28 = vpop.xlane.xlu1 %2493 }
 0x80d   :  { %v9492_v57 = vsub.f32 %v9412_v40, %v2542_v34  ;;  %v2541_v33 = vmul.f32 0.125, %v2494_v28 }
 0x80e   :  { %v2503_v20 = vpop.xlane.xlu0 %2502 }
 0x80f   :  { %v9495_v38 = vsub.f32 %v9415_v24, %v2541_v33  ;;  %v2544_v27 = vmul.f32 0.125, %v2503_v20  ;;  %v2574_v56 = vmul.f32 %v9492_v57, %v9492_v57 }
 0x810   :  { %v2500_v49 = vpop.xlane.xlu1 %2499 }
 0x811   :  { %v9500_v59 = vsub.f32 %v9420_v7, %v2544_v27  ;;  %v2543_v8 = vmul.f32 0.125, %v2500_v49  ;;  %v2592_v46 = vsel %vm175_vm4, %v2574_v56, 0.0  ;;  %v2573_v12 = vmul.f32 %v9495_v38, %v9495_v38 }
 0x812   :  { %v2509_v30 = vpop.xlane.xlu0 %2508  ;;  %2593 = vadd.xlane.f32.xlu0 %v2592_v46 }
 0x813   :  { %v9506_v1 = vsub.f32 %v9425_v15, %v2543_v8  ;;  %v2546_v14 = vmul.f32 0.125, %v2509_v30  ;;  %v2589_v0 = vsel %vm175_vm4, %v2573_v12, 0.0  ;;  %v2576_v63 = vmul.f32 %v9500_v59, %v9500_v59 }
 0x814   :  { %v2506_v36 = vpop.xlane.xlu1 %2505  ;;  %2590 = vadd.xlane.f32.xlu1 %v2589_v0 }
 0x815   :  { %v9512_v62 = vsub.f32 %v9430_v58, %v2546_v14  ;;  %v2545_v52 = vmul.f32 0.125, %v2506_v36  ;;  %v2598_v48 = vsel %vm175_vm4, %v2576_v63, 0.0  ;;  %v2575_v16 = vmul.f32 %v9506_v1, %v9506_v1 }
 0x816   :  { %v2515_v37 = vpop.xlane.xlu0 %2514  ;;  %2599 = vadd.xlane.f32.xlu0 %v2598_v48 }
 0x817   :  { %v9518_v39 = vsub.f32 %v9435_v17, %v2545_v52  ;;  %v2548_v51 = vmul.f32 0.125, %v2515_v37  ;;  %v2595_v22 = vsel %vm175_vm4, %v2575_v16, 0.0  ;;  %v2578_v53 = vmul.f32 %v9512_v62, %v9512_v62 }
 0x818   :  { %v2512_v55 = vpop.xlane.xlu1 %2511  ;;  %2596 = vadd.xlane.f32.xlu1 %v2595_v22 }
 0x819   :  { %v9524_v60 = vsub.f32 %v9440_v47, %v2548_v51  ;;  %v2547_v26 = vmul.f32 0.125, %v2512_v55  ;;  %v2604_v25 = vsel %vm175_vm4, %v2578_v53, 0.0  ;;  %v2577_v43 = vmul.f32 %v9518_v39, %v9518_v39 }
 0x81a   :  { %v2521_v5 = vpop.xlane.xlu0 %2520  ;;  %2605 = vadd.xlane.f32.xlu0 %v2604_v25 }
 0x81b   :  { %v9530_v31 = vsub.f32 %v9445_v21, %v2547_v26  ;;  %v2550_v42 = vmul.f32 0.125, %v2521_v5  ;;  %v2601_v6 = vsel %vm175_vm4, %v2577_v43, 0.0  ;;  %v2580_v50 = vmul.f32 %v9524_v60, %v9524_v60 }
 0x81c   :  { %v2518_v2 = vpop.xlane.xlu1 %2517  ;;  %2602 = vadd.xlane.f32.xlu1 %v2601_v6 }
 0x81d   :  { %v9536_v18 = vsub.f32 %v9450_v10, %v2550_v42  ;;  %v2549_v3 = vmul.f32 0.125, %v2518_v2  ;;  %v2610_v23 = vsel %vm175_vm4, %v2580_v50, 0.0  ;;  %v2579_v19 = vmul.f32 %v9530_v31, %v9530_v31 }
 0x81e   :  { %v2527_v9 = vpop.xlane.xlu0 %2526  ;;  %2611 = vadd.xlane.f32.xlu0 %v2610_v23 }
 0x81f   :  { %v9542_v41 = vsub.f32 %v9455_v45, %v2549_v3  ;;  %v2552_v34 = vmul.f32 0.125, %v2527_v9  ;;  %v2607_v28 = vsel %vm175_vm4, %v2579_v19, 0.0  ;;  %v2582_v33 = vmul.f32 %v9536_v18, %v9536_v18  ;;  %v2487_v9 = vld [vmem:[%s11413_s5] sm:$0xff] }
 0x820   :  { %v2524_v20 = vpop.xlane.xlu1 %2523  ;;  %2608 = vadd.xlane.f32.xlu1 %v2607_v28  ;;  %7344 = vmatprep.subr.mxu0 %v2487_v9 }
 0x821   :  { %v9548_v27 = vsub.f32 %v9460_v13, %v2552_v34  ;;  %v2551_v56 = vmul.f32 0.125, %v2524_v20  ;;  %v2616_v49 = vsel %vm175_vm4, %v2582_v33, 0.0  ;;  %v2581_v8 = vmul.f32 %v9542_v41, %v9542_v41  ;;  %7345 = vmatpush3.msra.mxu0 %v2487_v9  ;;  %v2491_v34 = vld [vmem:[%s11414_s6 + $0x18] sm:$0xff] }
 0x822   :  { %v2533_v46 = vpop.xlane.xlu0 %2532  ;;  %2617 = vadd.xlane.f32.xlu0 %v2616_v49  ;;  %7370 = vmatprep.subr.mxu1 %v2491_v34 }
 0x823   :  { %v9554_v12 = vsub.f32 %v9465_v35, %v2551_v56  ;;  %v2554_v30 = vmul.f32 0.125, %v2533_v46  ;;  %v2613_v14 = vsel %vm175_vm4, %v2581_v8, 0.0  ;;  %v2584_v0 = vmul.f32 %v9548_v27, %v9548_v27  ;;  %7371 = vmatpush3.msra.mxu1 %v2491_v34 }
 0x824   :  { %v2530_v63 = vpop.xlane.xlu1 %2529  ;;  %2614 = vadd.xlane.f32.xlu1 %v2613_v14 }
 0x825   :  { %v9560_v36 = vsub.f32 %v9470_v54, %v2554_v30  ;;  %v2553_v52 = vmul.f32 0.125, %v2530_v63  ;;  %v2622_v48 = vsel %vm175_vm4, %v2584_v0, 0.0  ;;  %v2583_v16 = vmul.f32 %v9554_v12, %v9554_v12 }
 0x826   :  { %2623 = vadd.xlane.f32.xlu0 %v2622_v48  ;;  %v2539_v37 = vpop.xlane.xlu0 %2538 }
 0x827   :  { %v9566_v51 = vsub.f32 %v9475_v32, %v2553_v52  ;;  %v2556_v22 = vmul.f32 0.125, %v2539_v37  ;;  %v2619_v53 = vsel %vm175_vm4, %v2583_v16, 0.0  ;;  %v2586_v55 = vmul.f32 %v9560_v36, %v9560_v36 }
 0x828   :  { %2620 = vadd.xlane.f32.xlu1 %v2619_v53  ;;  %v2536_v26 = vpop.xlane.xlu1 %2535 }
 0x829   :  { %v9572_v25 = vsub.f32 %v9480_v29, %v2556_v22  ;;  %v2555_v43 = vmul.f32 0.125, %v2536_v26  ;;  %v2628_v5 = vsel %vm175_vm4, %v2586_v55, 0.0  ;;  %v2585_v42 = vmul.f32 %v9566_v51, %v9566_v51 }
 0x82a   :  { %2629 = vadd.xlane.f32.xlu0 %v2628_v5  ;;  %v11483_v5 = vsub.s32 2, %v11616_v11 }
 0x82b   :  { %v9578_v6 = vsub.f32 %v9485_v44, %v2555_v43  ;;  %v2625_v50 = vsel %vm175_vm4, %v2585_v42, 0.0  ;;  %v2588_v2 = vmul.f32 %v9572_v25, %v9572_v25 }
 0x82c   :  { %2626 = vadd.xlane.f32.xlu1 %v2625_v50  ;;  %v9597_v34 = vrot.slane %v9398_v4, %v11483_v5 }
 0x82d   :  { %v2634_v3 = vsel %vm175_vm4, %v2588_v2, 0.0  ;;  %v2587_v23 = vmul.f32 %v9578_v6, %v9578_v6 }
 0x82e   :  { %2635 = vadd.xlane.f32.xlu0 %v2634_v3 }
 0x82f   :  { %v2631_v19 = vsel %vm175_vm4, %v2587_v23, 0.0 }
 0x830   :  { %2632 = vadd.xlane.f32.xlu1 %v2631_v19 }
 0x89b   :  { %v2594_v28 = vpop.xlane.xlu0 %2593 }
 0x89c   :  { %v2638_v33 = vmul.f32 0.125, %v2594_v28 }
 0x89d   :  { %v2591_v20 = vpop.xlane.xlu1 %2590 }
 0x89e   :  { %v2654_v56 = vadd.f32 1e-05, %v2638_v33  ;;  %v2637_v49 = vmul.f32 0.125, %v2591_v20  ;;  %v11482_v33 = vsub.s32 3, %v11616_v11 }
 0x89f   :  { %v2600_v8 = vpop.xlane.xlu0 %2599 }
 0x8a0   :  { %7812 = vrsqrt.f32 %v2654_v56  ;;  %v2653_v46 = vadd.f32 1e-05, %v2637_v49  ;;  %v2640_v30 = vmul.f32 0.125, %v2600_v8 }
 0x8a1   :  { %v2597_v14 = vpop.xlane.xlu1 %2596 }
 0x8a2   :  { %7814 = vrsqrt.f32 %v2653_v46  ;;  %v2656_v0 = vadd.f32 1e-05, %v2640_v30  ;;  %v2639_v63 = vmul.f32 0.125, %v2597_v14 }
 0x8a3   :  { %v2606_v52 = vpop.xlane.xlu0 %2605 }
 0x8a4   :  { %7816 = vrsqrt.f32 %v2656_v0  ;;  %v2655_v48 = vadd.f32 1e-05, %v2639_v63  ;;  %v2642_v16 = vmul.f32 0.125, %v2606_v52 }
 0x8a5   :  { %v2603_v37 = vpop.xlane.xlu1 %2602 }
 0x8a6   :  { %7818 = vrsqrt.f32 %v2655_v48  ;;  %v2658_v22 = vadd.f32 1e-05, %v2642_v16  ;;  %v2641_v53 = vmul.f32 0.125, %v2603_v37  ;;  %v9606_v16 = vrot.slane %v9398_v4, %v11482_v33 }
 0x8a7   :  { %v2612_v55 = vpop.xlane.xlu0 %2611 }
 0x8a8   :  { %7820 = vrsqrt.f32 %v2658_v22  ;;  %v2657_v26 = vadd.f32 1e-05, %v2641_v53  ;;  %v2644_v43 = vmul.f32 0.125, %v2612_v55 }
 0x8a9   :  { %v2609_v42 = vpop.xlane.xlu1 %2608 }
 0x8aa   :  { %7822 = vrsqrt.f32 %v2657_v26  ;;  %v2660_v50 = vadd.f32 1e-05, %v2644_v43  ;;  %v2643_v2 = vmul.f32 0.125, %v2609_v42 }
 0x8ab   :  { %v2618_v3 = vpop.xlane.xlu0 %2617 }
 0x8ac   :  { %7824 = vrsqrt.f32 %v2660_v50  ;;  %v2659_v23 = vadd.f32 1e-05, %v2643_v2  ;;  %v2646_v19 = vmul.f32 0.125, %v2618_v3 }
 0x8ad   :  { %v7813_v9 = vpop.eup %7812  ;;  %v2615_v28 = vpop.xlane.xlu1 %2614 }
 0x8ae   :  { %v2686_v20 = vmul.f32 %v7813_v9, %v9492_v57  ;;  %7826 = vrsqrt.f32 %v2659_v23  ;;  %v2662_v56 = vadd.f32 1e-05, %v2646_v19  ;;  %v2645_v49 = vmul.f32 0.125, %v2615_v28 }
 0x8af   :  { %v7815_v8 = vpop.eup %7814  ;;  %v2624_v46 = vpop.xlane.xlu0 %2623 }
 0x8b0   :  { %7828 = vrsqrt.f32 %v2662_v56  ;;  %v2661_v30 = vadd.f32 1e-05, %v2645_v49  ;;  %v2648_v14 = vmul.f32 0.125, %v2624_v46  ;;  %v2706_v63 = vmul.f32 %v9597_v34, %v2686_v20 }
 0x8b1   :  { %v7817_v0 = vpop.eup %7816  ;;  %v2621_v52 = vpop.xlane.xlu1 %2620  ;;  %v2685_v48 = vmul.f32 %v7815_v8, %v9495_v38 }
 0x8b2   :  { %7830 = vrsqrt.f32 %v2661_v30  ;;  %v2664_v57 = vadd.f32 1e-05, %v2648_v14  ;;  %v2647_v37 = vmul.f32 0.125, %v2621_v52  ;;  %v2688_v26 = vmul.f32 %v7817_v0, %v9500_v59 }
 0x8b3   :  { %v7819_v22 = vpop.eup %7818  ;;  %v2630_v53 = vpop.xlane.xlu0 %2629  ;;  %v2705_v55 = vmul.f32 %v9597_v34, %v2685_v48  ;;  %v2726_v23 = vadd.f32 %v9606_v16, %v2706_v63 }
 0x8b4   :  { %7832 = vrsqrt.f32 %v2664_v57  ;;  %v2663_v43 = vadd.f32 1e-05, %v2647_v37  ;;  %v2650_v42 = vmul.f32 0.125, %v2630_v53  ;;  %v2687_v50 = vmul.f32 %v7819_v22, %v9506_v1 }
 0x8b5   :  { %v7821_v38 = vpop.eup %7820  ;;  %v2627_v2 = vpop.xlane.xlu1 %2626  ;;  %v2725_v3 = vadd.f32 %v9606_v16, %v2705_v55  ;;  %v2708_v19 = vmul.f32 %v9597_v34, %v2688_v26 }
 0x8b6   :  { %7834 = vrsqrt.f32 %v2663_v43  ;;  %v2666_v9 = vadd.f32 1e-05, %v2650_v42  ;;  %v2649_v28 = vmul.f32 0.125, %v2627_v2  ;;  %v2707_v20 = vmul.f32 %v9597_v34, %v2687_v50 }
 0x8b7   :  { %v7823_v56 = vpop.eup %7822  ;;  %7346 = vmatprep.mubr.msk.f32.mxu0 %vm175_vm4, %v2725_v3  ;;  %v2636_v59 = vpop.xlane.xlu0 %2635  ;;  %v2690_v49 = vmul.f32 %v7821_v38, %v9512_v62  ;;  %v2728_v0 = vadd.f32 %v9606_v16, %v2708_v19 }
 0x8b8   :  { %7836 = vrsqrt.f32 %v2666_v9  ;;  %v2665_v1 = vadd.f32 1e-05, %v2649_v28  ;;  %v2652_v8 = vmul.f32 0.125, %v2636_v59  ;;  %7347 = vmatmul.mubr.msk.f32.vlgmr.msra.gmra.mxu0 %vm175_vm4, %v2726_v23  ;;  %v2727_v46 = vadd.f32 %v9606_v16, %v2707_v20 }
 0x8b9   :  { %v7825_v30 = vpop.eup %7824  ;;  %v2633_v14 = vpop.xlane.xlu1 %2632  ;;  %v2689_v63 = vmul.f32 %v7823_v56, %v9518_v39  ;;  %v2710_v52 = vmul.f32 %v9597_v34, %v2690_v49 }
 0x8ba   :  { %7838 = vrsqrt.f32 %v2665_v1  ;;  %v2668_v48 = vadd.f32 1e-05, %v2652_v8  ;;  %v2651_v57 = vmul.f32 0.125, %v2633_v14  ;;  %7349 = vmatprep.mubr.msk.f32.mxu0 %vm175_vm4, %v2727_v46  ;;  %v2692_v62 = vmul.f32 %v7825_v30, %v9524_v60 }
 0x8bb   :  { %v7827_v37 = vpop.eup %7826  ;;  %v2709_v22 = vmul.f32 %v9597_v34, %v2689_v63  ;;  %v2730_v43 = vadd.f32 %v9606_v16, %v2710_v52 }
 0x8bc   :  { %7840 = vrsqrt.f32 %v2668_v48  ;;  %v2667_v53 = vadd.f32 1e-05, %v2651_v57  ;;  %7350 = vmatmul.mubr.msk.f32.gmra.mxu0 %vm175_vm4, %v2728_v0  ;;  %v2691_v55 = vmul.f32 %v7827_v37, %v9530_v31  ;;  %v2712_v50 = vmul.f32 %v9597_v34, %v2692_v62 }
 0x8bd   :  { %v7829_v26 = vpop.eup %7828  ;;  %v2729_v39 = vadd.f32 %v9606_v16, %v2709_v22 }
 0x8be   :  { %7842 = vrsqrt.f32 %v2667_v53  ;;  %v2711_v42 = vmul.f32 %v9597_v34, %v2691_v55  ;;  %v2694_v60 = vmul.f32 %v7829_v26, %v9536_v18  ;;  %v2732_v23 = vadd.f32 %v9606_v16, %v2712_v50  ;;  %v2488_v53 = vld [vmem:[%s11414_s6] sm:$0xff] }
 0x8bf   :  { %v7831_v38 = vpop.eup %7830  ;;  %7352 = vmatprep.mubr.msk.f32.mxu0 %vm175_vm4, %v2729_v39 }
 0x8c0   :  { %7353 = vmatmul.mubr.msk.f32.gmra.mxu0 %vm175_vm4, %v2730_v43  ;;  %v2731_v2 = vadd.f32 %v9606_v16, %v2711_v42  ;;  %v2693_v31 = vmul.f32 %v7831_v38, %v9542_v41  ;;  %v2714_v9 = vmul.f32 %v9597_v34, %v2694_v60 }
 0x8c1   :  { %v7833_v3 = vpop.eup %7832 }
 0x8c2   :  { %7355 = vmatprep.mubr.msk.f32.mxu0 %vm175_vm4, %v2731_v2  ;;  %v2713_v19 = vmul.f32 %v9597_v34, %v2693_v31  ;;  %v2696_v18 = vmul.f32 %v7833_v3, %v9548_v27  ;;  %v2734_v41 = vadd.f32 %v9606_v16, %v2714_v9 }
 0x8c3   :  { %v7835_v28 = vpop.eup %7834 }
 0x8c4   :  { %7356 = vmatmul.mubr.msk.f32.gmra.mxu0 %vm175_vm4, %v2732_v23  ;;  %v2733_v20 = vadd.f32 %v9606_v16, %v2713_v19  ;;  %v2695_v56 = vmul.f32 %v7835_v28, %v9554_v12  ;;  %v2716_v1 = vmul.f32 %v9597_v34, %v2696_v18 }
 0x8c5   :  { %v7837_v59 = vpop.eup %7836 }
 0x8c6   :  { %7358 = vmatprep.mubr.msk.f32.mxu0 %vm175_vm4, %v2733_v20  ;;  %v2715_v49 = vmul.f32 %v9597_v34, %v2695_v56  ;;  %v2698_v8 = vmul.f32 %v7837_v59, %v9560_v36  ;;  %v2736_v12 = vadd.f32 %v9606_v16, %v2716_v1 }
 0x8c7   :  { %v7839_v46 = vpop.eup %7838 }
 0x8c8   :  { %7359 = vmatmul.mubr.msk.f32.gmra.mxu0 %vm175_vm4, %v2734_v41  ;;  %v2735_v27 = vadd.f32 %v9606_v16, %v2715_v49  ;;  %v2697_v30 = vmul.f32 %v7839_v46, %v9566_v51  ;;  %v2718_v63 = vmul.f32 %v9597_v34, %v2698_v8 }
 0x8c9   :  { %v7841_v14 = vpop.eup %7840 }
 0x8ca   :  { %7361 = vmatprep.mubr.msk.f32.mxu0 %vm175_vm4, %v2735_v27  ;;  %v2717_v0 = vmul.f32 %v9597_v34, %v2697_v30  ;;  %v2700_v52 = vmul.f32 %v7841_v14, %v9572_v25  ;;  %v2738_v51 = vadd.f32 %v9606_v16, %v2718_v63 }
 0x8cb   :  { %v7843_v48 = vpop.eup %7842 }
 0x8cc   :  { %7362 = vmatmul.mubr.msk.f32.gmra.mxu0 %vm175_vm4, %v2736_v12  ;;  %v2737_v36 = vadd.f32 %v9606_v16, %v2717_v0  ;;  %v2699_v57 = vmul.f32 %v7843_v48, %v9578_v6  ;;  %v2720_v37 = vmul.f32 %v9597_v34, %v2700_v52  ;;  %v2490_v6 = vld [vmem:[%s11414_s6 + $0x10] sm:$0xff] }
 0x8cd   :  { %7372 = vmatprep.subr.mxu1 %v2490_v6 }
 0x8ce   :  { %7364 = vmatprep.mubr.msk.f32.mxu0 %vm175_vm4, %v2737_v36  ;;  %v2719_v62 = vmul.f32 %v9597_v34, %v2699_v57  ;;  %v2740_v25 = vadd.f32 %v9606_v16, %v2720_v37  ;;  %7373 = vmatpush3.msra.mxu1 %v2490_v6  ;;  %v2489_v34 = vld [vmem:[%s11414_s6 + $0x8] sm:$0xff]  ;;  %v11480_v57 = vsub.s32 5, %v11616_v11 }
 0x8cf   :  { %7374 = vmatprep.subr.mxu1 %v2489_v34 }
 0x8d0   :  { %7365 = vmatmul.mubr.msk.f32.gmra.mxu0 %vm175_vm4, %v2738_v51  ;;  %v2739_v22 = vadd.f32 %v9606_v16, %v2719_v62  ;;  %7375 = vmatpush3.msra.mxu1 %v2489_v34  ;;  %v11481_v16 = vsub.s32 4, %v11616_v11  ;;  %v9702_v51 = vrot.slane %v9398_v4, %v11480_v57 }
 0x8d1   :  { %7376 = vmatprep.subr.mxu1 %v2488_v53 }
 0x8d2   :  { %7367 = vmatprep.mubr.msk.f32.mxu0 %vm175_vm4, %v2739_v22  ;;  %7377 = vmatpush3.msra.mxu1 %v2488_v53  ;;  %v2744_v55 = vrot.slane %v9398_v4, %v11481_v16 }
 0x8d4   :  { %7368 = vmatmul.mubr.msk.f32.gmra.mxu0 %vm175_vm4, %v2740_v25 }
 0x978   :  { %v7348_v26 = vpop.f32.mrf.mxu0 }
 0x979   :  { %v2865_v42 = vadd.f32 %v7348_v26, %v2744_v55 }
 0x97a   :  { %v2859_v39 = vpop.f32.mrf.mxu0 }
 0x97b   :  { %v2860_v43 = vadd.f32 %v2859_v39, %v2744_v55 }
 0x97c   :  { %v7351_v50 = vpop.f32.mrf.mxu0 }
 0x97d   :  { %7378 = vmatprep.mubr.msk.f32.mxu1 %vm2942_vm5, %v2860_v43  ;;  %v2875_v2 = vadd.f32 %v7351_v50, %v2744_v55 }
 0x97e   :  { %v2869_v60 = vpop.f32.mrf.mxu0  ;;  %7379 = vmatmul.mubr.msk.f32.vlgmr.msra.gmra.mxu1 %vm2942_vm5, %v2865_v42 }
 0x97f   :  { %v2870_v38 = vadd.f32 %v2869_v60, %v2744_v55 }
 0x980   :  { %v7354_v31 = vpop.f32.mrf.mxu0 }
 0x981   :  { %7381 = vmatprep.mubr.msk.f32.mxu1 %vm2942_vm5, %v2870_v38  ;;  %v2885_v19 = vadd.f32 %v7354_v31, %v2744_v55 }
 0x982   :  { %v2879_v3 = vpop.f32.mrf.mxu0  ;;  %7382 = vmatmul.mubr.msk.f32.gmra.mxu1 %vm2942_vm5, %v2875_v2 }
 0x983   :  { %v2880_v23 = vadd.f32 %v2879_v3, %v2744_v55 }
 0x984   :  { %v7357_v9 = vpop.f32.mrf.mxu0 }
 0x985   :  { %7384 = vmatprep.mubr.msk.f32.mxu1 %vm2942_vm5, %v2880_v23  ;;  %v2895_v20 = vadd.f32 %v7357_v9, %v2744_v55 }
 0x986   :  { %v2889_v18 = vpop.f32.mrf.mxu0  ;;  %7385 = vmatmul.mubr.msk.f32.gmra.mxu1 %vm2942_vm5, %v2885_v19 }
 0x987   :  { %v2890_v28 = vadd.f32 %v2889_v18, %v2744_v55 }
 0x988   :  { %v7360_v56 = vpop.f32.mrf.mxu0 }
 0x989   :  { %7387 = vmatprep.mubr.msk.f32.mxu1 %vm2942_vm5, %v2890_v28  ;;  %v2905_v49 = vadd.f32 %v7360_v56, %v2744_v55 }
 0x98a   :  { %v2899_v59 = vpop.f32.mrf.mxu0  ;;  %7388 = vmatmul.mubr.msk.f32.gmra.mxu1 %vm2942_vm5, %v2895_v20 }
 0x98b   :  { %v2900_v41 = vadd.f32 %v2899_v59, %v2744_v55 }
 0x98c   :  { %v7363_v1 = vpop.f32.mrf.mxu0 }
 0x98d   :  { %7390 = vmatprep.mubr.msk.f32.mxu1 %vm2942_vm5, %v2900_v41  ;;  %v2915_v27 = vadd.f32 %v7363_v1, %v2744_v55 }
 0x98e   :  { %v2909_v8 = vpop.f32.mrf.mxu0  ;;  %7391 = vmatmul.mubr.msk.f32.gmra.mxu1 %vm2942_vm5, %v2905_v49 }
 0x98f   :  { %v2910_v46 = vadd.f32 %v2909_v8, %v2744_v55 }
 0x990   :  { %v7366_v30 = vpop.f32.mrf.mxu0 }
 0x991   :  { %7393 = vmatprep.mubr.msk.f32.mxu1 %vm2942_vm5, %v2910_v46  ;;  %v2925_v0 = vadd.f32 %v7366_v30, %v2744_v55 }
 0x992   :  { %v2919_v14 = vpop.f32.mrf.mxu0  ;;  %7394 = vmatmul.mubr.msk.f32.gmra.mxu1 %vm2942_vm5, %v2915_v27 }
 0x993   :  { %v2920_v12 = vadd.f32 %v2919_v14, %v2744_v55 }
 0x994   :  { %v7369_v63 = vpop.f32.mrf.mxu0 }
 0x995   :  { %7396 = vmatprep.mubr.msk.f32.mxu1 %vm2942_vm5, %v2920_v12  ;;  %v2935_v36 = vadd.f32 %v7369_v63, %v2744_v55 }
 0x996   :  { %v2929_v52 = vpop.f32.mrf.mxu0  ;;  %7397 = vmatmul.mubr.msk.f32.gmra.mxu1 %vm2942_vm5, %v2925_v0 }
 0x997   :  { %v2930_v48 = vadd.f32 %v2929_v52, %v2744_v55 }
 0x999   :  { %7399 = vmatprep.mubr.msk.f32.mxu1 %vm2942_vm5, %v2930_v48 }
 0x99a   :  { %7400 = vmatmul.mubr.msk.f32.gmra.mxu1 %vm2942_vm5, %v2935_v36 }
 0xa3e   :  { %v7380_v62 = vpop.f32.mrf.mxu1 }
 0xa3f   :  { %v3063_v37 = vadd.f32 %v7380_v62, %v9702_v51 }
 0xa40   :  { %v3057_v22 = vpop.f32.mrf.mxu1 }
 0xa41   :  { %v9706_v25 = vadd.f32 %v3063_v37, %v9412_v40  ;;  %v3058_v6 = vadd.f32 %v3057_v22, %v9702_v51 }
 0xa42   :  { %v7383_v34 = vpop.f32.mrf.mxu1 }
 0xa43   :  { %11633 = vst [vmem:[#allocation48_spill] sm:$0xff] %v9706_v25  ;;  %v9710_v53 = vadd.f32 %v3058_v6, %v9415_v24  ;;  %v3073_v55 = vadd.f32 %v7383_v34, %v9702_v51  ;;  %v3155_v26 = vsel %vm175_vm4, %v9706_v25, 0.0 }
 0xa44   :  { %3156 = vadd.xlane.f32.xlu0 %v3155_v26  ;;  %v3067_v4 = vpop.f32.mrf.mxu1 }
 0xa45   :  { %11634 = vst [vmem:[#allocation49_spill] sm:$0xff] %v9710_v53  ;;  %v9716_v39 = vadd.f32 %v3073_v55, %v9420_v7  ;;  %v3068_v43 = vadd.f32 %v3067_v4, %v9702_v51  ;;  %v3152_v40 = vsel %vm175_vm4, %v9710_v53, 0.0 }
 0xa46   :  { %3153 = vadd.xlane.f32.xlu1 %v3152_v40  ;;  %v7386_v42 = vpop.f32.mrf.mxu1 }
 0xa47   :  { %11635 = vst [vmem:[#allocation34_spill] sm:$0xff] %v9716_v39  ;;  %v9722_v24 = vadd.f32 %v3068_v43, %v9425_v15  ;;  %v3083_v50 = vadd.f32 %v7386_v42, %v9702_v51  ;;  %v3161_v60 = vsel %vm175_vm4, %v9716_v39, 0.0 }
 0xa48   :  { %3162 = vadd.xlane.f32.xlu0 %v3161_v60  ;;  %v3077_v38 = vpop.f32.mrf.mxu1 }
 0xa49   :  { %11636 = vst [vmem:[#allocation36_spill] sm:$0xff] %v9722_v24  ;;  %v9728_v7 = vadd.f32 %v3083_v50, %v9430_v58  ;;  %v3078_v2 = vadd.f32 %v3077_v38, %v9702_v51  ;;  %v3158_v31 = vsel %vm175_vm4, %v9722_v24, 0.0 }
 0xa4a   :  { %3159 = vadd.xlane.f32.xlu1 %v3158_v31  ;;  %v7389_v3 = vpop.f32.mrf.mxu1 }
 0xa4b   :  { %11637 = vst [vmem:[#allocation35_spill] sm:$0xff] %v9728_v7  ;;  %v9734_v15 = vadd.f32 %v3078_v2, %v9435_v17  ;;  %v3093_v23 = vadd.f32 %v7389_v3, %v9702_v51  ;;  %v3167_v19 = vsel %vm175_vm4, %v9728_v7, 0.0 }
 0xa4c   :  { %3168 = vadd.xlane.f32.xlu0 %v3167_v19  ;;  %v3087_v9 = vpop.f32.mrf.mxu1 }
 0xa4d   :  { %11638 = vst [vmem:[#allocation38_spill] sm:$0xff] %v9734_v15  ;;  %v9740_v58 = vadd.f32 %v3093_v23, %v9440_v47  ;;  %v3088_v18 = vadd.f32 %v3087_v9, %v9702_v51  ;;  %v3164_v28 = vsel %vm175_vm4, %v9734_v15, 0.0 }
 0xa4e   :  { %3165 = vadd.xlane.f32.xlu1 %v3164_v28  ;;  %v7392_v20 = vpop.f32.mrf.mxu1 }
 0xa4f   :  { %11639 = vst [vmem:[#allocation37_spill] sm:$0xff] %v9740_v58  ;;  %v9746_v17 = vadd.f32 %v3088_v18, %v9445_v21  ;;  %v3103_v56 = vadd.f32 %v7392_v20, %v9702_v51  ;;  %v3173_v59 = vsel %vm175_vm4, %v9740_v58, 0.0 }
 0xa50   :  { %3174 = vadd.xlane.f32.xlu0 %v3173_v59  ;;  %v3097_v41 = vpop.f32.mrf.mxu1 }
 0xa51   :  { %11640 = vst [vmem:[#allocation39_spill] sm:$0xff] %v9746_v17  ;;  %v9752_v47 = vadd.f32 %v3103_v56, %v9450_v10  ;;  %v3098_v49 = vadd.f32 %v3097_v41, %v9702_v51  ;;  %v3170_v1 = vsel %vm175_vm4, %v9746_v17, 0.0 }
 0xa52   :  { %3171 = vadd.xlane.f32.xlu1 %v3170_v1  ;;  %v7395_v8 = vpop.f32.mrf.mxu1 }
 0xa53   :  { %11641 = vst [vmem:[#allocation41_spill] sm:$0xff] %v9752_v47  ;;  %v9758_v21 = vadd.f32 %v3098_v49, %v9455_v45  ;;  %v3113_v46 = vadd.f32 %v7395_v8, %v9702_v51  ;;  %v3179_v27 = vsel %vm175_vm4, %v9752_v47, 0.0 }
 0xa54   :  { %3180 = vadd.xlane.f32.xlu0 %v3179_v27  ;;  %v3107_v30 = vpop.f32.mrf.mxu1 }
 0xa55   :  { %11642 = vst [vmem:[#allocation40_spill] sm:$0xff] %v9758_v21  ;;  %v9764_v10 = vadd.f32 %v3113_v46, %v9460_v13  ;;  %v3108_v14 = vadd.f32 %v3107_v30, %v9702_v51  ;;  %v3176_v12 = vsel %vm175_vm4, %v9758_v21, 0.0 }
 0xa56   :  { %3177 = vadd.xlane.f32.xlu1 %v3176_v12  ;;  %v7398_v0 = vpop.f32.mrf.mxu1 }
 0xa57   :  { %11643 = vst [vmem:[#allocation43_spill] sm:$0xff] %v9764_v10  ;;  %v9770_v45 = vadd.f32 %v3108_v14, %v9465_v35  ;;  %v3123_v63 = vadd.f32 %v7398_v0, %v9702_v51  ;;  %v3185_v52 = vsel %vm175_vm4, %v9764_v10, 0.0 }
 0xa58   :  { %3186 = vadd.xlane.f32.xlu0 %v3185_v52  ;;  %v3117_v48 = vpop.f32.mrf.mxu1 }
 0xa59   :  { %11644 = vst [vmem:[#allocation42_spill] sm:$0xff] %v9770_v45  ;;  %v9776_v13 = vadd.f32 %v3123_v63, %v9470_v54  ;;  %v3118_v36 = vadd.f32 %v3117_v48, %v9702_v51  ;;  %v3182_v62 = vsel %vm175_vm4, %v9770_v45, 0.0 }
 0xa5a   :  { %3183 = vadd.xlane.f32.xlu1 %v3182_v62  ;;  %v7401_v37 = vpop.f32.mrf.mxu1 }
 0xa5b   :  { %11645 = vst [vmem:[#allocation45_spill] sm:$0xff] %v9776_v13  ;;  %v9782_v35 = vadd.f32 %v3118_v36, %v9475_v32  ;;  %v3133_v22 = vadd.f32 %v7401_v37, %v9702_v51  ;;  %v3191_v6 = vsel %vm175_vm4, %v9776_v13, 0.0 }
 0xa5c   :  { %3192 = vadd.xlane.f32.xlu0 %v3191_v6  ;;  %v3127_v34 = vpop.f32.mrf.mxu1 }
 0xa5d   :  { %11646 = vst [vmem:[#allocation44_spill] sm:$0xff] %v9782_v35  ;;  %v9788_v54 = vadd.f32 %v3133_v22, %v9480_v29  ;;  %v3128_v55 = vadd.f32 %v3127_v34, %v9702_v51  ;;  %v3188_v26 = vsel %vm175_vm4, %v9782_v35, 0.0 }
 0xa5e   :  { %3189 = vadd.xlane.f32.xlu1 %v3188_v26 }
 0xa5f   :  { %11647 = vst [vmem:[#allocation47_spill] sm:$0xff] %v9788_v54  ;;  %v9794_v4 = vadd.f32 %v3128_v55, %v9485_v44  ;;  %v3197_v32 = vsel %vm175_vm4, %v9788_v54, 0.0 }
 0xa60   :  { %3198 = vadd.xlane.f32.xlu0 %v3197_v32 }
 0xa61   :  { %11648 = vst [vmem:[#allocation46_spill] sm:$0xff] %v9794_v4  ;;  %v3194_v43 = vsel %vm175_vm4, %v9794_v4, 0.0 }
 0xa62   :  { %3195 = vadd.xlane.f32.xlu1 %v3194_v43 }
 0xacd   :  { %v3157_v40 = vpop.xlane.xlu0 %3156 }
 0xace   :  { %v3201_v29 = vmul.f32 0.125, %v3157_v40 }
 0xacf   :  { %v3154_v42 = vpop.xlane.xlu1 %3153 }
 0xad0   :  { %v9801_v51 = vsub.f32 %v9706_v25, %v3201_v29  ;;  %v3200_v50 = vmul.f32 0.125, %v3154_v42 }
 0xad1   :  { %v3163_v60 = vpop.xlane.xlu0 %3162 }
 0xad2   :  { %v9804_v38 = vsub.f32 %v9710_v53, %v3200_v50  ;;  %v3203_v44 = vmul.f32 0.125, %v3163_v60  ;;  %v3233_v2 = vmul.f32 %v9801_v51, %v9801_v51 }
 0xad3   :  { %v3160_v31 = vpop.xlane.xlu1 %3159 }
 0xad4   :  { %v9809_v3 = vsub.f32 %v9716_v39, %v3203_v44  ;;  %v3202_v23 = vmul.f32 0.125, %v3160_v31  ;;  %v3251_v19 = vsel %vm175_vm4, %v3233_v2, 0.0  ;;  %v3232_v9 = vmul.f32 %v9804_v38, %v9804_v38 }
 0xad5   :  { %v3169_v18 = vpop.xlane.xlu0 %3168  ;;  %3252 = vadd.xlane.f32.xlu0 %v3251_v19 }
 0xad6   :  { %v9815_v28 = vsub.f32 %v9722_v24, %v3202_v23  ;;  %v3205_v20 = vmul.f32 0.125, %v3169_v18  ;;  %v3248_v56 = vsel %vm175_vm4, %v3232_v9, 0.0  ;;  %v3235_v59 = vmul.f32 %v9809_v3, %v9809_v3 }
 0xad7   :  { %3249 = vadd.xlane.f32.xlu1 %v3248_v56  ;;  %v3166_v41 = vpop.xlane.xlu1 %3165 }
 0xad8   :  { %v9821_v49 = vsub.f32 %v9728_v7, %v3205_v20  ;;  %v3204_v1 = vmul.f32 0.125, %v3166_v41  ;;  %v3257_v8 = vsel %vm175_vm4, %v3235_v59, 0.0  ;;  %v3234_v46 = vmul.f32 %v9815_v28, %v9815_v28 }
 0xad9   :  { %v3175_v27 = vpop.xlane.xlu0 %3174  ;;  %3258 = vadd.xlane.f32.xlu0 %v3257_v8 }
 0xada   :  { %v9827_v30 = vsub.f32 %v9734_v15, %v3204_v1  ;;  %v3207_v14 = vmul.f32 0.125, %v3175_v27  ;;  %v3254_v12 = vsel %vm175_vm4, %v3234_v46, 0.0  ;;  %v3237_v0 = vmul.f32 %v9821_v49, %v9821_v49 }
 0xadb   :  { %3255 = vadd.xlane.f32.xlu1 %v3254_v12  ;;  %v3172_v63 = vpop.xlane.xlu1 %3171 }
 0xadc   :  { %v9833_v52 = vsub.f32 %v9740_v58, %v3207_v14  ;;  %v3206_v48 = vmul.f32 0.125, %v3172_v63  ;;  %v3263_v36 = vsel %vm175_vm4, %v3237_v0, 0.0  ;;  %v3236_v62 = vmul.f32 %v9827_v30, %v9827_v30 }
 0xadd   :  { %v3181_v37 = vpop.xlane.xlu0 %3180  ;;  %3264 = vadd.xlane.f32.xlu0 %v3263_v36 }
 0xade   :  { %v9839_v22 = vsub.f32 %v9746_v17, %v3206_v48  ;;  %v3209_v6 = vmul.f32 0.125, %v3181_v37  ;;  %v3260_v34 = vsel %vm175_vm4, %v3236_v62, 0.0  ;;  %v3239_v55 = vmul.f32 %v9833_v52, %v9833_v52 }
 0xadf   :  { %3261 = vadd.xlane.f32.xlu1 %v3260_v34  ;;  %v3178_v26 = vpop.xlane.xlu1 %3177 }
 0xae0   :  { %v9845_v32 = vsub.f32 %v9752_v47, %v3209_v6  ;;  %v3208_v43 = vmul.f32 0.125, %v3178_v26  ;;  %v3269_v40 = vsel %vm175_vm4, %v3239_v55, 0.0  ;;  %v3238_v29 = vmul.f32 %v9839_v22, %v9839_v22 }
 0xae1   :  { %v3187_v42 = vpop.xlane.xlu0 %3186  ;;  %3270 = vadd.xlane.f32.xlu0 %v3269_v40 }
 0xae2   :  { %v9851_v50 = vsub.f32 %v9758_v21, %v3208_v43  ;;  %v3211_v60 = vmul.f32 0.125, %v3187_v42  ;;  %v3266_v44 = vsel %vm175_vm4, %v3238_v29, 0.0  ;;  %v3241_v2 = vmul.f32 %v9845_v32, %v9845_v32 }
 0xae3   :  { %3267 = vadd.xlane.f32.xlu1 %v3266_v44  ;;  %v3184_v31 = vpop.xlane.xlu1 %3183 }
 0xae4   :  { %v9857_v23 = vsub.f32 %v9764_v10, %v3211_v60  ;;  %v3210_v19 = vmul.f32 0.125, %v3184_v31  ;;  %v3275_v9 = vsel %vm175_vm4, %v3241_v2, 0.0  ;;  %v3240_v18 = vmul.f32 %v9851_v50, %v9851_v50  ;;  %v6631_v2 = vld [vmem:[%s11411_s3 + $0x8] sm:$0xff] }
 0xae5   :  { %v3193_v20 = vpop.xlane.xlu0 %3192  ;;  %3276 = vadd.xlane.f32.xlu0 %v3275_v9  ;;  %7402 = vmatprep.subr.mxu0 %v6631_v2  ;;  %v11649_v31 = vmov 0.0  }
 0xae6   :  { %v9863_v56 = vsub.f32 %v9770_v45, %v3210_v19  ;;  %v3213_v59 = vmul.f32 0.125, %v3193_v20  ;;  %v3272_v41 = vsel %vm175_vm4, %v3240_v18, 0.0  ;;  %v3243_v1 = vmul.f32 %v9857_v23, %v9857_v23  ;;  %7403 = vmatpush3.msra.mxu0 %v6631_v2 }
 0xae7   :  { %3273 = vadd.xlane.f32.xlu1 %v3272_v41  ;;  %v3190_v8 = vpop.xlane.xlu1 %3189  ;;  %5011 = vmatprep.subr.mxu0 %v11649_v31 }
 0xae8   :  { %v9869_v46 = vsub.f32 %v9776_v13, %v3213_v59  ;;  %v3212_v27 = vmul.f32 0.125, %v3190_v8  ;;  %v3281_v14 = vsel %vm175_vm4, %v3243_v1, 0.0  ;;  %v3242_v12 = vmul.f32 %v9863_v56, %v9863_v56 }
 0xae9   :  { %3282 = vadd.xlane.f32.xlu0 %v3281_v14  ;;  %v3199_v0 = vpop.xlane.xlu0 %3198 }
 0xaea   :  { %v9875_v63 = vsub.f32 %v9782_v35, %v3212_v27  ;;  %v3215_v48 = vmul.f32 0.125, %v3199_v0  ;;  %v3278_v36 = vsel %vm175_vm4, %v3242_v12, 0.0  ;;  %v3245_v62 = vmul.f32 %v9869_v46, %v9869_v46 }
 0xaeb   :  { %3279 = vadd.xlane.f32.xlu1 %v3278_v36  ;;  %v3196_v37 = vpop.xlane.xlu1 %3195 }
 0xaec   :  { %v9881_v6 = vsub.f32 %v9788_v54, %v3215_v48  ;;  %v3214_v34 = vmul.f32 0.125, %v3196_v37  ;;  %v3287_v55 = vsel %vm175_vm4, %v3245_v62, 0.0  ;;  %v3244_v26 = vmul.f32 %v9875_v63, %v9875_v63 }
 0xaed   :  { %3288 = vadd.xlane.f32.xlu0 %v3287_v55 }
 0xaee   :  { %v9887_v43 = vsub.f32 %v9794_v4, %v3214_v34  ;;  %v3284_v40 = vsel %vm175_vm4, %v3244_v26, 0.0  ;;  %v3247_v29 = vmul.f32 %v9881_v6, %v9881_v6 }
 0xaef   :  { %3285 = vadd.xlane.f32.xlu1 %v3284_v40 }
 0xaf0   :  { %v3293_v42 = vsel %vm175_vm4, %v3247_v29, 0.0  ;;  %v3246_v60 = vmul.f32 %v9887_v43, %v9887_v43  ;;  %v3362_v29 = vsub.s32 6, %v11616_v11 }
 0xaf1   :  { %3294 = vadd.xlane.f32.xlu0 %v3293_v42 }
 0xaf2   :  { %v3290_v44 = vsel %vm175_vm4, %v3246_v60, 0.0 }
 0xaf3   :  { %3291 = vadd.xlane.f32.xlu1 %v3290_v44 }
 0xb5e   :  { %v3253_v19 = vpop.xlane.xlu0 %3252 }
 0xb5f   :  { %v3297_v9 = vmul.f32 0.125, %v3253_v19 }
 0xb60   :  { %v3250_v18 = vpop.xlane.xlu1 %3249 }
 0xb61   :  { %v3313_v20 = vadd.f32 1e-05, %v3297_v9  ;;  %v3296_v59 = vmul.f32 0.125, %v3250_v18 }
 0xb62   :  { %v3259_v41 = vpop.xlane.xlu0 %3258 }
 0xb63   :  { %7844 = vrsqrt.f32 %v3313_v20  ;;  %v3312_v1 = vadd.f32 1e-05, %v3296_v59  ;;  %v3299_v8 = vmul.f32 0.125, %v3259_v41  ;;  %v8101_v20 = vld [vmem:[%s11415_s7] sm:$0xff]  ;;  %v3382_v41 = vsub.s32 7, %v11616_v11 }
 0xb64   :  { %v3256_v27 = vpop.xlane.xlu1 %3255  ;;  %v9904_v59 = vrot.slane %v8101_v20, %v3362_v29 }
 0xb65   :  { %7846 = vrsqrt.f32 %v3312_v1  ;;  %v3315_v14 = vadd.f32 1e-05, %v3299_v8  ;;  %v3298_v12 = vmul.f32 0.125, %v3256_v27 }
 0xb66   :  { %v3265_v0 = vpop.xlane.xlu0 %3264 }
 0xb67   :  { %7848 = vrsqrt.f32 %v3315_v14  ;;  %v3314_v48 = vadd.f32 1e-05, %v3298_v12  ;;  %v3301_v36 = vmul.f32 0.125, %v3265_v0 }
 0xb68   :  { %v3262_v62 = vpop.xlane.xlu1 %3261 }
 0xb69   :  { %7850 = vrsqrt.f32 %v3314_v48  ;;  %v3317_v37 = vadd.f32 1e-05, %v3301_v36  ;;  %v3300_v34 = vmul.f32 0.125, %v3262_v62 }
 0xb6a   :  { %v3271_v55 = vpop.xlane.xlu0 %3270 }
 0xb6b   :  { %7852 = vrsqrt.f32 %v3317_v37  ;;  %v3316_v26 = vadd.f32 1e-05, %v3300_v34  ;;  %v3303_v40 = vmul.f32 0.125, %v3271_v55  ;;  %v9908_v37 = vrot.slane %v8101_v20, %v3382_v41 }
 0xb6c   :  { %v3268_v42 = vpop.xlane.xlu1 %3267 }
 0xb6d   :  { %7854 = vrsqrt.f32 %v3316_v26  ;;  %v3319_v60 = vadd.f32 1e-05, %v3303_v40  ;;  %v3302_v44 = vmul.f32 0.125, %v3268_v42 }
 0xb6e   :  { %v3277_v2 = vpop.xlane.xlu0 %3276 }
 0xb6f   :  { %7856 = vrsqrt.f32 %v3319_v60  ;;  %v3318_v19 = vadd.f32 1e-05, %v3302_v44  ;;  %v3305_v9 = vmul.f32 0.125, %v3277_v2 }
 0xb70   :  { %v7845_v18 = vpop.eup %7844  ;;  %v3274_v1 = vpop.xlane.xlu1 %3273 }
 0xb71   :  { %v3345_v8 = vmul.f32 %v7845_v18, %v9801_v51  ;;  %7858 = vrsqrt.f32 %v3318_v19  ;;  %v3321_v27 = vadd.f32 1e-05, %v3305_v9  ;;  %v3304_v14 = vmul.f32 0.125, %v3274_v1 }
 0xb72   :  { %v7847_v12 = vpop.eup %7846  ;;  %v3283_v0 = vpop.xlane.xlu0 %3282 }
 0xb73   :  { %7860 = vrsqrt.f32 %v3321_v27  ;;  %v3320_v48 = vadd.f32 1e-05, %v3304_v14  ;;  %v3307_v36 = vmul.f32 0.125, %v3283_v0  ;;  %v3365_v34 = vmul.f32 %v9904_v59, %v3345_v8 }
 0xb74   :  { %v7849_v62 = vpop.eup %7848  ;;  %v3280_v55 = vpop.xlane.xlu1 %3279  ;;  %v3344_v26 = vmul.f32 %v7847_v12, %v9804_v38 }
 0xb75   :  { %7862 = vrsqrt.f32 %v3320_v48  ;;  %v3323_v40 = vadd.f32 1e-05, %v3307_v36  ;;  %v3306_v29 = vmul.f32 0.125, %v3280_v55  ;;  %v3347_v44 = vmul.f32 %v7849_v62, %v9809_v3 }
 0xb76   :  { %v7851_v51 = vpop.eup %7850  ;;  %v3289_v42 = vpop.xlane.xlu0 %3288  ;;  %v3364_v60 = vmul.f32 %v9904_v59, %v3344_v26  ;;  %v3385_v20 = vadd.f32 %v9908_v37, %v3365_v34 }
 0xb77   :  { %7864 = vrsqrt.f32 %v3323_v40  ;;  %v3322_v2 = vadd.f32 1e-05, %v3306_v29  ;;  %v3309_v19 = vmul.f32 0.125, %v3289_v42  ;;  %v3346_v9 = vmul.f32 %v7851_v51, %v9815_v28 }
 0xb78   :  { %v7853_v18 = vpop.eup %7852  ;;  %v3286_v41 = vpop.xlane.xlu1 %3285  ;;  %v3384_v38 = vadd.f32 %v9908_v37, %v3364_v60  ;;  %v3367_v1 = vmul.f32 %v9904_v59, %v3347_v44 }
 0xb79   :  { %7866 = vrsqrt.f32 %v3322_v2  ;;  %v3325_v8 = vadd.f32 1e-05, %v3309_v19  ;;  %v3308_v27 = vmul.f32 0.125, %v3286_v41  ;;  %v3366_v14 = vmul.f32 %v9904_v59, %v3346_v9 }
 0xb7a   :  { %v7855_v12 = vpop.eup %7854  ;;  %7404 = vmatprep.mubr.msk.f32.mxu0 %vm175_vm4, %v3384_v38  ;;  %v3295_v3 = vpop.xlane.xlu0 %3294  ;;  %v3349_v0 = vmul.f32 %v7853_v18, %v9821_v49  ;;  %v3387_v55 = vadd.f32 %v9908_v37, %v3367_v1 }
 0xb7b   :  { %7868 = vrsqrt.f32 %v3325_v8  ;;  %v3324_v28 = vadd.f32 1e-05, %v3308_v27  ;;  %v3311_v48 = vmul.f32 0.125, %v3295_v3  ;;  %7405 = vmatmul.mubr.msk.f32.vlgmr.msra.gmra.mxu0 %vm175_vm4, %v3385_v20  ;;  %v3386_v36 = vadd.f32 %v9908_v37, %v3366_v14 }
 0xb7c   :  { %v7857_v62 = vpop.eup %7856  ;;  %v3292_v34 = vpop.xlane.xlu1 %3291  ;;  %v3348_v26 = vmul.f32 %v7855_v12, %v9827_v30  ;;  %v3369_v40 = vmul.f32 %v9904_v59, %v3349_v0 }
 0xb7d   :  { %7870 = vrsqrt.f32 %v3324_v28  ;;  %v3327_v29 = vadd.f32 1e-05, %v3311_v48  ;;  %v3310_v51 = vmul.f32 0.125, %v3292_v34  ;;  %7407 = vmatprep.mubr.msk.f32.mxu0 %vm175_vm4, %v3386_v36  ;;  %v3351_v49 = vmul.f32 %v7857_v62, %v9833_v52 }
 0xb7e   :  { %v7859_v42 = vpop.eup %7858  ;;  %v3368_v60 = vmul.f32 %v9904_v59, %v3348_v26  ;;  %v3389_v9 = vadd.f32 %v9908_v37, %v3369_v40 }
 0xb7f   :  { %7872 = vrsqrt.f32 %v3327_v29  ;;  %v3326_v44 = vadd.f32 1e-05, %v3310_v51  ;;  %7408 = vmatmul.mubr.msk.f32.gmra.mxu0 %vm175_vm4, %v3387_v55  ;;  %v3350_v2 = vmul.f32 %v7859_v42, %v9839_v22  ;;  %v3371_v20 = vmul.f32 %v9904_v59, %v3351_v49 }
 0xb80   :  { %v7861_v19 = vpop.eup %7860  ;;  %v3388_v30 = vadd.f32 %v9908_v37, %v3368_v60 }
 0xb81   :  { %7874 = vrsqrt.f32 %v3326_v44  ;;  %v3370_v18 = vmul.f32 %v9904_v59, %v3350_v2  ;;  %v3353_v52 = vmul.f32 %v7861_v19, %v9845_v32  ;;  %v3391_v8 = vadd.f32 %v9908_v37, %v3371_v20 }
 0xb82   :  { %v7863_v41 = vpop.eup %7862  ;;  %7410 = vmatprep.mubr.msk.f32.mxu0 %vm175_vm4, %v3388_v30  ;;  %v11650_v19 = vsub.s32 0, %v11616_v11 }
 0xb83   :  { %7411 = vmatmul.mubr.msk.f32.gmra.mxu0 %vm175_vm4, %v3389_v9  ;;  %v3390_v38 = vadd.f32 %v9908_v37, %v3370_v18  ;;  %v3352_v22 = vmul.f32 %v7863_v41, %v9851_v50  ;;  %v3373_v14 = vmul.f32 %v9904_v59, %v3353_v52  ;;  %v11651_v41 = vld [vmem:[#allocation11_spill] sm:$0xff] }
 0xb84   :  { %v7865_v1 = vpop.eup %7864 }
 0xb85   :  { %7413 = vmatprep.mubr.msk.f32.mxu0 %vm175_vm4, %v3390_v38  ;;  %v3372_v27 = vmul.f32 %v9904_v59, %v3352_v22  ;;  %v3355_v32 = vmul.f32 %v7865_v1, %v9857_v23  ;;  %v3393_v50 = vadd.f32 %v9908_v37, %v3373_v14 }
 0xb86   :  { %v7867_v12 = vpop.eup %7866 }
 0xb87   :  { %7414 = vmatmul.mubr.msk.f32.gmra.mxu0 %vm175_vm4, %v3391_v8  ;;  %v3392_v3 = vadd.f32 %v9908_v37, %v3372_v27  ;;  %v3354_v0 = vmul.f32 %v7867_v12, %v9863_v56  ;;  %v3375_v36 = vmul.f32 %v9904_v59, %v3355_v32 }
 0xb88   :  { %v7869_v28 = vpop.eup %7868 }
 0xb89   :  { %7416 = vmatprep.mubr.msk.f32.mxu0 %vm175_vm4, %v3392_v3  ;;  %v3374_v48 = vmul.f32 %v9904_v59, %v3354_v0  ;;  %v3357_v62 = vmul.f32 %v7869_v28, %v9869_v46  ;;  %v3395_v56 = vadd.f32 %v9908_v37, %v3375_v36 }
 0xb8a   :  { %v7871_v34 = vpop.eup %7870 }
 0xb8b   :  { %7417 = vmatmul.mubr.msk.f32.gmra.mxu0 %vm175_vm4, %v3393_v50  ;;  %v3394_v23 = vadd.f32 %v9908_v37, %v3374_v48  ;;  %v3356_v55 = vmul.f32 %v7871_v34, %v9875_v63  ;;  %v3377_v29 = vmul.f32 %v9904_v59, %v3357_v62 }
 0xb8c   :  { %v7873_v26 = vpop.eup %7872 }
 0xb8d   :  { %7419 = vmatprep.mubr.msk.f32.mxu0 %vm175_vm4, %v3394_v23  ;;  %v3376_v40 = vmul.f32 %v9904_v59, %v3356_v55  ;;  %v3359_v51 = vmul.f32 %v7873_v26, %v9881_v6  ;;  %v3397_v63 = vadd.f32 %v9908_v37, %v3377_v29  ;;  %v11652_v55 = vld [vmem:[#allocation31_spill] sm:$0xff] }
 0xb8e   :  { %v7875_v49 = vpop.eup %7874 }
 0xb8f   :  { %7420 = vmatmul.mubr.msk.f32.gmra.mxu0 %vm175_vm4, %v3395_v56  ;;  %v3396_v46 = vadd.f32 %v9908_v37, %v3376_v40  ;;  %v3358_v42 = vmul.f32 %v7875_v49, %v9887_v43  ;;  %v3379_v44 = vmul.f32 %v9904_v59, %v3359_v51  ;;  %v92_v43 = vld [vmem:[%s11415_s7 + $0x8] sm:$0x3f]  ;;  %v11653_v56 = vld [vmem:[#allocation30_spill] sm:$0xff] }
 0xb90   :  { %v9978_v30 = vrot.slane %v92_v43, %v11650_v19 }
 0xb91   :  { %7422 = vmatprep.mubr.msk.f32.mxu0 %vm175_vm4, %v3396_v46  ;;  %v3378_v60 = vmul.f32 %v9904_v59, %v3358_v42  ;;  %v3399_v6 = vadd.f32 %v9908_v37, %v3379_v44 }
 0xb93   :  { %7423 = vmatmul.mubr.msk.f32.gmra.mxu0 %vm175_vm4, %v3397_v63  ;;  %v3398_v2 = vadd.f32 %v9908_v37, %v3378_v60 }
 0xb95   :  { %7425 = vmatprep.mubr.msk.f32.mxu0 %vm175_vm4, %v3398_v2 }
 0xb97   :  { %7426 = vmatmul.mubr.msk.f32.gmra.mxu0 %vm175_vm4, %v3399_v6 }
 0xc3b   :  { %v7406_v9 = vpop.f32.mrf.mxu0 }
 0xc3c   :  { %v9981_v59 = vadd.f32 %v7406_v9, %v9978_v30 }
 0xc3d   :  { %v3587_v18 = vpop.f32.mrf.mxu0 }
 0xc3e   :  { %v9984_v20 = vadd.f32 %v3587_v18, %v9978_v30 }
 0xc3f   :  { %v7409_v52 = vpop.f32.mrf.mxu0 }
 0xc40   :  { %v9987_v37 = vadd.f32 %v7409_v52, %v9978_v30  ;;  %v9991_v38 = vmul.f32 %v11651_v41, %v9984_v20 }
 0xc41   :  { %v9993_v22 = vpop.f32.mrf.mxu0 }
 0xc42   :  { %7046 = vmatprep.mubr.msk.f32.mxu1 %vm175_vm4, %v9991_v38 }
 0xc43   :  { %v7412_v1 = vpop.f32.mrf.mxu0 }
 0xc45   :  { %v3607_v8 = vpop.f32.mrf.mxu0 }
 0xc47   :  { %v7415_v27 = vpop.f32.mrf.mxu0 }
 0xc49   :  { %v3617_v14 = vpop.f32.mrf.mxu0 }
 0xc4b   :  { %v7418_v32 = vpop.f32.mrf.mxu0 }
 0xc4c   :  { %v10040_v6 = vadd.f32 %v7418_v32, %v9978_v30  ;;  %v10058_v32 = vadd.f32 %v7415_v27, %v9978_v30 }
 0xc4d   :  { %v3627_v12 = vpop.f32.mrf.mxu0 }
 0xc4e   :  { %v10049_v9 = vadd.f32 %v3627_v12, %v9978_v30  ;;  %v3723_v18 = vmul.f32 %v11652_v55, %v10040_v6  ;;  %v3707_v27 = vmul.f32 %v11653_v56, %v10040_v6 }
 0xc4f   :  { %v7421_v3 = vpop.f32.mrf.mxu0 }
 0xc50   :  { %v10022_v46 = vadd.f32 %v7421_v3, %v9978_v30  ;;  %v3722_v3 = vmul.f32 %v11652_v55, %v10049_v9 }
 0xc51   :  { %v3637_v0 = vpop.f32.mrf.mxu0 }
 0xc52   :  { %v10031_v60 = vadd.f32 %v3637_v0, %v9978_v30  ;;  %v3725_v44 = vmul.f32 %v11652_v55, %v10022_v46  ;;  %v3709_v52 = vmul.f32 %v11653_v56, %v10022_v46  ;;  %v10067_v0 = vadd.f32 %v3617_v14, %v9978_v30 }
 0xc53   :  { %v7424_v28 = vpop.f32.mrf.mxu0  ;;  %v3706_v14 = vmul.f32 %v11653_v56, %v10049_v9  ;;  %v3677_v57 = vmul.f32 %v11651_v41, %v10022_v46 }
 0xc54   :  { %v10001_v34 = vadd.f32 %v7424_v28, %v9978_v30  ;;  %v3724_v43 = vmul.f32 %v11652_v55, %v10031_v60  ;;  %v3708_v12 = vmul.f32 %v11653_v56, %v10031_v60  ;;  %v3721_v28 = vmul.f32 %v11652_v55, %v10058_v32 }
 0xc55   :  { %v3647_v50 = vpop.f32.mrf.mxu0 }
 0xc56   :  { %v10013_v29 = vadd.f32 %v3647_v50, %v9978_v30  ;;  %v3727_v51 = vmul.f32 %v11652_v55, %v10001_v34  ;;  %v3711_v2 = vmul.f32 %v11653_v56, %v10001_v34  ;;  %v10076_v50 = vadd.f32 %v7412_v1, %v9978_v30 }
 0xc57   :  { %v7427_v48 = vpop.f32.mrf.mxu0  ;;  %v3705_v1 = vmul.f32 %v11653_v56, %v10058_v32 }
 0xc58   :  { %v9998_v36 = vadd.f32 %v7427_v48, %v9978_v30  ;;  %v3726_v42 = vmul.f32 %v11652_v55, %v10013_v29  ;;  %v3710_v19 = vmul.f32 %v11653_v56, %v10013_v29  ;;  %v3720_v48 = vmul.f32 %v11652_v55, %v10067_v0 }
 0xc59   :  { %v3657_v62 = vpop.f32.mrf.mxu0  ;;  %v3678_v33 = vmul.f32 %v11651_v41, %v10013_v29 }
 0xc5a   :  { %v10004_v23 = vadd.f32 %v3657_v62, %v9978_v30  ;;  %v3729_v26 = vmul.f32 %v11652_v55, %v9998_v36  ;;  %v3713_v40 = vmul.f32 %v11653_v56, %v9998_v36  ;;  %v10085_v62 = vadd.f32 %v3607_v8, %v9978_v30 }
 0xc5b   :  { %v10101_v8 = vadd.f32 %v9993_v22, %v9978_v30  ;;  %v3715_v30 = vmul.f32 %v11652_v55, %v9981_v59  ;;  %v3701_v22 = vmul.f32 %v11653_v56, %v9987_v37 }
 0xc5c   :  { %3856 = vrot.lane.b32.xlu1 %v3729_v26, %s8176_s22  ;;  %3824 = vrot.lane.b32.xlu0 %v3713_v40, %s8176_s22  ;;  %v3728_v49 = vmul.f32 %v11652_v55, %v10004_v23  ;;  %v3712_v63 = vmul.f32 %v11653_v56, %v10004_v23  ;;  %v3719_v26 = vmul.f32 %v11652_v55, %v10076_v50 }
 0xc5d   :  { %v3718_v40 = vmul.f32 %v11652_v55, %v10085_v62 }
 0xc60   :  { %3852 = vrot.lane.b32.xlu0 %v3727_v51, %s8176_s22  ;;  %3854 = vrot.lane.b32.xlu1 %v3728_v49, %s8176_s22  ;;  %v3704_v51 = vmul.f32 %v11653_v56, %v10067_v0  ;;  %v3717_v49 = vmul.f32 %v11652_v55, %v9987_v37 }
 0xc64   :  { %3850 = vrot.lane.b32.xlu0 %v3726_v42, %s8176_s22  ;;  %3822 = vrot.lane.b32.xlu1 %v3712_v63, %s8176_s22  ;;  %v3703_v42 = vmul.f32 %v11653_v56, %v10076_v50  ;;  %v3716_v63 = vmul.f32 %v11652_v55, %v10101_v8 }
 0xc68   :  { %3848 = vrot.lane.b32.xlu0 %v3725_v44, %s8176_s22  ;;  %3820 = vrot.lane.b32.xlu1 %v3711_v2, %s8176_s22  ;;  %v3702_v44 = vmul.f32 %v11653_v56, %v10085_v62  ;;  %v3714_v2 = vmul.f32 %v11652_v55, %v9984_v20 }
 0xc6c   :  { %3846 = vrot.lane.b32.xlu0 %v3724_v43, %s8176_s22  ;;  %3818 = vrot.lane.b32.xlu1 %v3710_v19, %s8176_s22  ;;  %v3700_v43 = vmul.f32 %v11653_v56, %v10101_v8  ;;  %v11654_v19 = vld [vmem:[#allocation32_spill] sm:$0xff] }
 0xc6d   :  { %v3743_v55 = vmul.f32 %v11654_v19, %v10001_v34 }
 0xc70   :  { %3844 = vrot.lane.b32.xlu0 %v3723_v18, %s8176_s22  ;;  %3816 = vrot.lane.b32.xlu1 %v3709_v52, %s8176_s22  ;;  %v3745_v18 = vmul.f32 %v11654_v19, %v9998_v36  ;;  %v3699_v52 = vmul.f32 %v11653_v56, %v9981_v59 }
 0xc74   :  { %3842 = vrot.lane.b32.xlu0 %v3722_v3, %s8176_s22  ;;  %3814 = vrot.lane.b32.xlu1 %v3708_v12, %s8176_s22  ;;  %v3698_v3 = vmul.f32 %v11653_v56, %v9984_v20  ;;  %v3742_v12 = vmul.f32 %v11654_v19, %v10013_v29  ;;  %v3737_v56 = vmul.f32 %v11654_v19, %v10058_v32 }
 0xc78   :  { %3840 = vrot.lane.b32.xlu0 %v3721_v28, %s8176_s22  ;;  %3812 = vrot.lane.b32.xlu1 %v3707_v27, %s8176_s22  ;;  %v3741_v28 = vmul.f32 %v11654_v19, %v10022_v46  ;;  %v3740_v27 = vmul.f32 %v11654_v19, %v10031_v60 }
 0xc7c   :  { %3838 = vrot.lane.b32.xlu0 %v3720_v48, %s8176_s22  ;;  %3810 = vrot.lane.b32.xlu1 %v3706_v14, %s8176_s22  ;;  %v3739_v48 = vmul.f32 %v11654_v19, %v10040_v6  ;;  %v3733_v14 = vmul.f32 %v11654_v19, %v9987_v37 }
 0xc80   :  { %3836 = vrot.lane.b32.xlu0 %v3719_v26, %s8176_s22  ;;  %3808 = vrot.lane.b32.xlu1 %v3705_v1, %s8176_s22  ;;  %v3738_v26 = vmul.f32 %v11654_v19, %v10049_v9  ;;  %v3732_v1 = vmul.f32 %v11654_v19, %v10101_v8 }
 0xc84   :  { %3834 = vrot.lane.b32.xlu0 %v3718_v40, %s8176_s22  ;;  %3806 = vrot.lane.b32.xlu1 %v3704_v51, %s8176_s22  ;;  %v3736_v40 = vmul.f32 %v11654_v19, %v10067_v0  ;;  %v11655_v51 = vld [vmem:[#allocation33_spill] sm:$0xff] }
 0xc85   :  { %v3747_v53 = vmul.f32 %v11655_v51, %v9981_v59 }
 0xc88   :  { %3832 = vrot.lane.b32.xlu0 %v3717_v49, %s8176_s22  ;;  %3804 = vrot.lane.b32.xlu1 %v3703_v42, %s8176_s22  ;;  %v3761_v49 = vmul.f32 %v11655_v51, %v9998_v36  ;;  %v3735_v42 = vmul.f32 %v11654_v19, %v10076_v50 }
 0xc8c   :  { %3830 = vrot.lane.b32.xlu0 %v3716_v63, %s8176_s22  ;;  %3802 = vrot.lane.b32.xlu1 %v3702_v44, %s8176_s22  ;;  %v3759_v63 = vmul.f32 %v11655_v51, %v10001_v34  ;;  %v3734_v44 = vmul.f32 %v11654_v19, %v10085_v62 }
 0xc90   :  { %3828 = vrot.lane.b32.xlu0 %v3715_v30, %s8176_s22  ;;  %3800 = vrot.lane.b32.xlu1 %v3701_v22, %s8176_s22  ;;  %v3757_v30 = vmul.f32 %v11655_v51, %v10022_v46  ;;  %v3731_v22 = vmul.f32 %v11654_v19, %v9981_v59 }
 0xc94   :  { %3826 = vrot.lane.b32.xlu0 %v3714_v2, %s8176_s22  ;;  %3798 = vrot.lane.b32.xlu1 %v3700_v43, %s8176_s22  ;;  %v3755_v2 = vmul.f32 %v11655_v51, %v10040_v6  ;;  %v3730_v43 = vmul.f32 %v11654_v19, %v9984_v20 }
 0xc98   :  { %4945 = vrot.lane.b32.xlu0 %v3745_v18, %s8177_s23  ;;  %3796 = vrot.lane.b32.xlu1 %v3699_v52, %s8176_s22  ;;  %v3753_v18 = vmul.f32 %v11655_v51, %v10058_v32  ;;  %v3758_v52 = vmul.f32 %v11655_v51, %v10013_v29 }
 0xc9c   :  { %4941 = vrot.lane.b32.xlu0 %v3743_v55, %s8177_s23  ;;  %3794 = vrot.lane.b32.xlu1 %v3698_v3, %s8176_s22  ;;  %v3751_v55 = vmul.f32 %v11655_v51, %v10076_v50  ;;  %v3756_v3 = vmul.f32 %v11655_v51, %v10031_v60 }
 0xca0   :  { %4939 = vrot.lane.b32.xlu0 %v3742_v12, %s8177_s23  ;;  %4937 = vrot.lane.b32.xlu1 %v3741_v28, %s8177_s23  ;;  %v3749_v12 = vmul.f32 %v11655_v51, %v9987_v37  ;;  %v3754_v28 = vmul.f32 %v11655_v51, %v10049_v9 }
 0xca4   :  { %4935 = vrot.lane.b32.xlu0 %v3740_v27, %s8177_s23  ;;  %4929 = vrot.lane.b32.xlu1 %v3737_v56, %s8177_s23  ;;  %v3744_v27 = vmul.f32 %v11654_v19, %v10004_v23  ;;  %v3750_v19 = vmul.f32 %v11655_v51, %v10085_v62 }
 0xca8   :  { %4933 = vrot.lane.b32.xlu0 %v3739_v48, %s8177_s23  ;;  %4921 = vrot.lane.b32.xlu1 %v3733_v14, %s8177_s23  ;;  %v3752_v14 = vmul.f32 %v11655_v51, %v10067_v0 }
 0xcac   :  { %4931 = vrot.lane.b32.xlu0 %v3738_v26, %s8177_s23  ;;  %4919 = vrot.lane.b32.xlu1 %v3732_v1, %s8177_s23 }
 0xcb0   :  { %4927 = vrot.lane.b32.xlu0 %v3736_v40, %s8177_s23  ;;  %4977 = vrot.lane.b32.xlu1 %v3761_v49, %s8177_s23 }
 0xcb4   :  { %4925 = vrot.lane.b32.xlu0 %v3735_v42, %s8177_s23  ;;  %4973 = vrot.lane.b32.xlu1 %v3759_v63, %s8177_s23  ;;  %v3748_v42 = vmul.f32 %v11655_v51, %v10101_v8 }
 0xcb8   :  { %4923 = vrot.lane.b32.xlu0 %v3734_v44, %s8177_s23  ;;  %4969 = vrot.lane.b32.xlu1 %v3757_v30, %s8177_s23  ;;  %v3760_v30 = vmul.f32 %v11655_v51, %v10004_v23 }
 0xcbc   :  { %4917 = vrot.lane.b32.xlu0 %v3731_v22, %s8177_s23  ;;  %4965 = vrot.lane.b32.xlu1 %v3755_v2, %s8177_s23 }
 0xcc0   :  { %4915 = vrot.lane.b32.xlu0 %v3730_v43, %s8177_s23  ;;  %4961 = vrot.lane.b32.xlu1 %v3753_v18, %s8177_s23 }
 0xcc4   :  { %4971 = vrot.lane.b32.xlu0 %v3758_v52, %s8177_s23  ;;  %4957 = vrot.lane.b32.xlu1 %v3751_v55, %s8177_s23 }
 0xcc8   :  { %4967 = vrot.lane.b32.xlu0 %v3756_v3, %s8177_s23  ;;  %4953 = vrot.lane.b32.xlu1 %v3749_v12, %s8177_s23 }
 0xccc   :  { %4963 = vrot.lane.b32.xlu0 %v3754_v28, %s8177_s23  ;;  %4943 = vrot.lane.b32.xlu1 %v3744_v27, %s8177_s23 }
 0xcce   :  { %v3857_v56 = vpop.permute.xlu1 %3856  ;;  %v3825_v48 = vpop.permute.xlu0 %3824 }
 0xccf   :  { %7014 = vmatprep.subr.msk.mxu1 %vm175_vm4, %v3857_v56 }
 0xcd0   :  { %4959 = vrot.lane.b32.xlu0 %v3752_v14, %s8177_s23  ;;  %7015 = vmatpush3.xpose.msk.msra.mxu1 %vm175_vm4, %v3825_v48 }
 0xcd2   :  { %v3853_v26 = vpop.permute.xlu0 %3852  ;;  %v3855_v1 = vpop.permute.xlu1 %3854 }
 0xcd3   :  { %7016 = vmatprep.subr.msk.mxu1 %vm175_vm4, %v3855_v1 }
 0xcd4   :  { %4955 = vrot.lane.b32.xlu0 %v3750_v19, %s8177_s23 }
 0xcd6   :  { %v3851_v40 = vpop.permute.xlu0 %3850  ;;  %v3823_v49 = vpop.permute.xlu1 %3822 }
 0xcd7   :  { %7017 = vmatpush3.xpose.msk.msra.mxu1 %vm175_vm4, %v3823_v49 }
 0xcd8   :  { %4951 = vrot.lane.b32.xlu0 %v3748_v42, %s8177_s23  ;;  %7018 = vmatprep.subr.msk.mxu1 %vm175_vm4, %v3853_v26 }
 0xcda   :  { %v3849_v63 = vpop.permute.xlu0 %3848  ;;  %v3821_v44 = vpop.permute.xlu1 %3820 }
 0xcdb   :  { %7019 = vmatpush3.xpose.msk.msra.mxu1 %vm175_vm4, %v3821_v44 }
 0xcdc   :  { %4975 = vrot.lane.b32.xlu0 %v3760_v30, %s8177_s23  ;;  %7020 = vmatprep.subr.msk.mxu1 %vm175_vm4, %v3851_v40 }
 0xcde   :  { %v3847_v22 = vpop.permute.xlu0 %3846  ;;  %v3819_v2 = vpop.permute.xlu1 %3818 }
 0xcdf   :  { %7021 = vmatpush3.xpose.msk.msra.mxu1 %vm175_vm4, %v3819_v2 }
 0xce0   :  { %7022 = vmatprep.subr.msk.mxu1 %vm175_vm4, %v3849_v63 }
 0xce2   :  { %v3845_v43 = vpop.permute.xlu0 %3844  ;;  %v3817_v18 = vpop.permute.xlu1 %3816 }
 0xce3   :  { %7023 = vmatpush3.xpose.msk.msra.mxu1 %vm175_vm4, %v3817_v18 }
 0xce4   :  { %7024 = vmatprep.subr.msk.mxu1 %vm175_vm4, %v3847_v22 }
 0xce6   :  { %v3843_v52 = vpop.permute.xlu0 %3842  ;;  %v3815_v55 = vpop.permute.xlu1 %3814 }
 0xce7   :  { %7025 = vmatpush3.xpose.msk.msra.mxu1 %vm175_vm4, %v3815_v55 }
 0xce8   :  { %7026 = vmatprep.subr.msk.mxu1 %vm175_vm4, %v3845_v43 }
 0xcea   :  { %v3841_v3 = vpop.permute.xlu0 %3840  ;;  %v3813_v12 = vpop.permute.xlu1 %3812 }
 0xceb   :  { %7027 = vmatpush3.xpose.msk.msra.mxu1 %vm175_vm4, %v3813_v12  ;;  %v3668_v12 = vmul.f32 %v11651_v41, %v10101_v8 }
 0xcec   :  { %7028 = vmatprep.subr.msk.mxu1 %vm175_vm4, %v3843_v52  ;;  %v3667_v52 = vmul.f32 %v11651_v41, %v9981_v59 }
 0xcee   :  { %v3839_v28 = vpop.permute.xlu0 %3838  ;;  %v3811_v27 = vpop.permute.xlu1 %3810 }
 0xcef   :  { %7029 = vmatpush3.xpose.msk.msra.mxu1 %vm175_vm4, %v3811_v27 }
 0xcf0   :  { %7030 = vmatprep.subr.msk.mxu1 %vm175_vm4, %v3841_v3 }
 0xcf2   :  { %v3837_v56 = vpop.permute.xlu0 %3836  ;;  %v3809_v48 = vpop.permute.xlu1 %3808 }
 0xcf3   :  { %7031 = vmatpush3.xpose.msk.msra.mxu1 %vm175_vm4, %v3809_v48 }
 0xcf4   :  { %7032 = vmatprep.subr.msk.mxu1 %vm175_vm4, %v3839_v28 }
 0xcf6   :  { %v3835_v14 = vpop.permute.xlu0 %3834  ;;  %v3807_v26 = vpop.permute.xlu1 %3806 }
 0xcf7   :  { %7033 = vmatpush3.xpose.msk.msra.mxu1 %vm175_vm4, %v3807_v26 }
 0xcf8   :  { %7034 = vmatprep.subr.msk.mxu1 %vm175_vm4, %v3837_v56  ;;  %v3669_v56 = vmul.f32 %v11651_v41, %v9987_v37 }
 0xcfa   :  { %v3833_v1 = vpop.permute.xlu0 %3832  ;;  %v3805_v19 = vpop.permute.xlu1 %3804 }
 0xcfb   :  { %7035 = vmatpush3.xpose.msk.msra.mxu1 %vm175_vm4, %v3805_v19  ;;  %v3671_v19 = vmul.f32 %v11651_v41, %v10076_v50 }
 0xcfc   :  { %7036 = vmatprep.subr.msk.mxu1 %vm175_vm4, %v3835_v14  ;;  %v3670_v14 = vmul.f32 %v11651_v41, %v10085_v62 }
 0xcfe   :  { %v3831_v40 = vpop.permute.xlu0 %3830  ;;  %v3803_v49 = vpop.permute.xlu1 %3802 }
 0xcff   :  { %7037 = vmatpush3.xpose.msk.msra.mxu1 %vm175_vm4, %v3803_v49 }
 0xd00   :  { %7038 = vmatprep.subr.msk.mxu1 %vm175_vm4, %v3833_v1 }
 0xd02   :  { %v3829_v42 = vpop.permute.xlu0 %3828  ;;  %v3801_v63 = vpop.permute.xlu1 %3800 }
 0xd03   :  { %7039 = vmatpush3.xpose.msk.msra.mxu1 %vm175_vm4, %v3801_v63 }
 0xd04   :  { %7040 = vmatprep.subr.msk.mxu1 %vm175_vm4, %v3831_v40 }
 0xd06   :  { %v3827_v44 = vpop.permute.xlu0 %3826  ;;  %v3799_v30 = vpop.permute.xlu1 %3798 }
 0xd07   :  { %7041 = vmatpush3.xpose.msk.msra.mxu1 %vm175_vm4, %v3799_v30  ;;  %v3673_v30 = vmul.f32 %v11651_v41, %v10058_v32 }
 0xd08   :  { %7042 = vmatprep.subr.msk.mxu1 %vm175_vm4, %v3829_v42  ;;  %v3672_v42 = vmul.f32 %v11651_v41, %v10067_v0 }
 0xd0a   :  { %v4946_v22 = vpop.permute.xlu0 %4945  ;;  %v3797_v2 = vpop.permute.xlu1 %3796 }
 0xd0b   :  { %7043 = vmatpush3.xpose.msk.msra.mxu1 %vm175_vm4, %v3797_v2  ;;  %5012 = vmatpush1.msra.mxu0 %v4946_v22 }
 0xd0c   :  { %7044 = vmatprep.subr.msk.mxu1 %vm175_vm4, %v3827_v44  ;;  %5013 = vmatprep.subr.mxu0 %v11649_v31 }
 0xd0e   :  { %v10255_v43 = vpop.permute.xlu0 %4941  ;;  %v3795_v18 = vpop.permute.xlu1 %3794 }
 0xd0f   :  { %7045 = vmatpush3.xpose.msk.msra.mxu1 %vm175_vm4, %v3795_v18  ;;  %v3674_v18 = vmul.f32 %v11651_v41, %v10049_v9 }
 0xd12   :  { %v10260_v55 = vpop.permute.xlu0 %4939  ;;  %7047 = vmatmul.mubr.msk.f32.vlgmr.msra.gmra.mxu1 %vm175_vm4, %v9991_v38  ;;  %v10264_v3 = vpop.permute.xlu1 %4937 }
 0xd13   :  { %7048 = vmatprep.mubr.msk.f32.mxu1 %vm175_vm4, %v3667_v52 }
 0xd16   :  { %v10269_v28 = vpop.permute.xlu0 %4935  ;;  %7049 = vmatmul.mubr.msk.f32.gmra.mxu1 %vm175_vm4, %v3667_v52  ;;  %v10272_v27 = vpop.permute.xlu1 %4929 }
 0xd17   :  { %7050 = vmatprep.mubr.msk.f32.mxu1 %vm175_vm4, %v3668_v12 }
 0xd1a   :  { %v10277_v48 = vpop.permute.xlu0 %4933  ;;  %7051 = vmatmul.mubr.msk.f32.gmra.mxu1 %vm175_vm4, %v3668_v12  ;;  %v10280_v38 = vpop.permute.xlu1 %4921 }
 0xd1b   :  { %7052 = vmatprep.mubr.msk.f32.mxu1 %vm175_vm4, %v3669_v56 }
 0xd1e   :  { %v10285_v26 = vpop.permute.xlu0 %4931  ;;  %7053 = vmatmul.mubr.msk.f32.gmra.mxu1 %vm175_vm4, %v3669_v56  ;;  %v10288_v1 = vpop.permute.xlu1 %4919  ;;  %v3675_v56 = vmul.f32 %v11651_v41, %v10040_v6 }
 0xd1f   :  { %7054 = vmatprep.mubr.msk.f32.mxu1 %vm175_vm4, %v3670_v14 }
 0xd22   :  { %v10293_v40 = vpop.permute.xlu0 %4927  ;;  %7055 = vmatmul.mubr.msk.f32.gmra.mxu1 %vm175_vm4, %v3670_v14  ;;  %v10296_v49 = vpop.permute.xlu1 %4977 }
 0xd23   :  { %7056 = vmatprep.mubr.msk.f32.mxu1 %vm175_vm4, %v3671_v19 }
 0xd26   :  { %v10301_v63 = vpop.permute.xlu0 %4925  ;;  %7057 = vmatmul.mubr.msk.f32.gmra.mxu1 %vm175_vm4, %v3671_v19  ;;  %v10304_v44 = vpop.permute.xlu1 %4973 }
 0xd27   :  { %7058 = vmatprep.mubr.msk.f32.mxu1 %vm175_vm4, %v3672_v42 }
 0xd2a   :  { %v10309_v22 = vpop.permute.xlu0 %4923  ;;  %7059 = vmatmul.mubr.msk.f32.gmra.mxu1 %vm175_vm4, %v3672_v42  ;;  %v10312_v2 = vpop.permute.xlu1 %4969  ;;  %v3676_v42 = vmul.f32 %v11651_v41, %v10031_v60 }
 0xd2b   :  { %7060 = vmatprep.mubr.msk.f32.mxu1 %vm175_vm4, %v3673_v30 }
 0xd2e   :  { %v10317_v52 = vpop.permute.xlu0 %4917  ;;  %7061 = vmatmul.mubr.msk.f32.gmra.mxu1 %vm175_vm4, %v3673_v30  ;;  %v10320_v12 = vpop.permute.xlu1 %4965 }
 0xd2f   :  { %7062 = vmatprep.mubr.msk.f32.mxu1 %vm175_vm4, %v3674_v18 }
 0xd32   :  { %7063 = vmatmul.mubr.msk.f32.gmra.mxu1 %vm175_vm4, %v3674_v18  ;;  %v10326_v14 = vpop.permute.xlu1 %4961  ;;  %v10329_v19 = vpop.permute.xlu0 %4915 }
 0xd33   :  { %7064 = vmatprep.mubr.msk.f32.mxu1 %vm175_vm4, %v3675_v56 }
 0xd36   :  { %7065 = vmatmul.mubr.msk.f32.gmra.mxu1 %vm175_vm4, %v3675_v56  ;;  %v10334_v30 = vpop.permute.xlu1 %4957  ;;  %v10339_v16 = vpop.permute.xlu0 %4971 }
 0xd37   :  { %7066 = vmatprep.mubr.msk.f32.mxu1 %vm175_vm4, %v3676_v42 }
 0xd3a   :  { %7067 = vmatmul.mubr.msk.f32.gmra.mxu1 %vm175_vm4, %v3676_v42  ;;  %v10342_v18 = vpop.permute.xlu1 %4953  ;;  %v10349_v5 = vpop.permute.xlu0 %4967  ;;  %v3679_v42 = vmul.f32 %v11651_v41, %v10001_v34 }
 0xd3b   :  { %7068 = vmatprep.mubr.msk.f32.mxu1 %vm175_vm4, %v3677_v57 }
 0xd3e   :  { %7069 = vmatmul.mubr.msk.f32.gmra.mxu1 %vm175_vm4, %v3677_v57  ;;  %v4944_v56 = vpop.permute.xlu1 %4943  ;;  %v3680_v57 = vmul.f32 %v11651_v41, %v10004_v23 }
 0xd3f   :  { %7070 = vmatprep.mubr.msk.f32.mxu1 %vm175_vm4, %v3678_v33  ;;  %5014 = vmatpush1.msra.mxu0 %v4944_v56  ;;  %v10363_v56 = vpop.permute.xlu0 %4963 }
 0xd40   :  { %5015 = vmatprep.subr.mxu0 %v11649_v31 }
 0xd41   :  { %5016 = vmatpush1.msra.mxu0 %v10255_v43 }
 0xd42   :  { %7071 = vmatmul.mubr.msk.f32.gmra.mxu1 %vm175_vm4, %v3678_v33  ;;  %5017 = vmatprep.subr.mxu0 %v11649_v31  ;;  %v3681_v33 = vmul.f32 %v11651_v41, %v9998_v36 }
 0xd43   :  { %7072 = vmatprep.mubr.msk.f32.mxu1 %vm175_vm4, %v3679_v42  ;;  %5018 = vmatpush1.msra.mxu0 %v10260_v55  ;;  %v10377_v43 = vpop.permute.xlu0 %4959  ;;  %v11656_v55 = vld [vmem:[#allocation12_spill] sm:$0xff] }
 0xd44   :  { %5019 = vmatprep.subr.mxu0 %v11649_v31  ;;  %v3683_v41 = vmul.f32 %v11656_v55, %v9981_v59 }
 0xd45   :  { %5020 = vmatpush1.msra.mxu0 %v10264_v3  ;;  %v3682_v3 = vmul.f32 %v11656_v55, %v9984_v20 }
 0xd46   :  { %7073 = vmatmul.mubr.msk.f32.gmra.mxu1 %vm175_vm4, %v3679_v42  ;;  %5021 = vmatprep.subr.mxu0 %v11649_v31 }
 0xd47   :  { %7074 = vmatprep.mubr.msk.f32.mxu1 %vm175_vm4, %v3680_v57  ;;  %5022 = vmatpush1.msra.mxu0 %v10269_v28  ;;  %v4956_v28 = vpop.permute.xlu0 %4955 }
 0xd48   :  { %5023 = vmatprep.subr.mxu0 %v11649_v31 }
 0xd49   :  { %5024 = vmatpush1.msra.mxu0 %v10277_v48 }
 0xd4a   :  { %7075 = vmatmul.mubr.msk.f32.gmra.mxu1 %vm175_vm4, %v3680_v57  ;;  %5025 = vmatprep.subr.mxu0 %v11649_v31 }
 0xd4b   :  { %7076 = vmatprep.mubr.msk.f32.mxu1 %vm175_vm4, %v3681_v33  ;;  %5026 = vmatpush1.msra.mxu0 %v10285_v26  ;;  %v4952_v48 = vpop.permute.xlu0 %4951  ;;  %v3685_v26 = vmul.f32 %v11656_v55, %v9987_v37  ;;  %v3687_v37 = vmul.f32 %v11656_v55, %v10076_v50 }
 0xd4c   :  { %5027 = vmatprep.subr.mxu0 %v11649_v31 }
 0xd4d   :  { %5028 = vmatpush1.msra.mxu0 %v10272_v27  ;;  %v3684_v27 = vmul.f32 %v11656_v55, %v10101_v8  ;;  %v3686_v8 = vmul.f32 %v11656_v55, %v10085_v62  ;;  %v3688_v62 = vmul.f32 %v11656_v55, %v10067_v0  ;;  %v3694_v0 = vmul.f32 %v11656_v55, %v10013_v29 }
 0xd4e   :  { %7077 = vmatmul.mubr.msk.f32.gmra.mxu1 %vm175_vm4, %v3681_v33  ;;  %5029 = vmatprep.subr.mxu0 %v11649_v31  ;;  %v3697_v29 = vmul.f32 %v11656_v55, %v9998_v36  ;;  %v3408_v36 = vld [vmem:[#allocation5 + $0x218] sm:$0xff]  ;;  %v3410_v33 = vld [vmem:[#allocation5 + $0x228] sm:$0xff] }
 0xd4f   :  { %7078 = vmatprep.mubr.msk.f32.mxu1 %vm175_vm4, %v3682_v3  ;;  %5030 = vmatpush1.msra.mxu0 %v10293_v40  ;;  %v3406_v40 = vld [vmem:[#allocation5 + $0x208] sm:$0xff] }
 0xd50   :  { %5031 = vmatprep.subr.mxu0 %v11649_v31 }
 0xd51   :  { %5032 = vmatpush1.msra.mxu0 %v10301_v63 }
 0xd52   :  { %7079 = vmatmul.mubr.msk.f32.gmra.mxu1 %vm175_vm4, %v3682_v3  ;;  %5033 = vmatprep.subr.mxu0 %v11649_v31 }
 0xd53   :  { %7080 = vmatprep.mubr.msk.f32.mxu1 %vm175_vm4, %v3683_v41  ;;  %5034 = vmatpush1.msra.mxu0 %v10309_v22 }
 0xd54   :  { %5035 = vmatprep.subr.mxu0 %v11649_v31 }
 0xd55   :  { %5036 = vmatpush1.msra.mxu0 %v10280_v38  ;;  %v4976_v38 = vpop.permute.xlu0 %4975 }
 0xd56   :  { %7081 = vmatmul.mubr.msk.f32.gmra.mxu1 %vm175_vm4, %v3683_v41  ;;  %5037 = vmatprep.subr.mxu0 %v11649_v31 }
 0xd57   :  { %7082 = vmatprep.mubr.msk.f32.mxu1 %vm175_vm4, %v3684_v27  ;;  %5038 = vmatpush1.msra.mxu0 %v10288_v1  ;;  %v3405_v1 = vld [vmem:[#allocation5 + $0x200] sm:$0xff] }
 0xd58   :  { %5039 = vmatprep.subr.mxu0 %v11649_v31 }
 0xd59   :  { %5040 = vmatpush1.msra.mxu0 %v10317_v52  ;;  %v3407_v52 = vld [vmem:[#allocation5 + $0x210] sm:$0xff] }
 0xd5a   :  { %7083 = vmatmul.mubr.msk.f32.gmra.mxu1 %vm175_vm4, %v3684_v27  ;;  %5041 = vmatprep.subr.mxu0 %v11649_v31 }
 0xd5b   :  { %7084 = vmatprep.mubr.msk.f32.mxu1 %vm175_vm4, %v3685_v26  ;;  %5042 = vmatpush1.msra.mxu0 %v10329_v19 }
 0xd5c   :  { %5043 = vmatprep.subr.mxu0 %v11649_v31 }
 0xd5d   :  { %5044 = vmatpush2.msra.mxu0 %v10296_v49 }
 0xd5e   :  { %7085 = vmatmul.mubr.msk.f32.gmra.mxu1 %vm175_vm4, %v3685_v26  ;;  %5045 = vmatprep.subr.mxu0 %v11649_v31  ;;  %v3411_v26 = vld [vmem:[#allocation5 + $0x230] sm:$0xff] }
 0xd5f   :  { %7086 = vmatprep.mubr.msk.f32.mxu1 %vm175_vm4, %v3686_v8  ;;  %5046 = vmatpush2.msra.mxu0 %v4976_v38 }
 0xd60   :  { %5047 = vmatprep.subr.mxu0 %v11649_v31 }
 0xd61   :  { %5048 = vmatpush2.msra.mxu0 %v10304_v44 }
 0xd62   :  { %7087 = vmatmul.mubr.msk.f32.gmra.mxu1 %vm175_vm4, %v3686_v8  ;;  %5049 = vmatprep.subr.mxu0 %v11649_v31  ;;  %v3412_v8 = vld [vmem:[#allocation5 + $0x238] sm:$0xff] }
 0xd63   :  { %7088 = vmatprep.mubr.msk.f32.mxu1 %vm175_vm4, %v3687_v37  ;;  %5050 = vmatpush2.msra.mxu0 %v10339_v16  ;;  %v3689_v16 = vmul.f32 %v11656_v55, %v10058_v32  ;;  %v3691_v32 = vmul.f32 %v11656_v55, %v10040_v6  ;;  %v3693_v6 = vmul.f32 %v11656_v55, %v10022_v46 }
 0xd64   :  { %5051 = vmatprep.subr.mxu0 %v11649_v31  ;;  %v3696_v46 = vmul.f32 %v11656_v55, %v10004_v23 }
 0xd65   :  { %5052 = vmatpush2.msra.mxu0 %v10312_v2 }
 0xd66   :  { %7089 = vmatmul.mubr.msk.f32.gmra.mxu1 %vm175_vm4, %v3687_v37  ;;  %5053 = vmatprep.subr.mxu0 %v11649_v31 }
 0xd67   :  { %7090 = vmatprep.mubr.msk.f32.mxu1 %vm175_vm4, %v3688_v62  ;;  %5054 = vmatpush2.msra.mxu0 %v10349_v5  ;;  %v3690_v5 = vmul.f32 %v11656_v55, %v10049_v9  ;;  %v3692_v9 = vmul.f32 %v11656_v55, %v10031_v60  ;;  %v3695_v60 = vmul.f32 %v11656_v55, %v10001_v34 }
 0xd68   :  { %5055 = vmatprep.subr.mxu0 %v11649_v31 }
 0xd69   :  { %5056 = vmatpush2.msra.mxu0 %v10320_v12 }
 0xd6a   :  { %7091 = vmatmul.mubr.msk.f32.gmra.mxu1 %vm175_vm4, %v3688_v62  ;;  %5057 = vmatprep.subr.mxu0 %v11649_v31 }
 0xd6b   :  { %7092 = vmatprep.mubr.msk.f32.mxu1 %vm175_vm4, %v3689_v16  ;;  %5058 = vmatpush2.msra.mxu0 %v10363_v56  ;;  %v3409_v56 = vld [vmem:[#allocation5 + $0x220] sm:$0xff] }
 0xd6c   :  { %5059 = vmatprep.subr.mxu0 %v11649_v31 }
 0xd6d   :  { %5060 = vmatpush2.msra.mxu0 %v10326_v14 }
 0xd6e   :  { %7093 = vmatmul.mubr.msk.f32.gmra.mxu1 %vm175_vm4, %v3689_v16  ;;  %5061 = vmatprep.subr.mxu0 %v11649_v31 }
 0xd6f   :  { %7094 = vmatprep.mubr.msk.f32.mxu1 %vm175_vm4, %v3690_v5  ;;  %5062 = vmatpush2.msra.mxu0 %v10377_v43 }
 0xd70   :  { %5063 = vmatprep.subr.mxu0 %v11649_v31 }
 0xd71   :  { %5064 = vmatpush2.msra.mxu0 %v10334_v30 }
 0xd72   :  { %7095 = vmatmul.mubr.msk.f32.gmra.mxu1 %vm175_vm4, %v3690_v5  ;;  %5065 = vmatprep.subr.mxu0 %v11649_v31 }
 0xd73   :  { %7096 = vmatprep.mubr.msk.f32.mxu1 %vm175_vm4, %v3691_v32  ;;  %5066 = vmatpush2.msra.mxu0 %v4956_v28 }
 0xd74   :  { %5067 = vmatprep.subr.mxu0 %v11649_v31 }
 0xd75   :  { %5068 = vmatpush2.msra.mxu0 %v10342_v18 }
 0xd76   :  { %7097 = vmatmul.mubr.msk.f32.gmra.mxu1 %vm175_vm4, %v3691_v32  ;;  %5069 = vmatprep.subr.mxu0 %v11649_v31 }
 0xd77   :  { %7098 = vmatprep.mubr.msk.f32.mxu1 %vm175_vm4, %v3692_v9  ;;  %5070 = vmatpush2.msra.mxu0 %v4952_v48 }
 0xd78   :  { %5071 = vmatprep.subr.mxu0 %v11649_v31 }
 0xd7a   :  { %7099 = vmatmul.mubr.msk.f32.gmra.mxu1 %vm175_vm4, %v3692_v9 }
 0xd7b   :  { %7100 = vmatprep.mubr.msk.f32.mxu1 %vm175_vm4, %v3693_v6 }
 0xd7e   :  { %7101 = vmatmul.mubr.msk.f32.gmra.mxu1 %vm175_vm4, %v3693_v6  ;;  %v3413_v6 = vld [vmem:[#allocation5 + $0x240] sm:$0xff] }
 0xd7f   :  { %7102 = vmatprep.mubr.msk.f32.mxu1 %vm175_vm4, %v3694_v0 }
 0xd82   :  { %7103 = vmatmul.mubr.msk.f32.gmra.mxu1 %vm175_vm4, %v3694_v0  ;;  %v3414_v0 = vld [vmem:[#allocation5 + $0x248] sm:$0xff] }
 0xd83   :  { %7104 = vmatprep.mubr.msk.f32.mxu1 %vm175_vm4, %v3695_v60 }
 0xd86   :  { %7105 = vmatmul.mubr.msk.f32.gmra.mxu1 %vm175_vm4, %v3695_v60 }
 0xd87   :  { %7106 = vmatprep.mubr.msk.f32.mxu1 %vm175_vm4, %v3696_v46 }
 0xd8a   :  { %7107 = vmatmul.mubr.msk.f32.gmra.mxu1 %vm175_vm4, %v3696_v46 }
 0xd8b   :  { %7108 = vmatprep.mubr.msk.f32.mxu1 %vm175_vm4, %v3697_v29 }
 0xd8e   :  { %7109 = vmatmul.mubr.msk.f32.gmra.mxu1 %vm175_vm4, %v3697_v29 }
 0xdd2   :  { %v4084_v34 = vpop.f32.mrf.mxu1 }
 0xdd3   :  { %v4275_v50 = vmul.f32 0.5, %v4084_v34 }
 0xdd4   :  { %v4086_v49 = vpop.f32.mrf.mxu1 }
 0xdd5   :  { %v4276_v63 = vmul.f32 0.5, %v4086_v49  ;;  %v10486_v44 = vadd.f32 %v4275_v50, %v3405_v1  ;;  %v3415_v49 = vld [vmem:[#allocation5 + $0x250] sm:$0xff] }
 0xdd6   :  { %v4090_v23 = vpop.f32.mrf.mxu1 }
 0xdd7   :  { %v10488_v22 = vadd.f32 %v4276_v63, %v3406_v40  ;;  %v4277_v2 = vmul.f32 0.5, %v4090_v23  ;;  %v3416_v63 = vld [vmem:[#allocation5 + $0x258] sm:$0xff] }
 0xdd8   :  { %v4092_v12 = vpop.f32.mrf.mxu1 }
 0xdd9   :  { %v4278_v14 = vmul.f32 0.5, %v4092_v12  ;;  %v4403_v19 = vmax.f32 %v10486_v44, %v10488_v22  ;;  %v10492_v18 = vadd.f32 %v4277_v2, %v3407_v52 }
 0xdda   :  { %v4096_v30 = vpop.f32.mrf.mxu1 }
 0xddb   :  { %v10494_v42 = vadd.f32 %v4278_v14, %v3408_v36  ;;  %v4279_v57 = vmul.f32 0.5, %v4096_v30  ;;  %4404 = vmax.xlane.f32.xlu0 %v4403_v19  ;;  %v3417_v30 = vld [vmem:[#allocation5 + $0x260] sm:$0xff] }
 0xddc   :  { %v4098_v43 = vpop.f32.mrf.mxu1 }
 0xddd   :  { %v4280_v55 = vmul.f32 0.5, %v4098_v43  ;;  %v4406_v3 = vmax.f32 %v10492_v18, %v10494_v42  ;;  %v10498_v28 = vadd.f32 %v4279_v57, %v3409_v56  ;;  %v3418_v57 = vld [vmem:[#allocation5 + $0x268] sm:$0xff] }
 0xdde   :  { %v4102_v41 = vpop.f32.mrf.mxu1 }
 0xddf   :  { %v10500_v27 = vadd.f32 %v4280_v55, %v3410_v33  ;;  %v4281_v48 = vmul.f32 0.5, %v4102_v41  ;;  %4407 = vmax.xlane.f32.xlu1 %v4406_v3 }
 0xde0   :  { %v4104_v38 = vpop.f32.mrf.mxu1 }
 0xde1   :  { %v4282_v37 = vmul.f32 0.5, %v4104_v38  ;;  %v4409_v62 = vmax.f32 %v10498_v28, %v10500_v27  ;;  %v10504_v5 = vadd.f32 %v4281_v48, %v3411_v26  ;;  %v3419_v26 = vld [vmem:[#allocation5 + $0x270] sm:$0xff] }
 0xde2   :  { %v4108_v16 = vpop.f32.mrf.mxu1 }
 0xde3   :  { %v10506_v32 = vadd.f32 %v4282_v37, %v3412_v8  ;;  %v4283_v9 = vmul.f32 0.5, %v4108_v16  ;;  %4410 = vmax.xlane.f32.xlu0 %v4409_v62  ;;  %v3420_v8 = vld [vmem:[#allocation5 + $0x278] sm:$0xff] }
 0xde4   :  { %v4110_v60 = vpop.f32.mrf.mxu1 }
 0xde5   :  { %v4284_v46 = vmul.f32 0.5, %v4110_v60  ;;  %v4412_v29 = vmax.f32 %v10504_v5, %v10506_v32  ;;  %v10510_v50 = vadd.f32 %v4283_v9, %v3413_v6  ;;  %v3421_v60 = vld [vmem:[#allocation5 + $0x280] sm:$0xff] }
 0xde6   :  { %v4114_v34 = vpop.f32.mrf.mxu1 }
 0xde7   :  { %v10512_v1 = vadd.f32 %v4284_v46, %v3414_v0  ;;  %v4285_v40 = vmul.f32 0.5, %v4114_v34  ;;  %4413 = vmax.xlane.f32.xlu0 %v4412_v29  ;;  %v3422_v46 = vld [vmem:[#allocation5 + $0x288] sm:$0xff] }
 0xde8   :  { %v4116_v23 = vpop.f32.mrf.mxu1 }
 0xde9   :  { %v4286_v2 = vmul.f32 0.5, %v4116_v23  ;;  %v4415_v52 = vmax.f32 %v10510_v50, %v10512_v1  ;;  %v10516_v12 = vadd.f32 %v4285_v40, %v3415_v49 }
 0xdea   :  { %v4120_v36 = vpop.f32.mrf.mxu1 }
 0xdeb   :  { %v10518_v14 = vadd.f32 %v4286_v2, %v3416_v63  ;;  %v4287_v19 = vmul.f32 0.5, %v4120_v36  ;;  %4416 = vmax.xlane.f32.xlu1 %v4415_v52  ;;  %v3423_v52 = vld [vmem:[#allocation5 + $0x290] sm:$0xff]  ;;  %v3424_v36 = vld [vmem:[#allocation5 + $0x298] sm:$0xff] }
 0xdec   :  { %v4122_v56 = vpop.f32.mrf.mxu1 }
 0xded   :  { %v4288_v33 = vmul.f32 0.5, %v4122_v56  ;;  %v4418_v43 = vmax.f32 %v10516_v12, %v10518_v14  ;;  %v10522_v3 = vadd.f32 %v4287_v19, %v3417_v30 }
 0xdee   :  { %v4126_v55 = vpop.f32.mrf.mxu1 }
 0xdef   :  { %v10524_v41 = vadd.f32 %v4288_v33, %v3418_v57  ;;  %v4289_v48 = vmul.f32 0.5, %v4126_v55  ;;  %4419 = vmax.xlane.f32.xlu0 %v4418_v43 }
 0xdf0   :  { %v4128_v38 = vpop.f32.mrf.mxu1 }
 0xdf1   :  { %v4290_v37 = vmul.f32 0.5, %v4128_v38  ;;  %v4421_v62 = vmax.f32 %v10522_v3, %v10524_v41  ;;  %v10528_v9 = vadd.f32 %v4289_v48, %v3419_v26  ;;  %v3425_v48 = vld [vmem:[#allocation5 + $0x2a0] sm:$0xff]  ;;  %v3426_v26 = vld [vmem:[#allocation5 + $0x2a8] sm:$0xff] }
 0xdf2   :  { %v4132_v16 = vpop.f32.mrf.mxu1 }
 0xdf3   :  { %v10530_v6 = vadd.f32 %v4290_v37, %v3420_v8  ;;  %v4291_v0 = vmul.f32 0.5, %v4132_v16  ;;  %4422 = vmax.xlane.f32.xlu1 %v4421_v62 }
 0xdf4   :  { %v4134_v29 = vpop.f32.mrf.mxu1 }
 0xdf5   :  { %v4292_v34 = vmul.f32 0.5, %v4134_v29  ;;  %v4424_v40 = vmax.f32 %v10528_v9, %v10530_v6  ;;  %v10534_v63 = vadd.f32 %v4291_v0, %v3421_v60  ;;  %v3428_v29 = vld [vmem:[#allocation5 + $0x2b8] sm:$0xff] }
 0xdf6   :  { %v4138_v49 = vpop.f32.mrf.mxu1 }
 0xdf7   :  { %v10536_v23 = vadd.f32 %v4292_v34, %v3422_v46  ;;  %v4293_v2 = vmul.f32 0.5, %v4138_v49  ;;  %4425 = vmax.xlane.f32.xlu0 %v4424_v40  ;;  %v3427_v46 = vld [vmem:[#allocation5 + $0x2b0] sm:$0xff] }
 0xdf8   :  { %v4140_v19 = vpop.f32.mrf.mxu1 }
 0xdf9   :  { %v4294_v30 = vmul.f32 0.5, %v4140_v19  ;;  %v4427_v57 = vmax.f32 %v10534_v63, %v10536_v23  ;;  %v10540_v33 = vadd.f32 %v4293_v2, %v3423_v52 }
 0xdfa   :  { %v4144_v56 = vpop.f32.mrf.mxu1 }
 0xdfb   :  { %v10542_v43 = vadd.f32 %v4294_v30, %v3424_v36  ;;  %v4295_v55 = vmul.f32 0.5, %v4144_v56  ;;  %4428 = vmax.xlane.f32.xlu1 %v4427_v57  ;;  %v3429_v30 = vld [vmem:[#allocation5 + $0x2c0] sm:$0xff]  ;;  %v3430_v57 = vld [vmem:[#allocation5 + $0x2c8] sm:$0xff] }
 0xdfc   :  { %v4146_v8 = vpop.f32.mrf.mxu1 }
 0xdfd   :  { %v4296_v38 = vmul.f32 0.5, %v4146_v8  ;;  %v4430_v37 = vmax.f32 %v10540_v33, %v10542_v43  ;;  %v10546_v16 = vadd.f32 %v4295_v55, %v3425_v48 }
 0xdfe   :  { %v4150_v62 = vpop.f32.mrf.mxu1 }
 0xdff   :  { %v10548_v0 = vadd.f32 %v4296_v38, %v3426_v26  ;;  %v4297_v60 = vmul.f32 0.5, %v4150_v62  ;;  %4431 = vmax.xlane.f32.xlu0 %v4430_v37  ;;  %v3431_v62 = vld [vmem:[#allocation5 + $0x2d0] sm:$0xff] }
 0xe00   :  { %v4152_v34 = vpop.f32.mrf.mxu1 }
 0xe01   :  { %v4298_v40 = vmul.f32 0.5, %v4152_v34  ;;  %v4433_v49 = vmax.f32 %v10546_v16, %v10548_v0  ;;  %v10552_v52 = vadd.f32 %v4297_v60, %v3427_v46  ;;  %v3432_v60 = vld [vmem:[#allocation5 + $0x2d8] sm:$0xff] }
 0xe02   :  { %v4156_v2 = vpop.f32.mrf.mxu1 }
 0xe03   :  { %v10554_v36 = vadd.f32 %v4298_v40, %v3428_v29  ;;  %v4299_v19 = vmul.f32 0.5, %v4156_v2  ;;  %4434 = vmax.xlane.f32.xlu1 %v4433_v49 }
 0xe04   :  { %v4158_v56 = vpop.f32.mrf.mxu1 }
 0xe05   :  { %v4300_v55 = vmul.f32 0.5, %v4158_v56  ;;  %v4436_v48 = vmax.f32 %v10552_v52, %v10554_v36  ;;  %v10558_v8 = vadd.f32 %v4299_v19, %v3429_v30  ;;  %v3433_v19 = vld [vmem:[#allocation5 + $0x2e0] sm:$0xff]  ;;  %v3434_v30 = vld [vmem:[#allocation5 + $0x2e8] sm:$0xff] }
 0xe06   :  { %v4162_v26 = vpop.f32.mrf.mxu1 }
 0xe07   :  { %v10560_v38 = vadd.f32 %v4300_v55, %v3430_v57  ;;  %v4301_v37 = vmul.f32 0.5, %v4162_v26  ;;  %4437 = vmax.xlane.f32.xlu0 %v4436_v48 }
 0xe08   :  { %v4164_v46 = vpop.f32.mrf.mxu1 }
 0xe09   :  { %v4302_v29 = vmul.f32 0.5, %v4164_v46  ;;  %v4439_v34 = vmax.f32 %v10558_v8, %v10560_v38  ;;  %v10564_v49 = vadd.f32 %v4301_v37, %v3431_v62  ;;  %v3435_v37 = vld [vmem:[#allocation5 + $0x2f0] sm:$0xff]  ;;  %v3436_v62 = vld [vmem:[#allocation5 + $0x2f8] sm:$0xff] }
 0xe0a   :  { %v4168_v40 = vpop.f32.mrf.mxu1 }
 0xe0b   :  { %11657 = vst [vmem:[#allocation14_spill] sm:$0xff] %v10564_v49  ;;  %v10566_v2 = vadd.f32 %v4302_v29, %v3432_v60  ;;  %v4303_v56 = vmul.f32 0.5, %v4168_v40  ;;  %4440 = vmax.xlane.f32.xlu1 %v4439_v34 }
 0xe0c   :  { %v4170_v57 = vpop.f32.mrf.mxu1 }
 0xe0d   :  { %11658 = vst [vmem:[#allocation13_spill] sm:$0xff] %v10566_v2  ;;  %v4304_v55 = vmul.f32 0.5, %v4170_v57  ;;  %v4442_v48 = vmax.f32 %v10564_v49, %v10566_v2  ;;  %v10570_v61 = vadd.f32 %v4303_v56, %v3433_v19  ;;  %v3437_v56 = vld [vmem:[#allocation5 + $0x300] sm:$0xff]  ;;  %v3438_v19 = vld [vmem:[#allocation5 + $0x308] sm:$0xff] }
 0xe0e   :  { %v4174_v26 = vpop.f32.mrf.mxu1 }
 0xe0f   :  { %11659 = vst [vmem:[#allocation16_spill] sm:$0xff] %v10570_v61  ;;  %v10572_v46 = vadd.f32 %v4304_v55, %v3434_v30  ;;  %v4305_v4 = vmul.f32 0.5, %v4174_v26  ;;  %4443 = vmax.xlane.f32.xlu0 %v4442_v48 }
 0xe10   :  { %v4176_v60 = vpop.f32.mrf.mxu1 }
 0xe11   :  { %11660 = vst [vmem:[#allocation15_spill] sm:$0xff] %v10572_v46  ;;  %v4306_v29 = vmul.f32 0.5, %v4176_v60  ;;  %v4445_v34 = vmax.f32 %v10570_v61, %v10572_v46  ;;  %v10576_v54 = vadd.f32 %v4305_v4, %v3435_v37  ;;  %v3439_v4 = vld [vmem:[#allocation5 + $0x310] sm:$0xff]  ;;  %v3440_v37 = vld [vmem:[#allocation5 + $0x318] sm:$0xff]  ;;  %v3449_v46 = vld [vmem:[#allocation5 + $0x360] sm:$0xff] }
 0xe12   :  { %v4180_v40 = vpop.f32.mrf.mxu1  ;;  %v3467_v61 = vld [vmem:[#allocation5 + $0x3f0] sm:$0xff] }
 0xe13   :  { %11661 = vst [vmem:[#allocation18_spill] sm:$0xff] %v10576_v54  ;;  %v10578_v57 = vadd.f32 %v4306_v29, %v3436_v62  ;;  %v4307_v35 = vmul.f32 0.5, %v4180_v40  ;;  %4446 = vmax.xlane.f32.xlu1 %v4445_v34 }
 0xe14   :  { %v4182_v30 = vpop.f32.mrf.mxu1 }
 0xe15   :  { %11662 = vst [vmem:[#allocation17_spill] sm:$0xff] %v10578_v57  ;;  %v4308_v55 = vmul.f32 0.5, %v4182_v30  ;;  %v4448_v48 = vmax.f32 %v10576_v54, %v10578_v57  ;;  %v10582_v13 = vadd.f32 %v4307_v35, %v3437_v56  ;;  %v3441_v35 = vld [vmem:[#allocation5 + $0x320] sm:$0xff]  ;;  %v3442_v56 = vld [vmem:[#allocation5 + $0x328] sm:$0xff] }
 0xe16   :  { %v4186_v26 = vpop.f32.mrf.mxu1 }
 0xe17   :  { %11663 = vst [vmem:[#allocation20_spill] sm:$0xff] %v10582_v13  ;;  %v10584_v60 = vadd.f32 %v4308_v55, %v3438_v19  ;;  %v4309_v45 = vmul.f32 0.5, %v4186_v26  ;;  %4449 = vmax.xlane.f32.xlu1 %v4448_v48 }
 0xe18   :  { %v4188_v62 = vpop.f32.mrf.mxu1 }
 0xe19   :  { %11664 = vst [vmem:[#allocation19_spill] sm:$0xff] %v10584_v60  ;;  %v4310_v29 = vmul.f32 0.5, %v4188_v62  ;;  %v4451_v34 = vmax.f32 %v10582_v13, %v10584_v60  ;;  %v10588_v10 = vadd.f32 %v4309_v45, %v3439_v4  ;;  %v3443_v45 = vld [vmem:[#allocation5 + $0x330] sm:$0xff]  ;;  %v3444_v4 = vld [vmem:[#allocation5 + $0x338] sm:$0xff] }
 0xe1a   :  { %v4192_v40 = vpop.f32.mrf.mxu1  ;;  %v3468_v60 = vld [vmem:[#allocation5 + $0x3f8] sm:$0xff] }
 0xe1b   :  { %11665 = vst [vmem:[#allocation22_spill] sm:$0xff] %v10588_v10  ;;  %v10590_v30 = vadd.f32 %v4310_v29, %v3440_v37  ;;  %v4311_v21 = vmul.f32 0.5, %v4192_v40  ;;  %4452 = vmax.xlane.f32.xlu0 %v4451_v34 }
 0xe1c   :  { %v4194_v19 = vpop.f32.mrf.mxu1 }
 0xe1d   :  { %11666 = vst [vmem:[#allocation21_spill] sm:$0xff] %v10590_v30  ;;  %v4312_v55 = vmul.f32 0.5, %v4194_v19  ;;  %v4454_v48 = vmax.f32 %v10588_v10, %v10590_v30  ;;  %v10594_v47 = vadd.f32 %v4311_v21, %v3441_v35  ;;  %v3445_v21 = vld [vmem:[#allocation5 + $0x340] sm:$0xff]  ;;  %v3446_v35 = vld [vmem:[#allocation5 + $0x348] sm:$0xff] }
 0xe1e   :  { %v4198_v26 = vpop.f32.mrf.mxu1  ;;  %v3450_v10 = vld [vmem:[#allocation5 + $0x368] sm:$0xff] }
 0xe1f   :  { %11667 = vst [vmem:[#allocation24_spill] sm:$0xff] %v10594_v47  ;;  %v10596_v62 = vadd.f32 %v4312_v55, %v3442_v56  ;;  %v4313_v17 = vmul.f32 0.5, %v4198_v26  ;;  %4455 = vmax.xlane.f32.xlu1 %v4454_v48 }
 0xe20   :  { %v4200_v37 = vpop.f32.mrf.mxu1 }
 0xe21   :  { %11668 = vst [vmem:[#allocation23_spill] sm:$0xff] %v10596_v62  ;;  %v4314_v29 = vmul.f32 0.5, %v4200_v37  ;;  %v4457_v34 = vmax.f32 %v10594_v47, %v10596_v62  ;;  %v10600_v58 = vadd.f32 %v4313_v17, %v3443_v45  ;;  %v3447_v62 = vld [vmem:[#allocation5 + $0x350] sm:$0xff] }
 0xe22   :  { %v4204_v40 = vpop.f32.mrf.mxu1 }
 0xe23   :  { %11669 = vst [vmem:[#allocation26_spill] sm:$0xff] %v10600_v58  ;;  %v10602_v19 = vadd.f32 %v4314_v29, %v3444_v4  ;;  %v4315_v15 = vmul.f32 0.5, %v4204_v40  ;;  %4458 = vmax.xlane.f32.xlu0 %v4457_v34 }
 0xe24   :  { %v4206_v56 = vpop.f32.mrf.mxu1 }
 0xe25   :  { %11670 = vst [vmem:[#allocation25_spill] sm:$0xff] %v10602_v19  ;;  %v4316_v55 = vmul.f32 0.5, %v4206_v56  ;;  %v4460_v48 = vmax.f32 %v10600_v58, %v10602_v19  ;;  %v10606_v7 = vadd.f32 %v4315_v15, %v3445_v21  ;;  %v3448_v58 = vld [vmem:[#allocation5 + $0x358] sm:$0xff] }
 0xe26   :  { %v4210_v26 = vpop.f32.mrf.mxu1 }
 0xe27   :  { %11671 = vst [vmem:[#allocation28_spill] sm:$0xff] %v10606_v7  ;;  %v10608_v37 = vadd.f32 %v4316_v55, %v3446_v35  ;;  %4461 = vmax.xlane.f32.xlu1 %v4460_v48  ;;  %v3746_v48 = vmul.f32 %v11655_v51, %v9984_v20  ;;  %v4317_v51 = vmul.f32 0.5, %v4210_v26 }
 0xe28   :  { %v4212_v24 = vpop.f32.mrf.mxu1 }
 0xe29   :  { %11672 = vst [vmem:[#allocation27_spill] sm:$0xff] %v10608_v37  ;;  %v4463_v17 = vmax.f32 %v10606_v7, %v10608_v37  ;;  %v4318_v19 = vmul.f32 0.5, %v4212_v24  ;;  %v10638_v13 = vadd.f32 %v4317_v51, %v3447_v62  ;;  %v3451_v62 = vld [vmem:[#allocation5 + $0x370] sm:$0xff] }
 0xe2a   :  { %v4216_v45 = vpop.f32.mrf.mxu1 }
 0xe2b   :  { %4464 = vmax.xlane.f32.xlu0 %v4463_v17  ;;  %v10636_v47 = vadd.f32 %v4318_v19, %v3448_v58  ;;  %v4319_v57 = vmul.f32 0.5, %v4216_v45  ;;  %v3452_v58 = vld [vmem:[#allocation5 + $0x378] sm:$0xff] }
 0xe2c   :  { %v4218_v4 = vpop.f32.mrf.mxu1 }
 0xe2d   :  { %v4466_v26 = vmax.f32 %v10638_v13, %v10636_v47  ;;  %v10646_v19 = vadd.f32 %v4319_v57, %v3449_v46  ;;  %v3453_v46 = vld [vmem:[#allocation5 + $0x380] sm:$0xff]  ;;  %v3456_v57 = vld [vmem:[#allocation5 + $0x398] sm:$0xff] }
 0xe2e   :  { %v4222_v29 = vpop.f32.mrf.mxu1 }
 0xe30   :  { %v4224_v34 = vpop.f32.mrf.mxu1 }
 0xe31   :  { %v4322_v49 = vmul.f32 0.5, %v4224_v34 }
 0xe32   :  { %v4228_v40 = vpop.f32.mrf.mxu1 }
 0xe33   :  { %v10650_v45 = vadd.f32 %v4322_v49, %v3452_v58  ;;  %v4323_v51 = vmul.f32 0.5, %v4228_v40 }
 0xe34   :  { %v4230_v56 = vpop.f32.mrf.mxu1 }
 0xe36   :  { %v4234_v39 = vpop.f32.mrf.mxu1 }
 0xe38   :  { %4949 = vrot.lane.b32.xlu1 %v3747_v53, %s8177_s23  ;;  %v4236_v15 = vpop.f32.mrf.mxu1 }
 0xe3a   :  { %v10615_v21 = vpop.f32.mrf.mxu1 }
 0xe3c   :  { %v4242_v35 = vpop.f32.mrf.mxu1 }
 0xe3e   :  { %v10617_v55 = vpop.f32.mrf.mxu1 }
 0xe40   :  { %v10621_v17 = vpop.f32.mrf.mxu1 }
 0xe41   :  { %4947 = vrot.lane.b32.xlu0 %v3746_v48, %s8177_s23  ;;  %v4320_v48 = vmul.f32 0.5, %v4218_v4  ;;  %v4321_v4 = vmul.f32 0.5, %v4222_v29  ;;  %v10662_v29 = vadd.f32 %v4323_v51, %v3453_v46  ;;  %v3457_v46 = vld [vmem:[#allocation5 + $0x3a0] sm:$0xff] }
 0xe42   :  { %v10624_v25 = vpop.f32.mrf.mxu1 }
 0xe43   :  { %v10640_v2 = vadd.f32 %v4320_v48, %v3450_v10  ;;  %v10656_v34 = vadd.f32 %v4321_v4, %v3451_v62  ;;  %v4328_v62 = vmul.f32 0.5, %v4242_v35  ;;  %v4330_v35 = vmul.f32 0.5, %v10621_v17 }
 0xe44   :  { %v10626_v11 = vpop.f32.mrf.mxu1 }
 0xe45   :  { %v4469_v10 = vmax.f32 %v10646_v19, %v10640_v2  ;;  %v4472_v49 = vmax.f32 %v10656_v34, %v10650_v45 }
 0xe46   :  { %v10628_v59 = vpop.f32.mrf.mxu1 }
 0xe48   :  { %v10630_v53 = vpop.f32.mrf.mxu1 }
 0xe4a   :  { %v10632_v31 = vpop.f32.mrf.mxu1 }
 0xe4c   :  { %v10634_v37 = vpop.f32.mrf.mxu1 }
 0xe4e   :  { %v4270_v7 = vpop.f32.mrf.mxu1 }
 0xe4f   :  { %v4337_v54 = vmul.f32 0.5, %v4270_v7  ;;  %v4324_v7 = vmul.f32 0.5, %v4230_v56  ;;  %v4325_v56 = vmul.f32 0.5, %v4234_v39  ;;  %v4327_v39 = vmul.f32 0.5, %v10615_v21 }
 0xe50   :  { %v4272_v20 = vpop.f32.mrf.mxu1 }
 0xe51   :  { %v4338_v30 = vmul.f32 0.5, %v4272_v20  ;;  %v10648_v20 = vadd.f32 %v4337_v54, %v3467_v61  ;;  %v4326_v54 = vmul.f32 0.5, %v4236_v15  ;;  %v10680_v21 = vadd.f32 %v4327_v39, %v3457_v46 }
 0xe52   :  { %v4331_v39 = vmul.f32 0.5, %v10624_v25 }
 0xe53   :  { %v10642_v24 = vadd.f32 %v4338_v30, %v3468_v60  ;;  %v3454_v30 = vld [vmem:[#allocation5 + $0x388] sm:$0xff]  ;;  %v10666_v4 = vadd.f32 %v4326_v54, %v3456_v57  ;;  %v3460_v57 = vld [vmem:[#allocation5 + $0x3b8] sm:$0xff] }
 0xe54   :  { %v10658_v61 = vadd.f32 %v4324_v7, %v3454_v30  ;;  %v3458_v7 = vld [vmem:[#allocation5 + $0x3a8] sm:$0xff]  ;;  %v10685_v17 = vadd.f32 %v4330_v35, %v3460_v57  ;;  %v3464_v35 = vld [vmem:[#allocation5 + $0x3d8] sm:$0xff] }
 0xe55   :  { %v4496_v60 = vmax.f32 %v10648_v20, %v10642_v24  ;;  %v10675_v54 = vadd.f32 %v4328_v62, %v3458_v7  ;;  %v4332_v62 = vmul.f32 0.5, %v10626_v11  ;;  %v3462_v7 = vld [vmem:[#allocation5 + $0x3c8] sm:$0xff] }
 0xe56   :  { %v4475_v15 = vmax.f32 %v10662_v29, %v10658_v61 }
 0xe57   :  { %v10695_v11 = vadd.f32 %v4332_v62, %v3462_v7 }
 0xe5c   :  { %4467 = vmax.xlane.f32.xlu1 %v4466_v26  ;;  %v3455_v26 = vld [vmem:[#allocation5 + $0x390] sm:$0xff] }
 0xe5d   :  { %v10670_v30 = vadd.f32 %v4325_v56, %v3455_v26  ;;  %v4329_v26 = vmul.f32 0.5, %v10617_v55 }
 0xe60   :  { %4470 = vmax.xlane.f32.xlu0 %v4469_v10  ;;  %4497 = vmax.xlane.f32.xlu1 %v4496_v60 }
 0xe64   :  { %v4405_v48 = vpop.xlane.xlu0 %4404  ;;  %4473 = vmax.xlane.f32.xlu0 %v4472_v49  ;;  %v4478_v49 = vmax.f32 %v10670_v30, %v10666_v4 }
 0xe65   :  { %v4499_v58 = vsub.f32 %v10486_v44, %v4405_v48  ;;  %v4500_v40 = vsub.f32 %v10488_v22, %v4405_v48 }
 0xe67   :  { %v4563_v10 = vmul.f32 1.442695, %v4499_v58  ;;  %v4565_v60 = vmul.f32 1.442695, %v4500_v40 }
 0xe68   :  { %v4408_v51 = vpop.xlane.xlu1 %4407  ;;  %4476 = vmax.xlane.f32.xlu0 %v4475_v15  ;;  %v4481_v15 = vmax.f32 %v10680_v21, %v10675_v54 }
 0xe69   :  { %7876 = vpow2.f32 %v4563_v10  ;;  %v4501_v44 = vsub.f32 %v10492_v18, %v4408_v51  ;;  %v4502_v22 = vsub.f32 %v10494_v42, %v4408_v51  ;;  %v3459_v18 = vld [vmem:[#allocation5 + $0x3b0] sm:$0xff] }
 0xe6a   :  { %7878 = vpow2.f32 %v4565_v60  ;;  %v10690_v55 = vadd.f32 %v4329_v26, %v3459_v18  ;;  %v4336_v18 = vmul.f32 0.5, %v10634_v37 }
 0xe6b   :  { %v4567_v56 = vmul.f32 1.442695, %v4501_v44  ;;  %v4569_v48 = vmul.f32 1.442695, %v4502_v22  ;;  %v4334_v44 = vmul.f32 0.5, %v10630_v53 }
 0xe6c   :  { %v4411_v58 = vpop.xlane.xlu0 %4410  ;;  %4479 = vmax.xlane.f32.xlu0 %v4478_v49  ;;  %v4484_v22 = vmax.f32 %v10690_v55, %v10685_v17 }
 0xe6d   :  { %7880 = vpow2.f32 %v4567_v56  ;;  %v4503_v42 = vsub.f32 %v10498_v28, %v4411_v58  ;;  %v4504_v40 = vsub.f32 %v10500_v27, %v4411_v58  ;;  %v3461_v28 = vld [vmem:[#allocation5 + $0x3c0] sm:$0xff]  ;;  %v4333_v56 = vmul.f32 0.5, %v10628_v59  ;;  %v3466_v59 = vld [vmem:[#allocation5 + $0x3e8] sm:$0xff] }
 0xe6e   :  { %7882 = vpow2.f32 %v4569_v48  ;;  %v10700_v25 = vadd.f32 %v4331_v39, %v3461_v28  ;;  %v10707_v58 = vadd.f32 %v4334_v44, %v3464_v35  ;;  %v10723_v28 = vadd.f32 %v4336_v18, %v3466_v59 }
 0xe6f   :  { %v4571_v10 = vmul.f32 1.442695, %v4503_v42  ;;  %v4573_v60 = vmul.f32 1.442695, %v4504_v40 }
 0xe70   :  { %v4414_v51 = vpop.xlane.xlu0 %4413  ;;  %4482 = vmax.xlane.f32.xlu0 %v4481_v15  ;;  %v4487_v42 = vmax.f32 %v10700_v25, %v10695_v11 }
 0xe71   :  { %7884 = vpow2.f32 %v4571_v10  ;;  %v4505_v27 = vsub.f32 %v10504_v5, %v4414_v51  ;;  %v4506_v46 = vsub.f32 %v10506_v32, %v4414_v51  ;;  %v3463_v5 = vld [vmem:[#allocation5 + $0x3d0] sm:$0xff] }
 0xe72   :  { %7886 = vpow2.f32 %v4573_v60  ;;  %v10714_v7 = vadd.f32 %v4333_v56, %v3463_v5  ;;  %v3465_v60 = vld [vmem:[#allocation5 + $0x3e0] sm:$0xff] }
 0xe73   :  { %v4575_v49 = vmul.f32 1.442695, %v4505_v27  ;;  %v4577_v57 = vmul.f32 1.442695, %v4506_v46 }
 0xe74   :  { %v4417_v48 = vpop.xlane.xlu1 %4416  ;;  %4485 = vmax.xlane.f32.xlu0 %v4484_v22 }
 0xe75   :  { %7888 = vpow2.f32 %v4575_v49  ;;  %v4507_v32 = vsub.f32 %v10510_v50, %v4417_v48  ;;  %v4508_v26 = vsub.f32 %v10512_v1, %v4417_v48  ;;  %v4335_v50 = vmul.f32 0.5, %v10632_v31 }
 0xe76   :  { %v10705_v53 = vpop.eup %7876  ;;  %7890 = vpow2.f32 %v4577_v57  ;;  %v4490_v31 = vmax.f32 %v10714_v7, %v10707_v58 }
 0xe77   :  { %v10712_v40 = vpop.eup %7878  ;;  %v4579_v62 = vmul.f32 1.442695, %v4507_v32  ;;  %v4581_v15 = vmul.f32 1.442695, %v4508_v26  ;;  %v10729_v22 = vadd.f32 %v4335_v50, %v3465_v60 }
 0xe78   :  { %v4420_v1 = vpop.xlane.xlu0 %4419  ;;  %4488 = vmax.xlane.f32.xlu0 %v4487_v42  ;;  %v4691_v10 = vadd.f32 %v10712_v40, %v10705_v53 }
 0xe79   :  { %7892 = vpow2.f32 %v4579_v62  ;;  %v4509_v37 = vsub.f32 %v10516_v12, %v4420_v1  ;;  %v4510_v39 = vsub.f32 %v10518_v14, %v4420_v1  ;;  %v4493_v56 = vmax.f32 %v10729_v22, %v10723_v28 }
 0xe7a   :  { %v10721_v51 = vpop.eup %7880  ;;  %7894 = vpow2.f32 %v4581_v15  ;;  %4692 = vadd.xlane.f32.xlu1 %v4691_v10 }
 0xe7b   :  { %v10727_v27 = vpop.eup %7882  ;;  %v4583_v46 = vmul.f32 1.442695, %v4509_v37  ;;  %v4585_v44 = vmul.f32 1.442695, %v4510_v39 }
 0xe7c   :  { %v4423_v35 = vpop.xlane.xlu1 %4422  ;;  %4491 = vmax.xlane.f32.xlu0 %v4490_v31  ;;  %v4694_v12 = vadd.f32 %v10727_v27, %v10721_v51 }
 0xe7d   :  { %7896 = vpow2.f32 %v4583_v46  ;;  %v4511_v14 = vsub.f32 %v10522_v3, %v4423_v35  ;;  %v4512_v49 = vsub.f32 %v10524_v41, %v4423_v35 }
 0xe7e   :  { %v10735_v57 = vpop.eup %7884  ;;  %7898 = vpow2.f32 %v4585_v44  ;;  %4695 = vadd.xlane.f32.xlu1 %v4694_v12 }
 0xe7f   :  { %v10739_v48 = vpop.eup %7886  ;;  %v4587_v5 = vmul.f32 1.442695, %v4511_v14  ;;  %v4589_v32 = vmul.f32 1.442695, %v4512_v49 }
 0xe80   :  { %v4426_v26 = vpop.xlane.xlu0 %4425  ;;  %4494 = vmax.xlane.f32.xlu0 %v4493_v56  ;;  %v4697_v18 = vadd.f32 %v10739_v48, %v10735_v57 }
 0xe81   :  { %7900 = vpow2.f32 %v4587_v5  ;;  %v4513_v3 = vsub.f32 %v10528_v9, %v4426_v26  ;;  %v4514_v41 = vsub.f32 %v10530_v6, %v4426_v26 }
 0xe82   :  { %v10745_v42 = vpop.eup %7888  ;;  %7902 = vpow2.f32 %v4589_v32  ;;  %4698 = vadd.xlane.f32.xlu1 %v4697_v18 }
 0xe83   :  { %v10747_v59 = vpop.eup %7890  ;;  %v4591_v62 = vmul.f32 1.442695, %v4513_v3  ;;  %v4593_v15 = vmul.f32 1.442695, %v4514_v41 }
 0xe84   :  { %v4429_v50 = vpop.xlane.xlu1 %4428  ;;  %v4700_v1 = vadd.f32 %v10747_v59, %v10745_v42 }
 0xe85   :  { %7904 = vpow2.f32 %v4591_v62  ;;  %v4515_v10 = vsub.f32 %v10534_v63, %v4429_v50  ;;  %v4516_v60 = vsub.f32 %v10536_v23, %v4429_v50 }
 0xe86   :  { %v10753_v9 = vpop.eup %7892  ;;  %7906 = vpow2.f32 %v4593_v15  ;;  %4701 = vadd.xlane.f32.xlu1 %v4700_v1 }
 0xe87   :  { %v10755_v6 = vpop.eup %7894  ;;  %v4595_v37 = vmul.f32 1.442695, %v4515_v10  ;;  %v4597_v39 = vmul.f32 1.442695, %v4516_v60 }
 0xe88   :  { %v4432_v31 = vpop.xlane.xlu0 %4431  ;;  %v4703_v46 = vadd.f32 %v10755_v6, %v10753_v9 }
 0xe89   :  { %7908 = vpow2.f32 %v4595_v37  ;;  %v4517_v44 = vsub.f32 %v10540_v33, %v4432_v31  ;;  %v4518_v35 = vsub.f32 %v10542_v43, %v4432_v31 }
 0xe8a   :  { %v10761_v63 = vpop.eup %7896  ;;  %7910 = vpow2.f32 %v4597_v39  ;;  %4704 = vadd.xlane.f32.xlu1 %v4703_v46 }
 0xe8b   :  { %v10763_v23 = vpop.eup %7898  ;;  %v4599_v12 = vmul.f32 1.442695, %v4517_v44  ;;  %v4601_v14 = vmul.f32 1.442695, %v4518_v35 }
 0xe8c   :  { %v4435_v49 = vpop.xlane.xlu1 %4434  ;;  %v4706_v56 = vadd.f32 %v10763_v23, %v10761_v63 }
 0xe8d   :  { %7912 = vpow2.f32 %v4599_v12  ;;  %v4519_v5 = vsub.f32 %v10546_v16, %v4435_v49  ;;  %v4520_v32 = vsub.f32 %v10548_v0, %v4435_v49  ;;  %v11673_v12 = vld [vmem:[#allocation14_spill] sm:$0xff]  ;;  %v11674_v49 = vld [vmem:[#allocation13_spill] sm:$0xff] }
 0xe8e   :  { %v10769_v33 = vpop.eup %7900  ;;  %7914 = vpow2.f32 %v4601_v14  ;;  %4707 = vadd.xlane.f32.xlu1 %v4706_v56 }
 0xe8f   :  { %v10771_v43 = vpop.eup %7902  ;;  %v4603_v26 = vmul.f32 1.442695, %v4519_v5  ;;  %v4605_v18 = vmul.f32 1.442695, %v4520_v32 }
 0xe90   :  { %v4438_v3 = vpop.xlane.xlu0 %4437  ;;  %v4709_v41 = vadd.f32 %v10771_v43, %v10769_v33 }
 0xe91   :  { %7916 = vpow2.f32 %v4603_v26  ;;  %v4521_v62 = vsub.f32 %v10552_v52, %v4438_v3  ;;  %v4522_v15 = vsub.f32 %v10554_v36, %v4438_v3  ;;  %v11675_v3 = vld [vmem:[#allocation16_spill] sm:$0xff] }
 0xe92   :  { %v10777_v16 = vpop.eup %7904  ;;  %7918 = vpow2.f32 %v4605_v18  ;;  %4710 = vadd.xlane.f32.xlu1 %v4709_v41 }
 0xe93   :  { %v10779_v0 = vpop.eup %7906  ;;  %v4607_v50 = vmul.f32 1.442695, %v4521_v62  ;;  %v4609_v1 = vmul.f32 1.442695, %v4522_v15  ;;  %v11676_v62 = vld [vmem:[#allocation15_spill] sm:$0xff] }
 0xe94   :  { %v4441_v10 = vpop.xlane.xlu1 %4440  ;;  %v4712_v60 = vadd.f32 %v10779_v0, %v10777_v16 }
 0xe95   :  { %7920 = vpow2.f32 %v4607_v50  ;;  %v4523_v37 = vsub.f32 %v10558_v8, %v4441_v10  ;;  %v4524_v39 = vsub.f32 %v10560_v38, %v4441_v10 }
 0xe96   :  { %v10785_v52 = vpop.eup %7908  ;;  %7922 = vpow2.f32 %v4609_v1  ;;  %4713 = vadd.xlane.f32.xlu1 %v4712_v60 }
 0xe97   :  { %v10787_v36 = vpop.eup %7910  ;;  %v4611_v31 = vmul.f32 1.442695, %v4523_v37  ;;  %v4613_v46 = vmul.f32 1.442695, %v4524_v39 }
 0xe98   :  { %v4444_v44 = vpop.xlane.xlu0 %4443  ;;  %v4715_v35 = vadd.f32 %v10787_v36, %v10785_v52 }
 0xe99   :  { %7924 = vpow2.f32 %v4611_v31  ;;  %v4525_v14 = vsub.f32 %v11673_v12, %v4444_v44  ;;  %v4526_v56 = vsub.f32 %v11674_v49, %v4444_v44  ;;  %v11677_v31 = vld [vmem:[#allocation18_spill] sm:$0xff]  ;;  %v11678_v44 = vld [vmem:[#allocation17_spill] sm:$0xff] }
 0xe9a   :  { %v10793_v8 = vpop.eup %7912  ;;  %7926 = vpow2.f32 %v4613_v46  ;;  %4716 = vadd.xlane.f32.xlu1 %v4715_v35 }
 0xe9b   :  { %v10795_v38 = vpop.eup %7914  ;;  %v4615_v5 = vmul.f32 1.442695, %v4525_v14  ;;  %v4617_v32 = vmul.f32 1.442695, %v4526_v56 }
 0xe9c   :  { %v4447_v26 = vpop.xlane.xlu1 %4446  ;;  %v4718_v18 = vadd.f32 %v10795_v38, %v10793_v8 }
 0xe9d   :  { %7928 = vpow2.f32 %v4615_v5  ;;  %v4527_v41 = vsub.f32 %v11675_v3, %v4447_v26  ;;  %v4528_v15 = vsub.f32 %v11676_v62, %v4447_v26  ;;  %v11679_v26 = vld [vmem:[#allocation20_spill] sm:$0xff]  ;;  %v11680_v3 = vld [vmem:[#allocation19_spill] sm:$0xff] }
 0xe9e   :  { %v10801_v50 = vpop.eup %7916  ;;  %7930 = vpow2.f32 %v4617_v32  ;;  %4719 = vadd.xlane.f32.xlu1 %v4718_v18 }
 0xe9f   :  { %v10803_v1 = vpop.eup %7918  ;;  %v4619_v10 = vmul.f32 1.442695, %v4527_v41  ;;  %v4621_v60 = vmul.f32 1.442695, %v4528_v15 }
 0xea0   :  { %v4450_v37 = vpop.xlane.xlu1 %4449  ;;  %v4721_v39 = vadd.f32 %v10803_v1, %v10801_v50 }
 0xea1   :  { %7932 = vpow2.f32 %v4619_v10  ;;  %v4529_v46 = vsub.f32 %v11677_v31, %v4450_v37  ;;  %v4530_v35 = vsub.f32 %v11678_v44, %v4450_v37  ;;  %v11682_v31 = vld [vmem:[#allocation22_spill] sm:$0xff]  ;;  %v11683_v44 = vld [vmem:[#allocation21_spill] sm:$0xff] }
 0xea2   :  { %v10809_v12 = vpop.eup %7920  ;;  %7934 = vpow2.f32 %v4621_v60  ;;  %4722 = vadd.xlane.f32.xlu1 %v4721_v39 }
 0xea3   :  { %v10811_v14 = vpop.eup %7922  ;;  %v4623_v49 = vmul.f32 1.442695, %v4529_v46  ;;  %v4625_v56 = vmul.f32 1.442695, %v4530_v35 }
 0xea4   :  { %v4453_v5 = vpop.xlane.xlu0 %4452  ;;  %v4724_v32 = vadd.f32 %v10811_v14, %v10809_v12 }
 0xea5   :  { %7936 = vpow2.f32 %v4623_v49  ;;  %v4531_v18 = vsub.f32 %v11679_v26, %v4453_v5  ;;  %v4532_v41 = vsub.f32 %v11680_v3, %v4453_v5  ;;  %v11686_v3 = vld [vmem:[#allocation24_spill] sm:$0xff] }
 0xea6   :  { %v10817_v62 = vpop.eup %7924  ;;  %7938 = vpow2.f32 %v4625_v56  ;;  %4725 = vadd.xlane.f32.xlu1 %v4724_v32 }
 0xea7   :  { %11681 = vst [vmem:[#allocation11_spill] sm:$0xff] %v10817_v62  ;;  %v10819_v15 = vpop.eup %7926  ;;  %v4627_v10 = vmul.f32 1.442695, %v4531_v18  ;;  %v4629_v60 = vmul.f32 1.442695, %v4532_v41 }
 0xea8   :  { %v4456_v37 = vpop.xlane.xlu1 %4455  ;;  %v4727_v39 = vadd.f32 %v10819_v15, %v10817_v62 }
 0xea9   :  { %7940 = vpow2.f32 %v4627_v10  ;;  %v4533_v46 = vsub.f32 %v11682_v31, %v4456_v37  ;;  %v4534_v35 = vsub.f32 %v11683_v44, %v4456_v37  ;;  %v11687_v10 = vld [vmem:[#allocation23_spill] sm:$0xff] }
 0xeaa   :  { %v10825_v49 = vpop.eup %7928  ;;  %7942 = vpow2.f32 %v4629_v60  ;;  %4728 = vadd.xlane.f32.xlu1 %v4727_v39 }
 0xeab   :  { %11684 = vst [vmem:[#allocation31_spill] sm:$0xff] %v10825_v49  ;;  %v10827_v5 = vpop.eup %7930  ;;  %v4631_v56 = vmul.f32 1.442695, %v4533_v46  ;;  %v4633_v32 = vmul.f32 1.442695, %v4534_v35  ;;  %v11690_v35 = vld [vmem:[#allocation26_spill] sm:$0xff] }
 0xeac   :  { %11685 = vst [vmem:[#allocation30_spill] sm:$0xff] %v10827_v5  ;;  %v4459_v26 = vpop.xlane.xlu0 %4458  ;;  %v4730_v18 = vadd.f32 %v10827_v5, %v10825_v49 }
 0xead   :  { %7944 = vpow2.f32 %v4631_v56  ;;  %v4535_v41 = vsub.f32 %v11686_v3, %v4459_v26  ;;  %v4536_v62 = vsub.f32 %v11687_v10, %v4459_v26  ;;  %v11691_v56 = vld [vmem:[#allocation25_spill] sm:$0xff] }
 0xeae   :  { %v10833_v31 = vpop.eup %7932  ;;  %7946 = vpow2.f32 %v4633_v32  ;;  %4731 = vadd.xlane.f32.xlu0 %v4730_v18 }
 0xeaf   :  { %11688 = vst [vmem:[#allocation32_spill] sm:$0xff] %v10833_v31  ;;  %v10835_v37 = vpop.eup %7934  ;;  %v4635_v60 = vmul.f32 1.442695, %v4535_v41  ;;  %v4637_v39 = vmul.f32 1.442695, %v4536_v62 }
 0xeb0   :  { %11689 = vst [vmem:[#allocation33_spill] sm:$0xff] %v10835_v37  ;;  %v4462_v44 = vpop.xlane.xlu1 %4461  ;;  %v4733_v46 = vadd.f32 %v10835_v37, %v10833_v31  ;;  %v11693_v31 = vld [vmem:[#allocation28_spill] sm:$0xff]  ;;  %v11694_v37 = vld [vmem:[#allocation27_spill] sm:$0xff] }
 0xeb1   :  { %7948 = vpow2.f32 %v4635_v60  ;;  %v4537_v49 = vsub.f32 %v11690_v35, %v4462_v44  ;;  %v4538_v5 = vsub.f32 %v11691_v56, %v4462_v44 }
 0xeb2   :  { %v10841_v3 = vpop.eup %7936  ;;  %7950 = vpow2.f32 %v4637_v39  ;;  %4734 = vadd.xlane.f32.xlu1 %v4733_v46  ;;  %v11695_v39 = vmov 0.0  }
 0xeb3   :  { %11692 = vst [vmem:[#allocation12_spill] sm:$0xff] %v10841_v3  ;;  %v10843_v26 = vpop.eup %7938  ;;  %v4639_v32 = vmul.f32 1.442695, %v4537_v49  ;;  %v4641_v18 = vmul.f32 1.442695, %v4538_v5 }
 0xeb4   :  { %v4950_v10 = vpop.permute.xlu1 %4949  ;;  %v4465_v41 = vpop.xlane.xlu0 %4464  ;;  %v4736_v62 = vadd.f32 %v10843_v26, %v10841_v3 }
 0xeb5   :  { %7952 = vpow2.f32 %v4639_v32  ;;  %v4539_v60 = vsub.f32 %v11693_v31, %v4465_v41  ;;  %v4540_v35 = vsub.f32 %v11694_v37, %v4465_v41  ;;  %5072 = vmatpush2.msra.mxu0 %v4950_v10 }
 0xeb6   :  { %v10849_v44 = vpop.eup %7940  ;;  %7954 = vpow2.f32 %v4641_v18  ;;  %4737 = vadd.xlane.f32.xlu0 %v4736_v62  ;;  %5073 = vmatprep.subr.mxu0 %v11695_v39 }
 0xeb7   :  { %v10852_v46 = vpop.eup %7942  ;;  %v4643_v49 = vmul.f32 1.442695, %v4539_v60  ;;  %v4645_v5 = vmul.f32 1.442695, %v4540_v35 }
 0xeb8   :  { %v4948_v56 = vpop.permute.xlu0 %4947  ;;  %v4739_v3 = vadd.f32 %v10852_v46, %v10849_v44 }
 0xeb9   :  { %7956 = vpow2.f32 %v4643_v49  ;;  %5074 = vmatpush2.msra.mxu0 %v4948_v56 }
 0xeba   :  { %v10856_v31 = vpop.eup %7944  ;;  %7958 = vpow2.f32 %v4645_v5  ;;  %4740 = vadd.xlane.f32.xlu1 %v4739_v3 }
 0xebb   :  { %11696 = vst [vmem:[#allocation14_spill] sm:$0xff] %v10856_v31  ;;  %v10858_v37 = vpop.eup %7946 }
 0xebc   :  { %11697 = vst [vmem:[#allocation13_spill] sm:$0xff] %v10858_v37  ;;  %v4742_v32 = vadd.f32 %v10858_v37, %v10856_v31 }
 0xebe   :  { %v10862_v18 = vpop.eup %7948  ;;  %4743 = vadd.xlane.f32.xlu0 %v4742_v32 }
 0xebf   :  { %11698 = vst [vmem:[#allocation16_spill] sm:$0xff] %v10862_v18  ;;  %v10864_v10 = vpop.eup %7950 }
 0xec0   :  { %11699 = vst [vmem:[#allocation15_spill] sm:$0xff] %v10864_v10  ;;  %v4745_v41 = vadd.f32 %v10864_v10, %v10862_v18 }
 0xec2   :  { %v10868_v62 = vpop.eup %7952  ;;  %4746 = vadd.xlane.f32.xlu1 %v4745_v41 }
 0xec3   :  { %11700 = vst [vmem:[#allocation18_spill] sm:$0xff] %v10868_v62  ;;  %v10870_v60 = vpop.eup %7954 }
 0xec4   :  { %11701 = vst [vmem:[#allocation17_spill] sm:$0xff] %v10870_v60  ;;  %v4748_v3 = vadd.f32 %v10870_v60, %v10868_v62 }
 0xec6   :  { %v10874_v35 = vpop.eup %7956  ;;  %4749 = vadd.xlane.f32.xlu0 %v4748_v3 }
 0xec7   :  { %11702 = vst [vmem:[#allocation20_spill] sm:$0xff] %v10874_v35  ;;  %v10876_v39 = vpop.eup %7958 }
 0xec8   :  { %v4751_v49 = vadd.f32 %v10876_v39, %v10874_v35 }
 0xeca   :  { %4752 = vadd.xlane.f32.xlu1 %v4751_v49 }
 0xee5   :  { %v4468_v5 = vpop.xlane.xlu1 %4467 }
 0xee6   :  { %v4541_v56 = vsub.f32 %v10638_v13, %v4468_v5  ;;  %v4542_v32 = vsub.f32 %v10636_v47, %v4468_v5 }
 0xee8   :  { %v4647_v41 = vmul.f32 1.442695, %v4541_v56  ;;  %v4649_v18 = vmul.f32 1.442695, %v4542_v32 }
 0xee9   :  { %v4471_v10 = vpop.xlane.xlu0 %4470 }
 0xeea   :  { %7960 = vpow2.f32 %v4647_v41  ;;  %v4543_v62 = vsub.f32 %v10646_v19, %v4471_v10  ;;  %v4544_v60 = vsub.f32 %v10640_v2, %v4471_v10 }
 0xeeb   :  { %7962 = vpow2.f32 %v4649_v18 }
 0xeec   :  { %v4651_v3 = vmul.f32 1.442695, %v4543_v62  ;;  %v4653_v31 = vmul.f32 1.442695, %v4544_v60 }
 0xeed   :  { %v4474_v37 = vpop.xlane.xlu0 %4473 }
 0xeee   :  { %7964 = vpow2.f32 %v4651_v3  ;;  %v4545_v49 = vsub.f32 %v10656_v34, %v4474_v37  ;;  %v4546_v35 = vsub.f32 %v10650_v45, %v4474_v37 }
 0xeef   :  { %7966 = vpow2.f32 %v4653_v31 }
 0xef0   :  { %v4655_v13 = vmul.f32 1.442695, %v4545_v49  ;;  %v4657_v47 = vmul.f32 1.442695, %v4546_v35 }
 0xef1   :  { %v4477_v5 = vpop.xlane.xlu0 %4476 }
 0xef2   :  { %7968 = vpow2.f32 %v4655_v13  ;;  %v4547_v56 = vsub.f32 %v10662_v29, %v4477_v5  ;;  %v4548_v19 = vsub.f32 %v10658_v61, %v4477_v5 }
 0xef3   :  { %7970 = vpow2.f32 %v4657_v47  ;;  %v4498_v47 = vpop.xlane.xlu1 %4497 }
 0xef4   :  { %v4659_v2 = vmul.f32 1.442695, %v4547_v56  ;;  %v4661_v18 = vmul.f32 1.442695, %v4548_v19 }
 0xef5   :  { %v4480_v10 = vpop.xlane.xlu0 %4479 }
 0xef6   :  { %7972 = vpow2.f32 %v4659_v2  ;;  %v4549_v62 = vsub.f32 %v10670_v30, %v4480_v10  ;;  %v4550_v34 = vsub.f32 %v10666_v4, %v4480_v10 }
 0xef7   :  { %v10890_v60 = vpop.eup %7960  ;;  %7974 = vpow2.f32 %v4661_v18  ;;  %v4561_v18 = vsub.f32 %v10648_v20, %v4498_v47  ;;  %v4562_v20 = vsub.f32 %v10642_v24, %v4498_v47 }
 0xef8   :  { %v10892_v45 = vpop.eup %7962  ;;  %v4663_v31 = vmul.f32 1.442695, %v4549_v62  ;;  %v4665_v37 = vmul.f32 1.442695, %v4550_v34 }
 0xef9   :  { %v4483_v35 = vpop.xlane.xlu0 %4482  ;;  %v4754_v61 = vadd.f32 %v10892_v45, %v10890_v60  ;;  %v4689_v24 = vmul.f32 1.442695, %v4562_v20 }
 0xefa   :  { %7976 = vpow2.f32 %v4663_v31  ;;  %v4551_v29 = vsub.f32 %v10680_v21, %v4483_v35  ;;  %v4552_v32 = vsub.f32 %v10675_v54, %v4483_v35 }
 0xefb   :  { %v10898_v41 = vpop.eup %7964  ;;  %7978 = vpow2.f32 %v4665_v37  ;;  %4755 = vadd.xlane.f32.xlu0 %v4754_v61 }
 0xefc   :  { %v10900_v4 = vpop.eup %7966  ;;  %v4667_v30 = vmul.f32 1.442695, %v4551_v29  ;;  %v4669_v3 = vmul.f32 1.442695, %v4552_v32  ;;  %v4687_v29 = vmul.f32 1.442695, %v4561_v18 }
 0xefd   :  { %v4486_v49 = vpop.xlane.xlu0 %4485  ;;  %v4757_v13 = vadd.f32 %v10900_v4, %v10898_v41 }
 0xefe   :  { %7980 = vpow2.f32 %v4667_v30  ;;  %v4553_v5 = vsub.f32 %v10690_v55, %v4486_v49  ;;  %v4554_v21 = vsub.f32 %v10685_v17, %v4486_v49 }
 0xeff   :  { %v10906_v56 = vpop.eup %7968  ;;  %7982 = vpow2.f32 %v4669_v3  ;;  %4758 = vadd.xlane.f32.xlu1 %v4757_v13 }
 0xf00   :  { %v10908_v54 = vpop.eup %7970  ;;  %v4671_v19 = vmul.f32 1.442695, %v4553_v5  ;;  %v4673_v2 = vmul.f32 1.442695, %v4554_v21 }
 0xf01   :  { %v4489_v10 = vpop.xlane.xlu0 %4488  ;;  %v4760_v62 = vadd.f32 %v10908_v54, %v10906_v56 }
 0xf02   :  { %7984 = vpow2.f32 %v4671_v19  ;;  %v4555_v34 = vsub.f32 %v10700_v25, %v4489_v10  ;;  %v4556_v55 = vsub.f32 %v10695_v11, %v4489_v10 }
 0xf03   :  { %v10915_v17 = vpop.eup %7972  ;;  %7986 = vpow2.f32 %v4673_v2  ;;  %4761 = vadd.xlane.f32.xlu0 %v4760_v62  ;;  %v4693_v31 = vpop.xlane.xlu1 %4692 }
 0xf04   :  { %v10917_v37 = vpop.eup %7974  ;;  %v4675_v35 = vmul.f32 1.442695, %v4555_v34  ;;  %v4677_v61 = vmul.f32 1.442695, %v4556_v55  ;;  %7988 = vrcp.f32 %v4693_v31 }
 0xf05   :  { %v4492_v32 = vpop.xlane.xlu0 %4491  ;;  %v4763_v30 = vadd.f32 %v10917_v37, %v10915_v17 }
 0xf06   :  { %7990 = vpow2.f32 %v4675_v35  ;;  %v4557_v11 = vsub.f32 %v10714_v7, %v4492_v32  ;;  %v4558_v25 = vsub.f32 %v10707_v58, %v4492_v32 }
 0xf07   :  { %v10924_v3 = vpop.eup %7976  ;;  %7992 = vpow2.f32 %v4677_v61  ;;  %4764 = vadd.xlane.f32.xlu1 %v4763_v30  ;;  %v4696_v49 = vpop.xlane.xlu1 %4695 }
 0xf08   :  { %v10926_v13 = vpop.eup %7978  ;;  %v4679_v5 = vmul.f32 1.442695, %v4557_v11  ;;  %v4681_v21 = vmul.f32 1.442695, %v4558_v25  ;;  %7994 = vrcp.f32 %v4696_v49 }
 0xf09   :  { %7996 = vpow2.f32 %v4687_v29  ;;  %v4495_v47 = vpop.xlane.xlu0 %4494  ;;  %v4766_v19 = vadd.f32 %v10926_v13, %v10924_v3 }
 0xf0a   :  { %7998 = vpow2.f32 %v4679_v5  ;;  %v4559_v7 = vsub.f32 %v10729_v22, %v4495_v47  ;;  %v4560_v58 = vsub.f32 %v10723_v28, %v4495_v47 }
 0xf0b   :  { %v10932_v2 = vpop.eup %7980  ;;  %8000 = vpow2.f32 %v4681_v21  ;;  %4767 = vadd.xlane.f32.xlu0 %v4766_v19  ;;  %v4699_v18 = vpop.xlane.xlu1 %4698 }
 0xf0c   :  { %v10934_v10 = vpop.eup %7982  ;;  %v4683_v62 = vmul.f32 1.442695, %v4559_v7  ;;  %v4685_v34 = vmul.f32 1.442695, %v4560_v58  ;;  %8002 = vrcp.f32 %v4699_v18 }
 0xf0d   :  { %8004 = vpow2.f32 %v4689_v24  ;;  %v4769_v55 = vadd.f32 %v10934_v10, %v10932_v2 }
 0xf0e   :  { %8006 = vpow2.f32 %v4683_v62 }
 0xf0f   :  { %v10938_v31 = vpop.eup %7984  ;;  %8008 = vpow2.f32 %v4685_v34  ;;  %4770 = vadd.xlane.f32.xlu1 %v4769_v55  ;;  %v4702_v28 = vpop.xlane.xlu1 %4701 }
 0xf10   :  { %v10940_v22 = vpop.eup %7986  ;;  %8010 = vrcp.f32 %v4702_v28 }
 0xf11   :  { %v7989_v35 = vpop.eup %7988  ;;  %v4772_v61 = vadd.f32 %v10940_v22, %v10938_v31 }
 0xf12   :  { %v4819_v20 = vmul.f32 %v7989_v35, %v10705_v53  ;;  %v4820_v29 = vmul.f32 %v7989_v35, %v10712_v40 }
 0xf13   :  { %v10946_v32 = vpop.eup %7990  ;;  %4773 = vadd.xlane.f32.xlu0 %v4772_v61  ;;  %v4705_v30 = vpop.xlane.xlu1 %4704 }
 0xf14   :  { %v10948_v11 = vpop.eup %7992  ;;  %8012 = vrcp.f32 %v4705_v30  ;;  %5075 = vmatprep.mubr.f32.mxu0 %v4820_v29 }
 0xf15   :  { %v7995_v25 = vpop.eup %7994  ;;  %5076 = vmatmul.mubr.f32.vlgmr.msra.gmra.mxu0 %v4819_v20  ;;  %v4775_v49 = vadd.f32 %v10948_v11, %v10946_v32 }
 0xf16   :  { %v10952_v5 = vpop.eup %7996  ;;  %v4822_v21 = vmul.f32 %v7995_v25, %v10727_v27  ;;  %v4821_v53 = vmul.f32 %v7995_v25, %v10721_v51 }
 0xf17   :  { %v10956_v40 = vpop.eup %7998  ;;  %4776 = vadd.xlane.f32.xlu1 %v4775_v49  ;;  %v4708_v24 = vpop.xlane.xlu1 %4707 }
 0xf18   :  { %v10958_v47 = vpop.eup %8000  ;;  %8014 = vrcp.f32 %v4708_v24  ;;  %5080 = vmatprep.mubr.f32.mxu0 %v4822_v21 }
 0xf19   :  { %v8003_v19 = vpop.eup %8002  ;;  %5081 = vmatmul.mubr.f32.gmra.mxu0 %v4821_v53  ;;  %v4778_v7 = vadd.f32 %v10958_v47, %v10956_v40 }
 0xf1a   :  { %v10962_v58 = vpop.eup %8004  ;;  %v4824_v18 = vmul.f32 %v8003_v19, %v10739_v48  ;;  %v4823_v27 = vmul.f32 %v8003_v19, %v10735_v57 }
 0xf1b   :  { %v10966_v51 = vpop.eup %8006  ;;  %4779 = vadd.xlane.f32.xlu0 %v4778_v7  ;;  %v4711_v62 = vpop.xlane.xlu1 %4710  ;;  %v4784_v35 = vadd.f32 %v10962_v58, %v10952_v5 }
 0xf1c   :  { %v10968_v34 = vpop.eup %8008  ;;  %8016 = vrcp.f32 %v4711_v62  ;;  %5085 = vmatprep.mubr.f32.mxu0 %v4824_v18 }
 0xf1d   :  { %v8011_v55 = vpop.eup %8010  ;;  %5086 = vmatmul.mubr.f32.gmra.mxu0 %v4823_v27  ;;  %v4781_v28 = vadd.f32 %v10968_v34, %v10966_v51 }
 0xf1e   :  { %v4826_v48 = vmul.f32 %v8011_v55, %v10747_v59  ;;  %v4825_v57 = vmul.f32 %v8011_v55, %v10745_v42 }
 0xf1f   :  { %4782 = vadd.xlane.f32.xlu1 %v4781_v28  ;;  %4785 = vadd.xlane.f32.xlu0 %v4784_v35  ;;  %v4714_v61 = vpop.xlane.xlu1 %4713 }
 0xf20   :  { %8018 = vrcp.f32 %v4714_v61  ;;  %5090 = vmatprep.mubr.f32.mxu0 %v4826_v48 }
 0xf21   :  { %v8013_v20 = vpop.eup %8012  ;;  %5091 = vmatmul.mubr.f32.gmra.mxu0 %v4825_v57 }
 0xf22   :  { %v4828_v29 = vmul.f32 %v8013_v20, %v10755_v6  ;;  %v4827_v30 = vmul.f32 %v8013_v20, %v10753_v9 }
 0xf23   :  { %v4717_v25 = vpop.xlane.xlu1 %4716 }
 0xf24   :  { %8020 = vrcp.f32 %v4717_v25  ;;  %5095 = vmatprep.mubr.f32.mxu0 %v4828_v29  ;;  %v11703_v29 = vld [vmem:[#allocation11_spill] sm:$0xff]  ;;  %v11704_v25 = vld [vmem:[#allocation30_spill] sm:$0xff] }
 0xf25   :  { %v8015_v49 = vpop.eup %8014  ;;  %5096 = vmatmul.mubr.f32.gmra.mxu0 %v4827_v30 }
 0xf26   :  { %v4830_v59 = vmul.f32 %v8015_v49, %v10763_v23  ;;  %v4829_v42 = vmul.f32 %v8015_v49, %v10761_v63 }
 0xf27   :  { %v4720_v21 = vpop.xlane.xlu1 %4719 }
 0xf28   :  { %8022 = vrcp.f32 %v4720_v21  ;;  %5100 = vmatprep.mubr.f32.mxu0 %v4830_v59  ;;  %v11705_v59 = vld [vmem:[#allocation31_spill] sm:$0xff]  ;;  %v11706_v21 = vld [vmem:[#allocation33_spill] sm:$0xff] }
 0xf29   :  { %v8017_v53 = vpop.eup %8016  ;;  %5101 = vmatmul.mubr.f32.gmra.mxu0 %v4829_v42 }
 0xf2a   :  { %v4832_v24 = vmul.f32 %v8017_v53, %v10771_v43  ;;  %v4831_v6 = vmul.f32 %v8017_v53, %v10769_v33 }
 0xf2b   :  { %v4723_v19 = vpop.xlane.xlu1 %4722 }
 0xf2c   :  { %8024 = vrcp.f32 %v4723_v19  ;;  %5105 = vmatprep.mubr.f32.mxu0 %v4832_v24  ;;  %v11707_v24 = vld [vmem:[#allocation32_spill] sm:$0xff] }
 0xf2d   :  { %v8019_v9 = vpop.eup %8018  ;;  %5106 = vmatmul.mubr.f32.gmra.mxu0 %v4831_v6 }
 0xf2e   :  { %v4834_v7 = vmul.f32 %v8019_v9, %v10779_v0  ;;  %v4833_v23 = vmul.f32 %v8019_v9, %v10777_v16 }
 0xf2f   :  { %v4726_v18 = vpop.xlane.xlu1 %4725 }
 0xf30   :  { %8026 = vrcp.f32 %v4726_v18  ;;  %5110 = vmatprep.mubr.f32.mxu0 %v4834_v7  ;;  %v11708_v7 = vld [vmem:[#allocation12_spill] sm:$0xff] }
 0xf31   :  { %v8021_v63 = vpop.eup %8020  ;;  %5111 = vmatmul.mubr.f32.gmra.mxu0 %v4833_v23 }
 0xf32   :  { %v4836_v27 = vmul.f32 %v8021_v63, %v10787_v36  ;;  %v4835_v43 = vmul.f32 %v8021_v63, %v10785_v52 }
 0xf33   :  { %v4729_v62 = vpop.xlane.xlu1 %4728 }
 0xf34   :  { %8028 = vrcp.f32 %v4729_v62  ;;  %5115 = vmatprep.mubr.f32.mxu0 %v4836_v27 }
 0xf35   :  { %v8023_v33 = vpop.eup %8022  ;;  %5116 = vmatmul.mubr.f32.gmra.mxu0 %v4835_v43 }
 0xf36   :  { %v4838_v55 = vmul.f32 %v8023_v33, %v10795_v38  ;;  %v4837_v0 = vmul.f32 %v8023_v33, %v10793_v8 }
 0xf37   :  { %v4732_v28 = vpop.xlane.xlu0 %4731 }
 0xf38   :  { %8030 = vrcp.f32 %v4732_v28  ;;  %5120 = vmatprep.mubr.f32.mxu0 %v4838_v55  ;;  %v11709_v55 = vld [vmem:[#allocation13_spill] sm:$0xff]  ;;  %v11710_v28 = vld [vmem:[#allocation14_spill] sm:$0xff] }
 0xf39   :  { %v8025_v16 = vpop.eup %8024  ;;  %5121 = vmatmul.mubr.f32.gmra.mxu0 %v4837_v0 }
 0xf3a   :  { %v4840_v35 = vmul.f32 %v8025_v16, %v10803_v1  ;;  %v4839_v36 = vmul.f32 %v8025_v16, %v10801_v50  ;;  %v6632_v16 = vld [vmem:[%s11412_s4 + $0x8] sm:$0xff] }
 0xf3b   :  { %v4735_v48 = vpop.xlane.xlu1 %4734  ;;  %7428 = vmatprep.subr.mxu1 %v6632_v16 }
 0xf3c   :  { %8032 = vrcp.f32 %v4735_v48  ;;  %5125 = vmatprep.mubr.f32.mxu0 %v4840_v35  ;;  %7429 = vmatpush3.msra.mxu1 %v6632_v16 }
 0xf3d   :  { %v8027_v52 = vpop.eup %8026  ;;  %5126 = vmatmul.mubr.f32.gmra.mxu0 %v4839_v36  ;;  %v11712_v36 = vld [vmem:[#allocation16_spill] sm:$0xff] }
 0xf3e   :  { %v4842_v57 = vmul.f32 %v8027_v52, %v10811_v14  ;;  %v4841_v38 = vmul.f32 %v8027_v52, %v10809_v12 }
 0xf3f   :  { %v4738_v61 = vpop.xlane.xlu0 %4737 }
 0xf40   :  { %8034 = vrcp.f32 %v4738_v61  ;;  %5130 = vmatprep.mubr.f32.mxu0 %v4842_v57  ;;  %v11713_v57 = vld [vmem:[#allocation17_spill] sm:$0xff]  ;;  %v11714_v61 = vld [vmem:[#allocation18_spill] sm:$0xff] }
 0xf41   :  { %v8029_v8 = vpop.eup %8028  ;;  %5131 = vmatmul.mubr.f32.gmra.mxu0 %v4841_v38 }
 0xf42   :  { %v4844_v20 = vmul.f32 %v8029_v8, %v10819_v15  ;;  %v4843_v1 = vmul.f32 %v8029_v8, %v11703_v29 }
 0xf43   :  { %v4741_v30 = vpop.xlane.xlu1 %4740 }
 0xf44   :  { %8036 = vrcp.f32 %v4741_v30  ;;  %5135 = vmatprep.mubr.f32.mxu0 %v4844_v20 }
 0xf45   :  { %v8031_v50 = vpop.eup %8030  ;;  %5136 = vmatmul.mubr.f32.gmra.mxu0 %v4843_v1  ;;  %v11715_v1 = vld [vmem:[#allocation20_spill] sm:$0xff] }
 0xf46   :  { %v4846_v49 = vmul.f32 %v8031_v50, %v11704_v25  ;;  %v4845_v14 = vmul.f32 %v8031_v50, %v11705_v59 }
 0xf47   :  { %v4744_v42 = vpop.xlane.xlu0 %4743 }
 0xf48   :  { %8038 = vrcp.f32 %v4744_v42  ;;  %5140 = vmatprep.mubr.f32.mxu0 %v4846_v49 }
 0xf49   :  { %v8033_v12 = vpop.eup %8032  ;;  %5141 = vmatmul.mubr.f32.gmra.mxu0 %v4845_v14 }
 0xf4a   :  { %v4848_v53 = vmul.f32 %v8033_v12, %v11706_v21  ;;  %v4847_v15 = vmul.f32 %v8033_v12, %v11707_v24 }
 0xf4b   :  { %v4747_v6 = vpop.xlane.xlu1 %4746 }
 0xf4c   :  { %8040 = vrcp.f32 %v4747_v6  ;;  %5145 = vmatprep.mubr.f32.mxu0 %v4848_v53 }
 0xf4d   :  { %v8035_v19 = vpop.eup %8034  ;;  %5146 = vmatmul.mubr.f32.gmra.mxu0 %v4847_v15 }
 0xf4e   :  { %v4850_v9 = vmul.f32 %v8035_v19, %v10843_v26  ;;  %v4849_v23 = vmul.f32 %v8035_v19, %v11708_v7 }
 0xf4f   :  { %v4750_v18 = vpop.xlane.xlu0 %4749 }
 0xf50   :  { %8042 = vrcp.f32 %v4750_v18  ;;  %5150 = vmatprep.mubr.f32.mxu0 %v4850_v9 }
 0xf51   :  { %v8037_v63 = vpop.eup %8036  ;;  %5151 = vmatmul.mubr.f32.gmra.mxu0 %v4849_v23 }
 0xf52   :  { %v4852_v27 = vmul.f32 %v8037_v63, %v10852_v46  ;;  %v4851_v43 = vmul.f32 %v8037_v63, %v10849_v44  ;;  %v11711_v46 = vld [vmem:[#allocation15_spill] sm:$0xff] }
 0xf53   :  { %v4753_v62 = vpop.xlane.xlu1 %4752 }
 0xf54   :  { %8044 = vrcp.f32 %v4753_v62  ;;  %5155 = vmatprep.mubr.f32.mxu0 %v4852_v27 }
 0xf55   :  { %v8039_v33 = vpop.eup %8038  ;;  %5156 = vmatmul.mubr.f32.gmra.mxu0 %v4851_v43 }
 0xf56   :  { %v4854_v0 = vmul.f32 %v8039_v33, %v11709_v55  ;;  %v4853_v26 = vmul.f32 %v8039_v33, %v11710_v28 }
 0xf58   :  { %5160 = vmatprep.mubr.f32.mxu0 %v4854_v0 }
 0xf59   :  { %v8041_v35 = vpop.eup %8040  ;;  %5161 = vmatmul.mubr.f32.gmra.mxu0 %v4853_v26 }
 0xf5a   :  { %v4856_v44 = vmul.f32 %v8041_v35, %v11711_v46  ;;  %v4855_v48 = vmul.f32 %v8041_v35, %v11712_v36 }
 0xf5c   :  { %5165 = vmatprep.mubr.f32.mxu0 %v4856_v44 }
 0xf5d   :  { %v8043_v52 = vpop.eup %8042  ;;  %5166 = vmatmul.mubr.f32.gmra.mxu0 %v4855_v48 }
 0xf5e   :  { %v4858_v38 = vmul.f32 %v8043_v52, %v11713_v57  ;;  %v4857_v8 = vmul.f32 %v8043_v52, %v11714_v61 }
 0xf60   :  { %5170 = vmatprep.mubr.f32.mxu0 %v4858_v38 }
 0xf61   :  { %v8045_v20 = vpop.eup %8044  ;;  %5171 = vmatmul.mubr.f32.gmra.mxu0 %v4857_v8 }
 0xf62   :  { %v4860_v29 = vmul.f32 %v8045_v20, %v10876_v39  ;;  %v4859_v30 = vmul.f32 %v8045_v20, %v11715_v1 }
 0xf64   :  { %5175 = vmatprep.mubr.f32.mxu0 %v4860_v29 }
 0xf65   :  { %5176 = vmatmul.mubr.f32.gmra.mxu0 %v4859_v30 }
 0xf84   :  { %v4756_v50 = vpop.xlane.xlu0 %4755 }
 0xf85   :  { %8046 = vrcp.f32 %v4756_v50 }
 0xf88   :  { %v4759_v25 = vpop.xlane.xlu1 %4758 }
 0xf89   :  { %8048 = vrcp.f32 %v4759_v25 }
 0xf8c   :  { %v4762_v49 = vpop.xlane.xlu0 %4761 }
 0xf8d   :  { %8050 = vrcp.f32 %v4762_v49 }
 0xf90   :  { %v4765_v59 = vpop.xlane.xlu1 %4764 }
 0xf91   :  { %8052 = vrcp.f32 %v4765_v59 }
 0xf92   :  { %v8047_v14 = vpop.eup %8046 }
 0xf93   :  { %v4862_v42 = vmul.f32 %v8047_v14, %v10892_v45  ;;  %v4861_v12 = vmul.f32 %v8047_v14, %v10890_v60 }
 0xf94   :  { %v4768_v21 = vpop.xlane.xlu0 %4767 }
 0xf95   :  { %8054 = vrcp.f32 %v4768_v21  ;;  %5180 = vmatprep.mubr.f32.mxu0 %v4862_v42 }
 0xf96   :  { %v8049_v39 = vpop.eup %8048  ;;  %5181 = vmatmul.mubr.f32.gmra.mxu0 %v4861_v12 }
 0xf97   :  { %v4864_v53 = vmul.f32 %v8049_v39, %v10900_v4  ;;  %v4863_v24 = vmul.f32 %v8049_v39, %v10898_v41 }
 0xf98   :  { %v4771_v15 = vpop.xlane.xlu1 %4770 }
 0xf99   :  { %8056 = vrcp.f32 %v4771_v15  ;;  %5185 = vmatprep.mubr.f32.mxu0 %v4864_v53 }
 0xf9a   :  { %v8051_v6 = vpop.eup %8050  ;;  %5186 = vmatmul.mubr.f32.gmra.mxu0 %v4863_v24 }
 0xf9b   :  { %v4866_v19 = vmul.f32 %v8051_v6, %v10908_v54  ;;  %v4865_v45 = vmul.f32 %v8051_v6, %v10906_v56 }
 0xf9c   :  { %v4774_v9 = vpop.xlane.xlu0 %4773 }
 0xf9d   :  { %8058 = vrcp.f32 %v4774_v9  ;;  %5190 = vmatprep.mubr.f32.mxu0 %v4866_v19 }
 0xf9e   :  { %v8053_v60 = vpop.eup %8052  ;;  %5191 = vmatmul.mubr.f32.gmra.mxu0 %v4865_v45 }
 0xf9f   :  { %v4868_v7 = vmul.f32 %v8053_v60, %v10917_v37  ;;  %v4867_v4 = vmul.f32 %v8053_v60, %v10915_v17 }
 0xfa0   :  { %v4777_v23 = vpop.xlane.xlu1 %4776 }
 0xfa1   :  { %8060 = vrcp.f32 %v4777_v23  ;;  %5195 = vmatprep.mubr.f32.mxu0 %v4868_v7 }
 0xfa2   :  { %v8055_v41 = vpop.eup %8054  ;;  %5196 = vmatmul.mubr.f32.gmra.mxu0 %v4867_v4 }
 0xfa3   :  { %v4870_v18 = vmul.f32 %v8055_v41, %v10926_v13  ;;  %v4869_v54 = vmul.f32 %v8055_v41, %v10924_v3 }
 0xfa4   :  { %v4780_v63 = vpop.xlane.xlu0 %4779 }
 0xfa5   :  { %8062 = vrcp.f32 %v4780_v63  ;;  %5200 = vmatprep.mubr.f32.mxu0 %v4870_v18 }
 0xfa6   :  { %v8057_v56 = vpop.eup %8056  ;;  %5201 = vmatmul.mubr.f32.gmra.mxu0 %v4869_v54 }
 0xfa7   :  { %v4872_v27 = vmul.f32 %v8057_v56, %v10934_v10  ;;  %v4871_v37 = vmul.f32 %v8057_v56, %v10932_v2 }
 0xfa8   :  { %v4786_v43 = vpop.xlane.xlu0 %4785  ;;  %v4783_v17 = vpop.xlane.xlu1 %4782 }
 0xfa9   :  { %8064 = vrcp.f32 %v4786_v43  ;;  %5205 = vmatprep.mubr.f32.mxu0 %v4872_v27 }
 0xfaa   :  { %v8059_v62 = vpop.eup %8058  ;;  %8066 = vrcp.f32 %v4783_v17  ;;  %5206 = vmatmul.mubr.f32.gmra.mxu0 %v4871_v37 }
 0xfab   :  { %v4874_v13 = vmul.f32 %v8059_v62, %v10940_v22  ;;  %v4873_v3 = vmul.f32 %v8059_v62, %v10938_v31 }
 0xfad   :  { %5210 = vmatprep.mubr.f32.mxu0 %v4874_v13 }
 0xfae   :  { %v8061_v33 = vpop.eup %8060  ;;  %5211 = vmatmul.mubr.f32.gmra.mxu0 %v4873_v3 }
 0xfaf   :  { %v4876_v55 = vmul.f32 %v8061_v33, %v10948_v11  ;;  %v4875_v10 = vmul.f32 %v8061_v33, %v10946_v32 }
 0xfb1   :  { %5215 = vmatprep.mubr.f32.mxu0 %v4876_v55 }
 0xfb2   :  { %v8063_v2 = vpop.eup %8062  ;;  %5216 = vmatmul.mubr.f32.gmra.mxu0 %v4875_v10 }
 0xfb3   :  { %v4878_v0 = vmul.f32 %v8063_v2, %v10958_v47  ;;  %v4877_v28 = vmul.f32 %v8063_v2, %v10956_v40 }
 0xfb5   :  { %5220 = vmatprep.mubr.f32.mxu0 %v4878_v0 }
 0xfb6   :  { %v8065_v26 = vpop.eup %8064  ;;  %5221 = vmatmul.mubr.f32.gmra.mxu0 %v4877_v28 }
 0xfb7   :  { %v8067_v22 = vpop.eup %8066  ;;  %v4882_v11 = vmul.f32 %v8065_v26, %v10962_v58  ;;  %v4881_v32 = vmul.f32 %v8065_v26, %v10952_v5 }
 0xfb8   :  { %v4880_v31 = vmul.f32 %v8067_v22, %v10968_v34  ;;  %v4879_v16 = vmul.f32 %v8067_v22, %v10966_v51 }
 0xfba   :  { %5225 = vmatprep.mubr.f32.mxu0 %v4880_v31 }
 0xfbb   :  { %5226 = vmatmul.mubr.f32.gmra.mxu0 %v4879_v16 }
 0xfbc   :  { %5230 = vmatprep.mubr.f32.mxu0 %v4882_v11 }
 0xfbf   :  { %5231 = vmatmul.mubr.f32.gmra.mxu0 %v4881_v32 }
 0xfd5   :  { %v5077_v35 = vpop.f32.mrf.mxu0 }
 0xfd6   :  { %7430 = vmatprep.mubr.msk.f32.mxu1 %vm175_vm4, %v5077_v35  ;;  %v5594_v35 = vld [vmem:[#allocation2 + $0x80] sm:$0xff] }
 0xfd7   :  { %v5079_v40 = vpop.f32.mrf.mxu0  ;;  %7510 = vmatprep.mubr.f32.mxu0 %v5594_v35 }
 0xfd9   :  { %v5082_v47 = vpop.f32.mrf.mxu0 }
 0xfda   :  { %7431 = vmatmul.mubr.msk.f32.vlgmr.msra.gmra.mxu1 %vm175_vm4, %v5082_v47 }
 0xfdb   :  { %v5084_v46 = vpop.f32.mrf.mxu0 }
 0xfdd   :  { %v5087_v44 = vpop.f32.mrf.mxu0 }
 0xfde   :  { %7433 = vmatprep.mubr.msk.f32.mxu1 %vm175_vm4, %v5087_v44 }
 0xfdf   :  { %v5089_v51 = vpop.f32.mrf.mxu0 }
 0xfe1   :  { %v5092_v34 = vpop.f32.mrf.mxu0 }
 0xfe2   :  { %7434 = vmatmul.mubr.msk.f32.gmra.mxu1 %vm175_vm4, %v5092_v34 }
 0xfe3   :  { %v5094_v58 = vpop.f32.mrf.mxu0 }
 0xfe5   :  { %v5097_v36 = vpop.f32.mrf.mxu0 }
 0xfe6   :  { %7436 = vmatprep.mubr.msk.f32.mxu1 %vm175_vm4, %v5097_v36 }
 0xfe7   :  { %v5099_v5 = vpop.f32.mrf.mxu0 }
 0xfe9   :  { %v5102_v48 = vpop.f32.mrf.mxu0 }
 0xfea   :  { %7437 = vmatmul.mubr.msk.f32.gmra.mxu1 %vm175_vm4, %v5102_v48 }
 0xfeb   :  { %v5104_v52 = vpop.f32.mrf.mxu0 }
 0xfed   :  { %v5107_v57 = vpop.f32.mrf.mxu0 }
 0xfee   :  { %7439 = vmatprep.mubr.msk.f32.mxu1 %vm175_vm4, %v5107_v57 }
 0xfef   :  { %v5109_v38 = vpop.f32.mrf.mxu0 }
 0xff1   :  { %v5112_v61 = vpop.f32.mrf.mxu0 }
 0xff2   :  { %7440 = vmatmul.mubr.msk.f32.gmra.mxu1 %vm175_vm4, %v5112_v61 }
 0xff3   :  { %v5114_v8 = vpop.f32.mrf.mxu0 }
 0xff5   :  { %v5117_v20 = vpop.f32.mrf.mxu0 }
 0xff6   :  { %7442 = vmatprep.mubr.msk.f32.mxu1 %vm175_vm4, %v5117_v20 }
 0xff7   :  { %v5119_v29 = vpop.f32.mrf.mxu0 }
 0xff9   :  { %v5122_v1 = vpop.f32.mrf.mxu0 }
 0xffa   :  { %7443 = vmatmul.mubr.msk.f32.gmra.mxu1 %vm175_vm4, %v5122_v1 }
 0xffb   :  { %v5124_v30 = vpop.f32.mrf.mxu0 }
 0xffd   :  { %v5127_v50 = vpop.f32.mrf.mxu0 }
 0xffe   :  { %7445 = vmatprep.mubr.msk.f32.mxu1 %vm175_vm4, %v5127_v50 }
 0xfff   :  { %v5129_v25 = vpop.f32.mrf.mxu0 }
0x1001   :  { %v5132_v49 = vpop.f32.mrf.mxu0 }
0x1002   :  { %7446 = vmatmul.mubr.msk.f32.gmra.mxu1 %vm175_vm4, %v5132_v49 }
0x1003   :  { %v5134_v59 = vpop.f32.mrf.mxu0 }
0x1005   :  { %v5137_v14 = vpop.f32.mrf.mxu0 }
0x1006   :  { %7448 = vmatprep.mubr.msk.f32.mxu1 %vm175_vm4, %v5137_v14 }
0x1007   :  { %v5139_v42 = vpop.f32.mrf.mxu0 }
0x1009   :  { %v5142_v12 = vpop.f32.mrf.mxu0 }
0x100a   :  { %7449 = vmatmul.mubr.msk.f32.gmra.mxu1 %vm175_vm4, %v5142_v12 }
0x100b   :  { %v5144_v21 = vpop.f32.mrf.mxu0 }
0x100d   :  { %v5147_v39 = vpop.f32.mrf.mxu0 }
0x100e   :  { %7451 = vmatprep.mubr.msk.f32.mxu1 %vm175_vm4, %v5147_v39 }
0x100f   :  { %v5149_v53 = vpop.f32.mrf.mxu0 }
0x1011   :  { %v5152_v24 = vpop.f32.mrf.mxu0 }
0x1012   :  { %7452 = vmatmul.mubr.msk.f32.gmra.mxu1 %vm175_vm4, %v5152_v24 }
0x1013   :  { %v5154_v15 = vpop.f32.mrf.mxu0 }
0x1015   :  { %v5157_v6 = vpop.f32.mrf.mxu0 }
0x1016   :  { %7454 = vmatprep.mubr.msk.f32.mxu1 %vm175_vm4, %v5157_v6  ;;  %v11084_v6 = vld [vmem:[%s11415_s7 + $0x8] sm:$0x3f] }
0x1017   :  { %v5159_v19 = vpop.f32.mrf.mxu0 }
0x1018   :  { %v11716_v19 = vld [vmem:[#allocation29_spill] sm:$0xff] }
0x1019   :  { %v5162_v45 = vpop.f32.mrf.mxu0 }
0x101a   :  { %7455 = vmatmul.mubr.msk.f32.gmra.mxu1 %vm175_vm4, %v5162_v45  ;;  %v11717_v45 = vsub.s32 1, %v11716_v19 }
0x101b   :  { %v5164_v9 = vpop.f32.mrf.mxu0 }
0x101c   :  { %v5576_v9 = vrot.slane %v11084_v6, %v11717_v45  ;;  %v11721_v45 = vld [vmem:[#allocation36_spill] sm:$0xff] }
0x101d   :  { %v5167_v60 = vpop.f32.mrf.mxu0 }
0x101e   :  { %7457 = vmatprep.mubr.msk.f32.mxu1 %vm175_vm4, %v5167_v60 }
0x101f   :  { %v5169_v7 = vpop.f32.mrf.mxu0 }
0x1021   :  { %v5172_v4 = vpop.f32.mrf.mxu0 }
0x1022   :  { %7458 = vmatmul.mubr.msk.f32.gmra.mxu1 %vm175_vm4, %v5172_v4 }
0x1023   :  { %v5174_v23 = vpop.f32.mrf.mxu0 }
0x1025   :  { %v5177_v41 = vpop.f32.mrf.mxu0 }
0x1026   :  { %7460 = vmatprep.mubr.msk.f32.mxu1 %vm175_vm4, %v5177_v41 }
0x1027   :  { %v5179_v18 = vpop.f32.mrf.mxu0 }
0x1056   :  { %v5182_v54 = vpop.f32.mrf.mxu0 }
0x1057   :  { %7461 = vmatmul.mubr.msk.f32.gmra.mxu1 %vm175_vm4, %v5182_v54 }
0x1058   :  { %v5184_v63 = vpop.f32.mrf.mxu0 }
0x105a   :  { %v5187_v56 = vpop.f32.mrf.mxu0 }
0x105b   :  { %7463 = vmatprep.mubr.msk.f32.mxu1 %vm175_vm4, %v5187_v56 }
0x105c   :  { %v5189_v27 = vpop.f32.mrf.mxu0 }
0x105e   :  { %v5192_v37 = vpop.f32.mrf.mxu0 }
0x105f   :  { %7464 = vmatmul.mubr.msk.f32.gmra.mxu1 %vm175_vm4, %v5192_v37 }
0x1060   :  { %v5194_v43 = vpop.f32.mrf.mxu0 }
0x1062   :  { %v5197_v17 = vpop.f32.mrf.mxu0 }
0x1063   :  { %7466 = vmatprep.mubr.msk.f32.mxu1 %vm175_vm4, %v5197_v17 }
0x1064   :  { %v5199_v62 = vpop.f32.mrf.mxu0 }
0x1066   :  { %v5202_v13 = vpop.f32.mrf.mxu0 }
0x1067   :  { %7467 = vmatmul.mubr.msk.f32.gmra.mxu1 %vm175_vm4, %v5202_v13 }
0x1068   :  { %v5204_v3 = vpop.f32.mrf.mxu0 }
0x106a   :  { %v5207_v33 = vpop.f32.mrf.mxu0 }
0x106b   :  { %7469 = vmatprep.mubr.msk.f32.mxu1 %vm175_vm4, %v5207_v33 }
0x106c   :  { %v5209_v55 = vpop.f32.mrf.mxu0 }
0x106e   :  { %v5212_v10 = vpop.f32.mrf.mxu0 }
0x106f   :  { %7470 = vmatmul.mubr.msk.f32.gmra.mxu1 %vm175_vm4, %v5212_v10 }
0x1070   :  { %v5214_v2 = vpop.f32.mrf.mxu0 }
0x1072   :  { %v5217_v0 = vpop.f32.mrf.mxu0 }
0x1073   :  { %7472 = vmatprep.mubr.msk.f32.mxu1 %vm175_vm4, %v5217_v0 }
0x1074   :  { %v5219_v28 = vpop.f32.mrf.mxu0 }
0x1076   :  { %v5222_v26 = vpop.f32.mrf.mxu0 }
0x1077   :  { %7473 = vmatmul.mubr.msk.f32.gmra.mxu1 %vm175_vm4, %v5222_v26 }
0x1078   :  { %v5224_v22 = vpop.f32.mrf.mxu0 }
0x107b   :  { %v5227_v31 = vpop.f32.mrf.mxu0 }
0x107c   :  { %7475 = vmatprep.mubr.msk.f32.mxu1 %vm175_vm4, %v5227_v31 }
0x107d   :  { %v5229_v16 = vpop.f32.mrf.mxu0 }
0x107f   :  { %v5232_v11 = vpop.f32.mrf.mxu0 }
0x1080   :  { %7476 = vmatmul.mubr.msk.f32.gmra.mxu1 %vm175_vm4, %v5232_v11 }
0x1081   :  { %v5234_v32 = vpop.f32.mrf.mxu0 }
0x109a   :  { %v11067_v40 = vpop.f32.mrf.mxu1 }
0x109c   :  { %v11069_v47 = vpop.f32.mrf.mxu1 }
0x10a2   :  { %v11071_v46 = vpop.f32.mrf.mxu1 }
0x10a4   :  { %v11073_v44 = vpop.f32.mrf.mxu1 }
0x10aa   :  { %v7438_v51 = vpop.f32.mrf.mxu1 }
0x10ac   :  { %v11075_v34 = vpop.f32.mrf.mxu1 }
0x10b2   :  { %v7441_v58 = vpop.f32.mrf.mxu1 }
0x10b4   :  { %v5428_v36 = vpop.f32.mrf.mxu1 }
0x10ba   :  { %v7444_v5 = vpop.f32.mrf.mxu1 }
0x10bc   :  { %v5438_v48 = vpop.f32.mrf.mxu1 }
0x10c2   :  { %v7447_v52 = vpop.f32.mrf.mxu1 }
0x10c4   :  { %v5448_v57 = vpop.f32.mrf.mxu1 }
0x10ca   :  { %v7450_v38 = vpop.f32.mrf.mxu1 }
0x10cc   :  { %v5458_v61 = vpop.f32.mrf.mxu1 }
0x10d2   :  { %v7453_v8 = vpop.f32.mrf.mxu1 }
0x10d4   :  { %v5468_v20 = vpop.f32.mrf.mxu1 }
0x10da   :  { %v11077_v29 = vpop.f32.mrf.mxu1 }
0x10db   :  { %v5558_v32 = vadd.f32 %v11077_v29, %v11067_v40  ;;  %v5597_v40 = vld [vmem:[#allocation2 + $0x98] sm:$0xff]  ;;  %v5607_v29 = vld [vmem:[#allocation2 + $0xe8] sm:$0xff] }
0x10dc   :  { %v11079_v1 = vpop.f32.mrf.mxu1 }
0x10e2   :  { %v7459_v30 = vpop.f32.mrf.mxu1 }
0x10e3   :  { %v5560_v22 = vadd.f32 %v7459_v30, %v11071_v46  ;;  %v5578_v46 = vadd.f32 %v5576_v9, %v5558_v32  ;;  %v5609_v30 = vld [vmem:[#allocation2 + $0xf8] sm:$0xff] }
0x10e4   :  { %v5488_v50 = vpop.f32.mrf.mxu1 }
0x10e5   :  { %v5559_v16 = vadd.f32 %v5488_v50, %v11073_v44  ;;  %v5580_v35 = vadd.f32 %v5576_v9, %v5560_v22  ;;  %v5595_v44 = vld [vmem:[#allocation2 + $0x88] sm:$0xff] }
0x1117   :  { %v7462_v25 = vpop.f32.mrf.mxu1 }
0x1118   :  { %v5562_v2 = vadd.f32 %v7462_v25, %v7438_v51  ;;  %v5557_v51 = vadd.f32 %v11079_v1, %v11069_v47  ;;  %v5599_v47 = vld [vmem:[#allocation2 + $0xa8] sm:$0xff]  ;;  %v5608_v1 = vld [vmem:[#allocation2 + $0xf0] sm:$0xff] }
0x1119   :  { %v5498_v49 = vpop.f32.mrf.mxu1  ;;  %v11718_v25 = vld [vmem:[#allocation48_spill] sm:$0xff] }
0x111a   :  { %v5561_v28 = vadd.f32 %v5498_v49, %v11075_v34  ;;  %v5582_v31 = vadd.f32 %v5576_v9, %v5562_v2  ;;  %v5579_v34 = vadd.f32 %v5576_v9, %v5559_v16 }
0x111c   :  { %v5581_v11 = vadd.f32 %v5576_v9, %v5561_v28 }
0x111f   :  { %v7465_v59 = vpop.f32.mrf.mxu1 }
0x1120   :  { %v5564_v3 = vadd.f32 %v7465_v59, %v7441_v58  ;;  %v5577_v58 = vadd.f32 %v5576_v9, %v5557_v51 }
0x1121   :  { %v5508_v14 = vpop.f32.mrf.mxu1 }
0x1122   :  { %v5563_v55 = vadd.f32 %v5508_v14, %v5428_v36  ;;  %v5584_v0 = vadd.f32 %v5576_v9, %v5564_v3  ;;  %v5596_v36 = vld [vmem:[#allocation2 + $0x90] sm:$0xff]  ;;  %v11719_v14 = vld [vmem:[#allocation49_spill] sm:$0xff] }
0x1124   :  { %v5583_v26 = vadd.f32 %v5576_v9, %v5563_v55 }
0x1127   :  { %v7468_v42 = vpop.f32.mrf.mxu1 }
0x1128   :  { %v5566_v43 = vadd.f32 %v7468_v42, %v7444_v5  ;;  %v5598_v5 = vld [vmem:[#allocation2 + $0xa0] sm:$0xff] }
0x1129   :  { %v5518_v12 = vpop.f32.mrf.mxu1 }
0x112a   :  { %v5565_v62 = vadd.f32 %v5518_v12, %v5438_v48  ;;  %v5586_v33 = vadd.f32 %v5576_v9, %v5566_v43  ;;  %v5600_v48 = vld [vmem:[#allocation2 + $0xb0] sm:$0xff] }
0x112c   :  { %v5585_v10 = vadd.f32 %v5576_v9, %v5565_v62 }
0x112f   :  { %v7471_v21 = vpop.f32.mrf.mxu1 }
0x1130   :  { %v5568_v63 = vadd.f32 %v7471_v21, %v7447_v52  ;;  %v5601_v52 = vld [vmem:[#allocation2 + $0xb8] sm:$0xff] }
0x1131   :  { %v5528_v39 = vpop.f32.mrf.mxu1 }
0x1132   :  { %v5567_v27 = vadd.f32 %v5528_v39, %v5448_v57  ;;  %v5588_v17 = vadd.f32 %v5576_v9, %v5568_v63  ;;  %v5602_v57 = vld [vmem:[#allocation2 + $0xc0] sm:$0xff] }
0x1133   :  { %v11720_v39 = vld [vmem:[#allocation34_spill] sm:$0xff] }
0x1134   :  { %v5587_v13 = vadd.f32 %v5576_v9, %v5567_v27 }
0x1137   :  { %v7474_v53 = vpop.f32.mrf.mxu1 }
0x1138   :  { %v5570_v4 = vadd.f32 %v7474_v53, %v7450_v38  ;;  %v5603_v38 = vld [vmem:[#allocation2 + $0xc8] sm:$0xff] }
0x1139   :  { %v5538_v24 = vpop.f32.mrf.mxu1 }
0x113a   :  { %v5569_v18 = vadd.f32 %v5538_v24, %v5458_v61  ;;  %v5590_v56 = vadd.f32 %v5576_v9, %v5570_v4  ;;  %v5604_v61 = vld [vmem:[#allocation2 + $0xd0] sm:$0xff]  ;;  %v11722_v4 = vld [vmem:[#allocation35_spill] sm:$0xff] }
0x113c   :  { %v5589_v37 = vadd.f32 %v5576_v9, %v5569_v18 }
0x1140   :  { %v7477_v15 = vpop.f32.mrf.mxu1 }
0x1141   :  { %v5572_v60 = vadd.f32 %v7477_v15, %v7453_v8  ;;  %v5605_v8 = vld [vmem:[#allocation2 + $0xd8] sm:$0xff] }
0x1142   :  { %v5548_v7 = vpop.f32.mrf.mxu1 }
0x1143   :  { %v5592_v23 = vadd.f32 %v5576_v9, %v5572_v60  ;;  %v5571_v41 = vadd.f32 %v5548_v7, %v5468_v20  ;;  %v5606_v20 = vld [vmem:[#allocation2 + $0xe0] sm:$0xff] }
0x1145   :  { %v5591_v54 = vadd.f32 %v5576_v9, %v5571_v41  ;;  %7478 = vmatprep.subr.mxu0 %v5592_v23 }
0x1146   :  { %7479 = vmatpush3.msra.mxu0 %v5592_v23 }
0x1147   :  { %7480 = vmatprep.subr.mxu0 %v5591_v54 }
0x1148   :  { %7481 = vmatpush3.msra.mxu0 %v5591_v54  ;;  %v11723_v54 = vld [vmem:[#allocation38_spill] sm:$0xff] }
0x1149   :  { %7482 = vmatprep.subr.mxu0 %v5590_v56 }
0x114a   :  { %7483 = vmatpush3.msra.mxu0 %v5590_v56 }
0x114b   :  { %7484 = vmatprep.subr.mxu0 %v5589_v37 }
0x114c   :  { %7485 = vmatpush3.msra.mxu0 %v5589_v37  ;;  %v11724_v37 = vld [vmem:[#allocation37_spill] sm:$0xff] }
0x114d   :  { %7486 = vmatprep.subr.mxu0 %v5588_v17 }
0x114e   :  { %7487 = vmatpush3.msra.mxu0 %v5588_v17 }
0x114f   :  { %7488 = vmatprep.subr.mxu0 %v5587_v13 }
0x1150   :  { %7489 = vmatpush3.msra.mxu0 %v5587_v13  ;;  %v11725_v13 = vld [vmem:[#allocation39_spill] sm:$0xff] }
0x1151   :  { %7490 = vmatprep.subr.mxu0 %v5586_v33 }
0x1152   :  { %7491 = vmatpush3.msra.mxu0 %v5586_v33 }
0x1153   :  { %7492 = vmatprep.subr.mxu0 %v5585_v10 }
0x1154   :  { %7493 = vmatpush3.msra.mxu0 %v5585_v10  ;;  %v11726_v10 = vld [vmem:[#allocation41_spill] sm:$0xff] }
0x1155   :  { %7494 = vmatprep.subr.mxu0 %v5584_v0 }
0x1156   :  { %7495 = vmatpush3.msra.mxu0 %v5584_v0 }
0x1157   :  { %7496 = vmatprep.subr.mxu0 %v5583_v26 }
0x1158   :  { %7497 = vmatpush3.msra.mxu0 %v5583_v26  ;;  %v11727_v26 = vld [vmem:[#allocation40_spill] sm:$0xff] }
0x1159   :  { %7498 = vmatprep.subr.mxu0 %v5582_v31 }
0x115a   :  { %7499 = vmatpush3.msra.mxu0 %v5582_v31 }
0x115b   :  { %7500 = vmatprep.subr.mxu0 %v5581_v11 }
0x115c   :  { %7501 = vmatpush3.msra.mxu0 %v5581_v11  ;;  %v11728_v11 = vld [vmem:[#allocation43_spill] sm:$0xff] }
0x115d   :  { %7502 = vmatprep.subr.mxu0 %v5580_v35 }
0x115e   :  { %7503 = vmatpush3.msra.mxu0 %v5580_v35 }
0x115f   :  { %7504 = vmatprep.subr.mxu0 %v5579_v34 }
0x1160   :  { %7505 = vmatpush3.msra.mxu0 %v5579_v34  ;;  %v11729_v34 = vld [vmem:[#allocation42_spill] sm:$0xff] }
0x1161   :  { %7506 = vmatprep.subr.mxu0 %v5578_v46 }
0x1162   :  { %7507 = vmatpush3.msra.mxu0 %v5578_v46 }
0x1163   :  { %7508 = vmatprep.subr.mxu0 %v5577_v58 }
0x1164   :  { %7509 = vmatpush3.msra.mxu0 %v5577_v58 }
0x1165   :  { %7511 = vmatmul.mubr.f32.vlgmr.msra.gmra.mxu0 %v5595_v44 }
0x1166   :  { %7513 = vmatprep.mubr.f32.mxu0 %v5596_v36  ;;  %v11730_v36 = vld [vmem:[#allocation45_spill] sm:$0xff] }
0x1169   :  { %7514 = vmatmul.mubr.f32.gmra.mxu0 %v5597_v40 }
0x116a   :  { %7516 = vmatprep.mubr.f32.mxu0 %v5598_v5 }
0x116d   :  { %7517 = vmatmul.mubr.f32.gmra.mxu0 %v5599_v47 }
0x116e   :  { %7519 = vmatprep.mubr.f32.mxu0 %v5600_v48  ;;  %v11731_v48 = vld [vmem:[#allocation44_spill] sm:$0xff] }
0x1171   :  { %7520 = vmatmul.mubr.f32.gmra.mxu0 %v5601_v52 }
0x1172   :  { %7522 = vmatprep.mubr.f32.mxu0 %v5602_v57 }
0x1175   :  { %7523 = vmatmul.mubr.f32.gmra.mxu0 %v5603_v38 }
0x1176   :  { %7525 = vmatprep.mubr.f32.mxu0 %v5604_v61  ;;  %v11732_v61 = vld [vmem:[#allocation47_spill] sm:$0xff] }
0x1179   :  { %7526 = vmatmul.mubr.f32.gmra.mxu0 %v5605_v8 }
0x117a   :  { %7528 = vmatprep.mubr.f32.mxu0 %v5606_v20 }
0x117d   :  { %7529 = vmatmul.mubr.f32.gmra.mxu0 %v5607_v29 }
0x117e   :  { %7531 = vmatprep.mubr.f32.mxu0 %v5608_v1  ;;  %v11733_v1 = vld [vmem:[#allocation46_spill] sm:$0xff] }
0x1181   :  { %7532 = vmatmul.mubr.f32.gmra.mxu0 %v5609_v30 }
0x1225   :  { %v7512_v50 = vpop.f32.mrf.mxu0 }
0x1226   :  { %v11097_v49 = vadd.f32 %v7512_v50, %v11718_v25 }
0x1227   :  { %v5676_v59 = vpop.f32.mrf.mxu0 }
0x1228   :  { %v11100_v42 = vadd.f32 %v5676_v59, %v11719_v14  ;;  %v5781_v12 = vsel %vm175_vm4, %v11097_v49, 0.0 }
0x1229   :  { %5782 = vadd.xlane.f32.xlu0 %v5781_v12  ;;  %v7515_v21 = vpop.f32.mrf.mxu0 }
0x122a   :  { %v11105_v53 = vadd.f32 %v7515_v21, %v11720_v39  ;;  %v5778_v24 = vsel %vm175_vm4, %v11100_v42, 0.0 }
0x122b   :  { %5779 = vadd.xlane.f32.xlu1 %v5778_v24  ;;  %v5686_v15 = vpop.f32.mrf.mxu0 }
0x122c   :  { %v11110_v9 = vadd.f32 %v5686_v15, %v11721_v45  ;;  %v5787_v60 = vsel %vm175_vm4, %v11105_v53, 0.0 }
0x122d   :  { %5788 = vadd.xlane.f32.xlu0 %v5787_v60  ;;  %v7518_v7 = vpop.f32.mrf.mxu0 }
0x122e   :  { %v11115_v23 = vadd.f32 %v7518_v7, %v11722_v4  ;;  %v5784_v41 = vsel %vm175_vm4, %v11110_v9, 0.0 }
0x122f   :  { %5785 = vadd.xlane.f32.xlu1 %v5784_v41  ;;  %v5696_v18 = vpop.f32.mrf.mxu0 }
0x1230   :  { %v11120_v63 = vadd.f32 %v5696_v18, %v11723_v54  ;;  %v5793_v56 = vsel %vm175_vm4, %v11115_v23, 0.0 }
0x1231   :  { %5794 = vadd.xlane.f32.xlu0 %v5793_v56  ;;  %v7521_v27 = vpop.f32.mrf.mxu0 }
0x1232   :  { %v11125_v43 = vadd.f32 %v7521_v27, %v11724_v37  ;;  %v5790_v17 = vsel %vm175_vm4, %v11120_v63, 0.0 }
0x1233   :  { %5791 = vadd.xlane.f32.xlu1 %v5790_v17  ;;  %v5706_v62 = vpop.f32.mrf.mxu0 }
0x1234   :  { %v11130_v3 = vadd.f32 %v5706_v62, %v11725_v13  ;;  %v5799_v33 = vsel %vm175_vm4, %v11125_v43, 0.0 }
0x1235   :  { %5800 = vadd.xlane.f32.xlu0 %v5799_v33  ;;  %v7524_v55 = vpop.f32.mrf.mxu0 }
0x1236   :  { %v11135_v2 = vadd.f32 %v7524_v55, %v11726_v10  ;;  %v5796_v0 = vsel %vm175_vm4, %v11130_v3, 0.0 }
0x1237   :  { %5797 = vadd.xlane.f32.xlu1 %v5796_v0  ;;  %v5716_v28 = vpop.f32.mrf.mxu0 }
0x1238   :  { %v11140_v22 = vadd.f32 %v5716_v28, %v11727_v26  ;;  %v5805_v31 = vsel %vm175_vm4, %v11135_v2, 0.0 }
0x1239   :  { %5806 = vadd.xlane.f32.xlu0 %v5805_v31  ;;  %v7527_v16 = vpop.f32.mrf.mxu0 }
0x123a   :  { %v11145_v32 = vadd.f32 %v7527_v16, %v11728_v11  ;;  %v5802_v35 = vsel %vm175_vm4, %v11140_v22, 0.0 }
0x123b   :  { %5803 = vadd.xlane.f32.xlu1 %v5802_v35  ;;  %v5726_v51 = vpop.f32.mrf.mxu0 }
0x123c   :  { %v11150_v46 = vadd.f32 %v5726_v51, %v11729_v34  ;;  %v5811_v58 = vsel %vm175_vm4, %v11145_v32, 0.0 }
0x123d   :  { %5812 = vadd.xlane.f32.xlu0 %v5811_v58  ;;  %v7530_v44 = vpop.f32.mrf.mxu0 }
0x123e   :  { %v11155_v40 = vadd.f32 %v7530_v44, %v11730_v36  ;;  %v5808_v5 = vsel %vm175_vm4, %v11150_v46, 0.0 }
0x123f   :  { %5809 = vadd.xlane.f32.xlu1 %v5808_v5  ;;  %v5736_v47 = vpop.f32.mrf.mxu0 }
0x1240   :  { %v11160_v52 = vadd.f32 %v5736_v47, %v11731_v48  ;;  %v5817_v57 = vsel %vm175_vm4, %v11155_v40, 0.0 }
0x1241   :  { %5818 = vadd.xlane.f32.xlu0 %v5817_v57  ;;  %v7533_v38 = vpop.f32.mrf.mxu0 }
0x1242   :  { %v11165_v8 = vadd.f32 %v7533_v38, %v11732_v61  ;;  %v5814_v20 = vsel %vm175_vm4, %v11160_v52, 0.0 }
0x1243   :  { %5815 = vadd.xlane.f32.xlu1 %v5814_v20  ;;  %v5746_v29 = vpop.f32.mrf.mxu0 }
0x1244   :  { %v11170_v30 = vadd.f32 %v5746_v29, %v11733_v1  ;;  %v5823_v50 = vsel %vm175_vm4, %v11165_v8, 0.0 }
0x1245   :  { %5824 = vadd.xlane.f32.xlu0 %v5823_v50 }
0x1246   :  { %v5820_v25 = vsel %vm175_vm4, %v11170_v30, 0.0 }
0x1247   :  { %5821 = vadd.xlane.f32.xlu1 %v5820_v25 }
0x12b2   :  { %v5783_v59 = vpop.xlane.xlu0 %5782 }
0x12b3   :  { %v5827_v14 = vmul.f32 0.125, %v5783_v59 }
0x12b4   :  { %v5780_v12 = vpop.xlane.xlu1 %5779 }
0x12b5   :  { %v11177_v21 = vsub.f32 %v11097_v49, %v5827_v14  ;;  %v5826_v39 = vmul.f32 0.125, %v5780_v12 }
0x12b6   :  { %v5789_v24 = vpop.xlane.xlu0 %5788 }
0x12b7   :  { %v11180_v15 = vsub.f32 %v11100_v42, %v5826_v39  ;;  %v5829_v45 = vmul.f32 0.125, %v5789_v24  ;;  %v5859_v60 = vmul.f32 %v11177_v21, %v11177_v21 }
0x12b8   :  { %v5786_v7 = vpop.xlane.xlu1 %5785 }
0x12b9   :  { %v11185_v4 = vsub.f32 %v11105_v53, %v5829_v45  ;;  %v5828_v41 = vmul.f32 0.125, %v5786_v7  ;;  %v5877_v18 = vsel %vm175_vm4, %v5859_v60, 0.0  ;;  %v5858_v54 = vmul.f32 %v11180_v15, %v11180_v15 }
0x12ba   :  { %v5795_v56 = vpop.xlane.xlu0 %5794  ;;  %5878 = vadd.xlane.f32.xlu0 %v5877_v18 }
0x12bb   :  { %v11191_v27 = vsub.f32 %v11110_v9, %v5828_v41  ;;  %v5831_v37 = vmul.f32 0.125, %v5795_v56  ;;  %v5874_v17 = vsel %vm175_vm4, %v5858_v54, 0.0  ;;  %v5861_v62 = vmul.f32 %v11185_v4, %v11185_v4 }
0x12bc   :  { %v5792_v13 = vpop.xlane.xlu1 %5791  ;;  %5875 = vadd.xlane.f32.xlu1 %v5874_v17 }
0x12bd   :  { %v11197_v33 = vsub.f32 %v11115_v23, %v5831_v37  ;;  %v5830_v55 = vmul.f32 0.125, %v5792_v13  ;;  %v5883_v10 = vsel %vm175_vm4, %v5861_v62, 0.0  ;;  %v5860_v0 = vmul.f32 %v11191_v27, %v11191_v27 }
0x12be   :  { %v5801_v28 = vpop.xlane.xlu0 %5800  ;;  %5884 = vadd.xlane.f32.xlu0 %v5883_v10 }
0x12bf   :  { %v11203_v26 = vsub.f32 %v11120_v63, %v5830_v55  ;;  %v5833_v31 = vmul.f32 0.125, %v5801_v28  ;;  %v5880_v16 = vsel %vm175_vm4, %v5860_v0, 0.0  ;;  %v5863_v11 = vmul.f32 %v11197_v33, %v11197_v33 }
0x12c0   :  { %v5798_v35 = vpop.xlane.xlu1 %5797  ;;  %5881 = vadd.xlane.f32.xlu1 %v5880_v16 }
0x12c1   :  { %v11209_v51 = vsub.f32 %v11125_v43, %v5833_v31  ;;  %v5832_v34 = vmul.f32 0.125, %v5798_v35  ;;  %v5889_v58 = vsel %vm175_vm4, %v5863_v11, 0.0  ;;  %v5862_v44 = vmul.f32 %v11203_v26, %v11203_v26 }
0x12c2   :  { %v5807_v36 = vpop.xlane.xlu0 %5806  ;;  %5890 = vadd.xlane.f32.xlu0 %v5889_v58 }
0x12c3   :  { %v11215_v5 = vsub.f32 %v11130_v3, %v5832_v34  ;;  %v5835_v47 = vmul.f32 0.125, %v5807_v36  ;;  %v5886_v48 = vsel %vm175_vm4, %v5862_v44, 0.0  ;;  %v5865_v57 = vmul.f32 %v11209_v51, %v11209_v51 }
0x12c4   :  { %v5804_v38 = vpop.xlane.xlu1 %5803  ;;  %5887 = vadd.xlane.f32.xlu1 %v5886_v48 }
0x12c5   :  { %v11221_v61 = vsub.f32 %v11135_v2, %v5835_v47  ;;  %v5834_v20 = vmul.f32 0.125, %v5804_v38  ;;  %v5895_v29 = vsel %vm175_vm4, %v5865_v57, 0.0  ;;  %v5864_v1 = vmul.f32 %v11215_v5, %v11215_v5 }
0x12c6   :  { %v5813_v50 = vpop.xlane.xlu0 %5812  ;;  %5896 = vadd.xlane.f32.xlu0 %v5895_v29 }
0x12c7   :  { %v11227_v25 = vsub.f32 %v11140_v22, %v5834_v20  ;;  %v5837_v59 = vmul.f32 0.125, %v5813_v50  ;;  %v5892_v14 = vsel %vm175_vm4, %v5864_v1, 0.0  ;;  %v5867_v12 = vmul.f32 %v11221_v61, %v11221_v61  ;;  %v6745_v1 = vld [vmem:[%s11413_s5 + $0x8] sm:$0xff]  ;;  %v11278_v50 = vld [vmem:[%s11414_s6 + $0x38] sm:$0xff] }
0x12c8   :  { %v5810_v39 = vpop.xlane.xlu1 %5809  ;;  %5893 = vadd.xlane.f32.xlu1 %v5892_v14  ;;  %7534 = vmatprep.subr.mxu0 %v6745_v1 }
0x12c9   :  { %v11233_v24 = vsub.f32 %v11145_v32, %v5837_v59  ;;  %v5836_v45 = vmul.f32 0.125, %v5810_v39  ;;  %v5901_v60 = vsel %vm175_vm4, %v5867_v12, 0.0  ;;  %v5866_v7 = vmul.f32 %v11227_v25, %v11227_v25  ;;  %7535 = vmatpush3.msra.mxu0 %v6745_v1  ;;  %7592 = vmatprep.subr.mxu1 %v11278_v50 }
0x12ca   :  { %v5819_v41 = vpop.xlane.xlu0 %5818  ;;  %5902 = vadd.xlane.f32.xlu0 %v5901_v60  ;;  %7560 = vmatprep.subr.mxu0 %v11278_v50 }
0x12cb   :  { %v11239_v18 = vsub.f32 %v11150_v46, %v5836_v45  ;;  %v5839_v54 = vmul.f32 0.125, %v5819_v41  ;;  %v5898_v56 = vsel %vm175_vm4, %v5866_v7, 0.0  ;;  %v5869_v37 = vmul.f32 %v11233_v24, %v11233_v24  ;;  %7596 = vmatpush3.msra.mxu1 %v11278_v50 }
0x12cc   :  { %v5816_v17 = vpop.xlane.xlu1 %5815  ;;  %5899 = vadd.xlane.f32.xlu1 %v5898_v56 }
0x12cd   :  { %v11245_v62 = vsub.f32 %v11155_v40, %v5839_v54  ;;  %v5838_v13 = vmul.f32 0.125, %v5816_v17  ;;  %v5907_v55 = vsel %vm175_vm4, %v5869_v37, 0.0  ;;  %v5868_v10 = vmul.f32 %v11239_v18, %v11239_v18 }
0x12ce   :  { %5908 = vadd.xlane.f32.xlu0 %v5907_v55  ;;  %v5825_v0 = vpop.xlane.xlu0 %5824 }
0x12cf   :  { %v11251_v28 = vsub.f32 %v11160_v52, %v5838_v13  ;;  %v5841_v31 = vmul.f32 0.125, %v5825_v0  ;;  %v5904_v16 = vsel %vm175_vm4, %v5868_v10, 0.0  ;;  %v5871_v11 = vmul.f32 %v11245_v62, %v11245_v62 }
0x12d0   :  { %5905 = vadd.xlane.f32.xlu1 %v5904_v16  ;;  %v5822_v35 = vpop.xlane.xlu1 %5821 }
0x12d1   :  { %v11257_v34 = vsub.f32 %v11165_v8, %v5841_v31  ;;  %v5840_v58 = vmul.f32 0.125, %v5822_v35  ;;  %v5913_v44 = vsel %vm175_vm4, %v5871_v11, 0.0  ;;  %v5870_v36 = vmul.f32 %v11251_v28, %v11251_v28 }
0x12d2   :  { %5914 = vadd.xlane.f32.xlu0 %v5913_v44 }
0x12d3   :  { %v11263_v47 = vsub.f32 %v11170_v30, %v5840_v58  ;;  %v5910_v48 = vsel %vm175_vm4, %v5870_v36, 0.0  ;;  %v5873_v57 = vmul.f32 %v11257_v34, %v11257_v34 }
0x12d4   :  { %5911 = vadd.xlane.f32.xlu1 %v5910_v48 }
0x12d5   :  { %v5919_v38 = vsel %vm175_vm4, %v5873_v57, 0.0  ;;  %v5872_v20 = vmul.f32 %v11263_v47, %v11263_v47 }
0x12d6   :  { %5920 = vadd.xlane.f32.xlu0 %v5919_v38 }
0x12d7   :  { %v5916_v29 = vsel %vm175_vm4, %v5872_v20, 0.0 }
0x12d8   :  { %5917 = vadd.xlane.f32.xlu1 %v5916_v29  ;;  %v11734_v29 = vsub.s32 2, %v11716_v19 }
0x12da   :  { %v11286_v1 = vrot.slane %v11084_v6, %v11734_v29 }
0x1343   :  { %v5879_v59 = vpop.xlane.xlu0 %5878 }
0x1344   :  { %v5923_v14 = vmul.f32 0.125, %v5879_v59 }
0x1345   :  { %v5876_v12 = vpop.xlane.xlu1 %5875 }
0x1346   :  { %v5939_v39 = vadd.f32 1e-05, %v5923_v14  ;;  %v5922_v45 = vmul.f32 0.125, %v5876_v12 }
0x1347   :  { %v5885_v60 = vpop.xlane.xlu0 %5884 }
0x1348   :  { %8068 = vrsqrt.f32 %v5939_v39  ;;  %v5938_v7 = vadd.f32 1e-05, %v5922_v45  ;;  %v5925_v41 = vmul.f32 0.125, %v5885_v60 }
0x1349   :  { %v5882_v54 = vpop.xlane.xlu1 %5881 }
0x134a   :  { %8070 = vrsqrt.f32 %v5938_v7  ;;  %v5941_v56 = vadd.f32 1e-05, %v5925_v41  ;;  %v5924_v37 = vmul.f32 0.125, %v5882_v54 }
0x134b   :  { %v5891_v17 = vpop.xlane.xlu0 %5890 }
0x134c   :  { %8072 = vrsqrt.f32 %v5941_v56  ;;  %v5940_v13 = vadd.f32 1e-05, %v5924_v37  ;;  %v5927_v55 = vmul.f32 0.125, %v5891_v17  ;;  %v11735_v56 = vsub.s32 3, %v11716_v19 }
0x134d   :  { %v5888_v10 = vpop.xlane.xlu1 %5887 }
0x134e   :  { %8074 = vrsqrt.f32 %v5940_v13  ;;  %v5943_v0 = vadd.f32 1e-05, %v5927_v55  ;;  %v5926_v31 = vmul.f32 0.125, %v5888_v10  ;;  %v11292_v37 = vrot.slane %v11084_v6, %v11735_v56 }
0x134f   :  { %v5897_v16 = vpop.xlane.xlu0 %5896 }
0x1350   :  { %8076 = vrsqrt.f32 %v5943_v0  ;;  %v5942_v11 = vadd.f32 1e-05, %v5926_v31  ;;  %v5929_v35 = vmul.f32 0.125, %v5897_v16 }
0x1351   :  { %v5894_v58 = vpop.xlane.xlu1 %5893 }
0x1352   :  { %8078 = vrsqrt.f32 %v5942_v11  ;;  %v5945_v44 = vadd.f32 1e-05, %v5929_v35  ;;  %v5928_v36 = vmul.f32 0.125, %v5894_v58 }
0x1353   :  { %v5903_v48 = vpop.xlane.xlu0 %5902 }
0x1354   :  { %8080 = vrsqrt.f32 %v5945_v44  ;;  %v5944_v57 = vadd.f32 1e-05, %v5928_v36  ;;  %v5931_v38 = vmul.f32 0.125, %v5903_v48 }
0x1355   :  { %v8069_v20 = vpop.eup %8068  ;;  %v5900_v59 = vpop.xlane.xlu1 %5899 }
0x1356   :  { %v5971_v14 = vmul.f32 %v8069_v20, %v11177_v21  ;;  %8082 = vrsqrt.f32 %v5944_v57  ;;  %v5947_v12 = vadd.f32 1e-05, %v5931_v38  ;;  %v5930_v39 = vmul.f32 0.125, %v5900_v59 }
0x1357   :  { %v8071_v45 = vpop.eup %8070  ;;  %v5909_v60 = vpop.xlane.xlu0 %5908 }
0x1358   :  { %8084 = vrsqrt.f32 %v5947_v12  ;;  %v5946_v7 = vadd.f32 1e-05, %v5930_v39  ;;  %v5933_v41 = vmul.f32 0.125, %v5909_v60  ;;  %v5991_v17 = vmul.f32 %v11286_v1, %v5971_v14 }
0x1359   :  { %v8073_v54 = vpop.eup %8072  ;;  %v5906_v13 = vpop.xlane.xlu1 %5905  ;;  %v5970_v55 = vmul.f32 %v8071_v45, %v11180_v15 }
0x135a   :  { %v5973_v21 = vmul.f32 %v8073_v54, %v11185_v4  ;;  %8086 = vrsqrt.f32 %v5946_v7  ;;  %v5949_v10 = vadd.f32 1e-05, %v5933_v41  ;;  %v5932_v31 = vmul.f32 0.125, %v5906_v13 }
0x135b   :  { %v8075_v0 = vpop.eup %8074  ;;  %v5915_v16 = vpop.xlane.xlu0 %5914  ;;  %v5990_v11 = vmul.f32 %v11286_v1, %v5970_v55  ;;  %v6011_v36 = vadd.f32 %v11292_v37, %v5991_v17 }
0x135c   :  { %8088 = vrsqrt.f32 %v5949_v10  ;;  %v5935_v35 = vmul.f32 0.125, %v5915_v16  ;;  %v5972_v58 = vmul.f32 %v8075_v0, %v11191_v27  ;;  %v5948_v48 = vadd.f32 1e-05, %v5932_v31 }
0x135d   :  { %v8077_v44 = vpop.eup %8076  ;;  %v5912_v57 = vpop.xlane.xlu1 %5911  ;;  %v6010_v15 = vadd.f32 %v11292_v37, %v5990_v11  ;;  %v5993_v4 = vmul.f32 %v11286_v1, %v5973_v21 }
0x135e   :  { %v5975_v38 = vmul.f32 %v8077_v44, %v11197_v33  ;;  %v5951_v20 = vadd.f32 1e-05, %v5935_v35  ;;  %v5934_v29 = vmul.f32 0.125, %v5912_v57  ;;  %v5992_v59 = vmul.f32 %v11286_v1, %v5972_v58 }
0x135f   :  { %v8079_v14 = vpop.eup %8078  ;;  %8090 = vrsqrt.f32 %v5948_v48  ;;  %7536 = vmatprep.mubr.msk.f32.mxu0 %vm175_vm4, %v6010_v15  ;;  %v5921_v27 = vpop.xlane.xlu0 %5920  ;;  %v6013_v33 = vadd.f32 %v11292_v37, %v5993_v4 }
0x1360   :  { %8092 = vrsqrt.f32 %v5951_v20  ;;  %v5950_v12 = vadd.f32 1e-05, %v5934_v29  ;;  %v5937_v39 = vmul.f32 0.125, %v5921_v27  ;;  %7537 = vmatmul.mubr.msk.f32.vlgmr.msra.gmra.mxu0 %vm175_vm4, %v6011_v36  ;;  %v6012_v45 = vadd.f32 %v11292_v37, %v5992_v59 }
0x1361   :  { %v8081_v60 = vpop.eup %8080  ;;  %v5918_v7 = vpop.xlane.xlu1 %5917  ;;  %v5974_v41 = vmul.f32 %v8079_v14, %v11203_v26  ;;  %v5995_v54 = vmul.f32 %v11286_v1, %v5975_v38  ;;  %7561 = vmatpush3.msra.mxu0 %v11278_v50 }
0x1362   :  { %v5977_v56 = vmul.f32 %v8081_v60, %v11209_v51  ;;  %8094 = vrsqrt.f32 %v5950_v12  ;;  %v5953_v17 = vadd.f32 1e-05, %v5937_v39  ;;  %v5936_v13 = vmul.f32 0.125, %v5918_v7  ;;  %7539 = vmatprep.mubr.msk.f32.mxu0 %vm175_vm4, %v6012_v45 }
0x1363   :  { %v8083_v55 = vpop.eup %8082  ;;  %v5994_v21 = vmul.f32 %v11286_v1, %v5974_v41  ;;  %v6015_v50 = vadd.f32 %v11292_v37, %v5995_v54 }
0x1364   :  { %8096 = vrsqrt.f32 %v5953_v17  ;;  %v5952_v10 = vadd.f32 1e-05, %v5936_v13  ;;  %7540 = vmatmul.mubr.msk.f32.gmra.mxu0 %vm175_vm4, %v6013_v33  ;;  %v5976_v26 = vmul.f32 %v8083_v55, %v11215_v5  ;;  %v5997_v11 = vmul.f32 %v11286_v1, %v5977_v56 }
0x1365   :  { %v8085_v0 = vpop.eup %8084  ;;  %v6014_v31 = vadd.f32 %v11292_v37, %v5994_v21  ;;  %v11736_v13 = vsub.s32 4, %v11716_v19 }
0x1366   :  { %v5979_v51 = vmul.f32 %v8085_v0, %v11221_v61  ;;  %8098 = vrsqrt.f32 %v5952_v10  ;;  %v5996_v16 = vmul.f32 %v11286_v1, %v5976_v26  ;;  %v6017_v61 = vadd.f32 %v11292_v37, %v5997_v11 }
0x1367   :  { %v8087_v35 = vpop.eup %8086  ;;  %7542 = vmatprep.mubr.msk.f32.mxu0 %vm175_vm4, %v6014_v31  ;;  %v6029_v55 = vrot.slane %v11084_v6, %v11736_v13 }
0x1368   :  { %7543 = vmatmul.mubr.msk.f32.gmra.mxu0 %vm175_vm4, %v6015_v50  ;;  %v6016_v58 = vadd.f32 %v11292_v37, %v5996_v16  ;;  %v5978_v5 = vmul.f32 %v8087_v35, %v11227_v25  ;;  %v5999_v57 = vmul.f32 %v11286_v1, %v5979_v51 }
0x1369   :  { %v8089_v44 = vpop.eup %8088 }
0x136a   :  { %v5981_v36 = vmul.f32 %v8089_v44, %v11233_v24  ;;  %7545 = vmatprep.mubr.msk.f32.mxu0 %vm175_vm4, %v6016_v58  ;;  %v5998_v48 = vmul.f32 %v11286_v1, %v5978_v5  ;;  %v6019_v24 = vadd.f32 %v11292_v37, %v5999_v57 }
0x136c   :  { %v8091_v15 = vpop.eup %8090  ;;  %7546 = vmatmul.mubr.msk.f32.gmra.mxu0 %vm175_vm4, %v6017_v61  ;;  %v6018_v4 = vadd.f32 %v11292_v37, %v5998_v48  ;;  %v6001_v29 = vmul.f32 %v11286_v1, %v5981_v36 }
0x136d   :  { %v8093_v38 = vpop.eup %8092  ;;  %v5980_v20 = vmul.f32 %v8091_v15, %v11239_v18 }
0x136e   :  { %v5983_v25 = vmul.f32 %v8093_v38, %v11245_v62  ;;  %7548 = vmatprep.mubr.msk.f32.mxu0 %vm175_vm4, %v6018_v4  ;;  %v6021_v62 = vadd.f32 %v11292_v37, %v6001_v29 }
0x136f   :  { %v8095_v59 = vpop.eup %8094  ;;  %v6000_v14 = vmul.f32 %v11286_v1, %v5980_v20 }
0x1370   :  { %7549 = vmatmul.mubr.msk.f32.gmra.mxu0 %vm175_vm4, %v6019_v24  ;;  %v5982_v27 = vmul.f32 %v8095_v59, %v11251_v28  ;;  %v6003_v60 = vmul.f32 %v11286_v1, %v5983_v25 }
0x1371   :  { %v8097_v12 = vpop.eup %8096  ;;  %v6020_v39 = vadd.f32 %v11292_v37, %v6000_v14 }
0x1372   :  { %v5985_v18 = vmul.f32 %v8097_v12, %v11257_v34  ;;  %v6002_v45 = vmul.f32 %v11286_v1, %v5982_v27  ;;  %v6023_v41 = vadd.f32 %v11292_v37, %v6003_v60 }
0x1373   :  { %v8099_v7 = vpop.eup %8098  ;;  %7551 = vmatprep.mubr.msk.f32.mxu0 %vm175_vm4, %v6020_v39 }
0x1374   :  { %7552 = vmatmul.mubr.msk.f32.gmra.mxu0 %vm175_vm4, %v6021_v62  ;;  %v6022_v33 = vadd.f32 %v11292_v37, %v6002_v45  ;;  %v5984_v28 = vmul.f32 %v8099_v7, %v11263_v47  ;;  %v6005_v54 = vmul.f32 %v11286_v1, %v5985_v18  ;;  %v6748_v47 = vld [vmem:[%s11414_s6 + $0x30] sm:$0xff]  ;;  %v11737_v7 = vsub.s32 5, %v11716_v19 }
0x1375   :  { %7562 = vmatprep.subr.mxu0 %v6748_v47  ;;  %7593 = vmatprep.subr.mxu1 %v6748_v47 }
0x1376   :  { %7554 = vmatprep.mubr.msk.f32.mxu0 %vm175_vm4, %v6022_v33  ;;  %v6004_v34 = vmul.f32 %v11286_v1, %v5984_v28  ;;  %v6025_v17 = vadd.f32 %v11292_v37, %v6005_v54  ;;  %7563 = vmatpush3.msra.mxu0 %v6748_v47  ;;  %v6747_v1 = vld [vmem:[%s11414_s6 + $0x28] sm:$0xff]  ;;  %v6226_v33 = vrot.slane %v11084_v6, %v11737_v7 }
0x1377   :  { %7597 = vmatpush3.msra.mxu1 %v6748_v47  ;;  %7564 = vmatprep.subr.mxu0 %v6747_v1 }
0x1378   :  { %7555 = vmatmul.mubr.msk.f32.gmra.mxu0 %vm175_vm4, %v6023_v41  ;;  %v6024_v56 = vadd.f32 %v11292_v37, %v6004_v34  ;;  %7594 = vmatprep.subr.mxu1 %v6747_v1  ;;  %v6746_v37 = vld [vmem:[%s11414_s6 + $0x20] sm:$0xff]  ;;  %s8178_s6 = smov [#allocation7]  }
0x1379   :  { %7565 = vmatpush3.msra.mxu0 %v6747_v1  ;;  %7598 = vmatpush3.msra.mxu1 %v6747_v1  ;;  %s6475_s29 = sshll.u32 %s8178_s6, 4  ;;  %s6476_s29 = int_to_ptr.vmem [resolvable:$true] %s6475_s29 }
0x137a   :  { %7557 = vmatprep.mubr.msk.f32.mxu0 %vm175_vm4, %v6024_v56  ;;  %7566 = vmatprep.subr.mxu0 %v6746_v37  ;;  %s8143_s30 = scalar_lea.vmem %s6476_s29, 128  ;;  %p8148_p11 = scmp.lt.s32.totalorder %s6476_s29, %s6476_s29 }
0x137b   :  { %7595 = vmatprep.subr.mxu1 %v6746_v37  ;;  %7567 = vmatpush3.msra.mxu0 %v6746_v37  ;;  %p8144_p10 = scmp.ne.s32.totalorder %s6476_s29, %s8143_s30  ;;  %p8149_p12 = scmp.lt.s32.totalorder %s8143_s30, %s8143_s30 }
0x137c   :  { %7558 = vmatmul.mubr.msk.f32.gmra.mxu0 %vm175_vm4, %v6025_v17  ;;  %7599 = vmatpush3.msra.mxu1 %v6746_v37 }
0x137d   :  { %p8150_p13 = por %p8149_p12, %p8148_p11 }
0x137f   :  { %p8151_p0 = pnand %p8150_p13, %p8144_p10 }
0x1420   :  { %v7538_v21 = vpop.f32.mrf.mxu0 }
0x1421   :  { %v6150_v0 = vadd.f32 %v7538_v21, %v6029_v55 }
0x1422   :  { %v6144_v10 = vpop.f32.mrf.mxu0 }
0x1423   :  { %v6145_v26 = vadd.f32 %v6144_v10, %v6029_v55 }
0x1424   :  { %v7541_v31 = vpop.f32.mrf.mxu0 }
0x1425   :  { %7568 = vmatprep.mubr.msk.f32.mxu0 %vm2942_vm5, %v6145_v26  ;;  %v6160_v16 = vadd.f32 %v7541_v31, %v6029_v55 }
0x1426   :  { %v6154_v50 = vpop.f32.mrf.mxu0  ;;  %7569 = vmatmul.mubr.msk.f32.vlgmr.msra.gmra.mxu0 %vm2942_vm5, %v6150_v0 }
0x1427   :  { %v6155_v51 = vadd.f32 %v6154_v50, %v6029_v55 }
0x1428   :  { %v7544_v11 = vpop.f32.mrf.mxu0 }
0x1429   :  { %7571 = vmatprep.mubr.msk.f32.mxu0 %vm2942_vm5, %v6155_v51  ;;  %v6170_v5 = vadd.f32 %v7544_v11, %v6029_v55 }
0x142a   :  { %v6164_v35 = vpop.f32.mrf.mxu0  ;;  %7572 = vmatmul.mubr.msk.f32.gmra.mxu0 %vm2942_vm5, %v6160_v16 }
0x142b   :  { %v6165_v58 = vadd.f32 %v6164_v35, %v6029_v55 }
0x142c   :  { %v7547_v44 = vpop.f32.mrf.mxu0 }
0x142d   :  { %7574 = vmatprep.mubr.msk.f32.mxu0 %vm2942_vm5, %v6165_v58  ;;  %v6180_v48 = vadd.f32 %v7547_v44, %v6029_v55 }
0x142e   :  { %v6174_v36 = vpop.f32.mrf.mxu0  ;;  %7575 = vmatmul.mubr.msk.f32.gmra.mxu0 %vm2942_vm5, %v6170_v5 }
0x142f   :  { %v6175_v61 = vadd.f32 %v6174_v36, %v6029_v55 }
0x1430   :  { %v7550_v57 = vpop.f32.mrf.mxu0 }
0x1431   :  { %7577 = vmatprep.mubr.msk.f32.mxu1 %vm2942_vm5, %v6175_v61  ;;  %v6190_v38 = vadd.f32 %v7550_v57, %v6029_v55 }
0x1432   :  { %v6184_v15 = vpop.f32.mrf.mxu0  ;;  %7578 = vmatmul.mubr.msk.f32.vlgmr.msra.gmra.mxu1 %vm2942_vm5, %v6180_v48 }
0x1433   :  { %v6185_v4 = vadd.f32 %v6184_v15, %v6029_v55 }
0x1434   :  { %v7553_v20 = vpop.f32.mrf.mxu0 }
0x1435   :  { %7580 = vmatprep.mubr.msk.f32.mxu1 %vm2942_vm5, %v6185_v4  ;;  %v6200_v29 = vadd.f32 %v7553_v20, %v6029_v55 }
0x1436   :  { %v6194_v25 = vpop.f32.mrf.mxu0  ;;  %7581 = vmatmul.mubr.msk.f32.gmra.mxu1 %vm2942_vm5, %v6190_v38 }
0x1437   :  { %v6195_v24 = vadd.f32 %v6194_v25, %v6029_v55 }
0x1438   :  { %v7556_v59 = vpop.f32.mrf.mxu0 }
0x1439   :  { %7583 = vmatprep.mubr.msk.f32.mxu1 %vm2942_vm5, %v6195_v24  ;;  %v6210_v12 = vadd.f32 %v7556_v59, %v6029_v55 }
0x143a   :  { %v6204_v14 = vpop.f32.mrf.mxu0  ;;  %7584 = vmatmul.mubr.msk.f32.gmra.mxu1 %vm2942_vm5, %v6200_v29 }
0x143b   :  { %v6205_v27 = vadd.f32 %v6204_v14, %v6029_v55 }
0x143c   :  { %v7559_v39 = vpop.f32.mrf.mxu0 }
0x143d   :  { %7586 = vmatprep.mubr.msk.f32.mxu1 %vm2942_vm5, %v6205_v27  ;;  %v6220_v45 = vadd.f32 %v7559_v39, %v6029_v55 }
0x143e   :  { %v6214_v18 = vpop.f32.mrf.mxu0  ;;  %7587 = vmatmul.mubr.msk.f32.gmra.mxu1 %vm2942_vm5, %v6210_v12 }
0x143f   :  { %v6215_v62 = vadd.f32 %v6214_v18, %v6029_v55 }
0x1441   :  { %7589 = vmatprep.mubr.msk.f32.mxu1 %vm2942_vm5, %v6215_v62 }
0x1442   :  { %7590 = vmatmul.mubr.msk.f32.gmra.mxu1 %vm2942_vm5, %v6220_v45 }
0x14e6   :  { %v7570_v60 = vpop.f32.mrf.mxu0 }
0x14e7   :  { %v6347_v54 = vadd.f32 %v7570_v60, %v6226_v33 }
0x14e8   :  { %v6341_v28 = vpop.f32.mrf.mxu0 }
0x14e9   :  { %v6342_v41 = vadd.f32 %v6341_v28, %v6226_v33  ;;  %v6421_v47 = vadd.f32 %v6347_v54, %v11097_v49 }
0x14ea   :  { %v7573_v34 = vpop.f32.mrf.mxu0 }
0x14eb   :  { %v6420_v56 = vadd.f32 %v6342_v41, %v11100_v42  ;;  %v6357_v13 = vadd.f32 %v7573_v34, %v6226_v33 }
0x14ec   :  { %v6351_v17 = vpop.f32.mrf.mxu0 }
0x14ed   :  { %6436 = vxpose.xlu1.b32.start [1/16] (narrow) %v6420_v56, 8  ;;  %v6352_v1 = vadd.f32 %v6351_v17, %v6226_v33  ;;  %v6423_v6 = vadd.f32 %v6357_v13, %v11105_v53 }
0x14ee   :  { %v7576_v37 = vpop.f32.mrf.mxu0 }
0x14ef   :  { %v6422_v55 = vadd.f32 %v6352_v1, %v11110_v9  ;;  %v6367_v26 = vadd.f32 %v7576_v37, %v6226_v33 }
0x14f0   :  { %v6361_v21 = vpop.f32.mrf.mxu0 }
0x14f1   :  { %6437 = vxpose.xlu1.b32.cont [2/16] (narrow) %v6421_v47, 8  ;;  %v6362_v19 = vadd.f32 %v6361_v21, %v6226_v33  ;;  %v6425_v49 = vadd.f32 %v6367_v26, %v11115_v23 }
0x14f2   :  { %v7579_v10 = vpop.f32.mrf.mxu1 }
0x14f3   :  { %v6424_v42 = vadd.f32 %v6362_v19, %v11120_v63  ;;  %v6377_v51 = vadd.f32 %v7579_v10, %v6226_v33 }
0x14f4   :  { %v6371_v0 = vpop.f32.mrf.mxu1 }
0x14f5   :  { %6438 = vxpose.xlu1.b32.cont [3/16] (narrow) %v6422_v55, 8  ;;  %v6372_v31 = vadd.f32 %v6371_v0, %v6226_v33  ;;  %v6427_v53 = vadd.f32 %v6377_v51, %v11125_v43 }
0x14f6   :  { %v7582_v50 = vpop.f32.mrf.mxu1 }
0x14f7   :  { %v6426_v9 = vadd.f32 %v6372_v31, %v11130_v3  ;;  %v6387_v58 = vadd.f32 %v7582_v50, %v6226_v33 }
0x14f8   :  { %v6381_v16 = vpop.f32.mrf.mxu1 }
0x14f9   :  { %6439 = vxpose.xlu1.b32.cont [4/16] (narrow) %v6423_v6, 8  ;;  %v6382_v11 = vadd.f32 %v6381_v16, %v6226_v33  ;;  %v6429_v23 = vadd.f32 %v6387_v58, %v11135_v2 }
0x14fa   :  { %v7585_v35 = vpop.f32.mrf.mxu1 }
0x14fb   :  { %v6428_v63 = vadd.f32 %v6382_v11, %v11140_v22  ;;  %v6397_v61 = vadd.f32 %v7585_v35, %v6226_v33 }
0x14fc   :  { %v6391_v5 = vpop.f32.mrf.mxu1 }
0x14fd   :  { %6440 = vxpose.xlu1.b32.cont [5/16] (narrow) %v6424_v42, 8  ;;  %v6392_v44 = vadd.f32 %v6391_v5, %v6226_v33  ;;  %v6431_v43 = vadd.f32 %v6397_v61, %v11145_v32 }
0x14fe   :  { %v7588_v36 = vpop.f32.mrf.mxu1 }
0x14ff   :  { %v6430_v3 = vadd.f32 %v6392_v44, %v11150_v46  ;;  %v6407_v4 = vadd.f32 %v7588_v36, %v6226_v33 }
0x1500   :  { %v6401_v48 = vpop.f32.mrf.mxu1 }
0x1501   :  { %6441 = vxpose.xlu1.b32.cont [6/16] (narrow) %v6425_v49, 8  ;;  %v6402_v57 = vadd.f32 %v6401_v48, %v6226_v33  ;;  %v6433_v2 = vadd.f32 %v6407_v4, %v11155_v40 }
0x1502   :  { %v7591_v15 = vpop.f32.mrf.mxu1 }
0x1503   :  { %v6432_v22 = vadd.f32 %v6402_v57, %v11160_v52  ;;  %v6417_v25 = vadd.f32 %v7591_v15, %v6226_v33 }
0x1504   :  { %v6411_v38 = vpop.f32.mrf.mxu1 }
0x1505   :  { %6442 = vxpose.xlu1.b32.cont [7/16] (narrow) %v6426_v9, 8  ;;  %v6412_v20 = vadd.f32 %v6411_v38, %v6226_v33  ;;  %v6435_v46 = vadd.f32 %v6417_v25, %v11165_v8 }
0x1507   :  { %v6434_v24 = vadd.f32 %v6412_v20, %v11170_v30 }
0x1509   :  { %6443 = vxpose.xlu1.b32.cont [8/16] (narrow) %v6427_v53, 8 }
0x150d   :  { %6444 = vxpose.xlu1.b32.cont [9/16] (narrow) %v6428_v63, 8 }
0x1511   :  { %6445 = vxpose.xlu1.b32.cont [10/16] (narrow) %v6429_v23, 8 }
0x1515   :  { %6446 = vxpose.xlu1.b32.cont [11/16] (narrow) %v6430_v3, 8 }
0x1519   :  { %6447 = vxpose.xlu1.b32.cont [12/16] (narrow) %v6431_v43, 8 }
0x151d   :  { %6448 = vxpose.xlu1.b32.cont [13/16] (narrow) %v6432_v22, 8 }
0x1521   :  { %6449 = vxpose.xlu1.b32.cont [14/16] (narrow) %v6433_v2, 8 }
0x1525   :  { %6450 = vxpose.xlu1.b32.cont [15/16] (narrow) %v6434_v24, 8 }
0x1529   :  { %6451 = vxpose.xlu1.b32.end [16/16] (narrow) %v6435_v46, 8 }
0x1569   :  { %v6452_v32 = vpop.trf.xlu1 }
0x156a   :  { %6468 = vst [vmem:[#allocation7] sm:$0xff] %v6452_v32 }
0x156b   :  { %8154 = shalt.err (!%p8151_p0)
}
0x156c   :  { %6478 = dma.vmem_to_hbm [thread:$0]  %s6476_s29, 128, %s11416_s8, [#allocation4]  }
0x156d   :  { %8167 = dma.done.wait [#allocation4], 128  }
0x156e   :  { %8168 = vsyncadd [#allocation4], 4294967168 }
0x156f   :  { %6482 = vsyncpa [#allocation3], 1 }
0x1570   :  { %6483 = vsyncpa [#allocation6], 1 }
0x1571   :  { %6484 = vsyncpa [#allocation4], 1 }

</bundles_post_ra>
